<compile_context>
chip_gen: v6e
topology: v6e:2x2x1
jax: 0.10.0
libtpu: 0.0.40
codegen_flags: <defaults>
</compile_context>

<pallas_src>
import functools

import jax
import jax.numpy as jnp
from jax.experimental import pallas as pl
from jax.experimental.pallas import tpu as pltpu


def _fused_mlp_kernel(x_ref, w1_ref, b1_ref, w2_ref, o_ref):
    """One N tile: h_j = sigmoid(x @ W1_j + b1_j); partial_j = h_j @ W2_j."""
    z1 = jnp.dot(x_ref[...], w1_ref[...], preferred_element_type=jnp.float32)
    h = jax.nn.sigmoid(z1 + b1_ref[...])                       # (B, tn) f32
    # Partial fc2 contribution from this hidden slice (bias added outside).
    o_ref[...] = jnp.dot(h.astype(w2_ref.dtype), w2_ref[...],
                         preferred_element_type=jnp.float32)   # (B, 128) f32


def fused_mlp(x, w1t, b1p, w2t):
    """Returns per-tile fc2 partial sums, shape (nt, B, 128) float32.

    x   : (B, K)         bf16 activations (K = 3072)
    w1t : (nt, K, tn)    bf16 fc1 weight tiles (contiguous per tile)
    b1p : (1, nt*tn)     f32 fc1 bias (padded)
    w2t : (nt, tn, N2)   bf16 fc2 weight tiles (N2 = 128, padded)
    """
    B, K = x.shape
    nt, Kw, tn = w1t.shape
    nt2, tn2, N2 = w2t.shape
    assert K == Kw and nt == nt2 and tn == tn2
    assert b1p.shape == (1, nt * tn)
    assert tn % 128 == 0 and N2 % 128 == 0

    # Double-buffered weight tiles + small act/bias/output buffers, plus
    # margin for Mosaic internal scratch; cap at 48 MiB (v7x physical = 64 MiB).
    need = (2 * (K * tn + tn * N2) * w1t.dtype.itemsize
            + 2 * (B * K * x.dtype.itemsize + tn * 4 + B * N2 * 4))
    vmem_limit = min(need + (8 << 20), 48 << 20)

    return pl.pallas_call(
        _fused_mlp_kernel,
        out_shape=jax.ShapeDtypeStruct((nt, B, N2), jnp.float32),
        grid_spec=pltpu.PrefetchScalarGridSpec(
            num_scalar_prefetch=0,
            grid=(nt,),
            in_specs=[
                # Activations: constant block index -> Pallas skips re-DMA.
                pl.BlockSpec((B, K), lambda j: (0, 0)),
                # fc1 weight tile j: contiguous (K, tn) slab.
                pl.BlockSpec((None, K, tn), lambda j: (j, 0, 0)),
                # fc1 bias tile j.
                pl.BlockSpec((1, tn), lambda j: (0, j)),
                # fc2 weight tile j: contiguous (tn, 128) slab.
                pl.BlockSpec((None, tn, N2), lambda j: (j, 0, 0)),
            ],
            # Each grid step owns its own partial-output block -> "parallel" OK.
            out_specs=pl.BlockSpec((None, B, N2), lambda j: (j, 0, 0)),
        ),
        compiler_params=pltpu.CompilerParams(
            dimension_semantics=("parallel",),
            vmem_limit_bytes=vmem_limit,
        ),
    )(x, w1t, b1p, w2t)


def _round_up(n, m):
    return (n + m - 1) // m * m


def pick_tile_n():
    """Layer-1 N tile, chosen once per process for the local TPU generation."""
    kind = jax.devices()[0].device_kind.lower()
    if "v7" in kind:
        return 768    # 4 even "parallel" tiles -> 2 per TensorCore (64 MiB VMEM/TC)
    return 1536       # v5e / v6e: 1 TC, 128 MiB VMEM -> fewer, larger DMAs


def init_params(key):
    """Deterministic PyTorch-style init: U(-1/sqrt(fan_in), 1/sqrt(fan_in))."""
    k1, k2, k3, k4 = jax.random.split(key, 4)
    in1, out1 = 32 * 32 * 3, 3000
    in2, out2 = 3000, 10

    bound1 = 1.0 / jnp.sqrt(in1)
    w1 = jax.random.uniform(k1, (in1, out1), jnp.float32, -bound1, bound1)
    b1 = jax.random.uniform(k2, (out1,), jnp.float32, -bound1, bound1)

    bound2 = 1.0 / jnp.sqrt(in2)
    w2 = jax.random.uniform(k3, (in2, out2), jnp.float32, -bound2, bound2)
    b2 = jax.random.uniform(k4, (out2,), jnp.float32, -bound2, bound2)
    return w1, b1, w2, b2


def prepare_params(w1, b1, w2, b2, *, tn):
    """One-time pad + bf16 cast + tile-major re-layout (outside the jit)."""
    in1, out1 = w1.shape
    in2, out2 = w2.shape
    out1_p = _round_up(out1, 128)   # 3000 -> 3072
    out2_p = _round_up(out2, 128)   # 10   -> 128
    assert out1_p % tn == 0
    nt = out1_p // tn

    w1p = jnp.zeros((in1, out1_p), jnp.float32).at[:, :out1].set(w1)
    # (K, N) -> contiguous per-tile layout (nt, K, tn), stored as bf16.
    w1t = w1p.reshape(in1, nt, tn).transpose(1, 0, 2).astype(jnp.bfloat16)

    b1p = jnp.zeros((1, out1_p), jnp.float32).at[:, :out1].set(b1)

    w2p = jnp.zeros((out1_p, out2_p), jnp.float32).at[:in2, :out2].set(w2)
    # (N_hidden, 128) -> (nt, tn, 128) tiles, bf16.  Padded rows are zero, so
    # the padded hidden columns (sigmoid(0)=0.5) contribute nothing.
    w2t = w2p.reshape(nt, tn, out2_p).astype(jnp.bfloat16)

    b2p = jnp.zeros((1, out2_p), jnp.float32).at[:, :out2].set(b2)

    return (jax.device_put(w1t), jax.device_put(b1p),
            jax.device_put(w2t), jax.device_put(b2p), out2)


@functools.partial(jax.jit, static_argnames=("num_classes",))
def forward(x, w1t, b1p, w2t, b2p, *, num_classes=10):
    B = x.shape[0]
    xf = x.reshape(B, -1).astype(jnp.bfloat16)   # same row-major flatten as torch .view
    partials = fused_mlp(xf, w1t, b1p, w2t)      # (nt, B, 128) f32
    # Tiny finalize (sum of nt partials + bias + sigmoid) handed to XLA.
    out = jax.nn.sigmoid(jnp.sum(partials, axis=0) + b2p)
    return out[:, :num_classes]


if __name__ == "__main__":
    key = jax.random.PRNGKey(0)
    kx, kp = jax.random.split(key)

    # Module's fc1 expects 32*32*3 inputs -> x is (B, 3, 32, 32) NCHW.
    x = jax.random.normal(kx, (2, 3, 32, 32), jnp.float32)
    w1, b1, w2, b2 = init_params(kp)

    tn = pick_tile_n()
    w1t, b1p, w2t, b2p, num_classes = prepare_params(w1, b1, w2, b2, tn=tn)

    out = forward(x, w1t, b1p, w2t, b2p, num_classes=num_classes)
    jax.block_until_ready(out)

    # Sanity check against plain-JAX f32 reference (bf16 weights -> loosened tol).
    ref = jax.nn.sigmoid(
        jax.nn.sigmoid(x.reshape(2, -1) @ w1 + b1) @ w2 + b2
    )
    assert out.shape == (2, 10)
    assert jnp.allclose(out, ref, atol=2e-2, rtol=2e-2), (
        float(jnp.max(jnp.abs(out - ref))))

    print("KERNEL_OK")
</pallas_src>

<mosaic_0001>
module attributes {stable_mosaic.version = 11 : i64} {
  func.func @_fused_mlp_kernel(%arg0: i32, %arg1: memref<2x3072xbf16, #tpu.memory_space<vmem>>, %arg2: memref<1x3072x1536xbf16, #tpu.memory_space<vmem>>, %arg3: memref<1x1536xf32, #tpu.memory_space<vmem>>, %arg4: memref<1x1536x128xbf16, #tpu.memory_space<vmem>>, %arg5: memref<1x2x128xf32, #tpu.memory_space<vmem>>) attributes {dimension_semantics = [#tpu.dimension_semantics<parallel>], iteration_bounds = array<i64: 2>, scalar_prefetch = 0 : i64, scratch_operands = 0 : i64, tpu.core_type = #tpu.core_type<tc>, window_params = [{pipeline_mode = #tpu.pipeline_mode<synchronous>, transform_indices = @transform_0, window_bounds = array<i64: 2, 3072>}, {transform_indices = @transform_1, window_bounds = array<i64: 1, 3072, 1536>}, {transform_indices = @transform_2, window_bounds = array<i64: 1, 1536>}, {transform_indices = @transform_3, window_bounds = array<i64: 1, 1536, 128>}, {transform_indices = @transform_4, window_bounds = array<i64: 1, 2, 128>}]} {
    %c0 = arith.constant 0 : index
    %c0_0 = arith.constant 0 : index
    %0 = vector.load %arg1[%c0, %c0_0] : memref<2x3072xbf16, #tpu.memory_space<vmem>>, vector<2x3072xbf16>
    %c0_1 = arith.constant 0 : index
    %c0_2 = arith.constant 0 : index
    %c0_3 = arith.constant 0 : index
    %1 = vector.load %arg2[%c0_1, %c0_2, %c0_3] : memref<1x3072x1536xbf16, #tpu.memory_space<vmem>>, vector<1x3072x1536xbf16>
    %2 = vector.shape_cast %1 : vector<1x3072x1536xbf16> to vector<3072x1536xbf16>
    %cst = arith.constant dense<0.000000e+00> : vector<2x1536xf32>
    %3 = tpu.matmul %0, %2, %cst {dimension_numbers = #tpu.dot_dimension_numbers<[1], [0], [0], [1], [0, 0, 1, 1], [], []>} : vector<2x3072xbf16>, vector<3072x1536xbf16>, vector<2x1536xf32> -> vector<2x1536xf32>
    %c0_4 = arith.constant 0 : index
    %c0_5 = arith.constant 0 : index
    %4 = vector.load %arg3[%c0_4, %c0_5] : memref<1x1536xf32, #tpu.memory_space<vmem>>, vector<1x1536xf32>
    %5 = vector.broadcast %4 : vector<1x1536xf32> to vector<2x1536xf32>
    %6 = arith.addf %3, %5 : vector<2x1536xf32>
    %7 = arith.negf %6 : vector<2x1536xf32>
    %8 = math.exp %7 : vector<2x1536xf32>
    %cst_6 = arith.constant 1.000000e+00 : f32
    %9 = vector.broadcast %cst_6 : f32 to vector<2x1536xf32>
    %10 = arith.addf %9, %8 : vector<2x1536xf32>
    %11 = arith.divf %9, %10 : vector<2x1536xf32>
    %12 = arith.truncf %11 : vector<2x1536xf32> to vector<2x1536xbf16>
    %c0_7 = arith.constant 0 : index
    %c0_8 = arith.constant 0 : index
    %c0_9 = arith.constant 0 : index
    %13 = vector.load %arg4[%c0_7, %c0_8, %c0_9] : memref<1x1536x128xbf16, #tpu.memory_space<vmem>>, vector<1x1536x128xbf16>
    %14 = vector.shape_cast %13 : vector<1x1536x128xbf16> to vector<1536x128xbf16>
    %cst_10 = arith.constant dense<0.000000e+00> : vector<2x128xf32>
    %15 = tpu.matmul %12, %14, %cst_10 {dimension_numbers = #tpu.dot_dimension_numbers<[1], [0], [0], [1], [0, 0, 1, 1], [], []>} : vector<2x1536xbf16>, vector<1536x128xbf16>, vector<2x128xf32> -> vector<2x128xf32>
    %c0_11 = arith.constant 0 : index
    %c0_12 = arith.constant 0 : index
    %c0_13 = arith.constant 0 : index
    %16 = vector.load %arg5[%c0_11, %c0_12, %c0_13] : memref<1x2x128xf32, #tpu.memory_space<vmem>>, vector<1x2x128xf32>
    %17 = vector.shape_cast %16 : vector<1x2x128xf32> to vector<2x128xf32>
    %18 = vector.shape_cast %15 : vector<2x128xf32> to vector<1x2x128xf32>
    tpu.vector_store %arg5[%c0_11, %c0_12, %c0_13], %18 {strides = array<i32>} : memref<1x2x128xf32, #tpu.memory_space<vmem>>, vector<1x2x128xf32>,
    return
  }
  func.func @transform_0(%arg0: i32) -> (i32, i32) {
    %c0_i32 = arith.constant 0 : i32
    %c0_i32_0 = arith.constant 0 : i32
    %c0_i32_1 = arith.constant 0 : i32
    return %c0_i32, %c0_i32_0 : i32, i32
  }
  func.func @transform_1(%arg0: i32) -> (i32, i32, i32) {
    %c0_i32 = arith.constant 0 : i32
    %c0_i32_0 = arith.constant 0 : i32
    %c0_i32_1 = arith.constant 0 : i32
    return %arg0, %c0_i32, %c0_i32_0 : i32, i32, i32
  }
  func.func @transform_2(%arg0: i32) -> (i32, i32) {
    %c0_i32 = arith.constant 0 : i32
    %c0_i32_0 = arith.constant 0 : i32
    return %c0_i32, %arg0 : i32, i32
  }
  func.func @transform_3(%arg0: i32) -> (i32, i32, i32) {
    %c0_i32 = arith.constant 0 : i32
    %c0_i32_0 = arith.constant 0 : i32
    %c0_i32_1 = arith.constant 0 : i32
    return %arg0, %c0_i32, %c0_i32_0 : i32, i32, i32
  }
  func.func @transform_4(%arg0: i32) -> (i32, i32, i32) {
    %c0_i32 = arith.constant 0 : i32
    %c0_i32_0 = arith.constant 0 : i32
    %c0_i32_1 = arith.constant 0 : i32
    return %arg0, %c0_i32, %c0_i32_0 : i32, i32, i32
  }
}

</mosaic_0001>

<bundles_post_ra>
// kernel: forward.1
= control target key start
LH: loop header
LB: loop body
LE: loop exit
PB: predicated region body
PF: predicated region fallthrough
CT: control target
= control target key end

     0   :  { %9 = vsyncpa [#allocation3], 0  ;;  %s28006_s0 = inlined_call_operand.vmem [shape: bf16[2,3072], index: 0, kind: input, shape index: {}]   ;;  %s28007_s1 = inlined_call_operand.hbm [shape: bf16[2,3072,1536], index: 1, kind: input, shape index: {}]   ;;  %s28008_s2 = inlined_call_operand.hbm [shape: f32[1,3072], index: 2, kind: input, shape index: {}]   ;;  %s28009_s3 = inlined_call_operand.hbm [shape: bf16[2,1536,128], index: 3, kind: input, shape index: {}]   ;;  %s28010_s4 = inlined_call_operand.vmem [shape: f32[2,2,128], index: 4, kind: output, shape index: {}]  }
   0x1   :  { %11 = vsyncpa [#allocation3 + $0x1], 0 }
   0x2   :  { %12 = vsyncpa [#allocation5], 0 }
   0x3   :  { %14 = vsyncpa [#allocation5 + $0x1], 0  ;;  %s24892_s15 = smov 0   ;;  %s24894_s16 = smov 0  }
   0x4   :  { %s24896_s17 = smov 0   ;;  %s24898_s18 = smov 0  }
   0x5 LB: > { %s24911_s19 = sadd.s32 4294967295, %s24857_s18   ;;  %s24914_s20 = sadd.s32 1, %s24857_s18   ;;  %s24857_s18 = sphi %s24898_s18, %s28022_s18   ;;  %s24853_s17 = sphi %s24896_s17, %s28021_s17   ;;  %s24849_s16 = sphi %s24894_s16, %s28020_s16   ;;  %s24845_s15 = sphi %s24892_s15, %s28019_s15  }
   0x6   : > { %s45_s21 = ssub.s32 %s24857_s18, %s24914_s20  ;;  %s48_s22 = sadd.s32 1, %s24853_s17 }
   0x7   : > { %p46_p0 = scmp.eq.s32.totalorder %s45_s21, 0  ;;  %p55_p1 = scmp.ne.s32.totalorder %s24853_s17, %s24849_s16 }
   0x8   : > { %p56_p2 = scmp.eq.s32.totalorder %s24857_s18, 0  ;;  %p61_p3 = scmp.ne.s32.totalorder %s24849_s16, %s24845_s15 }
   0x9   : > { %s24924_s23 = scalar_select %p46_p0, %s24853_s17, %s48_s22  }
   0xa   : > { %p57_p4 = por %p56_p2, %p55_p1  ;;  %p62_p5 = scmp.eq.s32.totalorder %s24911_s19, 0 }
   0xb   : > { %p21090_p6 = scmp.lt.s32.totalorder %s24857_s18, 2  ;;  %s24933_s25 = sand.u32 1, %s24853_s17  }
   0xc   : > { %p24928_p7 = por %p62_p5, %p61_p3  ;;  %s187_s27 = sand.u32 1, %s24857_s18  }
   0xd   : > { %p24935_p8 = pnand %p21090_p6, %p57_p4  ;;  %s21068_s28 = smul.u32 12, %s24933_s25 }
   0xe   : > { %s28012_s24 = scalar_select %p24928_p7, 1, 0 }
   0xf   : > { %s20933_s29 = smul.u32 192, %s24857_s18  ;;  %s191_s8 = scalar_lea.vmem [#allocation4], %s21068_s28 }
  0x10   : > { %s21069_s30 = smul.u32 768, %s24933_s25  ;;  %s199_s9 = sshll.u32 %s191_s8, 4  ;;  %s200_s9 = int_to_ptr.vmem [resolvable:$true] %s199_s9 }
  0x11   : > { %s24946_s7 = scalar_lea.hbm %s28008_s2, %s20933_s29  ;;  %s24949_s10 = scalar_lea.sflag [#allocation5], %s187_s27 }
  0x12   : > { %s24735_s11 = scalar_lea.hbm %s24946_s7, 192  ;;  %p24955_p11 = pneg %p24935_p8 }
  0x13   : > { %p24736_p10 = scmp.ne.s32.totalorder %s24946_s7, %s24735_s11  ;;  %s24740_s15 = scalar_lea.hbm %s28008_s2, 384 }
  0x14   : > { %p24741_p0 = scmp.lt.s32.totalorder %s24946_s7, %s28008_s2  ;;  %p24742_p1 = scmp.lt.s32.totalorder %s24740_s15, %s24735_s11 }
  0x15   : > { %p24738_p12 = pnand %p24955_p11, %p24736_p10 }
  0x16   : > { %p24743_p2 = por %p24742_p1, %p24741_p0 }
  0x17   : > { %p24739_p13 = pneg %p24738_p12 }
  0x19   : > { %p24744_p3 = pnand %p24743_p2, %p24739_p13 }
  0x1b   : > { %24747 = shalt.err (!%p24744_p3)
}
  0x1c   : > { %s24748_s27 = scalar_lea.vmem %s200_s9, 192  ;;  %s24859_s28 = smov [#allocation4]  }
  0x1d   : > { %p24749_p4 = scmp.ne.s32.totalorder %s200_s9, %s24748_s27  ;;  %s24753_s29 = sshll.u32 %s24859_s28, 4  ;;  %s24754_s29 = int_to_ptr.vmem [resolvable:$false] %s24753_s29 }
  0x1e   : > { %s24755_s5 = scalar_lea.vmem %s24754_s29, 384  ;;  %p24756_p10 = scmp.lt.s32.totalorder %s200_s9, %s24754_s29 }
  0x1f   : > { %p24751_p5 = pnand %p24749_p4, %p24955_p11  ;;  %p24757_p12 = scmp.lt.s32.totalorder %s24755_s5, %s24748_s27 }
  0x21   : > { %p24752_p6 = pneg %p24751_p5  ;;  %p24758_p9 = por %p24757_p12, %p24756_p10 }
  0x23   : > { %p24759_p7 = pnand %p24758_p9, %p24752_p6 }
  0x25   : > { %24762 = shalt.err (!%p24759_p7)
}
  0x26   : > { %21086 = dma.hbm_to_vmem [thread:$0]  (!%p24935_p8), %s24946_s7, 192, %s200_s9, %s24949_s10  }
  0x27   : > { %p225_p13 = scmp.lt.s32.totalorder %s24857_s18, 3  ;;  %s21066_s6 = smul.u32 18432, %s24933_s25 }
  0x28   : > { %p28015_p0 = scmp.ge.s32.totalorder %s24857_s18, 1  ;;  %s21067_s11 = smul.u32 294912, %s24857_s18 }
  0x29   : > { %s170_s21 = scalar_lea.vmem [#allocation2], %s21066_s6  ;;  %s167_s7 = scalar_lea.sflag [#allocation3], %s24933_s25 }
  0x2a   : > { %p24978_p1 = pnand %p28015_p0, %p225_p13  ;;  %s24986_s15 = scalar_lea.hbm %s28007_s1, %s21067_s11 }
  0x2b   : > { %s177_s22 = sshll.u32 %s170_s21, 4  ;;  %s24763_s9 = scalar_lea.hbm %s24986_s15, 294912  ;;  %s24988_s22 = int_to_ptr.vmem [resolvable:$true] %s177_s22 }
  0x2c   : > { %s28016_s8 = scalar_select %p24978_p1, 1, 0 }
  0x2d   : > { %p24764_p7 = scmp.ne.s32.totalorder %s24986_s15, %s24763_s9  ;;  %s24768_s29 = scalar_lea.hbm %s28007_s1, 589824 }
  0x2e   : > { %p24769_p3 = scmp.lt.s32.totalorder %s24986_s15, %s28007_s1  ;;  %p24770_p4 = scmp.lt.s32.totalorder %s24768_s29, %s24763_s9 }
  0x2f   : > { %p24766_p9 = pnand %p24764_p7, %p24955_p11 }
  0x30   : > { %p24771_p5 = por %p24770_p4, %p24769_p3 }
  0x31   : > { %p24767_p2 = pneg %p24766_p9 }
  0x33   : > { %p24772_p6 = pnand %p24771_p5, %p24767_p2 }
  0x35   : > { %24775 = shalt.err (!%p24772_p6)
}
  0x36   : > { %s24776_s6 = scalar_lea.vmem %s24988_s22, 294912  ;;  %s24860_s13 = smov [#allocation2]  }
  0x37   : > { %p24777_p10 = scmp.ne.s32.totalorder %s24988_s22, %s24776_s6  ;;  %s24781_s14 = sshll.u32 %s24860_s13, 4  ;;  %s24782_s14 = int_to_ptr.vmem [resolvable:$false] %s24781_s14 }
  0x38   : > { %s24783_s21 = scalar_lea.vmem %s24782_s14, 589824  ;;  %p24784_p0 = scmp.lt.s32.totalorder %s24988_s22, %s24782_s14 }
  0x39   : > { %p24779_p12 = pnand %p24777_p10, %p24955_p11  ;;  %p24785_p7 = scmp.lt.s32.totalorder %s24783_s21, %s24776_s6 }
  0x3b   : > { %p24780_p13 = pneg %p24779_p12  ;;  %p24786_p9 = por %p24785_p7, %p24784_p0 }
  0x3d   : > { %p24787_p1 = pnand %p24786_p9, %p24780_p13 }
  0x3f   : > { %24790 = shalt.err (!%p24787_p1)
}
  0x40   : > { %s24861_s9 = smov 768   ;;  %s24862_s27 = smov 48  }
  0x41   : > { %21083 = dma.hbm_to_vmem [thread:$0]  (!%p24935_p8), %s24986_s15, 294912, %s24988_s22, %s167_s7, %s24861_s9, %s24861_s9, %s24862_s27  }
  0x42   : > { %s21070_s28 = smul.u32 12288, %s24857_s18  ;;  %s210_s29 = scalar_lea.vmem [#allocation6], %s21069_s30 }
  0x43   : > { %s217_s5 = sshll.u32 %s210_s29, 4  ;;  %s24796_s25 = scalar_lea.hbm %s28009_s3, 24576  ;;  %s25016_s5 = int_to_ptr.vmem [resolvable:$true] %s217_s5 }
  0x44   : > { %s25021_s13 = scalar_lea.hbm %s28009_s3, %s21070_s28 }
  0x45   : > { %s24791_s14 = scalar_lea.hbm %s25021_s13, 12288  ;;  %p24797_p4 = scmp.lt.s32.totalorder %s25021_s13, %s28009_s3 }
  0x46   : > { %p24792_p1 = scmp.ne.s32.totalorder %s25021_s13, %s24791_s14  ;;  %p24798_p5 = scmp.lt.s32.totalorder %s24796_s25, %s24791_s14 }
  0x48   : > { %p24794_p2 = pnand %p24792_p1, %p24955_p11  ;;  %p24799_p6 = por %p24798_p5, %p24797_p4 }
  0x4a   : > { %p24795_p3 = pneg %p24794_p2 }
  0x4c   : > { %p24800_p10 = pnand %p24799_p6, %p24795_p3 }
  0x4e   : > { %24803 = shalt.err (!%p24800_p10)
}
  0x4f   : > { %s24804_s7 = scalar_lea.vmem %s25016_s5, 12288  ;;  %s24863_s21 = smov [#allocation6]  }
  0x50   : > { %p24805_p12 = scmp.ne.s32.totalorder %s25016_s5, %s24804_s7  ;;  %s24809_s9 = sshll.u32 %s24863_s21, 4  ;;  %s24810_s9 = int_to_ptr.vmem [resolvable:$false] %s24809_s9 }
  0x51   : > { %s24811_s27 = scalar_lea.vmem %s24810_s9, 24576  ;;  %p24812_p7 = scmp.lt.s32.totalorder %s25016_s5, %s24810_s9 }
  0x52   : > { %p24807_p13 = pnand %p24805_p12, %p24955_p11  ;;  %p24813_p9 = scmp.lt.s32.totalorder %s24811_s27, %s24804_s7 }
  0x54   : > { %p24808_p0 = pneg %p24807_p13  ;;  %p24814_p1 = por %p24813_p9, %p24812_p7 }
  0x56   : > { %p24815_p2 = pnand %p24814_p1, %p24808_p0 }
  0x58   : > { %24818 = shalt.err (!%p24815_p2)
}
  0x59   : > { %s24864_s28 = smov 64   ;;  %s24865_s29 = smov 4  }
  0x5a   : > { %21089 = dma.hbm_to_vmem [thread:$0]  (!%p24935_p8), %s25021_s13, 12288, %s25016_s5, %s24949_s10, %s24864_s28, %s24864_s28, %s24865_s29  }
  0x5b   : > { %p28017_p11 = scmp.ne.s32.totalorder %s28016_s8, 0 }
  0x5c   : > { %s25047_s12 = sand.u32 (!%p28017_p11), 1, %s24849_s16   ;;  %p28018_p3 = scmp.ne.s32.totalorder (!%p28017_p11), %s28012_s24, 0 }
  0x5d   : > { %229 = sbr.rel (%p28017_p11) target bundleno = 2842 (0xb1a), region = 36  ;;  %s232_s6 = scalar_lea.sflag (!%p28017_p11), [#allocation3], %s25047_s12 }
  0x5e   : > { %s21071_s11 = smul.u32 (!%p28017_p11), 18432, %s25047_s12 }
  0x60   : > { %s25051_s14 = scalar_lea.vmem (!%p28017_p11), [#allocation2], %s21071_s11 }
  0x62   : > { %24836 = dma.done.wait (%p28018_p3), %s232_s6, 294912  }
  0x63   : > { %24838 = vsyncadd (%p28018_p3), %s232_s6, 4294672384  ;;  %s240_s26 = sand.u32 1, %s24911_s19   ;;  %s21072_s10 = smul.u32 12, %s25047_s12 }
  0x64   : > { %s241_s8 = scalar_lea.sflag [#allocation5], %s240_s26 }
  0x65   : > { %s25059_s5 = scalar_lea.vmem [#allocation4], %s21072_s10 }
  0x66   : > { %24840 = dma.done.wait (%p28018_p3), %s241_s8, 12480  }
  0x67   : > { %24842 = vsyncadd (%p28018_p3), %s241_s8, 4294954816  ;;  %v21128_v0 = vld [vmem:[%s25051_s14 + $0x2a4] ss:$48 sps:$4 sm:$0xff]   ;;  %v21132_v2 = vld [vmem:[%s25051_s14 + $0x2a0] ss:$48 sps:$4 sm:$0xff]   ;;  %v2604_v36 = vlaneseq  ;;  %s21073_s22 = smul.u32 768, %s25047_s12 }
  0x68   : > { %v21130_v1 = vld [vmem:[%s25051_s14 + $0x8a4] ss:$48 sps:$4 sm:$0xff]   ;;  %14358 = vmatprep.subr.bf16.mxu0 %v21128_v0  ;;  %v21133_v3 = vld [vmem:[%s25051_s14 + $0x8a0] ss:$48 sps:$4 sm:$0xff]   ;;  %v24866_v37 = vmov 1966171168  }
  0x69   : > { %14399 = vmatprep.subr.bf16.mxu1 %v21130_v1  ;;  %v21134_v4 = vld [vmem:[%s25051_s14 + $0x244] ss:$48 sps:$4 sm:$0xff]   ;;  %14359 = vmatpush1.bf16.msra.mxu0 %v21132_v2  ;;  %v21138_v6 = vld [vmem:[%s25051_s14 + $0x240] ss:$48 sps:$4 sm:$0xff]   ;;  %v2669_v38 = vunpack.c.l.s4 %v24866_v37  ;;  %v25104_v42 = vshrl.u32 %v2604_v36, 7  ;;  %s27719_s7 = scalar_lea.vmem [#allocation6], %s21073_s22 }
  0x6a   : > { %14400 = vmatpush1.bf16.msra.mxu1 %v21133_v3  ;;  %v21136_v5 = vld [vmem:[%s25051_s14 + $0x844] ss:$48 sps:$4 sm:$0xff]   ;;  %14360 = vmatprep.subr.bf16.mxu0 %v21134_v4  ;;  %v21139_v7 = vld [vmem:[%s25051_s14 + $0x840] ss:$48 sps:$4 sm:$0xff]   ;;  %p288_p8 = scmp.lt.s32.totalorder %s24911_s19, 1 }
  0x6b   : > { %14401 = vmatprep.subr.bf16.mxu1 %v21136_v5  ;;  %v21140_v8 = vld [vmem:[%s25051_s14 + $0x1e4] ss:$48 sps:$4 sm:$0xff]   ;;  %v21144_v10 = vld [vmem:[%s25051_s14 + $0x1e0] ss:$48 sps:$4 sm:$0xff]   ;;  %v2670_v43 = vunpack.c.0.s8 %v2669_v38 }
  0x6c   : > { %v21142_v9 = vld [vmem:[%s25051_s14 + $0x7e4] ss:$48 sps:$4 sm:$0xff]   ;;  %v21145_v11 = vld [vmem:[%s25051_s14 + $0x7e0] ss:$48 sps:$4 sm:$0xff]   ;;  %s28024_s19 = smov (!%p288_p8, %s24911_s19), 1 }
  0x6d   : > { %14361 = vmatpush1.bf16.msra.mxu0 %v21138_v6  ;;  %v21146_v12 = vld [vmem:[%s25051_s14 + $0x184] ss:$48 sps:$4 sm:$0xff]   ;;  %v21150_v14 = vld [vmem:[%s25051_s14 + $0x180] ss:$48 sps:$4 sm:$0xff]   ;;  %v25112_v49 = vsub.s32 %v2670_v43, %v25104_v42  ;;  %s18518_s21 = sshll.u32 %s28024_s19, 1 }
  0x6e   : > { %14402 = vmatpush1.bf16.msra.mxu1 %v21139_v7  ;;  %14362 = vmatprep.subr.bf16.mxu0 %v21140_v8  ;;  %v21148_v13 = vld [vmem:[%s25051_s14 + $0x784] ss:$48 sps:$4 sm:$0xff]   ;;  %v21151_v15 = vld [vmem:[%s25051_s14 + $0x780] ss:$48 sps:$4 sm:$0xff]   ;;  %s291_s28 = scalar_lea.vmem %s28010_s4, %s18518_s21 }
  0x6f   : > { %14403 = vmatprep.subr.bf16.mxu1 %v21142_v9  ;;  %v21152_v16 = vld [vmem:[%s25051_s14 + $0x124] ss:$48 sps:$4 sm:$0xff]   ;;  %v21156_v18 = vld [vmem:[%s25051_s14 + $0x120] ss:$48 sps:$4 sm:$0xff]  }
  0x70   : > { %v21154_v17 = vld [vmem:[%s25051_s14 + $0x724] ss:$48 sps:$4 sm:$0xff]   ;;  %v21157_v19 = vld [vmem:[%s25051_s14 + $0x720] ss:$48 sps:$4 sm:$0xff]  }
  0x71   : > { %14363 = vmatpush1.bf16.msra.mxu0 %v21144_v10  ;;  %v21158_v20 = vld [vmem:[%s25051_s14 + $0xc4] ss:$48 sps:$4 sm:$0xff]   ;;  %v21162_v22 = vld [vmem:[%s25051_s14 + $0xc0] ss:$48 sps:$4 sm:$0xff]  }
  0x72   : > { %14404 = vmatpush1.bf16.msra.mxu1 %v21145_v11  ;;  %14364 = vmatprep.subr.bf16.mxu0 %v21146_v12  ;;  %v21160_v21 = vld [vmem:[%s25051_s14 + $0x6c4] ss:$48 sps:$4 sm:$0xff]   ;;  %v21163_v23 = vld [vmem:[%s25051_s14 + $0x6c0] ss:$48 sps:$4 sm:$0xff]  }
  0x73   : > { %14405 = vmatprep.subr.bf16.mxu1 %v21148_v13  ;;  %v21164_v24 = vld [vmem:[%s25051_s14 + $0x64] ss:$48 sps:$4 sm:$0xff]   ;;  %v21168_v26 = vld [vmem:[%s25051_s14 + $0x60] ss:$48 sps:$4 sm:$0xff]  }
  0x74   : > { %v21166_v25 = vld [vmem:[%s25051_s14 + $0x664] ss:$48 sps:$4 sm:$0xff]   ;;  %v21169_v27 = vld [vmem:[%s25051_s14 + $0x660] ss:$48 sps:$4 sm:$0xff]  }
  0x75   : > { %14365 = vmatpush1.bf16.msra.mxu0 %v21150_v14  ;;  %v21170_v28 = vld [vmem:[%s25051_s14 + $0x4] ss:$48 sps:$4 sm:$0xff]   ;;  %v21174_v30 = vld [vmem:[%s25051_s14] ss:$48 sps:$4 sm:$0xff]  }
  0x76   : > { %14406 = vmatpush1.bf16.msra.mxu1 %v21151_v15  ;;  %14366 = vmatprep.subr.bf16.mxu0 %v21152_v16  ;;  %v21172_v29 = vld [vmem:[%s25051_s14 + $0x604] ss:$48 sps:$4 sm:$0xff]   ;;  %v21175_v31 = vld [vmem:[%s25051_s14 + $0x600] ss:$48 sps:$4 sm:$0xff]  }
  0x77   : > { %14407 = vmatprep.subr.bf16.mxu1 %v21154_v17  ;;  %v21176_v32 = vld [vmem:[%s25051_s14 + $0x5a4] ss:$48 sps:$4 sm:$0xff]   ;;  %v21180_v34 = vld [vmem:[%s25051_s14 + $0x5a0] ss:$48 sps:$4 sm:$0xff]  }
  0x78   : > { %v21178_v33 = vld [vmem:[%s25051_s14 + $0xba4] ss:$48 sps:$4 sm:$0xff]   ;;  %v21181_v35 = vld [vmem:[%s25051_s14 + $0xba0] ss:$48 sps:$4 sm:$0xff]  }
  0x79   : > { %14367 = vmatpush1.bf16.msra.mxu0 %v21156_v18  ;;  %v21182_v39 = vld [vmem:[%s25051_s14 + $0x544] ss:$48 sps:$4 sm:$0xff]   ;;  %v21186_v41 = vld [vmem:[%s25051_s14 + $0x540] ss:$48 sps:$4 sm:$0xff]  }
  0x7a   : > { %14408 = vmatpush1.bf16.msra.mxu1 %v21157_v19  ;;  %14368 = vmatprep.subr.bf16.mxu0 %v21158_v20  ;;  %v21184_v40 = vld [vmem:[%s25051_s14 + $0xb44] ss:$48 sps:$4 sm:$0xff]   ;;  %v21187_v44 = vld [vmem:[%s25051_s14 + $0xb40] ss:$48 sps:$4 sm:$0xff]  }
  0x7b   : > { %14409 = vmatprep.subr.bf16.mxu1 %v21160_v21  ;;  %v21188_v45 = vld [vmem:[%s25051_s14 + $0x4e4] ss:$48 sps:$4 sm:$0xff]   ;;  %v21192_v47 = vld [vmem:[%s25051_s14 + $0x4e0] ss:$48 sps:$4 sm:$0xff]  }
  0x7c   : > { %v21190_v46 = vld [vmem:[%s25051_s14 + $0xae4] ss:$48 sps:$4 sm:$0xff]   ;;  %v21193_v48 = vld [vmem:[%s25051_s14 + $0xae0] ss:$48 sps:$4 sm:$0xff]  }
  0x7d   : > { %14369 = vmatpush1.bf16.msra.mxu0 %v21162_v22  ;;  %v21194_v50 = vld [vmem:[%s25051_s14 + $0x484] ss:$48 sps:$4 sm:$0xff]   ;;  %v21198_v53 = vld [vmem:[%s25051_s14 + $0x480] ss:$48 sps:$4 sm:$0xff]  }
  0x7e   : > { %14410 = vmatpush1.bf16.msra.mxu1 %v21163_v23  ;;  %14370 = vmatprep.subr.bf16.mxu0 %v21164_v24  ;;  %v21196_v51 = vld [vmem:[%s25051_s14 + $0xa84] ss:$48 sps:$4 sm:$0xff]   ;;  %v21199_v55 = vld [vmem:[%s25051_s14 + $0xa80] ss:$48 sps:$4 sm:$0xff]  }
  0x7f   : > { %14411 = vmatprep.subr.bf16.mxu1 %v21166_v25  ;;  %v293_v52 = vld [vmem:[%s28006_s0] sm:$0xff] }
  0x80   : > { %v2674_v54 = vrot.slane %v293_v52, %v25112_v49  ;;  %v21200_v56 = vld [vmem:[%s25051_s14 + $0x424] ss:$48 sps:$4 sm:$0xff]   ;;  %v21204_v59 = vld [vmem:[%s25051_s14 + $0x420] ss:$48 sps:$4 sm:$0xff]   ;;  %v2667_v1 = vcombine.high %v293_v52, %v293_v52 }
  0x81   : > { %14371 = vmatpush1.bf16.msra.mxu0 %v21168_v26  ;;  %v21202_v57 = vld [vmem:[%s25051_s14 + $0xa24] ss:$48 sps:$4 sm:$0xff]   ;;  %v21205_v61 = vld [vmem:[%s25051_s14 + $0xa20] ss:$48 sps:$4 sm:$0xff]  }
  0x82   : > { %14412 = vmatpush1.bf16.msra.mxu1 %v21169_v27  ;;  %14372 = vmatprep.subr.bf16.mxu0 %v21170_v28  ;;  %v2682_v58 = vcombine.high %v2674_v54, %v2674_v54  ;;  %v21206_v62 = vld [vmem:[%s25051_s14 + $0x3c4] ss:$48 sps:$4 sm:$0xff]   ;;  %v21210_v2 = vld [vmem:[%s25051_s14 + $0x3c0] ss:$48 sps:$4 sm:$0xff]   ;;  %v25142_v6 = vrot.slane %v2667_v1, %v25112_v49  ;;  %v25152_v13 = vrot.slane %v2674_v54, %v25112_v49 }
  0x83   : > { %14413 = vmatprep.subr.bf16.mxu1 %v21172_v29  ;;  %v21208_v63 = vld [vmem:[%s25051_s14 + $0x9c4] ss:$48 sps:$4 sm:$0xff]   ;;  %v21211_v3 = vld [vmem:[%s25051_s14 + $0x9c0] ss:$48 sps:$4 sm:$0xff]  }
  0x84   : > { %v25126_v60 = vrot.slane %v2682_v58, %v25112_v49  ;;  %v21212_v4 = vld [vmem:[%s25051_s14 + $0x364] ss:$48 sps:$4 sm:$0xff]   ;;  %v21216_v7 = vld [vmem:[%s25051_s14 + $0x360] ss:$48 sps:$4 sm:$0xff]   ;;  %v2683_v11 = vcombine.high %v25142_v6, %v25142_v6  ;;  %v25162_v18 = vcombine.high %v25152_v13, %v25152_v13 }
  0x85   : > { %14373 = vmatpush1.bf16.msra.mxu0 %v21174_v30  ;;  %v21214_v5 = vld [vmem:[%s25051_s14 + $0x964] ss:$48 sps:$4 sm:$0xff]   ;;  %v21217_v8 = vld [vmem:[%s25051_s14 + $0x960] ss:$48 sps:$4 sm:$0xff]  }
  0x86   : > { %14414 = vmatpush1.bf16.msra.mxu1 %v21175_v31  ;;  %14374 = vmatprep.subr.bf16.mxu0 %v21176_v32  ;;  %v25133_v0 = vcombine.high %v25126_v60, %v25126_v60  ;;  %v21218_v9 = vld [vmem:[%s25051_s14 + $0x304] ss:$48 sps:$4 sm:$0xff]   ;;  %v21222_v12 = vld [vmem:[%s25051_s14 + $0x300] ss:$48 sps:$4 sm:$0xff]   ;;  %v25158_v17 = vrot.slane %v2683_v11, %v25112_v49 }
  0x87   : > { %14415 = vmatprep.subr.bf16.mxu1 %v21178_v33  ;;  %14390 = vmatprep.mubr.bf16.mxu0 %v25126_v60  ;;  %v21220_v10 = vld [vmem:[%s25051_s14 + $0x904] ss:$48 sps:$4 sm:$0xff]   ;;  %v21223_v14 = vld [vmem:[%s25051_s14 + $0x900] ss:$48 sps:$4 sm:$0xff]  }
  0x88   : > { %14431 = vmatprep.mubr.bf16.mxu1 %v25133_v0  ;;  %v21226_v15 = vld [vmem:[%s25051_s14 + $0xea4] ss:$48 sps:$4 sm:$0xff]   ;;  %v21224_v19 = vld [vmem:[%s25051_s14 + $0xea0] ss:$48 sps:$4 sm:$0xff]   ;;  %v25170_v23 = vcombine.high %v25158_v17, %v25158_v17 }
  0x89   : > { %14375 = vmatpush2.bf16.msra.mxu0 %v21180_v34  ;;  %v21229_v16 = vld [vmem:[%s25051_s14 + $0x14a4] ss:$48 sps:$4 sm:$0xff]   ;;  %v21227_v20 = vld [vmem:[%s25051_s14 + $0x14a0] ss:$48 sps:$4 sm:$0xff]  }
  0x8a   : > { %14416 = vmatpush2.bf16.msra.mxu1 %v21181_v35  ;;  %14376 = vmatprep.subr.bf16.mxu0 %v21182_v39  ;;  %v21232_v21 = vld [vmem:[%s25051_s14 + $0xe44] ss:$48 sps:$4 sm:$0xff]   ;;  %v21230_v24 = vld [vmem:[%s25051_s14 + $0xe40] ss:$48 sps:$4 sm:$0xff]  }
  0x8b   : > { %14417 = vmatprep.subr.bf16.mxu1 %v21184_v40  ;;  %v21235_v22 = vld [vmem:[%s25051_s14 + $0x1444] ss:$48 sps:$4 sm:$0xff]   ;;  %v21233_v25 = vld [vmem:[%s25051_s14 + $0x1440] ss:$48 sps:$4 sm:$0xff]  }
  0x8c   : > { %v21238_v26 = vld [vmem:[%s25051_s14 + $0xde4] ss:$48 sps:$4 sm:$0xff]   ;;  %v21236_v28 = vld [vmem:[%s25051_s14 + $0xde0] ss:$48 sps:$4 sm:$0xff]  }
  0x8d   : > { %14377 = vmatpush2.bf16.msra.mxu0 %v21186_v41  ;;  %v21241_v27 = vld [vmem:[%s25051_s14 + $0x13e4] ss:$48 sps:$4 sm:$0xff]   ;;  %v21239_v29 = vld [vmem:[%s25051_s14 + $0x13e0] ss:$48 sps:$4 sm:$0xff]  }
  0x8e   : > { %14418 = vmatpush2.bf16.msra.mxu1 %v21187_v44  ;;  %14378 = vmatprep.subr.bf16.mxu0 %v21188_v45  ;;  %v21244_v30 = vld [vmem:[%s25051_s14 + $0xd84] ss:$48 sps:$4 sm:$0xff]   ;;  %v21242_v32 = vld [vmem:[%s25051_s14 + $0xd80] ss:$48 sps:$4 sm:$0xff]  }
  0x8f   : > { %14419 = vmatprep.subr.bf16.mxu1 %v21190_v46  ;;  %v21247_v31 = vld [vmem:[%s25051_s14 + $0x1384] ss:$48 sps:$4 sm:$0xff]   ;;  %v21245_v33 = vld [vmem:[%s25051_s14 + $0x1380] ss:$48 sps:$4 sm:$0xff]  }
  0x90   : > { %v21250_v34 = vld [vmem:[%s25051_s14 + $0xd24] ss:$48 sps:$4 sm:$0xff]   ;;  %v21248_v36 = vld [vmem:[%s25051_s14 + $0xd20] ss:$48 sps:$4 sm:$0xff]  }
  0x91   : > { %14379 = vmatpush2.bf16.msra.mxu0 %v21192_v47  ;;  %v21253_v35 = vld [vmem:[%s25051_s14 + $0x1324] ss:$48 sps:$4 sm:$0xff]   ;;  %v21251_v37 = vld [vmem:[%s25051_s14 + $0x1320] ss:$48 sps:$4 sm:$0xff]  }
  0x92   : > { %14420 = vmatpush2.bf16.msra.mxu1 %v21193_v48  ;;  %14380 = vmatprep.subr.bf16.mxu0 %v21194_v50  ;;  %v21256_v38 = vld [vmem:[%s25051_s14 + $0xcc4] ss:$48 sps:$4 sm:$0xff]   ;;  %v21254_v40 = vld [vmem:[%s25051_s14 + $0xcc0] ss:$48 sps:$4 sm:$0xff]  }
  0x93   : > { %14421 = vmatprep.subr.bf16.mxu1 %v21196_v51  ;;  %v21259_v39 = vld [vmem:[%s25051_s14 + $0x12c4] ss:$48 sps:$4 sm:$0xff]   ;;  %v21257_v41 = vld [vmem:[%s25051_s14 + $0x12c0] ss:$48 sps:$4 sm:$0xff]  }
  0x94   : > { %v21262_v43 = vld [vmem:[%s25051_s14 + $0xc64] ss:$48 sps:$4 sm:$0xff]   ;;  %v21260_v45 = vld [vmem:[%s25051_s14 + $0xc60] ss:$48 sps:$4 sm:$0xff]  }
  0x95   : > { %14381 = vmatpush2.bf16.msra.mxu0 %v21198_v53  ;;  %v21265_v44 = vld [vmem:[%s25051_s14 + $0x1264] ss:$48 sps:$4 sm:$0xff]   ;;  %v21263_v46 = vld [vmem:[%s25051_s14 + $0x1260] ss:$48 sps:$4 sm:$0xff]  }
  0x96   : > { %14422 = vmatpush2.bf16.msra.mxu1 %v21199_v55  ;;  %14382 = vmatprep.subr.bf16.mxu0 %v21200_v56  ;;  %v21268_v47 = vld [vmem:[%s25051_s14 + $0xc04] ss:$48 sps:$4 sm:$0xff]   ;;  %v21266_v50 = vld [vmem:[%s25051_s14 + $0xc00] ss:$48 sps:$4 sm:$0xff]  }
  0x97   : > { %14423 = vmatprep.subr.bf16.mxu1 %v21202_v57  ;;  %v21271_v48 = vld [vmem:[%s25051_s14 + $0x1204] ss:$48 sps:$4 sm:$0xff]   ;;  %v21269_v51 = vld [vmem:[%s25051_s14 + $0x1200] ss:$48 sps:$4 sm:$0xff]  }
  0x98   : > { %v21274_v52 = vld [vmem:[%s25051_s14 + $0x11a4] ss:$48 sps:$4 sm:$0xff]   ;;  %v21272_v54 = vld [vmem:[%s25051_s14 + $0x11a0] ss:$48 sps:$4 sm:$0xff]  }
  0x99   : > { %14383 = vmatpush2.bf16.msra.mxu0 %v21204_v59  ;;  %v21277_v53 = vld [vmem:[%s25051_s14 + $0x17a4] ss:$48 sps:$4 sm:$0xff]   ;;  %v21275_v55 = vld [vmem:[%s25051_s14 + $0x17a0] ss:$48 sps:$4 sm:$0xff]  }
  0x9a   : > { %14424 = vmatpush2.bf16.msra.mxu1 %v21205_v61  ;;  %14384 = vmatprep.subr.bf16.mxu0 %v21206_v62  ;;  %v21280_v56 = vld [vmem:[%s25051_s14 + $0x1144] ss:$48 sps:$4 sm:$0xff]   ;;  %v21278_v58 = vld [vmem:[%s25051_s14 + $0x1140] ss:$48 sps:$4 sm:$0xff]  }
  0x9b   : > { %14425 = vmatprep.subr.bf16.mxu1 %v21208_v63  ;;  %v21283_v57 = vld [vmem:[%s25051_s14 + $0x1744] ss:$48 sps:$4 sm:$0xff]   ;;  %v21281_v59 = vld [vmem:[%s25051_s14 + $0x1740] ss:$48 sps:$4 sm:$0xff]  }
  0x9c   : > { %v21286_v61 = vld [vmem:[%s25051_s14 + $0x10e4] ss:$48 sps:$4 sm:$0xff]   ;;  %v21284_v63 = vld [vmem:[%s25051_s14 + $0x10e0] ss:$48 sps:$4 sm:$0xff]  }
  0x9d   : > { %14385 = vmatpush2.bf16.msra.mxu0 %v21210_v2  ;;  %v21289_v62 = vld [vmem:[%s25051_s14 + $0x16e4] ss:$48 sps:$4 sm:$0xff]   ;;  %v21287_v1 = vld [vmem:[%s25051_s14 + $0x16e0] ss:$48 sps:$4 sm:$0xff]  }
  0x9e   : > { %14426 = vmatpush2.bf16.msra.mxu1 %v21211_v3  ;;  %14386 = vmatprep.subr.bf16.mxu0 %v21212_v4  ;;  %v21292_v2 = vld [vmem:[%s25051_s14 + $0x1084] ss:$48 sps:$4 sm:$0xff]   ;;  %v21290_v4 = vld [vmem:[%s25051_s14 + $0x1080] ss:$48 sps:$4 sm:$0xff]  }
  0x9f   : > { %14427 = vmatprep.subr.bf16.mxu1 %v21214_v5  ;;  %v21295_v3 = vld [vmem:[%s25051_s14 + $0x1684] ss:$48 sps:$4 sm:$0xff]   ;;  %v21293_v5 = vld [vmem:[%s25051_s14 + $0x1680] ss:$48 sps:$4 sm:$0xff]  }
  0xa0   : > { %v21304_v11 = vld [vmem:[%s25051_s14 + $0xfc4] ss:$48 sps:$4 sm:$0xff]  }
  0xa1   : > { %14387 = vmatpush2.bf16.msra.mxu0 %v21216_v7  ;;  %v21298_v7 = vld [vmem:[%s25051_s14 + $0x1024] ss:$48 sps:$4 sm:$0xff]  }
  0xa2   : > { %14428 = vmatpush2.bf16.msra.mxu1 %v21217_v8  ;;  %14388 = vmatprep.subr.bf16.mxu0 %v21218_v9  ;;  %v21301_v8 = vld [vmem:[%s25051_s14 + $0x1624] ss:$48 sps:$4 sm:$0xff]   ;;  %v21296_v9 = vld [vmem:[%s25051_s14 + $0x1020] ss:$48 sps:$4 sm:$0xff]  }
  0xa3   : > { %14429 = vmatprep.subr.bf16.mxu1 %v21220_v10  ;;  %v21299_v10 = vld [vmem:[%s25051_s14 + $0x1620] ss:$48 sps:$4 sm:$0xff]  }
  0xa5   : > { %14389 = vmatpush2.bf16.msra.mxu0 %v21222_v12  ;;  %v21307_v12 = vld [vmem:[%s25051_s14 + $0x15c4] ss:$48 sps:$4 sm:$0xff]  }
  0xa6   : > { %14430 = vmatpush2.bf16.msra.mxu1 %v21223_v14  ;;  %14440 = vmatprep.subr.bf16.mxu0 %v21226_v15  ;;  %v21302_v14 = vld [vmem:[%s25051_s14 + $0xfc0] ss:$48 sps:$4 sm:$0xff]  }
  0xa7   : > { %14481 = vmatprep.subr.bf16.mxu1 %v21229_v16  ;;  %v21305_v15 = vld [vmem:[%s25051_s14 + $0x15c0] ss:$48 sps:$4 sm:$0xff]   ;;  %v21310_v16 = vld [vmem:[%s25051_s14 + $0xf64] ss:$48 sps:$4 sm:$0xff]  }
  0xa8   : > { %14391 = vmatmul.mubr.bf16.vlgmr.msra.gmra.mxu0 %v25152_v13 }
  0xa9   : > { %14432 = vmatmul.mubr.bf16.vlgmr.msra.gmra.mxu1 %v25162_v18  ;;  %14441 = vmatpush1.bf16.msra.mxu0 %v21224_v19  ;;  %v21313_v19 = vld [vmem:[%s25051_s14 + $0x1564] ss:$48 sps:$4 sm:$0xff]  }
  0xaa   : > { %14482 = vmatpush1.bf16.msra.mxu1 %v21227_v20  ;;  %14442 = vmatprep.subr.bf16.mxu0 %v21232_v21  ;;  %v21308_v20 = vld [vmem:[%s25051_s14 + $0xf60] ss:$48 sps:$4 sm:$0xff]  }
  0xab   : > { %14483 = vmatprep.subr.bf16.mxu1 %v21235_v22  ;;  %14472 = vmatprep.mubr.bf16.mxu0 %v25158_v17  ;;  %v21311_v21 = vld [vmem:[%s25051_s14 + $0x1560] ss:$48 sps:$4 sm:$0xff]   ;;  %v21316_v22 = vld [vmem:[%s25051_s14 + $0xf04] ss:$48 sps:$4 sm:$0xff]  }
  0xac   : > { %14513 = vmatprep.mubr.bf16.mxu1 %v25170_v23 }
  0xad   : > { %14443 = vmatpush1.bf16.msra.mxu0 %v21230_v24  ;;  %v21319_v24 = vld [vmem:[%s25051_s14 + $0x1504] ss:$48 sps:$4 sm:$0xff]  }
  0xae   : > { %14484 = vmatpush1.bf16.msra.mxu1 %v21233_v25  ;;  %14444 = vmatprep.subr.bf16.mxu0 %v21238_v26  ;;  %v21314_v25 = vld [vmem:[%s25051_s14 + $0xf00] ss:$48 sps:$4 sm:$0xff]   ;;  %v25235_v26 = vrot.slane %v25142_v6, %v25112_v49 }
  0xaf   : > { %14485 = vmatprep.subr.bf16.mxu1 %v21241_v27  ;;  %v21317_v27 = vld [vmem:[%s25051_s14 + $0x1500] ss:$48 sps:$4 sm:$0xff]  }
  0xb0   : > { %v21324_v6 = vld [vmem:[%s25051_s14 + $0x20a0] ss:$48 sps:$4 sm:$0xff]  }
  0xb1   : > { %14445 = vmatpush1.bf16.msra.mxu0 %v21236_v28  ;;  %v21323_v28 = vld [vmem:[%s25051_s14 + $0x1aa4] ss:$48 sps:$4 sm:$0xff]  }
  0xb2   : > { %14486 = vmatpush1.bf16.msra.mxu1 %v21239_v29  ;;  %14446 = vmatprep.subr.bf16.mxu0 %v21244_v30  ;;  %v21326_v29 = vld [vmem:[%s25051_s14 + $0x20a4] ss:$48 sps:$4 sm:$0xff]   ;;  %v25242_v30 = vcombine.high %v25235_v26, %v25235_v26 }
  0xb3   : > { %14487 = vmatprep.subr.bf16.mxu1 %v21247_v31  ;;  %v21321_v31 = vld [vmem:[%s25051_s14 + $0x1aa0] ss:$48 sps:$4 sm:$0xff]  }
  0xb5   : > { %14447 = vmatpush1.bf16.msra.mxu0 %v21242_v32  ;;  %v25249_v32 = vld [vmem:[%s28006_s0 + $0x8] sm:$0xff] }
  0xb6   : > { %14488 = vmatpush1.bf16.msra.mxu1 %v21245_v33  ;;  %14448 = vmatprep.subr.bf16.mxu0 %v21250_v34  ;;  %v21329_v33 = vld [vmem:[%s25051_s14 + $0x1a44] ss:$48 sps:$4 sm:$0xff]  }
  0xb7   : > { %14489 = vmatprep.subr.bf16.mxu1 %v21253_v35  ;;  %v21332_v34 = vld [vmem:[%s25051_s14 + $0x2044] ss:$48 sps:$4 sm:$0xff]   ;;  %v25255_v35 = vrot.slane %v25249_v32, %v25112_v49 }
  0xb9   : > { %14449 = vmatpush1.bf16.msra.mxu0 %v21248_v36  ;;  %v2731_v36 = vcombine.high %v25255_v35, %v25255_v35 }
  0xba   : > { %14490 = vmatpush1.bf16.msra.mxu1 %v21251_v37  ;;  %14450 = vmatprep.subr.bf16.mxu0 %v21256_v38  ;;  %v21327_v37 = vld [vmem:[%s25051_s14 + $0x1a40] ss:$48 sps:$4 sm:$0xff]  }
  0xbb   : > { %14491 = vmatprep.subr.bf16.mxu1 %v21259_v39  ;;  %v21330_v38 = vld [vmem:[%s25051_s14 + $0x2040] ss:$48 sps:$4 sm:$0xff]   ;;  %v21335_v39 = vld [vmem:[%s25051_s14 + $0x19e4] ss:$48 sps:$4 sm:$0xff]  }
  0xbd   : > { %14451 = vmatpush1.bf16.msra.mxu0 %v21254_v40  ;;  %v21338_v40 = vld [vmem:[%s25051_s14 + $0x1fe4] ss:$48 sps:$4 sm:$0xff]  }
  0xbe   : > { %14492 = vmatpush1.bf16.msra.mxu1 %v21257_v41  ;;  %14452 = vmatprep.subr.bf16.mxu0 %v21262_v43  ;;  %v25266_v41 = vrot.slane %v2731_v36, %v25112_v49  ;;  %v21399_v36 = vld [vmem:[%s25051_s14 + $0x1bc0] ss:$48 sps:$4 sm:$0xff]  }
  0xbf   : > { %14493 = vmatprep.subr.bf16.mxu1 %v21265_v44  ;;  %v21333_v44 = vld [vmem:[%s25051_s14 + $0x19e0] ss:$48 sps:$4 sm:$0xff]  }
  0xc0   : > { %v25271_v43 = vcombine.high %v25266_v41, %v25266_v41 }
  0xc1   : > { %14453 = vmatpush1.bf16.msra.mxu0 %v21260_v45  ;;  %v21336_v45 = vld [vmem:[%s25051_s14 + $0x1fe0] ss:$48 sps:$4 sm:$0xff]  }
  0xc2   : > { %14494 = vmatpush1.bf16.msra.mxu1 %v21263_v46  ;;  %14454 = vmatprep.subr.bf16.mxu0 %v21268_v47  ;;  %v21341_v46 = vld [vmem:[%s25051_s14 + $0x1984] ss:$48 sps:$4 sm:$0xff]  }
  0xc3   : > { %14495 = vmatprep.subr.bf16.mxu1 %v21271_v48  ;;  %v21344_v47 = vld [vmem:[%s25051_s14 + $0x1f84] ss:$48 sps:$4 sm:$0xff]   ;;  %v21339_v48 = vld [vmem:[%s25051_s14 + $0x1980] ss:$48 sps:$4 sm:$0xff]  }
  0xc5   : > { %14455 = vmatpush1.bf16.msra.mxu0 %v21266_v50  ;;  %v21342_v50 = vld [vmem:[%s25051_s14 + $0x1f80] ss:$48 sps:$4 sm:$0xff]  }
  0xc6   : > { %14496 = vmatpush1.bf16.msra.mxu1 %v21269_v51  ;;  %14456 = vmatprep.subr.bf16.mxu0 %v21274_v52  ;;  %v21347_v51 = vld [vmem:[%s25051_s14 + $0x1924] ss:$48 sps:$4 sm:$0xff]  }
  0xc7   : > { %14497 = vmatprep.subr.bf16.mxu1 %v21277_v53  ;;  %v21350_v52 = vld [vmem:[%s25051_s14 + $0x1f24] ss:$48 sps:$4 sm:$0xff]   ;;  %v21345_v53 = vld [vmem:[%s25051_s14 + $0x1920] ss:$48 sps:$4 sm:$0xff]  }
  0xc9   : > { %14457 = vmatpush2.bf16.msra.mxu0 %v21272_v54  ;;  %v21348_v54 = vld [vmem:[%s25051_s14 + $0x1f20] ss:$48 sps:$4 sm:$0xff]  }
  0xca   : > { %14498 = vmatpush2.bf16.msra.mxu1 %v21275_v55  ;;  %14458 = vmatprep.subr.bf16.mxu0 %v21280_v56  ;;  %v21353_v55 = vld [vmem:[%s25051_s14 + $0x18c4] ss:$48 sps:$4 sm:$0xff]  }
  0xcb   : > { %14499 = vmatprep.subr.bf16.mxu1 %v21283_v57  ;;  %v21356_v56 = vld [vmem:[%s25051_s14 + $0x1ec4] ss:$48 sps:$4 sm:$0xff]   ;;  %v21351_v57 = vld [vmem:[%s25051_s14 + $0x18c0] ss:$48 sps:$4 sm:$0xff]  }
  0xcd   : > { %14459 = vmatpush2.bf16.msra.mxu0 %v21278_v58  ;;  %v21354_v58 = vld [vmem:[%s25051_s14 + $0x1ec0] ss:$48 sps:$4 sm:$0xff]  }
  0xce   : > { %14500 = vmatpush2.bf16.msra.mxu1 %v21281_v59  ;;  %14460 = vmatprep.subr.bf16.mxu0 %v21286_v61  ;;  %v21359_v59 = vld [vmem:[%s25051_s14 + $0x1864] ss:$48 sps:$4 sm:$0xff]  }
  0xcf   : > { %14501 = vmatprep.subr.bf16.mxu1 %v21289_v62  ;;  %v21362_v61 = vld [vmem:[%s25051_s14 + $0x1e64] ss:$48 sps:$4 sm:$0xff]   ;;  %v21357_v62 = vld [vmem:[%s25051_s14 + $0x1860] ss:$48 sps:$4 sm:$0xff]  }
  0xd1   : > { %14461 = vmatpush2.bf16.msra.mxu0 %v21284_v63  ;;  %v21360_v63 = vld [vmem:[%s25051_s14 + $0x1e60] ss:$48 sps:$4 sm:$0xff]  }
  0xd2   : > { %14502 = vmatpush2.bf16.msra.mxu1 %v21287_v1  ;;  %14462 = vmatprep.subr.bf16.mxu0 %v21292_v2  ;;  %v21365_v1 = vld [vmem:[%s25051_s14 + $0x1804] ss:$48 sps:$4 sm:$0xff]  }
  0xd3   : > { %14503 = vmatprep.subr.bf16.mxu1 %v21295_v3  ;;  %v21368_v2 = vld [vmem:[%s25051_s14 + $0x1e04] ss:$48 sps:$4 sm:$0xff]   ;;  %v21363_v3 = vld [vmem:[%s25051_s14 + $0x1800] ss:$48 sps:$4 sm:$0xff]  }
  0xd5   : > { %14463 = vmatpush2.bf16.msra.mxu0 %v21290_v4  ;;  %v21366_v4 = vld [vmem:[%s25051_s14 + $0x1e00] ss:$48 sps:$4 sm:$0xff]  }
  0xd6   : > { %14504 = vmatpush2.bf16.msra.mxu1 %v21293_v5  ;;  %14464 = vmatprep.subr.bf16.mxu0 %v21298_v7  ;;  %v21371_v5 = vld [vmem:[%s25051_s14 + $0x1da4] ss:$48 sps:$4 sm:$0xff]  }
  0xd7   : > { %14505 = vmatprep.subr.bf16.mxu1 %v21301_v8  ;;  %v21374_v7 = vld [vmem:[%s25051_s14 + $0x23a4] ss:$48 sps:$4 sm:$0xff]   ;;  %v21369_v8 = vld [vmem:[%s25051_s14 + $0x1da0] ss:$48 sps:$4 sm:$0xff]  }
  0xd9   : > { %14465 = vmatpush2.bf16.msra.mxu0 %v21296_v9  ;;  %v21372_v9 = vld [vmem:[%s25051_s14 + $0x23a0] ss:$48 sps:$4 sm:$0xff]  }
  0xda   : > { %14506 = vmatpush2.bf16.msra.mxu1 %v21299_v10  ;;  %14466 = vmatprep.subr.bf16.mxu0 %v21304_v11  ;;  %v21377_v10 = vld [vmem:[%s25051_s14 + $0x1d44] ss:$48 sps:$4 sm:$0xff]  }
  0xdb   : > { %14507 = vmatprep.subr.bf16.mxu1 %v21307_v12  ;;  %v21380_v11 = vld [vmem:[%s25051_s14 + $0x2344] ss:$48 sps:$4 sm:$0xff]   ;;  %v21375_v12 = vld [vmem:[%s25051_s14 + $0x1d40] ss:$48 sps:$4 sm:$0xff]  }
  0xdd   : > { %14467 = vmatpush2.bf16.msra.mxu0 %v21302_v14  ;;  %v21378_v14 = vld [vmem:[%s25051_s14 + $0x2340] ss:$48 sps:$4 sm:$0xff]  }
  0xde   : > { %14508 = vmatpush2.bf16.msra.mxu1 %v21305_v15  ;;  %14468 = vmatprep.subr.bf16.mxu0 %v21310_v16  ;;  %v21383_v15 = vld [vmem:[%s25051_s14 + $0x1ce4] ss:$48 sps:$4 sm:$0xff]  }
  0xdf   : > { %14509 = vmatprep.subr.bf16.mxu1 %v21313_v19  ;;  %v21386_v16 = vld [vmem:[%s25051_s14 + $0x22e4] ss:$48 sps:$4 sm:$0xff]   ;;  %v21381_v19 = vld [vmem:[%s25051_s14 + $0x1ce0] ss:$48 sps:$4 sm:$0xff]  }
  0xe1   : > { %14469 = vmatpush2.bf16.msra.mxu0 %v21308_v20  ;;  %v21384_v20 = vld [vmem:[%s25051_s14 + $0x22e0] ss:$48 sps:$4 sm:$0xff]  }
  0xe2   : > { %14510 = vmatpush2.bf16.msra.mxu1 %v21311_v21  ;;  %14470 = vmatprep.subr.bf16.mxu0 %v21316_v22  ;;  %v21389_v21 = vld [vmem:[%s25051_s14 + $0x1c84] ss:$48 sps:$4 sm:$0xff]  }
  0xe3   : > { %14511 = vmatprep.subr.bf16.mxu1 %v21319_v24  ;;  %v21392_v22 = vld [vmem:[%s25051_s14 + $0x2284] ss:$48 sps:$4 sm:$0xff]   ;;  %v21387_v24 = vld [vmem:[%s25051_s14 + $0x1c80] ss:$48 sps:$4 sm:$0xff]  }
  0xe5   : > { %14471 = vmatpush2.bf16.msra.mxu0 %v21314_v25  ;;  %v21390_v25 = vld [vmem:[%s25051_s14 + $0x2280] ss:$48 sps:$4 sm:$0xff]  }
  0xe6   : > { %14512 = vmatpush2.bf16.msra.mxu1 %v21317_v27  ;;  %14522 = vmatprep.subr.bf16.mxu0 %v21323_v28  ;;  %v21395_v27 = vld [vmem:[%s25051_s14 + $0x1c24] ss:$48 sps:$4 sm:$0xff]  }
  0xe7   : > { %14563 = vmatprep.subr.bf16.mxu1 %v21326_v29  ;;  %v21398_v28 = vld [vmem:[%s25051_s14 + $0x2224] ss:$48 sps:$4 sm:$0xff]   ;;  %v21393_v29 = vld [vmem:[%s25051_s14 + $0x1c20] ss:$48 sps:$4 sm:$0xff]  }
  0xe8   : > { %14473 = vmatmul.mubr.bf16.vlgmr.msra.gmra.mxu0 %v25235_v26 }
  0xe9   : > { %14514 = vmatmul.mubr.bf16.vlgmr.msra.gmra.mxu1 %v25242_v30  ;;  %14523 = vmatpush1.bf16.msra.mxu0 %v21321_v31  ;;  %v21396_v31 = vld [vmem:[%s25051_s14 + $0x2220] ss:$48 sps:$4 sm:$0xff]  }
  0xea   : > { %14564 = vmatpush1.bf16.msra.mxu1 %v21324_v6  ;;  %14524 = vmatprep.subr.bf16.mxu0 %v21329_v33  ;;  %v21401_v6 = vld [vmem:[%s25051_s14 + $0x1bc4] ss:$48 sps:$4 sm:$0xff]  }
  0xeb   : > { %14565 = vmatprep.subr.bf16.mxu1 %v21332_v34  ;;  %14554 = vmatprep.mubr.bf16.mxu0 %v25266_v41  ;;  %v21404_v33 = vld [vmem:[%s25051_s14 + $0x21c4] ss:$48 sps:$4 sm:$0xff]   ;;  %v2716_v34 = vcombine.high %v25249_v32, %v25249_v32  ;;  %v21408_v32 = vld [vmem:[%s25051_s14 + $0x2160] ss:$48 sps:$4 sm:$0xff]  }
  0xec   : > { %14595 = vmatprep.mubr.bf16.mxu1 %v25271_v43 }
  0xed   : > { %14525 = vmatpush1.bf16.msra.mxu0 %v21327_v37  ;;  %v21402_v37 = vld [vmem:[%s25051_s14 + $0x21c0] ss:$48 sps:$4 sm:$0xff]  }
  0xee   : > { %14566 = vmatpush1.bf16.msra.mxu1 %v21330_v38  ;;  %14526 = vmatprep.subr.bf16.mxu0 %v21335_v39  ;;  %v21407_v38 = vld [vmem:[%s25051_s14 + $0x1b64] ss:$48 sps:$4 sm:$0xff]  }
  0xef   : > { %14567 = vmatprep.subr.bf16.mxu1 %v21338_v40  ;;  %v21410_v39 = vld [vmem:[%s25051_s14 + $0x2164] ss:$48 sps:$4 sm:$0xff]   ;;  %v25325_v40 = vrot.slane %v2716_v34, %v25112_v49  ;;  %v21468_v34 = vld [vmem:[%s25051_s14 + $0x2fa0] ss:$48 sps:$4 sm:$0xff]  }
  0xf1   : > { %14527 = vmatpush1.bf16.msra.mxu0 %v21333_v44  ;;  %v21405_v44 = vld [vmem:[%s25051_s14 + $0x1b60] ss:$48 sps:$4 sm:$0xff]  }
  0xf2   : > { %14568 = vmatpush1.bf16.msra.mxu1 %v21336_v45  ;;  %14528 = vmatprep.subr.bf16.mxu0 %v21341_v46  ;;  %v21413_v45 = vld [vmem:[%s25051_s14 + $0x1b04] ss:$48 sps:$4 sm:$0xff]  }
  0xf3   : > { %14569 = vmatprep.subr.bf16.mxu1 %v21344_v47  ;;  %v21416_v46 = vld [vmem:[%s25051_s14 + $0x2104] ss:$48 sps:$4 sm:$0xff]   ;;  %v2732_v47 = vcombine.high %v25325_v40, %v25325_v40 }
  0xf5   : > { %14529 = vmatpush1.bf16.msra.mxu0 %v21339_v48  ;;  %v21411_v48 = vld [vmem:[%s25051_s14 + $0x1b00] ss:$48 sps:$4 sm:$0xff]  }
  0xf6   : > { %14570 = vmatpush1.bf16.msra.mxu1 %v21342_v50  ;;  %14530 = vmatprep.subr.bf16.mxu0 %v21347_v51  ;;  %v25336_v50 = vrot.slane %v25255_v35, %v25112_v49  ;;  %v21414_v51 = vld [vmem:[%s25051_s14 + $0x2100] ss:$48 sps:$4 sm:$0xff]  }
  0xf7   : > { %14571 = vmatprep.subr.bf16.mxu1 %v21350_v52  ;;  %v21419_v52 = vld [vmem:[%s25051_s14 + $0x26a4] ss:$48 sps:$4 sm:$0xff]   ;;  %v21417_v35 = vld [vmem:[%s25051_s14 + $0x26a0] ss:$48 sps:$4 sm:$0xff]  }
  0xf9   : > { %14531 = vmatpush1.bf16.msra.mxu0 %v21345_v53  ;;  %v21422_v53 = vld [vmem:[%s25051_s14 + $0x2ca4] ss:$48 sps:$4 sm:$0xff]  }
  0xfa   : > { %14572 = vmatpush1.bf16.msra.mxu1 %v21348_v54  ;;  %14532 = vmatprep.subr.bf16.mxu0 %v21353_v55  ;;  %v25342_v54 = vrot.slane %v2732_v47, %v25112_v49  ;;  %v25346_v55 = vcombine.high %v25336_v50, %v25336_v50  ;;  %v21485_v47 = vld [vmem:[%s25051_s14 + $0x2884] ss:$48 sps:$4 sm:$0xff]  }
  0xfb   : > { %14573 = vmatprep.subr.bf16.mxu1 %v21356_v56  ;;  %v21420_v56 = vld [vmem:[%s25051_s14 + $0x2ca0] ss:$48 sps:$4 sm:$0xff]  }
  0xfd   : > { %14533 = vmatpush1.bf16.msra.mxu0 %v21351_v57  ;;  %v21425_v57 = vld [vmem:[%s25051_s14 + $0x2644] ss:$48 sps:$4 sm:$0xff]  }
  0xfe   : > { %14574 = vmatpush1.bf16.msra.mxu1 %v21354_v58  ;;  %14534 = vmatprep.subr.bf16.mxu0 %v21359_v59  ;;  %v21428_v58 = vld [vmem:[%s25051_s14 + $0x2c44] ss:$48 sps:$4 sm:$0xff]   ;;  %v25354_v59 = vcombine.high %v25342_v54, %v25342_v54 }
  0xff   : > { %14575 = vmatprep.subr.bf16.mxu1 %v21362_v61  ;;  %v21423_v61 = vld [vmem:[%s25051_s14 + $0x2640] ss:$48 sps:$4 sm:$0xff]  }
 0x101   : > { %14535 = vmatpush1.bf16.msra.mxu0 %v21357_v62  ;;  %v21426_v62 = vld [vmem:[%s25051_s14 + $0x2c40] ss:$48 sps:$4 sm:$0xff]  }
 0x102   : > { %14576 = vmatpush1.bf16.msra.mxu1 %v21360_v63  ;;  %14536 = vmatprep.subr.bf16.mxu0 %v21365_v1  ;;  %v21431_v63 = vld [vmem:[%s25051_s14 + $0x25e4] ss:$48 sps:$4 sm:$0xff]  }
 0x103   : > { %14577 = vmatprep.subr.bf16.mxu1 %v21368_v2  ;;  %v21434_v1 = vld [vmem:[%s25051_s14 + $0x2be4] ss:$48 sps:$4 sm:$0xff]   ;;  %v21429_v2 = vld [vmem:[%s25051_s14 + $0x25e0] ss:$48 sps:$4 sm:$0xff]  }
 0x105   : > { %14537 = vmatpush1.bf16.msra.mxu0 %v21363_v3  ;;  %v21432_v3 = vld [vmem:[%s25051_s14 + $0x2be0] ss:$48 sps:$4 sm:$0xff]  }
 0x106   : > { %14578 = vmatpush1.bf16.msra.mxu1 %v21366_v4  ;;  %14538 = vmatprep.subr.bf16.mxu0 %v21371_v5  ;;  %v21437_v4 = vld [vmem:[%s25051_s14 + $0x2584] ss:$48 sps:$4 sm:$0xff]  }
 0x107   : > { %14579 = vmatprep.subr.bf16.mxu1 %v21374_v7  ;;  %v21440_v5 = vld [vmem:[%s25051_s14 + $0x2b84] ss:$48 sps:$4 sm:$0xff]   ;;  %v21435_v7 = vld [vmem:[%s25051_s14 + $0x2580] ss:$48 sps:$4 sm:$0xff]  }
 0x109   : > { %14539 = vmatpush2.bf16.msra.mxu0 %v21369_v8  ;;  %v21438_v8 = vld [vmem:[%s25051_s14 + $0x2b80] ss:$48 sps:$4 sm:$0xff]  }
 0x10a   : > { %14580 = vmatpush2.bf16.msra.mxu1 %v21372_v9  ;;  %14540 = vmatprep.subr.bf16.mxu0 %v21377_v10  ;;  %v21443_v9 = vld [vmem:[%s25051_s14 + $0x2524] ss:$48 sps:$4 sm:$0xff]  }
 0x10b   : > { %14581 = vmatprep.subr.bf16.mxu1 %v21380_v11  ;;  %v21446_v10 = vld [vmem:[%s25051_s14 + $0x2b24] ss:$48 sps:$4 sm:$0xff]   ;;  %v21441_v11 = vld [vmem:[%s25051_s14 + $0x2520] ss:$48 sps:$4 sm:$0xff]  }
 0x10d   : > { %14541 = vmatpush2.bf16.msra.mxu0 %v21375_v12  ;;  %v21444_v12 = vld [vmem:[%s25051_s14 + $0x2b20] ss:$48 sps:$4 sm:$0xff]  }
 0x10e   : > { %14582 = vmatpush2.bf16.msra.mxu1 %v21378_v14  ;;  %14542 = vmatprep.subr.bf16.mxu0 %v21383_v15  ;;  %v21449_v14 = vld [vmem:[%s25051_s14 + $0x24c4] ss:$48 sps:$4 sm:$0xff]  }
 0x10f   : > { %14583 = vmatprep.subr.bf16.mxu1 %v21386_v16  ;;  %v21452_v15 = vld [vmem:[%s25051_s14 + $0x2ac4] ss:$48 sps:$4 sm:$0xff]   ;;  %v21447_v16 = vld [vmem:[%s25051_s14 + $0x24c0] ss:$48 sps:$4 sm:$0xff]  }
 0x111   : > { %14543 = vmatpush2.bf16.msra.mxu0 %v21381_v19  ;;  %v21450_v19 = vld [vmem:[%s25051_s14 + $0x2ac0] ss:$48 sps:$4 sm:$0xff]  }
 0x112   : > { %14584 = vmatpush2.bf16.msra.mxu1 %v21384_v20  ;;  %14544 = vmatprep.subr.bf16.mxu0 %v21389_v21  ;;  %v21455_v20 = vld [vmem:[%s25051_s14 + $0x2464] ss:$48 sps:$4 sm:$0xff]  }
 0x113   : > { %14585 = vmatprep.subr.bf16.mxu1 %v21392_v22  ;;  %v21458_v21 = vld [vmem:[%s25051_s14 + $0x2a64] ss:$48 sps:$4 sm:$0xff]   ;;  %v21453_v22 = vld [vmem:[%s25051_s14 + $0x2460] ss:$48 sps:$4 sm:$0xff]  }
 0x115   : > { %14545 = vmatpush2.bf16.msra.mxu0 %v21387_v24  ;;  %v21456_v24 = vld [vmem:[%s25051_s14 + $0x2a60] ss:$48 sps:$4 sm:$0xff]  }
 0x116   : > { %14586 = vmatpush2.bf16.msra.mxu1 %v21390_v25  ;;  %14546 = vmatprep.subr.bf16.mxu0 %v21395_v27  ;;  %v21461_v25 = vld [vmem:[%s25051_s14 + $0x2404] ss:$48 sps:$4 sm:$0xff]  }
 0x117   : > { %14587 = vmatprep.subr.bf16.mxu1 %v21398_v28  ;;  %v21464_v27 = vld [vmem:[%s25051_s14 + $0x2a04] ss:$48 sps:$4 sm:$0xff]   ;;  %v21459_v28 = vld [vmem:[%s25051_s14 + $0x2400] ss:$48 sps:$4 sm:$0xff]  }
 0x119   : > { %14547 = vmatpush2.bf16.msra.mxu0 %v21393_v29  ;;  %v21462_v29 = vld [vmem:[%s25051_s14 + $0x2a00] ss:$48 sps:$4 sm:$0xff]  }
 0x11a   : > { %14588 = vmatpush2.bf16.msra.mxu1 %v21396_v31  ;;  %14548 = vmatprep.subr.bf16.mxu0 %v21401_v6  ;;  %v21467_v31 = vld [vmem:[%s25051_s14 + $0x29a4] ss:$48 sps:$4 sm:$0xff]  }
 0x11b   : > { %14589 = vmatprep.subr.bf16.mxu1 %v21404_v33  ;;  %v21470_v6 = vld [vmem:[%s25051_s14 + $0x2fa4] ss:$48 sps:$4 sm:$0xff]   ;;  %v21465_v33 = vld [vmem:[%s25051_s14 + $0x29a0] ss:$48 sps:$4 sm:$0xff]  }
 0x11d   : > { %14549 = vmatpush2.bf16.msra.mxu0 %v21399_v36  ;;  %v21473_v36 = vld [vmem:[%s25051_s14 + $0x2944] ss:$48 sps:$4 sm:$0xff]  }
 0x11e   : > { %14590 = vmatpush2.bf16.msra.mxu1 %v21402_v37  ;;  %14550 = vmatprep.subr.bf16.mxu0 %v21407_v38  ;;  %v21476_v37 = vld [vmem:[%s25051_s14 + $0x2f44] ss:$48 sps:$4 sm:$0xff]   ;;  %v21471_v38 = vld [vmem:[%s25051_s14 + $0x2940] ss:$48 sps:$4 sm:$0xff]  }
 0x11f   : > { %14591 = vmatprep.subr.bf16.mxu1 %v21410_v39  ;;  %v21474_v39 = vld [vmem:[%s25051_s14 + $0x2f40] ss:$48 sps:$4 sm:$0xff]  }
 0x121   : > { %14551 = vmatpush2.bf16.msra.mxu0 %v21405_v44  ;;  %v21479_v44 = vld [vmem:[%s25051_s14 + $0x28e4] ss:$48 sps:$4 sm:$0xff]  }
 0x122   : > { %14592 = vmatpush2.bf16.msra.mxu1 %v21408_v32  ;;  %14552 = vmatprep.subr.bf16.mxu0 %v21413_v45  ;;  %v21482_v32 = vld [vmem:[%s25051_s14 + $0x2ee4] ss:$48 sps:$4 sm:$0xff]   ;;  %v21477_v45 = vld [vmem:[%s25051_s14 + $0x28e0] ss:$48 sps:$4 sm:$0xff]  }
 0x123   : > { %14593 = vmatprep.subr.bf16.mxu1 %v21416_v46  ;;  %v21480_v46 = vld [vmem:[%s25051_s14 + $0x2ee0] ss:$48 sps:$4 sm:$0xff]  }
 0x125   : > { %14553 = vmatpush2.bf16.msra.mxu0 %v21411_v48  ;;  %v21488_v48 = vld [vmem:[%s25051_s14 + $0x2e84] ss:$48 sps:$4 sm:$0xff]  }
 0x126   : > { %14594 = vmatpush2.bf16.msra.mxu1 %v21414_v51  ;;  %14604 = vmatprep.subr.bf16.mxu0 %v21419_v52  ;;  %v21483_v51 = vld [vmem:[%s25051_s14 + $0x2880] ss:$48 sps:$4 sm:$0xff]  }
 0x127   : > { %14645 = vmatprep.subr.bf16.mxu1 %v21422_v53  ;;  %v21486_v52 = vld [vmem:[%s25051_s14 + $0x2e80] ss:$48 sps:$4 sm:$0xff]   ;;  %v21491_v53 = vld [vmem:[%s25051_s14 + $0x2824] ss:$48 sps:$4 sm:$0xff]  }
 0x128   : > { %14555 = vmatmul.mubr.bf16.vlgmr.msra.gmra.mxu0 %v25336_v50 }
 0x129   : > { %14596 = vmatmul.mubr.bf16.vlgmr.msra.gmra.mxu1 %v25346_v55  ;;  %14605 = vmatpush1.bf16.msra.mxu0 %v21417_v35  ;;  %v21494_v35 = vld [vmem:[%s25051_s14 + $0x2e24] ss:$48 sps:$4 sm:$0xff]  }
 0x12a   : > { %14646 = vmatpush1.bf16.msra.mxu1 %v21420_v56  ;;  %14606 = vmatprep.subr.bf16.mxu0 %v21425_v57  ;;  %v21489_v56 = vld [vmem:[%s25051_s14 + $0x2820] ss:$48 sps:$4 sm:$0xff]  }
 0x12b   : > { %14647 = vmatprep.subr.bf16.mxu1 %v21428_v58  ;;  %14636 = vmatprep.mubr.bf16.mxu0 %v25342_v54  ;;  %v21492_v57 = vld [vmem:[%s25051_s14 + $0x2e20] ss:$48 sps:$4 sm:$0xff]   ;;  %v21497_v58 = vld [vmem:[%s25051_s14 + $0x27c4] ss:$48 sps:$4 sm:$0xff]  }
 0x12c   : > { %14677 = vmatprep.mubr.bf16.mxu1 %v25354_v59 }
 0x12d   : > { %14607 = vmatpush1.bf16.msra.mxu0 %v21423_v61  ;;  %v21500_v61 = vld [vmem:[%s25051_s14 + $0x2dc4] ss:$48 sps:$4 sm:$0xff]  }
 0x12e   : > { %14648 = vmatpush1.bf16.msra.mxu1 %v21426_v62  ;;  %14608 = vmatprep.subr.bf16.mxu0 %v21431_v63  ;;  %v21495_v62 = vld [vmem:[%s25051_s14 + $0x27c0] ss:$48 sps:$4 sm:$0xff]  }
 0x12f   : > { %14649 = vmatprep.subr.bf16.mxu1 %v21434_v1  ;;  %v21498_v63 = vld [vmem:[%s25051_s14 + $0x2dc0] ss:$48 sps:$4 sm:$0xff]  }
 0x130   : > { %v25413_v1 = vld [vmem:[%s28006_s0 + $0x10] sm:$0xff] }
 0x131   : > { %14609 = vmatpush1.bf16.msra.mxu0 %v21429_v2  ;;  %v21503_v2 = vld [vmem:[%s25051_s14 + $0x2764] ss:$48 sps:$4 sm:$0xff]  }
 0x132   : > { %14650 = vmatpush1.bf16.msra.mxu1 %v21432_v3  ;;  %14610 = vmatprep.subr.bf16.mxu0 %v21437_v4  ;;  %v21506_v3 = vld [vmem:[%s25051_s14 + $0x2d64] ss:$48 sps:$4 sm:$0xff]   ;;  %v25419_v4 = vrot.slane %v25413_v1, %v25112_v49 }
 0x133   : > { %14651 = vmatprep.subr.bf16.mxu1 %v21440_v5  ;;  %v21501_v5 = vld [vmem:[%s25051_s14 + $0x2760] ss:$48 sps:$4 sm:$0xff]  }
 0x135   : > { %14611 = vmatpush1.bf16.msra.mxu0 %v21435_v7  ;;  %v21504_v7 = vld [vmem:[%s25051_s14 + $0x2d60] ss:$48 sps:$4 sm:$0xff]  }
 0x136   : > { %14652 = vmatpush1.bf16.msra.mxu1 %v21438_v8  ;;  %14612 = vmatprep.subr.bf16.mxu0 %v21443_v9  ;;  %v21509_v8 = vld [vmem:[%s25051_s14 + $0x2704] ss:$48 sps:$4 sm:$0xff]  }
 0x137   : > { %14653 = vmatprep.subr.bf16.mxu1 %v21446_v10  ;;  %v21512_v9 = vld [vmem:[%s25051_s14 + $0x2d04] ss:$48 sps:$4 sm:$0xff]   ;;  %v21507_v10 = vld [vmem:[%s25051_s14 + $0x2700] ss:$48 sps:$4 sm:$0xff]  }
 0x139   : > { %14613 = vmatpush1.bf16.msra.mxu0 %v21441_v11  ;;  %v2780_v11 = vcombine.high %v25419_v4, %v25419_v4 }
 0x13a   : > { %14654 = vmatpush1.bf16.msra.mxu1 %v21444_v12  ;;  %14614 = vmatprep.subr.bf16.mxu0 %v21449_v14  ;;  %v21510_v12 = vld [vmem:[%s25051_s14 + $0x2d00] ss:$48 sps:$4 sm:$0xff]  }
 0x13b   : > { %14655 = vmatprep.subr.bf16.mxu1 %v21452_v15  ;;  %v2600_v14 = vld [vmem:[%s25059_s5] sm:$0xff]  ;;  %v25432_v15 = vrot.slane %v25325_v40, %v25112_v49 }
 0x13c   : > { %v21514_v40 = vld [vmem:[%s25051_s14 + $0x32a0] ss:$48 sps:$4 sm:$0xff]  }
 0x13d   : > { %14615 = vmatpush1.bf16.msra.mxu0 %v21447_v16  ;;  %v2606_v16 = vsub.s32 0, %v25104_v42 }
 0x13e   : > { %14656 = vmatpush1.bf16.msra.mxu1 %v21450_v19  ;;  %14616 = vmatprep.subr.bf16.mxu0 %v21455_v20  ;;  %v21516_v19 = vld [vmem:[%s25051_s14 + $0x32a4] ss:$48 sps:$4 sm:$0xff]  }
 0x13f   : > { %14657 = vmatprep.subr.bf16.mxu1 %v21458_v21  ;;  %v21519_v20 = vld [vmem:[%s25051_s14 + $0x38a4] ss:$48 sps:$4 sm:$0xff]   ;;  %v2610_v21 = vsub.s32 1, %v25104_v42 }
 0x141   : > { %14617 = vmatpush1.bf16.msra.mxu0 %v21453_v22  ;;  %v25439_v22 = vrot.slane %v2780_v11, %v25112_v49  ;;  %v21547_v11 = vld [vmem:[%s25051_s14 + $0x36c0] ss:$48 sps:$4 sm:$0xff]  }
 0x142   : > { %14658 = vmatpush1.bf16.msra.mxu1 %v21456_v24  ;;  %14618 = vmatprep.subr.bf16.mxu0 %v21461_v25  ;;  %v25443_v24 = vcombine.high %v25432_v15, %v25432_v15  ;;  %v21517_v25 = vld [vmem:[%s25051_s14 + $0x38a0] ss:$48 sps:$4 sm:$0xff]  }
 0x143   : > { %14659 = vmatprep.subr.bf16.mxu1 %v21464_v27  ;;  %v2607_v27 = vrot.slane %v2600_v14, %v2606_v16 }
 0x145   : > { %14619 = vmatpush1.bf16.msra.mxu0 %v21459_v28  ;;  %v21522_v28 = vld [vmem:[%s25051_s14 + $0x3244] ss:$48 sps:$4 sm:$0xff]  }
 0x146   : > { %14660 = vmatpush1.bf16.msra.mxu1 %v21462_v29  ;;  %14620 = vmatprep.subr.bf16.mxu0 %v21467_v31  ;;  %v21525_v29 = vld [vmem:[%s25051_s14 + $0x3844] ss:$48 sps:$4 sm:$0xff]   ;;  %v2611_v31 = vrot.slane %v2600_v14, %v2610_v21 }
 0x147   : > { %14661 = vmatprep.subr.bf16.mxu1 %v21470_v6  ;;  %v25455_v6 = vcombine.high %v25439_v22, %v25439_v22  ;;  %v21555_v14 = vld [vmem:[%s25051_s14 + $0x3664] ss:$48 sps:$4 sm:$0xff]  }
 0x149   : > { %14621 = vmatpush2.bf16.msra.mxu0 %v21465_v33 }
 0x14a   : > { %14662 = vmatpush2.bf16.msra.mxu1 %v21468_v34  ;;  %14622 = vmatprep.subr.bf16.mxu0 %v21473_v36  ;;  %v21520_v36 = vld [vmem:[%s25051_s14 + $0x3240] ss:$48 sps:$4 sm:$0xff]  }
 0x14b   : > { %14663 = vmatprep.subr.bf16.mxu1 %v21476_v37  ;;  %v21523_v37 = vld [vmem:[%s25051_s14 + $0x3840] ss:$48 sps:$4 sm:$0xff]  }
 0x14d   : > { %14623 = vmatpush2.bf16.msra.mxu0 %v21471_v38 }
 0x14e   : > { %14664 = vmatpush2.bf16.msra.mxu1 %v21474_v39  ;;  %14624 = vmatprep.subr.bf16.mxu0 %v21479_v44 }
 0x14f   : > { %14665 = vmatprep.subr.bf16.mxu1 %v21482_v32  ;;  %v21528_v32 = vld [vmem:[%s25051_s14 + $0x31e4] ss:$48 sps:$4 sm:$0xff]  }
 0x151   : > { %14625 = vmatpush2.bf16.msra.mxu0 %v21477_v45  ;;  %v21531_v45 = vld [vmem:[%s25051_s14 + $0x37e4] ss:$48 sps:$4 sm:$0xff]  }
 0x152   : > { %14666 = vmatpush2.bf16.msra.mxu1 %v21480_v46  ;;  %14626 = vmatprep.subr.bf16.mxu0 %v21485_v47 }
 0x153   : > { %14667 = vmatprep.subr.bf16.mxu1 %v21488_v48  ;;  %v21526_v48 = vld [vmem:[%s25051_s14 + $0x31e0] ss:$48 sps:$4 sm:$0xff]  }
 0x155   : > { %14627 = vmatpush2.bf16.msra.mxu0 %v21483_v51  ;;  %v21529_v51 = vld [vmem:[%s25051_s14 + $0x37e0] ss:$48 sps:$4 sm:$0xff]  }
 0x156   : > { %14668 = vmatpush2.bf16.msra.mxu1 %v21486_v52  ;;  %14628 = vmatprep.subr.bf16.mxu0 %v21491_v53 }
 0x157   : > { %14669 = vmatprep.subr.bf16.mxu1 %v21494_v35 }
 0x159   : > { %14629 = vmatpush2.bf16.msra.mxu0 %v21489_v56 }
 0x15a   : > { %14670 = vmatpush2.bf16.msra.mxu1 %v21492_v57  ;;  %14630 = vmatprep.subr.bf16.mxu0 %v21497_v58  ;;  %v21534_v58 = vld [vmem:[%s25051_s14 + $0x3184] ss:$48 sps:$4 sm:$0xff]  }
 0x15b   : > { %14671 = vmatprep.subr.bf16.mxu1 %v21500_v61  ;;  %v21537_v61 = vld [vmem:[%s25051_s14 + $0x3784] ss:$48 sps:$4 sm:$0xff]  }
 0x15d   : > { %14631 = vmatpush2.bf16.msra.mxu0 %v21495_v62  ;;  %v21532_v62 = vld [vmem:[%s25051_s14 + $0x3180] ss:$48 sps:$4 sm:$0xff]  }
 0x15e   : > { %14672 = vmatpush2.bf16.msra.mxu1 %v21498_v63  ;;  %14632 = vmatprep.subr.bf16.mxu0 %v21503_v2  ;;  %v21535_v63 = vld [vmem:[%s25051_s14 + $0x3780] ss:$48 sps:$4 sm:$0xff]   ;;  %v21540_v2 = vld [vmem:[%s25051_s14 + $0x3124] ss:$48 sps:$4 sm:$0xff]  }
 0x15f   : > { %14673 = vmatprep.subr.bf16.mxu1 %v21506_v3  ;;  %v21543_v3 = vld [vmem:[%s25051_s14 + $0x3724] ss:$48 sps:$4 sm:$0xff]  }
 0x161   : > { %14633 = vmatpush2.bf16.msra.mxu0 %v21501_v5  ;;  %v21538_v5 = vld [vmem:[%s25051_s14 + $0x3120] ss:$48 sps:$4 sm:$0xff]  }
 0x162   : > { %14674 = vmatpush2.bf16.msra.mxu1 %v21504_v7  ;;  %14634 = vmatprep.subr.bf16.mxu0 %v21509_v8  ;;  %v21541_v7 = vld [vmem:[%s25051_s14 + $0x3720] ss:$48 sps:$4 sm:$0xff]   ;;  %v21546_v8 = vld [vmem:[%s25051_s14 + $0x30c4] ss:$48 sps:$4 sm:$0xff]  }
 0x163   : > { %14675 = vmatprep.subr.bf16.mxu1 %v21512_v9  ;;  %v21549_v9 = vld [vmem:[%s25051_s14 + $0x36c4] ss:$48 sps:$4 sm:$0xff]  }
 0x165   : > { %14635 = vmatpush2.bf16.msra.mxu0 %v21507_v10  ;;  %v21544_v10 = vld [vmem:[%s25051_s14 + $0x30c0] ss:$48 sps:$4 sm:$0xff]  }
 0x166   : > { %14676 = vmatpush2.bf16.msra.mxu1 %v21510_v12  ;;  %14686 = vmatprep.subr.bf16.mxu0 %v21516_v19  ;;  %v21552_v12 = vld [vmem:[%s25051_s14 + $0x3064] ss:$48 sps:$4 sm:$0xff]   ;;  %v21550_v19 = vld [vmem:[%s25051_s14 + $0x3060] ss:$48 sps:$4 sm:$0xff]  }
 0x167   : > { %14727 = vmatprep.subr.bf16.mxu1 %v21519_v20  ;;  %v21553_v20 = vld [vmem:[%s25051_s14 + $0x3660] ss:$48 sps:$4 sm:$0xff]  }
 0x168   : > { %v14392_v33 = vpop.f32.mrf.mxu0  ;;  %14637 = vmatmul.mubr.bf16.vlgmr.msra.gmra.mxu0 %v25432_v15 }
 0x169   : > { %v14433_v34 = vpop.f32.mrf.mxu1  ;;  %14678 = vmatmul.mubr.bf16.vlgmr.msra.gmra.mxu1 %v25443_v24  ;;  %v14393_v38 = vadd.f32 %v14392_v33, %v2607_v27  ;;  %14687 = vmatpush1.bf16.msra.mxu0 %v21514_v40  ;;  %v21558_v40 = vld [vmem:[%s25051_s14 + $0x3004] ss:$48 sps:$4 sm:$0xff]   ;;  %v21556_v27 = vld [vmem:[%s25051_s14 + $0x3000] ss:$48 sps:$4 sm:$0xff]  }
 0x16a   : > { %14728 = vmatpush1.bf16.msra.mxu1 %v21517_v25  ;;  %v14394_v39 = vpop.f32.mrf.mxu0  ;;  %14688 = vmatprep.subr.bf16.mxu0 %v21522_v28  ;;  %v21561_v25 = vld [vmem:[%s25051_s14 + $0x3604] ss:$48 sps:$4 sm:$0xff]   ;;  %v21559_v28 = vld [vmem:[%s25051_s14 + $0x3600] ss:$48 sps:$4 sm:$0xff]  }
 0x16b   : > { %v14435_v44 = vpop.f32.mrf.mxu1  ;;  %14729 = vmatprep.subr.bf16.mxu1 %v21525_v29  ;;  %v25463_v46 = vadd.f32 %v14433_v34, %v14393_v38  ;;  %v14395_v47 = vadd.f32 %v14394_v39, %v2611_v31  ;;  %14718 = vmatprep.mubr.bf16.mxu0 %v25439_v22  ;;  %v21564_v29 = vld [vmem:[%s25051_s14 + $0x35a4] ss:$48 sps:$4 sm:$0xff]   ;;  %v21562_v33 = vld [vmem:[%s25051_s14 + $0x35a0] ss:$48 sps:$4 sm:$0xff]  }
 0x16c   : > { %14759 = vmatprep.mubr.bf16.mxu1 %v25455_v6  ;;  %v14396_v52 = vpop.f32.mrf.mxu0  ;;  %v21567_v31 = vld [vmem:[%s25051_s14 + $0x3ba4] ss:$48 sps:$4 sm:$0xff]   ;;  %v21565_v34 = vld [vmem:[%s25051_s14 + $0x3ba0] ss:$48 sps:$4 sm:$0xff]  }
 0x16d   : > { %v14437_v53 = vpop.f32.mrf.mxu1  ;;  %v25469_v35 = vadd.f32 %v14435_v44, %v14395_v47  ;;  %14689 = vmatpush1.bf16.msra.mxu0 %v21520_v36  ;;  %v21570_v36 = vld [vmem:[%s25051_s14 + $0x3544] ss:$48 sps:$4 sm:$0xff]   ;;  %v21568_v38 = vld [vmem:[%s25051_s14 + $0x3540] ss:$48 sps:$4 sm:$0xff]  }
 0x16e   : > { %14730 = vmatpush1.bf16.msra.mxu1 %v21523_v37  ;;  %v14397_v56 = vpop.f32.mrf.mxu0  ;;  %14690 = vmatprep.subr.bf16.mxu0 %v21528_v32  ;;  %v21573_v37 = vld [vmem:[%s25051_s14 + $0x3b44] ss:$48 sps:$4 sm:$0xff]   ;;  %v21571_v39 = vld [vmem:[%s25051_s14 + $0x3b40] ss:$48 sps:$4 sm:$0xff]  }
 0x16f   : > { %v14438_v57 = vpop.f32.mrf.mxu1  ;;  %14731 = vmatprep.subr.bf16.mxu1 %v21531_v45  ;;  %v21576_v44 = vld [vmem:[%s25051_s14 + $0x34e4] ss:$48 sps:$4 sm:$0xff]   ;;  %v21574_v45 = vld [vmem:[%s25051_s14 + $0x34e0] ss:$48 sps:$4 sm:$0xff]  }
 0x170   : > { %v21579_v32 = vld [vmem:[%s25051_s14 + $0x3ae4] ss:$48 sps:$4 sm:$0xff]   ;;  %v21577_v47 = vld [vmem:[%s25051_s14 + $0x3ae0] ss:$48 sps:$4 sm:$0xff]  }
 0x171   : > { %14691 = vmatpush1.bf16.msra.mxu0 %v21526_v48  ;;  %v21582_v48 = vld [vmem:[%s25051_s14 + $0x3484] ss:$48 sps:$4 sm:$0xff]   ;;  %v21580_v52 = vld [vmem:[%s25051_s14 + $0x3480] ss:$48 sps:$4 sm:$0xff]  }
 0x172   : > { %14732 = vmatpush1.bf16.msra.mxu1 %v21529_v51  ;;  %14692 = vmatprep.subr.bf16.mxu0 %v21534_v58  ;;  %v21585_v51 = vld [vmem:[%s25051_s14 + $0x3a84] ss:$48 sps:$4 sm:$0xff]   ;;  %v21583_v53 = vld [vmem:[%s25051_s14 + $0x3a80] ss:$48 sps:$4 sm:$0xff]  }
 0x173   : > { %14733 = vmatprep.subr.bf16.mxu1 %v21537_v61  ;;  %v21588_v56 = vld [vmem:[%s25051_s14 + $0x3424] ss:$48 sps:$4 sm:$0xff]   ;;  %v21586_v58 = vld [vmem:[%s25051_s14 + $0x3420] ss:$48 sps:$4 sm:$0xff]  }
 0x174   : > { %v21591_v57 = vld [vmem:[%s25051_s14 + $0x3a24] ss:$48 sps:$4 sm:$0xff]   ;;  %v21589_v61 = vld [vmem:[%s25051_s14 + $0x3a20] ss:$48 sps:$4 sm:$0xff]  }
 0x175   : > { %14693 = vmatpush1.bf16.msra.mxu0 %v21532_v62  ;;  %v21594_v62 = vld [vmem:[%s25051_s14 + $0x33c4] ss:$48 sps:$4 sm:$0xff]  }
 0x176   : > { %14734 = vmatpush1.bf16.msra.mxu1 %v21535_v63  ;;  %14694 = vmatprep.subr.bf16.mxu0 %v21540_v2  ;;  %v21597_v63 = vld [vmem:[%s25051_s14 + $0x39c4] ss:$48 sps:$4 sm:$0xff]   ;;  %v2765_v2 = vcombine.high %v25413_v1, %v25413_v1  ;;  %v21598_v1 = vld [vmem:[%s25051_s14 + $0x3360] ss:$48 sps:$4 sm:$0xff]  }
 0x177   : > { %14735 = vmatprep.subr.bf16.mxu1 %v21543_v3  ;;  %v21592_v3 = vld [vmem:[%s25051_s14 + $0x33c0] ss:$48 sps:$4 sm:$0xff]  }
 0x179   : > { %14695 = vmatpush1.bf16.msra.mxu0 %v21538_v5  ;;  %v21595_v5 = vld [vmem:[%s25051_s14 + $0x39c0] ss:$48 sps:$4 sm:$0xff]  }
 0x17a   : > { %14736 = vmatpush1.bf16.msra.mxu1 %v21541_v7  ;;  %14696 = vmatprep.subr.bf16.mxu0 %v21546_v8  ;;  %v21600_v7 = vld [vmem:[%s25051_s14 + $0x3364] ss:$48 sps:$4 sm:$0xff]  }
 0x17b   : > { %14737 = vmatprep.subr.bf16.mxu1 %v21549_v9  ;;  %v21603_v8 = vld [vmem:[%s25051_s14 + $0x3964] ss:$48 sps:$4 sm:$0xff]   ;;  %v25520_v9 = vrot.slane %v2765_v2, %v25112_v49 }
 0x17c   : > { %v21633_v2 = vld [vmem:[%s25051_s14 + $0x4384] ss:$48 sps:$4 sm:$0xff]  }
 0x17d   : > { %14697 = vmatpush1.bf16.msra.mxu0 %v21544_v10  ;;  %v21601_v10 = vld [vmem:[%s25051_s14 + $0x3960] ss:$48 sps:$4 sm:$0xff]  }
 0x17e   : > { %14738 = vmatpush1.bf16.msra.mxu1 %v21547_v11  ;;  %14698 = vmatprep.subr.bf16.mxu0 %v21552_v12  ;;  %v21606_v11 = vld [vmem:[%s25051_s14 + $0x3304] ss:$48 sps:$4 sm:$0xff]  }
 0x17f   : > { %14739 = vmatprep.subr.bf16.mxu1 %v21555_v14  ;;  %v21609_v12 = vld [vmem:[%s25051_s14 + $0x3904] ss:$48 sps:$4 sm:$0xff]   ;;  %v2781_v14 = vcombine.high %v25520_v9, %v25520_v9 }
 0x181   : > { %14699 = vmatpush1.bf16.msra.mxu0 %v21550_v19  ;;  %v25530_v19 = vrot.slane %v25419_v4, %v25112_v49 }
 0x182   : > { %14740 = vmatpush1.bf16.msra.mxu1 %v21553_v20  ;;  %14700 = vmatprep.subr.bf16.mxu0 %v21558_v40  ;;  %v21604_v20 = vld [vmem:[%s25051_s14 + $0x3300] ss:$48 sps:$4 sm:$0xff]  }
 0x183   : > { %14741 = vmatprep.subr.bf16.mxu1 %v21561_v25  ;;  %v21607_v40 = vld [vmem:[%s25051_s14 + $0x3900] ss:$48 sps:$4 sm:$0xff]   ;;  %v21612_v25 = vld [vmem:[%s25051_s14 + $0x3ea4] ss:$48 sps:$4 sm:$0xff]   ;;  %v25543_v4 = vcombine.high %v25530_v19, %v25530_v19 }
 0x185   : > { %14701 = vmatpush1.bf16.msra.mxu0 %v21556_v27  ;;  %v21615_v27 = vld [vmem:[%s25051_s14 + $0x44a4] ss:$48 sps:$4 sm:$0xff]  }
 0x186   : > { %14742 = vmatpush1.bf16.msra.mxu1 %v21559_v28  ;;  %14702 = vmatprep.subr.bf16.mxu0 %v21564_v29  ;;  %v21610_v28 = vld [vmem:[%s25051_s14 + $0x3ea0] ss:$48 sps:$4 sm:$0xff]  }
 0x187   : > { %14743 = vmatprep.subr.bf16.mxu1 %v21567_v31  ;;  %v21613_v29 = vld [vmem:[%s25051_s14 + $0x44a0] ss:$48 sps:$4 sm:$0xff]   ;;  %v25539_v31 = vrot.slane %v2781_v14, %v25112_v49 }
 0x188   : > { %v21640_v14 = vld [vmem:[%s25051_s14 + $0x3cc0] ss:$48 sps:$4 sm:$0xff]  }
 0x189   : > { %14703 = vmatpush2.bf16.msra.mxu0 %v21562_v33  ;;  %v21618_v33 = vld [vmem:[%s25051_s14 + $0x3e44] ss:$48 sps:$4 sm:$0xff]  }
 0x18a   : > { %14744 = vmatpush2.bf16.msra.mxu1 %v21565_v34  ;;  %14704 = vmatprep.subr.bf16.mxu0 %v21570_v36  ;;  %v21621_v34 = vld [vmem:[%s25051_s14 + $0x4444] ss:$48 sps:$4 sm:$0xff]   ;;  %v21616_v36 = vld [vmem:[%s25051_s14 + $0x3e40] ss:$48 sps:$4 sm:$0xff]  }
 0x18b   : > { %14745 = vmatprep.subr.bf16.mxu1 %v21573_v37  ;;  %v21619_v37 = vld [vmem:[%s25051_s14 + $0x4440] ss:$48 sps:$4 sm:$0xff]  }
 0x18d   : > { %14705 = vmatpush2.bf16.msra.mxu0 %v21568_v38  ;;  %v25551_v38 = vcombine.high %v25539_v31, %v25539_v31 }
 0x18e   : > { %14746 = vmatpush2.bf16.msra.mxu1 %v21571_v39  ;;  %14706 = vmatprep.subr.bf16.mxu0 %v21576_v44 }
 0x18f   : > { %14747 = vmatprep.subr.bf16.mxu1 %v21579_v32 }
 0x191   : > { %14707 = vmatpush2.bf16.msra.mxu0 %v21574_v45 }
 0x192   : > { %14748 = vmatpush2.bf16.msra.mxu1 %v21577_v47  ;;  %14708 = vmatprep.subr.bf16.mxu0 %v21582_v48  ;;  %v21624_v48 = vld [vmem:[%s25051_s14 + $0x3de4] ss:$48 sps:$4 sm:$0xff]  }
 0x193   : > { %14749 = vmatprep.subr.bf16.mxu1 %v21585_v51  ;;  %v21627_v51 = vld [vmem:[%s25051_s14 + $0x43e4] ss:$48 sps:$4 sm:$0xff]  }
 0x195   : > { %14709 = vmatpush2.bf16.msra.mxu0 %v21580_v52 }
 0x196   : > { %14750 = vmatpush2.bf16.msra.mxu1 %v21583_v53  ;;  %14710 = vmatprep.subr.bf16.mxu0 %v21588_v56  ;;  %v21622_v56 = vld [vmem:[%s25051_s14 + $0x3de0] ss:$48 sps:$4 sm:$0xff]  }
 0x197   : > { %14751 = vmatprep.subr.bf16.mxu1 %v21591_v57  ;;  %v21625_v57 = vld [vmem:[%s25051_s14 + $0x43e0] ss:$48 sps:$4 sm:$0xff]  }
 0x199   : > { %14711 = vmatpush2.bf16.msra.mxu0 %v21586_v58 }
 0x19a   : > { %14752 = vmatpush2.bf16.msra.mxu1 %v21589_v61  ;;  %14712 = vmatprep.subr.bf16.mxu0 %v21594_v62 }
 0x19b   : > { %14753 = vmatprep.subr.bf16.mxu1 %v21597_v63 }
 0x19d   : > { %14713 = vmatpush2.bf16.msra.mxu0 %v21592_v3  ;;  %v21628_v3 = vld [vmem:[%s25051_s14 + $0x3d80] ss:$48 sps:$4 sm:$0xff]  }
 0x19e   : > { %14754 = vmatpush2.bf16.msra.mxu1 %v21595_v5  ;;  %14714 = vmatprep.subr.bf16.mxu0 %v21600_v7  ;;  %v21631_v5 = vld [vmem:[%s25051_s14 + $0x4380] ss:$48 sps:$4 sm:$0xff]   ;;  %v21636_v7 = vld [vmem:[%s25051_s14 + $0x3d24] ss:$48 sps:$4 sm:$0xff]  }
 0x19f   : > { %14755 = vmatprep.subr.bf16.mxu1 %v21603_v8  ;;  %v21639_v8 = vld [vmem:[%s25051_s14 + $0x4324] ss:$48 sps:$4 sm:$0xff]  }
 0x1a1   : > { %14715 = vmatpush2.bf16.msra.mxu0 %v21598_v1  ;;  %v21634_v1 = vld [vmem:[%s25051_s14 + $0x3d20] ss:$48 sps:$4 sm:$0xff]  }
 0x1a2   : > { %14756 = vmatpush2.bf16.msra.mxu1 %v21601_v10  ;;  %14716 = vmatprep.subr.bf16.mxu0 %v21606_v11  ;;  %v21637_v10 = vld [vmem:[%s25051_s14 + $0x4320] ss:$48 sps:$4 sm:$0xff]   ;;  %v21642_v11 = vld [vmem:[%s25051_s14 + $0x3cc4] ss:$48 sps:$4 sm:$0xff]  }
 0x1a3   : > { %14757 = vmatprep.subr.bf16.mxu1 %v21609_v12  ;;  %v21645_v12 = vld [vmem:[%s25051_s14 + $0x42c4] ss:$48 sps:$4 sm:$0xff]  }
 0x1a5   : > { %14717 = vmatpush2.bf16.msra.mxu0 %v21604_v20  ;;  %v21643_v20 = vld [vmem:[%s25051_s14 + $0x42c0] ss:$48 sps:$4 sm:$0xff]  }
 0x1a6   : > { %14758 = vmatpush2.bf16.msra.mxu1 %v21607_v40  ;;  %14768 = vmatprep.subr.bf16.mxu0 %v21612_v25  ;;  %v21648_v40 = vld [vmem:[%s25051_s14 + $0x3c64] ss:$48 sps:$4 sm:$0xff]  }
 0x1a7   : > { %14809 = vmatprep.subr.bf16.mxu1 %v21615_v27  ;;  %v21651_v25 = vld [vmem:[%s25051_s14 + $0x4264] ss:$48 sps:$4 sm:$0xff]   ;;  %v21646_v27 = vld [vmem:[%s25051_s14 + $0x3c60] ss:$48 sps:$4 sm:$0xff]  }
 0x1a8   : > { %v14474_v39 = vpop.f32.mrf.mxu0  ;;  %14719 = vmatmul.mubr.bf16.vlgmr.msra.gmra.mxu0 %v25530_v19 }
 0x1a9   : > { %v14515_v44 = vpop.f32.mrf.mxu1  ;;  %14760 = vmatmul.mubr.bf16.vlgmr.msra.gmra.mxu1 %v25543_v4  ;;  %v14475_v32 = vadd.f32 %v14474_v39, %v25463_v46  ;;  %14769 = vmatpush1.bf16.msra.mxu0 %v21610_v28  ;;  %v21649_v28 = vld [vmem:[%s25051_s14 + $0x4260] ss:$48 sps:$4 sm:$0xff]   ;;  %v21663_v39 = vld [vmem:[%s25051_s14 + $0x47a4] ss:$48 sps:$4 sm:$0xff]  }
 0x1aa   : > { %14810 = vmatpush1.bf16.msra.mxu1 %v21613_v29  ;;  %v14476_v45 = vpop.f32.mrf.mxu0  ;;  %14770 = vmatprep.subr.bf16.mxu0 %v21618_v33  ;;  %v21654_v29 = vld [vmem:[%s25051_s14 + $0x3c04] ss:$48 sps:$4 sm:$0xff]  }
 0x1ab   : > { %v14517_v47 = vpop.f32.mrf.mxu1  ;;  %14811 = vmatprep.subr.bf16.mxu1 %v21621_v34  ;;  %v25558_v52 = vadd.f32 %v14515_v44, %v14475_v32  ;;  %v14477_v53 = vadd.f32 %v14476_v45, %v25469_v35  ;;  %14800 = vmatprep.mubr.bf16.mxu0 %v25539_v31  ;;  %v21630_v35 = vld [vmem:[%s25051_s14 + $0x3d84] ss:$48 sps:$4 sm:$0xff]   ;;  %v21652_v34 = vld [vmem:[%s25051_s14 + $0x3c00] ss:$48 sps:$4 sm:$0xff]  }
 0x1ac   : > { %14841 = vmatprep.mubr.bf16.mxu1 %v25551_v38  ;;  %v14478_v46 = vpop.f32.mrf.mxu0  ;;  %v21657_v33 = vld [vmem:[%s25051_s14 + $0x4204] ss:$48 sps:$4 sm:$0xff]   ;;  %v21658_v44 = vld [vmem:[%s25051_s14 + $0x41a0] ss:$48 sps:$4 sm:$0xff]  }
 0x1ad   : > { %v14519_v58 = vpop.f32.mrf.mxu1  ;;  %v25565_v61 = vadd.f32 %v14517_v47, %v14477_v53  ;;  %14771 = vmatpush1.bf16.msra.mxu0 %v21616_v36  ;;  %v21655_v36 = vld [vmem:[%s25051_s14 + $0x4200] ss:$48 sps:$4 sm:$0xff]   ;;  %v21666_v45 = vld [vmem:[%s25051_s14 + $0x4144] ss:$48 sps:$4 sm:$0xff]  }
 0x1ae   : > { %14812 = vmatpush1.bf16.msra.mxu1 %v21619_v37  ;;  %v14479_v62 = vpop.f32.mrf.mxu0  ;;  %14772 = vmatprep.subr.bf16.mxu0 %v21624_v48  ;;  %v21660_v37 = vld [vmem:[%s25051_s14 + $0x41a4] ss:$48 sps:$4 sm:$0xff]   ;;  %v21661_v32 = vld [vmem:[%s25051_s14 + $0x47a0] ss:$48 sps:$4 sm:$0xff]  }
 0x1af   : > { %v14520_v63 = vpop.f32.mrf.mxu1  ;;  %14813 = vmatprep.subr.bf16.mxu1 %v21627_v51  ;;  %v21669_v47 = vld [vmem:[%s25051_s14 + $0x4744] ss:$48 sps:$4 sm:$0xff]   ;;  %v21664_v48 = vld [vmem:[%s25051_s14 + $0x4140] ss:$48 sps:$4 sm:$0xff]  }
 0x1b0   : > { %v21667_v51 = vld [vmem:[%s25051_s14 + $0x4740] ss:$48 sps:$4 sm:$0xff]   ;;  %v21672_v53 = vld [vmem:[%s25051_s14 + $0x40e4] ss:$48 sps:$4 sm:$0xff]  }
 0x1b1   : > { %14773 = vmatpush1.bf16.msra.mxu0 %v21622_v56  ;;  %v21675_v56 = vld [vmem:[%s25051_s14 + $0x46e4] ss:$48 sps:$4 sm:$0xff]   ;;  %v21673_v46 = vld [vmem:[%s25051_s14 + $0x46e0] ss:$48 sps:$4 sm:$0xff]  }
 0x1b2   : > { %14814 = vmatpush1.bf16.msra.mxu1 %v21625_v57  ;;  %14774 = vmatprep.subr.bf16.mxu0 %v21630_v35  ;;  %v21670_v57 = vld [vmem:[%s25051_s14 + $0x40e0] ss:$48 sps:$4 sm:$0xff]   ;;  %v21678_v58 = vld [vmem:[%s25051_s14 + $0x4084] ss:$48 sps:$4 sm:$0xff]  }
 0x1b3   : > { %14815 = vmatprep.subr.bf16.mxu1 %v21633_v2  ;;  %v21681_v62 = vld [vmem:[%s25051_s14 + $0x4684] ss:$48 sps:$4 sm:$0xff]   ;;  %v21676_v63 = vld [vmem:[%s25051_s14 + $0x4080] ss:$48 sps:$4 sm:$0xff]  }
 0x1b4   : > { %v21679_v35 = vld [vmem:[%s25051_s14 + $0x4680] ss:$48 sps:$4 sm:$0xff]   ;;  %v21684_v2 = vld [vmem:[%s25051_s14 + $0x4024] ss:$48 sps:$4 sm:$0xff]  }
 0x1b5   : > { %14775 = vmatpush1.bf16.msra.mxu0 %v21628_v3  ;;  %v21687_v3 = vld [vmem:[%s25051_s14 + $0x4624] ss:$48 sps:$4 sm:$0xff]  }
 0x1b6   : > { %14816 = vmatpush1.bf16.msra.mxu1 %v21631_v5  ;;  %14776 = vmatprep.subr.bf16.mxu0 %v21636_v7  ;;  %v21682_v5 = vld [vmem:[%s25051_s14 + $0x4020] ss:$48 sps:$4 sm:$0xff]  }
 0x1b7   : > { %14817 = vmatprep.subr.bf16.mxu1 %v21639_v8  ;;  %v21685_v7 = vld [vmem:[%s25051_s14 + $0x4620] ss:$48 sps:$4 sm:$0xff]   ;;  %v21690_v8 = vld [vmem:[%s25051_s14 + $0x3fc4] ss:$48 sps:$4 sm:$0xff]  }
 0x1b9   : > { %14777 = vmatpush1.bf16.msra.mxu0 %v21634_v1  ;;  %v21693_v1 = vld [vmem:[%s25051_s14 + $0x45c4] ss:$48 sps:$4 sm:$0xff]  }
 0x1ba   : > { %14818 = vmatpush1.bf16.msra.mxu1 %v21637_v10  ;;  %14778 = vmatprep.subr.bf16.mxu0 %v21642_v11  ;;  %v21688_v10 = vld [vmem:[%s25051_s14 + $0x3fc0] ss:$48 sps:$4 sm:$0xff]  }
 0x1bb   : > { %14819 = vmatprep.subr.bf16.mxu1 %v21645_v12  ;;  %v21691_v11 = vld [vmem:[%s25051_s14 + $0x45c0] ss:$48 sps:$4 sm:$0xff]   ;;  %v21696_v12 = vld [vmem:[%s25051_s14 + $0x3f64] ss:$48 sps:$4 sm:$0xff]  }
 0x1bd   : > { %14779 = vmatpush1.bf16.msra.mxu0 %v21640_v14  ;;  %v21699_v14 = vld [vmem:[%s25051_s14 + $0x4564] ss:$48 sps:$4 sm:$0xff]  }
 0x1be   : > { %14820 = vmatpush1.bf16.msra.mxu1 %v21643_v20  ;;  %14780 = vmatprep.subr.bf16.mxu0 %v21648_v40  ;;  %v21694_v20 = vld [vmem:[%s25051_s14 + $0x3f60] ss:$48 sps:$4 sm:$0xff]  }
 0x1bf   : > { %14821 = vmatprep.subr.bf16.mxu1 %v21651_v25  ;;  %v21697_v40 = vld [vmem:[%s25051_s14 + $0x4560] ss:$48 sps:$4 sm:$0xff]   ;;  %v21702_v25 = vld [vmem:[%s25051_s14 + $0x3f04] ss:$48 sps:$4 sm:$0xff]  }
 0x1c1   : > { %14781 = vmatpush1.bf16.msra.mxu0 %v21646_v27  ;;  %v21705_v27 = vld [vmem:[%s25051_s14 + $0x4504] ss:$48 sps:$4 sm:$0xff]  }
 0x1c2   : > { %14822 = vmatpush1.bf16.msra.mxu1 %v21649_v28  ;;  %14782 = vmatprep.subr.bf16.mxu0 %v21654_v29  ;;  %v25619_v28 = vrot.slane %v25520_v9, %v25112_v49  ;;  %v21700_v29 = vld [vmem:[%s25051_s14 + $0x3f00] ss:$48 sps:$4 sm:$0xff]   ;;  %v21715_v49 = vld [vmem:[%s25051_s14 + $0x24c] ss:$48 sps:$4 sm:$0xff]  }
 0x1c3   : > { %14823 = vmatprep.subr.bf16.mxu1 %v21657_v33  ;;  %v21703_v33 = vld [vmem:[%s25051_s14 + $0x4500] ss:$48 sps:$4 sm:$0xff]   ;;  %v21718_v9 = vld [vmem:[%s25051_s14 + $0x84c] ss:$48 sps:$4 sm:$0xff]  }
 0x1c5   : > { %14783 = vmatpush1.bf16.msra.mxu0 %v21652_v34  ;;  %v21709_v34 = vld [vmem:[%s25051_s14 + $0x2ac] ss:$48 sps:$4 sm:$0xff]  }
 0x1c6   : > { %14824 = vmatpush1.bf16.msra.mxu1 %v21655_v36  ;;  %14784 = vmatprep.subr.bf16.mxu0 %v21660_v37  ;;  %v21712_v36 = vld [vmem:[%s25051_s14 + $0x8ac] ss:$48 sps:$4 sm:$0xff]   ;;  %v21707_v37 = vld [vmem:[%s25051_s14 + $0x2a8] ss:$48 sps:$4 sm:$0xff]  }
 0x1c7   : > { %14825 = vmatprep.subr.bf16.mxu1 %v21663_v39  ;;  %v21710_v39 = vld [vmem:[%s25051_s14 + $0x8a8] ss:$48 sps:$4 sm:$0xff]  }
 0x1c9   : > { %14785 = vmatpush2.bf16.msra.mxu0 %v21658_v44  ;;  %v25629_v44 = vcombine.high %v25619_v28, %v25619_v28 }
 0x1ca   : > { %14826 = vmatpush2.bf16.msra.mxu1 %v21661_v32  ;;  %14786 = vmatprep.subr.bf16.mxu0 %v21666_v45  ;;  %v21713_v32 = vld [vmem:[%s25051_s14 + $0x248] ss:$48 sps:$4 sm:$0xff]  }
 0x1cb   : > { %14827 = vmatprep.subr.bf16.mxu1 %v21669_v47  ;;  %v21716_v45 = vld [vmem:[%s25051_s14 + $0x848] ss:$48 sps:$4 sm:$0xff]  }
 0x1cd   : > { %14787 = vmatpush2.bf16.msra.mxu0 %v21664_v48 }
 0x1ce   : > { %14828 = vmatpush2.bf16.msra.mxu1 %v21667_v51  ;;  %14788 = vmatprep.subr.bf16.mxu0 %v21672_v53 }
 0x1cf   : > { %14829 = vmatprep.subr.bf16.mxu1 %v21675_v56 }
 0x1d1   : > { %14789 = vmatpush2.bf16.msra.mxu0 %v21670_v57  ;;  %v21721_v57 = vld [vmem:[%s25051_s14 + $0x1ec] ss:$48 sps:$4 sm:$0xff]  }
 0x1d2   : > { %14830 = vmatpush2.bf16.msra.mxu1 %v21673_v46  ;;  %14790 = vmatprep.subr.bf16.mxu0 %v21678_v58  ;;  %v21724_v46 = vld [vmem:[%s25051_s14 + $0x7ec] ss:$48 sps:$4 sm:$0xff]  }
 0x1d3   : > { %14831 = vmatprep.subr.bf16.mxu1 %v21681_v62 }
 0x1d5   : > { %14791 = vmatpush2.bf16.msra.mxu0 %v21676_v63  ;;  %v21719_v63 = vld [vmem:[%s25051_s14 + $0x1e8] ss:$48 sps:$4 sm:$0xff]  }
 0x1d6   : > { %14832 = vmatpush2.bf16.msra.mxu1 %v21679_v35  ;;  %14792 = vmatprep.subr.bf16.mxu0 %v21684_v2  ;;  %v21722_v35 = vld [vmem:[%s25051_s14 + $0x7e8] ss:$48 sps:$4 sm:$0xff]  }
 0x1d7   : > { %14833 = vmatprep.subr.bf16.mxu1 %v21687_v3 }
 0x1d9   : > { %14793 = vmatpush2.bf16.msra.mxu0 %v21682_v5 }
 0x1da   : > { %14834 = vmatpush2.bf16.msra.mxu1 %v21685_v7  ;;  %14794 = vmatprep.subr.bf16.mxu0 %v21690_v8  ;;  %v21730_v8 = vld [vmem:[%s25051_s14 + $0x78c] ss:$48 sps:$4 sm:$0xff]  }
 0x1db   : > { %14835 = vmatprep.subr.bf16.mxu1 %v21693_v1  ;;  %v21725_v1 = vld [vmem:[%s25051_s14 + $0x188] ss:$48 sps:$4 sm:$0xff]  }
 0x1dd   : > { %14795 = vmatpush2.bf16.msra.mxu0 %v21688_v10  ;;  %v21728_v10 = vld [vmem:[%s25051_s14 + $0x788] ss:$48 sps:$4 sm:$0xff]  }
 0x1de   : > { %14836 = vmatpush2.bf16.msra.mxu1 %v21691_v11  ;;  %14796 = vmatprep.subr.bf16.mxu0 %v21696_v12  ;;  %v21733_v11 = vld [vmem:[%s25051_s14 + $0x12c] ss:$48 sps:$4 sm:$0xff]  }
 0x1df   : > { %14837 = vmatprep.subr.bf16.mxu1 %v21699_v14  ;;  %v21736_v12 = vld [vmem:[%s25051_s14 + $0x72c] ss:$48 sps:$4 sm:$0xff]   ;;  %v21731_v14 = vld [vmem:[%s25051_s14 + $0x128] ss:$48 sps:$4 sm:$0xff]  }
 0x1e1   : > { %14797 = vmatpush2.bf16.msra.mxu0 %v21694_v20  ;;  %v21734_v20 = vld [vmem:[%s25051_s14 + $0x728] ss:$48 sps:$4 sm:$0xff]  }
 0x1e2   : > { %14838 = vmatpush2.bf16.msra.mxu1 %v21697_v40  ;;  %14798 = vmatprep.subr.bf16.mxu0 %v21702_v25  ;;  %v21739_v40 = vld [vmem:[%s25051_s14 + $0xcc] ss:$48 sps:$4 sm:$0xff]  }
 0x1e3   : > { %14839 = vmatprep.subr.bf16.mxu1 %v21705_v27  ;;  %v21742_v25 = vld [vmem:[%s25051_s14 + $0x6cc] ss:$48 sps:$4 sm:$0xff]   ;;  %v21737_v27 = vld [vmem:[%s25051_s14 + $0xc8] ss:$48 sps:$4 sm:$0xff]  }
 0x1e5   : > { %14799 = vmatpush2.bf16.msra.mxu0 %v21700_v29  ;;  %v21740_v29 = vld [vmem:[%s25051_s14 + $0x6c8] ss:$48 sps:$4 sm:$0xff]  }
 0x1e6   : > { %14840 = vmatpush2.bf16.msra.mxu1 %v21703_v33  ;;  %14850 = vmatprep.subr.bf16.mxu0 %v21709_v34  ;;  %v21745_v33 = vld [vmem:[%s25051_s14 + $0x6c] ss:$48 sps:$4 sm:$0xff]  }
 0x1e7   : > { %14891 = vmatprep.subr.bf16.mxu1 %v21712_v36  ;;  %v21748_v34 = vld [vmem:[%s25051_s14 + $0x66c] ss:$48 sps:$4 sm:$0xff]   ;;  %v21743_v36 = vld [vmem:[%s25051_s14 + $0x68] ss:$48 sps:$4 sm:$0xff]  }
 0x1e8   : > { %v14556_v47 = vpop.f32.mrf.mxu0  ;;  %14801 = vmatmul.mubr.bf16.vlgmr.msra.gmra.mxu0 %v25619_v28 }
 0x1e9   : > { %v14597_v48 = vpop.f32.mrf.mxu1  ;;  %14842 = vmatmul.mubr.bf16.vlgmr.msra.gmra.mxu1 %v25629_v44  ;;  %v14557_v51 = vadd.f32 %v14556_v47, %v25558_v52  ;;  %14851 = vmatpush1.bf16.msra.mxu0 %v21707_v37  ;;  %v21746_v37 = vld [vmem:[%s25051_s14 + $0x668] ss:$48 sps:$4 sm:$0xff]   ;;  %v21760_v47 = vld [vmem:[%s25051_s14 + $0xbac] ss:$48 sps:$4 sm:$0xff]  }
 0x1ea   : > { %14892 = vmatpush1.bf16.msra.mxu1 %v21710_v39  ;;  %v14558_v53 = vpop.f32.mrf.mxu0  ;;  %14852 = vmatprep.subr.bf16.mxu0 %v21715_v49  ;;  %v21751_v39 = vld [vmem:[%s25051_s14 + $0xc] ss:$48 sps:$4 sm:$0xff]  }
 0x1eb   : > { %v14599_v56 = vpop.f32.mrf.mxu1  ;;  %14893 = vmatprep.subr.bf16.mxu1 %v21718_v9  ;;  %v25640_v58 = vadd.f32 %v14597_v48, %v14557_v51  ;;  %v14559_v62 = vadd.f32 %v14558_v53, %v25565_v61  ;;  %14882 = vmatprep.mubr.bf16.mxu0 %v25126_v60  ;;  %v21727_v61 = vld [vmem:[%s25051_s14 + $0x18c] ss:$48 sps:$4 sm:$0xff]   ;;  %v21749_v9 = vld [vmem:[%s25051_s14 + $0x8] ss:$48 sps:$4 sm:$0xff]  }
 0x1ec   : > { %14923 = vmatprep.mubr.bf16.mxu1 %v25133_v0  ;;  %v14560_v52 = vpop.f32.mrf.mxu0  ;;  %v21754_v49 = vld [vmem:[%s25051_s14 + $0x60c] ss:$48 sps:$4 sm:$0xff]   ;;  %v21755_v48 = vld [vmem:[%s25051_s14 + $0x5a8] ss:$48 sps:$4 sm:$0xff]  }
 0x1ed   : > { %v14601_v2 = vpop.f32.mrf.mxu1  ;;  %v25647_v3 = vadd.f32 %v14599_v56, %v14559_v62  ;;  %14853 = vmatpush1.bf16.msra.mxu0 %v21713_v32  ;;  %v21752_v32 = vld [vmem:[%s25051_s14 + $0x608] ss:$48 sps:$4 sm:$0xff]   ;;  %v21763_v53 = vld [vmem:[%s25051_s14 + $0x54c] ss:$48 sps:$4 sm:$0xff]  }
 0x1ee   : > { %14894 = vmatpush1.bf16.msra.mxu1 %v21716_v45  ;;  %v14561_v5 = vpop.f32.mrf.mxu0  ;;  %14854 = vmatprep.subr.bf16.mxu0 %v21721_v57  ;;  %v21757_v45 = vld [vmem:[%s25051_s14 + $0x5ac] ss:$48 sps:$4 sm:$0xff]   ;;  %v21758_v51 = vld [vmem:[%s25051_s14 + $0xba8] ss:$48 sps:$4 sm:$0xff]  }
 0x1ef   : > { %v14602_v7 = vpop.f32.mrf.mxu1  ;;  %14895 = vmatprep.subr.bf16.mxu1 %v21724_v46  ;;  %v21766_v56 = vld [vmem:[%s25051_s14 + $0xb4c] ss:$48 sps:$4 sm:$0xff]   ;;  %v21761_v57 = vld [vmem:[%s25051_s14 + $0x548] ss:$48 sps:$4 sm:$0xff]  }
 0x1f0   : > { %v21764_v46 = vld [vmem:[%s25051_s14 + $0xb48] ss:$48 sps:$4 sm:$0xff]   ;;  %v21769_v62 = vld [vmem:[%s25051_s14 + $0x4ec] ss:$48 sps:$4 sm:$0xff]  }
 0x1f1   : > { %14855 = vmatpush1.bf16.msra.mxu0 %v21719_v63  ;;  %v21772_v63 = vld [vmem:[%s25051_s14 + $0xaec] ss:$48 sps:$4 sm:$0xff]   ;;  %v21770_v52 = vld [vmem:[%s25051_s14 + $0xae8] ss:$48 sps:$4 sm:$0xff]  }
 0x1f2   : > { %14896 = vmatpush1.bf16.msra.mxu1 %v21722_v35  ;;  %14856 = vmatprep.subr.bf16.mxu0 %v21727_v61  ;;  %v21767_v35 = vld [vmem:[%s25051_s14 + $0x4e8] ss:$48 sps:$4 sm:$0xff]   ;;  %v21775_v2 = vld [vmem:[%s25051_s14 + $0x48c] ss:$48 sps:$4 sm:$0xff]  }
 0x1f3   : > { %14897 = vmatprep.subr.bf16.mxu1 %v21730_v8  ;;  %v21778_v5 = vld [vmem:[%s25051_s14 + $0xa8c] ss:$48 sps:$4 sm:$0xff]   ;;  %v21773_v7 = vld [vmem:[%s25051_s14 + $0x488] ss:$48 sps:$4 sm:$0xff]  }
 0x1f4   : > { %v21776_v61 = vld [vmem:[%s25051_s14 + $0xa88] ss:$48 sps:$4 sm:$0xff]   ;;  %v21781_v8 = vld [vmem:[%s25051_s14 + $0x42c] ss:$48 sps:$4 sm:$0xff]  }
 0x1f5   : > { %14857 = vmatpush1.bf16.msra.mxu0 %v21725_v1  ;;  %v21784_v1 = vld [vmem:[%s25051_s14 + $0xa2c] ss:$48 sps:$4 sm:$0xff]  }
 0x1f6   : > { %14898 = vmatpush1.bf16.msra.mxu1 %v21728_v10  ;;  %14858 = vmatprep.subr.bf16.mxu0 %v21733_v11  ;;  %v21779_v10 = vld [vmem:[%s25051_s14 + $0x428] ss:$48 sps:$4 sm:$0xff]  }
 0x1f7   : > { %14899 = vmatprep.subr.bf16.mxu1 %v21736_v12  ;;  %v21782_v11 = vld [vmem:[%s25051_s14 + $0xa28] ss:$48 sps:$4 sm:$0xff]   ;;  %v21787_v12 = vld [vmem:[%s25051_s14 + $0x3cc] ss:$48 sps:$4 sm:$0xff]  }
 0x1f9   : > { %14859 = vmatpush1.bf16.msra.mxu0 %v21731_v14  ;;  %v21790_v14 = vld [vmem:[%s25051_s14 + $0x9cc] ss:$48 sps:$4 sm:$0xff]  }
 0x1fa   : > { %14900 = vmatpush1.bf16.msra.mxu1 %v21734_v20  ;;  %14860 = vmatprep.subr.bf16.mxu0 %v21739_v40  ;;  %v21785_v20 = vld [vmem:[%s25051_s14 + $0x3c8] ss:$48 sps:$4 sm:$0xff]  }
 0x1fb   : > { %14901 = vmatprep.subr.bf16.mxu1 %v21742_v25  ;;  %v21788_v40 = vld [vmem:[%s25051_s14 + $0x9c8] ss:$48 sps:$4 sm:$0xff]   ;;  %v21793_v25 = vld [vmem:[%s25051_s14 + $0x36c] ss:$48 sps:$4 sm:$0xff]  }
 0x1fd   : > { %14861 = vmatpush1.bf16.msra.mxu0 %v21737_v27  ;;  %v21796_v27 = vld [vmem:[%s25051_s14 + $0x96c] ss:$48 sps:$4 sm:$0xff]  }
 0x1fe   : > { %14902 = vmatpush1.bf16.msra.mxu1 %v21740_v29  ;;  %14862 = vmatprep.subr.bf16.mxu0 %v21745_v33  ;;  %v21791_v29 = vld [vmem:[%s25051_s14 + $0x368] ss:$48 sps:$4 sm:$0xff]  }
 0x1ff   : > { %14903 = vmatprep.subr.bf16.mxu1 %v21748_v34  ;;  %v21794_v33 = vld [vmem:[%s25051_s14 + $0x968] ss:$48 sps:$4 sm:$0xff]   ;;  %v21799_v34 = vld [vmem:[%s25051_s14 + $0x30c] ss:$48 sps:$4 sm:$0xff]  }
 0x201   : > { %14863 = vmatpush1.bf16.msra.mxu0 %v21743_v36  ;;  %v21802_v36 = vld [vmem:[%s25051_s14 + $0x90c] ss:$48 sps:$4 sm:$0xff]  }
 0x202   : > { %14904 = vmatpush1.bf16.msra.mxu1 %v21746_v37  ;;  %14864 = vmatprep.subr.bf16.mxu0 %v21751_v39  ;;  %v21797_v37 = vld [vmem:[%s25051_s14 + $0x308] ss:$48 sps:$4 sm:$0xff]  }
 0x203   : > { %14905 = vmatprep.subr.bf16.mxu1 %v21754_v49  ;;  %v21800_v39 = vld [vmem:[%s25051_s14 + $0x908] ss:$48 sps:$4 sm:$0xff]   ;;  %v21805_v49 = vld [vmem:[%s25051_s14 + $0xeac] ss:$48 sps:$4 sm:$0xff]  }
 0x205   : > { %14865 = vmatpush1.bf16.msra.mxu0 %v21749_v9  ;;  %v21808_v9 = vld [vmem:[%s25051_s14 + $0x14ac] ss:$48 sps:$4 sm:$0xff]  }
 0x206   : > { %14906 = vmatpush1.bf16.msra.mxu1 %v21752_v32  ;;  %14866 = vmatprep.subr.bf16.mxu0 %v21757_v45  ;;  %v21803_v32 = vld [vmem:[%s25051_s14 + $0xea8] ss:$48 sps:$4 sm:$0xff]  }
 0x207   : > { %14907 = vmatprep.subr.bf16.mxu1 %v21760_v47  ;;  %v21806_v45 = vld [vmem:[%s25051_s14 + $0x14a8] ss:$48 sps:$4 sm:$0xff]   ;;  %v21811_v47 = vld [vmem:[%s25051_s14 + $0xe4c] ss:$48 sps:$4 sm:$0xff]  }
 0x209   : > { %14867 = vmatpush2.bf16.msra.mxu0 %v21755_v48  ;;  %v21814_v48 = vld [vmem:[%s25051_s14 + $0x144c] ss:$48 sps:$4 sm:$0xff]  }
 0x20a   : > { %14908 = vmatpush2.bf16.msra.mxu1 %v21758_v51  ;;  %14868 = vmatprep.subr.bf16.mxu0 %v21763_v53  ;;  %v21809_v51 = vld [vmem:[%s25051_s14 + $0xe48] ss:$48 sps:$4 sm:$0xff]  }
 0x20b   : > { %14909 = vmatprep.subr.bf16.mxu1 %v21766_v56  ;;  %v21812_v53 = vld [vmem:[%s25051_s14 + $0x1448] ss:$48 sps:$4 sm:$0xff]  }
 0x20d   : > { %14869 = vmatpush2.bf16.msra.mxu0 %v21761_v57 }
 0x20e   : > { %14910 = vmatpush2.bf16.msra.mxu1 %v21764_v46  ;;  %14870 = vmatprep.subr.bf16.mxu0 %v21769_v62 }
 0x20f   : > { %14911 = vmatprep.subr.bf16.mxu1 %v21772_v63 }
 0x211   : > { %14871 = vmatpush2.bf16.msra.mxu0 %v21767_v35  ;;  %v21817_v35 = vld [vmem:[%s25051_s14 + $0xdec] ss:$48 sps:$4 sm:$0xff]  }
 0x212   : > { %14912 = vmatpush2.bf16.msra.mxu1 %v21770_v52  ;;  %14872 = vmatprep.subr.bf16.mxu0 %v21775_v2  ;;  %v21820_v52 = vld [vmem:[%s25051_s14 + $0x13ec] ss:$48 sps:$4 sm:$0xff]  }
 0x213   : > { %14913 = vmatprep.subr.bf16.mxu1 %v21778_v5 }
 0x215   : > { %14873 = vmatpush2.bf16.msra.mxu0 %v21773_v7  ;;  %v21815_v7 = vld [vmem:[%s25051_s14 + $0xde8] ss:$48 sps:$4 sm:$0xff]  }
 0x216   : > { %14914 = vmatpush2.bf16.msra.mxu1 %v21776_v61  ;;  %14874 = vmatprep.subr.bf16.mxu0 %v21781_v8  ;;  %v21818_v61 = vld [vmem:[%s25051_s14 + $0x13e8] ss:$48 sps:$4 sm:$0xff]  }
 0x217   : > { %14915 = vmatprep.subr.bf16.mxu1 %v21784_v1 }
 0x219   : > { %14875 = vmatpush2.bf16.msra.mxu0 %v21779_v10 }
 0x21a   : > { %14916 = vmatpush2.bf16.msra.mxu1 %v21782_v11  ;;  %14876 = vmatprep.subr.bf16.mxu0 %v21787_v12  ;;  %v21823_v11 = vld [vmem:[%s25051_s14 + $0xd8c] ss:$48 sps:$4 sm:$0xff]  }
 0x21b   : > { %14917 = vmatprep.subr.bf16.mxu1 %v21790_v14  ;;  %v21826_v12 = vld [vmem:[%s25051_s14 + $0x138c] ss:$48 sps:$4 sm:$0xff]   ;;  %v21821_v14 = vld [vmem:[%s25051_s14 + $0xd88] ss:$48 sps:$4 sm:$0xff]  }
 0x21d   : > { %14877 = vmatpush2.bf16.msra.mxu0 %v21785_v20  ;;  %v21824_v20 = vld [vmem:[%s25051_s14 + $0x1388] ss:$48 sps:$4 sm:$0xff]  }
 0x21e   : > { %14918 = vmatpush2.bf16.msra.mxu1 %v21788_v40  ;;  %14878 = vmatprep.subr.bf16.mxu0 %v21793_v25  ;;  %v21829_v40 = vld [vmem:[%s25051_s14 + $0xd2c] ss:$48 sps:$4 sm:$0xff]  }
 0x21f   : > { %14919 = vmatprep.subr.bf16.mxu1 %v21796_v27  ;;  %v21832_v25 = vld [vmem:[%s25051_s14 + $0x132c] ss:$48 sps:$4 sm:$0xff]   ;;  %v21827_v27 = vld [vmem:[%s25051_s14 + $0xd28] ss:$48 sps:$4 sm:$0xff]  }
 0x221   : > { %14879 = vmatpush2.bf16.msra.mxu0 %v21791_v29  ;;  %v21830_v29 = vld [vmem:[%s25051_s14 + $0x1328] ss:$48 sps:$4 sm:$0xff]  }
 0x222   : > { %14920 = vmatpush2.bf16.msra.mxu1 %v21794_v33  ;;  %14880 = vmatprep.subr.bf16.mxu0 %v21799_v34  ;;  %v21835_v33 = vld [vmem:[%s25051_s14 + $0xccc] ss:$48 sps:$4 sm:$0xff]  }
 0x223   : > { %14921 = vmatprep.subr.bf16.mxu1 %v21802_v36  ;;  %v21838_v34 = vld [vmem:[%s25051_s14 + $0x12cc] ss:$48 sps:$4 sm:$0xff]   ;;  %v21833_v36 = vld [vmem:[%s25051_s14 + $0xcc8] ss:$48 sps:$4 sm:$0xff]  }
 0x225   : > { %14881 = vmatpush2.bf16.msra.mxu0 %v21797_v37  ;;  %v21836_v37 = vld [vmem:[%s25051_s14 + $0x12c8] ss:$48 sps:$4 sm:$0xff]  }
 0x226   : > { %14922 = vmatpush2.bf16.msra.mxu1 %v21800_v39  ;;  %14932 = vmatprep.subr.bf16.mxu0 %v21805_v49  ;;  %v21841_v39 = vld [vmem:[%s25051_s14 + $0xc6c] ss:$48 sps:$4 sm:$0xff]  }
 0x227   : > { %14973 = vmatprep.subr.bf16.mxu1 %v21808_v9  ;;  %v21844_v49 = vld [vmem:[%s25051_s14 + $0x126c] ss:$48 sps:$4 sm:$0xff]   ;;  %v21839_v9 = vld [vmem:[%s25051_s14 + $0xc68] ss:$48 sps:$4 sm:$0xff]  }
 0x228   : > { %v14638_v56 = vpop.f32.mrf.mxu0  ;;  %14883 = vmatmul.mubr.bf16.vlgmr.msra.gmra.mxu0 %v25152_v13 }
 0x229   : > { %v14679_v57 = vpop.f32.mrf.mxu1  ;;  %14924 = vmatmul.mubr.bf16.vlgmr.msra.gmra.mxu1 %v25162_v18  ;;  %v14639_v46 = vadd.f32 %v14638_v56, %v25640_v58  ;;  %14933 = vmatpush1.bf16.msra.mxu0 %v21803_v32  ;;  %v21842_v32 = vld [vmem:[%s25051_s14 + $0x1268] ss:$48 sps:$4 sm:$0xff]   ;;  %v21856_v56 = vld [vmem:[%s25051_s14 + $0x17ac] ss:$48 sps:$4 sm:$0xff]  }
 0x22a   : > { %14974 = vmatpush1.bf16.msra.mxu1 %v21806_v45  ;;  %v14640_v62 = vpop.f32.mrf.mxu0  ;;  %14934 = vmatprep.subr.bf16.mxu0 %v21811_v47  ;;  %v21847_v45 = vld [vmem:[%s25051_s14 + $0xc0c] ss:$48 sps:$4 sm:$0xff]  }
 0x22b   : > { %v14681_v63 = vpop.f32.mrf.mxu1  ;;  %14975 = vmatprep.subr.bf16.mxu1 %v21814_v48  ;;  %v25714_v2 = vadd.f32 %v14679_v57, %v14639_v46  ;;  %v14641_v5 = vadd.f32 %v14640_v62, %v25647_v3  ;;  %14964 = vmatprep.mubr.bf16.mxu0 %v25158_v17  ;;  %v21850_v47 = vld [vmem:[%s25051_s14 + $0x120c] ss:$48 sps:$4 sm:$0xff]   ;;  %v21845_v48 = vld [vmem:[%s25051_s14 + $0xc08] ss:$48 sps:$4 sm:$0xff]  }
 0x22c   : > { %15005 = vmatprep.mubr.bf16.mxu1 %v25170_v23  ;;  %v14642_v58 = vpop.f32.mrf.mxu0  ;;  %v21851_v57 = vld [vmem:[%s25051_s14 + $0x11a8] ss:$48 sps:$4 sm:$0xff]   ;;  %v21859_v62 = vld [vmem:[%s25051_s14 + $0x114c] ss:$48 sps:$4 sm:$0xff]  }
 0x22d   : > { %v14683_v8 = vpop.f32.mrf.mxu1  ;;  %v25721_v1 = vadd.f32 %v14681_v63, %v14641_v5  ;;  %14935 = vmatpush1.bf16.msra.mxu0 %v21809_v51  ;;  %v21848_v51 = vld [vmem:[%s25051_s14 + $0x1208] ss:$48 sps:$4 sm:$0xff]   ;;  %v21862_v63 = vld [vmem:[%s25051_s14 + $0x174c] ss:$48 sps:$4 sm:$0xff]  }
 0x22e   : > { %14976 = vmatpush1.bf16.msra.mxu1 %v21812_v53  ;;  %v14643_v10 = vpop.f32.mrf.mxu0  ;;  %14936 = vmatprep.subr.bf16.mxu0 %v21817_v35  ;;  %v21853_v53 = vld [vmem:[%s25051_s14 + $0x11ac] ss:$48 sps:$4 sm:$0xff]   ;;  %v21854_v46 = vld [vmem:[%s25051_s14 + $0x17a8] ss:$48 sps:$4 sm:$0xff]  }
 0x22f   : > { %v14684_v3 = vpop.f32.mrf.mxu1  ;;  %14977 = vmatprep.subr.bf16.mxu1 %v21820_v52  ;;  %v21857_v35 = vld [vmem:[%s25051_s14 + $0x1148] ss:$48 sps:$4 sm:$0xff]   ;;  %v21865_v5 = vld [vmem:[%s25051_s14 + $0x10ec] ss:$48 sps:$4 sm:$0xff]  }
 0x230   : > { %v21860_v52 = vld [vmem:[%s25051_s14 + $0x1748] ss:$48 sps:$4 sm:$0xff]   ;;  %v21871_v8 = vld [vmem:[%s25051_s14 + $0x108c] ss:$48 sps:$4 sm:$0xff]  }
 0x231   : > { %14937 = vmatpush1.bf16.msra.mxu0 %v21815_v7  ;;  %v21868_v7 = vld [vmem:[%s25051_s14 + $0x16ec] ss:$48 sps:$4 sm:$0xff]   ;;  %v21866_v58 = vld [vmem:[%s25051_s14 + $0x16e8] ss:$48 sps:$4 sm:$0xff]  }
 0x232   : > { %14978 = vmatpush1.bf16.msra.mxu1 %v21818_v61  ;;  %14938 = vmatprep.subr.bf16.mxu0 %v21823_v11  ;;  %v21863_v61 = vld [vmem:[%s25051_s14 + $0x10e8] ss:$48 sps:$4 sm:$0xff]   ;;  %v21874_v10 = vld [vmem:[%s25051_s14 + $0x168c] ss:$48 sps:$4 sm:$0xff]  }
 0x233   : > { %14979 = vmatprep.subr.bf16.mxu1 %v21826_v12  ;;  %v21869_v3 = vld [vmem:[%s25051_s14 + $0x1088] ss:$48 sps:$4 sm:$0xff]   ;;  %v21877_v12 = vld [vmem:[%s25051_s14 + $0x102c] ss:$48 sps:$4 sm:$0xff]  }
 0x234   : > { %v21872_v11 = vld [vmem:[%s25051_s14 + $0x1688] ss:$48 sps:$4 sm:$0xff]  }
 0x235   : > { %14939 = vmatpush1.bf16.msra.mxu0 %v21821_v14  ;;  %v21880_v14 = vld [vmem:[%s25051_s14 + $0x162c] ss:$48 sps:$4 sm:$0xff]  }
 0x236   : > { %14980 = vmatpush1.bf16.msra.mxu1 %v21824_v20  ;;  %14940 = vmatprep.subr.bf16.mxu0 %v21829_v40  ;;  %v21875_v20 = vld [vmem:[%s25051_s14 + $0x1028] ss:$48 sps:$4 sm:$0xff]  }
 0x237   : > { %14981 = vmatprep.subr.bf16.mxu1 %v21832_v25  ;;  %v21878_v40 = vld [vmem:[%s25051_s14 + $0x1628] ss:$48 sps:$4 sm:$0xff]   ;;  %v21883_v25 = vld [vmem:[%s25051_s14 + $0xfcc] ss:$48 sps:$4 sm:$0xff]  }
 0x239   : > { %14941 = vmatpush1.bf16.msra.mxu0 %v21827_v27  ;;  %v21886_v27 = vld [vmem:[%s25051_s14 + $0x15cc] ss:$48 sps:$4 sm:$0xff]  }
 0x23a   : > { %14982 = vmatpush1.bf16.msra.mxu1 %v21830_v29  ;;  %14942 = vmatprep.subr.bf16.mxu0 %v21835_v33  ;;  %v21881_v29 = vld [vmem:[%s25051_s14 + $0xfc8] ss:$48 sps:$4 sm:$0xff]  }
 0x23b   : > { %14983 = vmatprep.subr.bf16.mxu1 %v21838_v34  ;;  %v21884_v33 = vld [vmem:[%s25051_s14 + $0x15c8] ss:$48 sps:$4 sm:$0xff]   ;;  %v21889_v34 = vld [vmem:[%s25051_s14 + $0xf6c] ss:$48 sps:$4 sm:$0xff]  }
 0x23d   : > { %14943 = vmatpush1.bf16.msra.mxu0 %v21833_v36  ;;  %v21892_v36 = vld [vmem:[%s25051_s14 + $0x156c] ss:$48 sps:$4 sm:$0xff]  }
 0x23e   : > { %14984 = vmatpush1.bf16.msra.mxu1 %v21836_v37  ;;  %14944 = vmatprep.subr.bf16.mxu0 %v21841_v39  ;;  %v21887_v37 = vld [vmem:[%s25051_s14 + $0xf68] ss:$48 sps:$4 sm:$0xff]  }
 0x23f   : > { %14985 = vmatprep.subr.bf16.mxu1 %v21844_v49  ;;  %v21890_v39 = vld [vmem:[%s25051_s14 + $0x1568] ss:$48 sps:$4 sm:$0xff]   ;;  %v21895_v49 = vld [vmem:[%s25051_s14 + $0xf0c] ss:$48 sps:$4 sm:$0xff]  }
 0x241   : > { %14945 = vmatpush1.bf16.msra.mxu0 %v21839_v9  ;;  %v21898_v9 = vld [vmem:[%s25051_s14 + $0x150c] ss:$48 sps:$4 sm:$0xff]  }
 0x242   : > { %14986 = vmatpush1.bf16.msra.mxu1 %v21842_v32  ;;  %14946 = vmatprep.subr.bf16.mxu0 %v21847_v45  ;;  %v21893_v32 = vld [vmem:[%s25051_s14 + $0xf08] ss:$48 sps:$4 sm:$0xff]  }
 0x243   : > { %14987 = vmatprep.subr.bf16.mxu1 %v21850_v47  ;;  %v21896_v45 = vld [vmem:[%s25051_s14 + $0x1508] ss:$48 sps:$4 sm:$0xff]   ;;  %v21901_v47 = vld [vmem:[%s25051_s14 + $0x1aac] ss:$48 sps:$4 sm:$0xff]  }
 0x245   : > { %14947 = vmatpush1.bf16.msra.mxu0 %v21845_v48  ;;  %v21904_v48 = vld [vmem:[%s25051_s14 + $0x20ac] ss:$48 sps:$4 sm:$0xff]  }
 0x246   : > { %14988 = vmatpush1.bf16.msra.mxu1 %v21848_v51  ;;  %14948 = vmatprep.subr.bf16.mxu0 %v21853_v53  ;;  %v21899_v51 = vld [vmem:[%s25051_s14 + $0x1aa8] ss:$48 sps:$4 sm:$0xff]  }
 0x247   : > { %14989 = vmatprep.subr.bf16.mxu1 %v21856_v56  ;;  %v21902_v53 = vld [vmem:[%s25051_s14 + $0x20a8] ss:$48 sps:$4 sm:$0xff]   ;;  %v21907_v56 = vld [vmem:[%s25051_s14 + $0x1a4c] ss:$48 sps:$4 sm:$0xff]  }
 0x249   : > { %14949 = vmatpush2.bf16.msra.mxu0 %v21851_v57  ;;  %v21910_v57 = vld [vmem:[%s25051_s14 + $0x204c] ss:$48 sps:$4 sm:$0xff]  }
 0x24a   : > { %14990 = vmatpush2.bf16.msra.mxu1 %v21854_v46  ;;  %14950 = vmatprep.subr.bf16.mxu0 %v21859_v62  ;;  %v21905_v46 = vld [vmem:[%s25051_s14 + $0x1a48] ss:$48 sps:$4 sm:$0xff]  }
 0x24b   : > { %14991 = vmatprep.subr.bf16.mxu1 %v21862_v63  ;;  %v21908_v62 = vld [vmem:[%s25051_s14 + $0x2048] ss:$48 sps:$4 sm:$0xff]  }
 0x24d   : > { %14951 = vmatpush2.bf16.msra.mxu0 %v21857_v35 }
 0x24e   : > { %14992 = vmatpush2.bf16.msra.mxu1 %v21860_v52  ;;  %14952 = vmatprep.subr.bf16.mxu0 %v21865_v5 }
 0x24f   : > { %14993 = vmatprep.subr.bf16.mxu1 %v21868_v7 }
 0x251   : > { %14953 = vmatpush2.bf16.msra.mxu0 %v21863_v61  ;;  %v21913_v61 = vld [vmem:[%s25051_s14 + $0x19ec] ss:$48 sps:$4 sm:$0xff]  }
 0x252   : > { %14994 = vmatpush2.bf16.msra.mxu1 %v21866_v58  ;;  %14954 = vmatprep.subr.bf16.mxu0 %v21871_v8  ;;  %v21916_v58 = vld [vmem:[%s25051_s14 + $0x1fec] ss:$48 sps:$4 sm:$0xff]  }
 0x253   : > { %14995 = vmatprep.subr.bf16.mxu1 %v21874_v10 }
 0x255   : > { %14955 = vmatpush2.bf16.msra.mxu0 %v21869_v3  ;;  %v21911_v3 = vld [vmem:[%s25051_s14 + $0x19e8] ss:$48 sps:$4 sm:$0xff]  }
 0x256   : > { %14996 = vmatpush2.bf16.msra.mxu1 %v21872_v11  ;;  %14956 = vmatprep.subr.bf16.mxu0 %v21877_v12  ;;  %v21914_v11 = vld [vmem:[%s25051_s14 + $0x1fe8] ss:$48 sps:$4 sm:$0xff]  }
 0x257   : > { %14997 = vmatprep.subr.bf16.mxu1 %v21880_v14 }
 0x259   : > { %14957 = vmatpush2.bf16.msra.mxu0 %v21875_v20 }
 0x25a   : > { %14998 = vmatpush2.bf16.msra.mxu1 %v21878_v40  ;;  %14958 = vmatprep.subr.bf16.mxu0 %v21883_v25  ;;  %v21922_v25 = vld [vmem:[%s25051_s14 + $0x1f8c] ss:$48 sps:$4 sm:$0xff]  }
 0x25b   : > { %14999 = vmatprep.subr.bf16.mxu1 %v21886_v27  ;;  %v21917_v27 = vld [vmem:[%s25051_s14 + $0x1988] ss:$48 sps:$4 sm:$0xff]  }
 0x25d   : > { %14959 = vmatpush2.bf16.msra.mxu0 %v21881_v29  ;;  %v21920_v29 = vld [vmem:[%s25051_s14 + $0x1f88] ss:$48 sps:$4 sm:$0xff]  }
 0x25e   : > { %15000 = vmatpush2.bf16.msra.mxu1 %v21884_v33  ;;  %14960 = vmatprep.subr.bf16.mxu0 %v21889_v34  ;;  %v21925_v33 = vld [vmem:[%s25051_s14 + $0x192c] ss:$48 sps:$4 sm:$0xff]  }
 0x25f   : > { %15001 = vmatprep.subr.bf16.mxu1 %v21892_v36  ;;  %v21928_v34 = vld [vmem:[%s25051_s14 + $0x1f2c] ss:$48 sps:$4 sm:$0xff]   ;;  %v21923_v36 = vld [vmem:[%s25051_s14 + $0x1928] ss:$48 sps:$4 sm:$0xff]  }
 0x261   : > { %14961 = vmatpush2.bf16.msra.mxu0 %v21887_v37  ;;  %v21926_v37 = vld [vmem:[%s25051_s14 + $0x1f28] ss:$48 sps:$4 sm:$0xff]  }
 0x262   : > { %15002 = vmatpush2.bf16.msra.mxu1 %v21890_v39  ;;  %14962 = vmatprep.subr.bf16.mxu0 %v21895_v49  ;;  %v21931_v39 = vld [vmem:[%s25051_s14 + $0x18cc] ss:$48 sps:$4 sm:$0xff]  }
 0x263   : > { %15003 = vmatprep.subr.bf16.mxu1 %v21898_v9  ;;  %v21934_v49 = vld [vmem:[%s25051_s14 + $0x1ecc] ss:$48 sps:$4 sm:$0xff]   ;;  %v21929_v9 = vld [vmem:[%s25051_s14 + $0x18c8] ss:$48 sps:$4 sm:$0xff]  }
 0x265   : > { %14963 = vmatpush2.bf16.msra.mxu0 %v21893_v32  ;;  %v21932_v32 = vld [vmem:[%s25051_s14 + $0x1ec8] ss:$48 sps:$4 sm:$0xff]  }
 0x266   : > { %15004 = vmatpush2.bf16.msra.mxu1 %v21896_v45  ;;  %15014 = vmatprep.subr.bf16.mxu0 %v21901_v47  ;;  %v21937_v45 = vld [vmem:[%s25051_s14 + $0x186c] ss:$48 sps:$4 sm:$0xff]  }
 0x267   : > { %15055 = vmatprep.subr.bf16.mxu1 %v21904_v48  ;;  %v21940_v47 = vld [vmem:[%s25051_s14 + $0x1e6c] ss:$48 sps:$4 sm:$0xff]   ;;  %v21935_v48 = vld [vmem:[%s25051_s14 + $0x1868] ss:$48 sps:$4 sm:$0xff]  }
 0x268   : > { %v14720_v63 = vpop.f32.mrf.mxu0  ;;  %14965 = vmatmul.mubr.bf16.vlgmr.msra.gmra.mxu0 %v25235_v26 }
 0x269   : > { %v14761_v35 = vpop.f32.mrf.mxu1  ;;  %15006 = vmatmul.mubr.bf16.vlgmr.msra.gmra.mxu1 %v25242_v30  ;;  %v14721_v52 = vadd.f32 %v14720_v63, %v25714_v2  ;;  %15015 = vmatpush1.bf16.msra.mxu0 %v21899_v51  ;;  %v21938_v51 = vld [vmem:[%s25051_s14 + $0x1e68] ss:$48 sps:$4 sm:$0xff]   ;;  %v21952_v63 = vld [vmem:[%s25051_s14 + $0x23ac] ss:$48 sps:$4 sm:$0xff]  }
 0x26a   : > { %15056 = vmatpush1.bf16.msra.mxu1 %v21902_v53  ;;  %v14722_v5 = vpop.f32.mrf.mxu0  ;;  %15016 = vmatprep.subr.bf16.mxu0 %v21907_v56  ;;  %v21943_v53 = vld [vmem:[%s25051_s14 + $0x180c] ss:$48 sps:$4 sm:$0xff]  }
 0x26b   : > { %v14763_v7 = vpop.f32.mrf.mxu1  ;;  %15057 = vmatprep.subr.bf16.mxu1 %v21910_v57  ;;  %v25788_v8 = vadd.f32 %v14761_v35, %v14721_v52  ;;  %v14723_v10 = vadd.f32 %v14722_v5, %v25721_v1  ;;  %15046 = vmatprep.mubr.bf16.mxu0 %v25266_v41  ;;  %v21919_v1 = vld [vmem:[%s25051_s14 + $0x198c] ss:$48 sps:$4 sm:$0xff]   ;;  %v21941_v57 = vld [vmem:[%s25051_s14 + $0x1808] ss:$48 sps:$4 sm:$0xff]  }
 0x26c   : > { %15087 = vmatprep.mubr.bf16.mxu1 %v25271_v43  ;;  %v14724_v2 = vpop.f32.mrf.mxu0  ;;  %v21946_v56 = vld [vmem:[%s25051_s14 + $0x1e0c] ss:$48 sps:$4 sm:$0xff]   ;;  %v21947_v35 = vld [vmem:[%s25051_s14 + $0x1da8] ss:$48 sps:$4 sm:$0xff]  }
 0x26d   : > { %v14765_v12 = vpop.f32.mrf.mxu1  ;;  %v25795_v14 = vadd.f32 %v14763_v7, %v14723_v10  ;;  %15017 = vmatpush1.bf16.msra.mxu0 %v21905_v46  ;;  %v21944_v46 = vld [vmem:[%s25051_s14 + $0x1e08] ss:$48 sps:$4 sm:$0xff]   ;;  %v21955_v5 = vld [vmem:[%s25051_s14 + $0x1d4c] ss:$48 sps:$4 sm:$0xff]  }
 0x26e   : > { %15058 = vmatpush1.bf16.msra.mxu1 %v21908_v62  ;;  %v14725_v20 = vpop.f32.mrf.mxu0  ;;  %15018 = vmatprep.subr.bf16.mxu0 %v21913_v61  ;;  %v21949_v62 = vld [vmem:[%s25051_s14 + $0x1dac] ss:$48 sps:$4 sm:$0xff]   ;;  %v21950_v52 = vld [vmem:[%s25051_s14 + $0x23a8] ss:$48 sps:$4 sm:$0xff]  }
 0x26f   : > { %v14766_v40 = vpop.f32.mrf.mxu1  ;;  %15059 = vmatprep.subr.bf16.mxu1 %v21916_v58  ;;  %v21958_v7 = vld [vmem:[%s25051_s14 + $0x234c] ss:$48 sps:$4 sm:$0xff]   ;;  %v21953_v61 = vld [vmem:[%s25051_s14 + $0x1d48] ss:$48 sps:$4 sm:$0xff]  }
 0x270   : > { %v21956_v58 = vld [vmem:[%s25051_s14 + $0x2348] ss:$48 sps:$4 sm:$0xff]   ;;  %v21961_v10 = vld [vmem:[%s25051_s14 + $0x1cec] ss:$48 sps:$4 sm:$0xff]  }
 0x271   : > { %15019 = vmatpush1.bf16.msra.mxu0 %v21911_v3  ;;  %v21964_v3 = vld [vmem:[%s25051_s14 + $0x22ec] ss:$48 sps:$4 sm:$0xff]   ;;  %v21962_v2 = vld [vmem:[%s25051_s14 + $0x22e8] ss:$48 sps:$4 sm:$0xff]  }
 0x272   : > { %15060 = vmatpush1.bf16.msra.mxu1 %v21914_v11  ;;  %15020 = vmatprep.subr.bf16.mxu0 %v21919_v1  ;;  %v21959_v11 = vld [vmem:[%s25051_s14 + $0x1ce8] ss:$48 sps:$4 sm:$0xff]   ;;  %v21967_v12 = vld [vmem:[%s25051_s14 + $0x1c8c] ss:$48 sps:$4 sm:$0xff]  }
 0x273   : > { %15061 = vmatprep.subr.bf16.mxu1 %v21922_v25  ;;  %v21970_v20 = vld [vmem:[%s25051_s14 + $0x228c] ss:$48 sps:$4 sm:$0xff]   ;;  %v21965_v40 = vld [vmem:[%s25051_s14 + $0x1c88] ss:$48 sps:$4 sm:$0xff]  }
 0x274   : > { %v21968_v1 = vld [vmem:[%s25051_s14 + $0x2288] ss:$48 sps:$4 sm:$0xff]   ;;  %v21973_v25 = vld [vmem:[%s25051_s14 + $0x1c2c] ss:$48 sps:$4 sm:$0xff]  }
 0x275   : > { %15021 = vmatpush1.bf16.msra.mxu0 %v21917_v27  ;;  %v21976_v27 = vld [vmem:[%s25051_s14 + $0x222c] ss:$48 sps:$4 sm:$0xff]  }
 0x276   : > { %15062 = vmatpush1.bf16.msra.mxu1 %v21920_v29  ;;  %15022 = vmatprep.subr.bf16.mxu0 %v21925_v33  ;;  %v21971_v29 = vld [vmem:[%s25051_s14 + $0x1c28] ss:$48 sps:$4 sm:$0xff]  }
 0x277   : > { %15063 = vmatprep.subr.bf16.mxu1 %v21928_v34  ;;  %v21974_v33 = vld [vmem:[%s25051_s14 + $0x2228] ss:$48 sps:$4 sm:$0xff]   ;;  %v21979_v34 = vld [vmem:[%s25051_s14 + $0x1bcc] ss:$48 sps:$4 sm:$0xff]  }
 0x279   : > { %15023 = vmatpush1.bf16.msra.mxu0 %v21923_v36  ;;  %v21982_v36 = vld [vmem:[%s25051_s14 + $0x21cc] ss:$48 sps:$4 sm:$0xff]  }
 0x27a   : > { %15064 = vmatpush1.bf16.msra.mxu1 %v21926_v37  ;;  %15024 = vmatprep.subr.bf16.mxu0 %v21931_v39  ;;  %v21977_v37 = vld [vmem:[%s25051_s14 + $0x1bc8] ss:$48 sps:$4 sm:$0xff]  }
 0x27b   : > { %15065 = vmatprep.subr.bf16.mxu1 %v21934_v49  ;;  %v21980_v39 = vld [vmem:[%s25051_s14 + $0x21c8] ss:$48 sps:$4 sm:$0xff]   ;;  %v21985_v49 = vld [vmem:[%s25051_s14 + $0x1b6c] ss:$48 sps:$4 sm:$0xff]  }
 0x27d   : > { %15025 = vmatpush1.bf16.msra.mxu0 %v21929_v9  ;;  %v21988_v9 = vld [vmem:[%s25051_s14 + $0x216c] ss:$48 sps:$4 sm:$0xff]  }
 0x27e   : > { %15066 = vmatpush1.bf16.msra.mxu1 %v21932_v32  ;;  %15026 = vmatprep.subr.bf16.mxu0 %v21937_v45  ;;  %v21983_v32 = vld [vmem:[%s25051_s14 + $0x1b68] ss:$48 sps:$4 sm:$0xff]  }
 0x27f   : > { %15067 = vmatprep.subr.bf16.mxu1 %v21940_v47  ;;  %v21986_v45 = vld [vmem:[%s25051_s14 + $0x2168] ss:$48 sps:$4 sm:$0xff]   ;;  %v21991_v47 = vld [vmem:[%s25051_s14 + $0x1b0c] ss:$48 sps:$4 sm:$0xff]  }
 0x281   : > { %15027 = vmatpush1.bf16.msra.mxu0 %v21935_v48  ;;  %v21994_v48 = vld [vmem:[%s25051_s14 + $0x210c] ss:$48 sps:$4 sm:$0xff]  }
 0x282   : > { %15068 = vmatpush1.bf16.msra.mxu1 %v21938_v51  ;;  %15028 = vmatprep.subr.bf16.mxu0 %v21943_v53  ;;  %v21989_v51 = vld [vmem:[%s25051_s14 + $0x1b08] ss:$48 sps:$4 sm:$0xff]  }
 0x283   : > { %15069 = vmatprep.subr.bf16.mxu1 %v21946_v56  ;;  %v21992_v53 = vld [vmem:[%s25051_s14 + $0x2108] ss:$48 sps:$4 sm:$0xff]   ;;  %v21997_v56 = vld [vmem:[%s25051_s14 + $0x26ac] ss:$48 sps:$4 sm:$0xff]  }
 0x285   : > { %15029 = vmatpush1.bf16.msra.mxu0 %v21941_v57  ;;  %v22000_v57 = vld [vmem:[%s25051_s14 + $0x2cac] ss:$48 sps:$4 sm:$0xff]  }
 0x286   : > { %15070 = vmatpush1.bf16.msra.mxu1 %v21944_v46  ;;  %15030 = vmatprep.subr.bf16.mxu0 %v21949_v62  ;;  %v21995_v46 = vld [vmem:[%s25051_s14 + $0x26a8] ss:$48 sps:$4 sm:$0xff]  }
 0x287   : > { %15071 = vmatprep.subr.bf16.mxu1 %v21952_v63  ;;  %v21998_v62 = vld [vmem:[%s25051_s14 + $0x2ca8] ss:$48 sps:$4 sm:$0xff]   ;;  %v22003_v63 = vld [vmem:[%s25051_s14 + $0x264c] ss:$48 sps:$4 sm:$0xff]  }
 0x289   : > { %15031 = vmatpush2.bf16.msra.mxu0 %v21947_v35  ;;  %v22006_v35 = vld [vmem:[%s25051_s14 + $0x2c4c] ss:$48 sps:$4 sm:$0xff]  }
 0x28a   : > { %15072 = vmatpush2.bf16.msra.mxu1 %v21950_v52  ;;  %15032 = vmatprep.subr.bf16.mxu0 %v21955_v5  ;;  %v22001_v52 = vld [vmem:[%s25051_s14 + $0x2648] ss:$48 sps:$4 sm:$0xff]  }
 0x28b   : > { %15073 = vmatprep.subr.bf16.mxu1 %v21958_v7  ;;  %v22004_v5 = vld [vmem:[%s25051_s14 + $0x2c48] ss:$48 sps:$4 sm:$0xff]  }
 0x28d   : > { %15033 = vmatpush2.bf16.msra.mxu0 %v21953_v61 }
 0x28e   : > { %15074 = vmatpush2.bf16.msra.mxu1 %v21956_v58  ;;  %15034 = vmatprep.subr.bf16.mxu0 %v21961_v10 }
 0x28f   : > { %15075 = vmatprep.subr.bf16.mxu1 %v21964_v3 }
 0x291   : > { %15035 = vmatpush2.bf16.msra.mxu0 %v21959_v11  ;;  %v22009_v11 = vld [vmem:[%s25051_s14 + $0x25ec] ss:$48 sps:$4 sm:$0xff]  }
 0x292   : > { %15076 = vmatpush2.bf16.msra.mxu1 %v21962_v2  ;;  %15036 = vmatprep.subr.bf16.mxu0 %v21967_v12  ;;  %v22012_v2 = vld [vmem:[%s25051_s14 + $0x2bec] ss:$48 sps:$4 sm:$0xff]  }
 0x293   : > { %15077 = vmatprep.subr.bf16.mxu1 %v21970_v20 }
 0x295   : > { %15037 = vmatpush2.bf16.msra.mxu0 %v21965_v40  ;;  %v22007_v40 = vld [vmem:[%s25051_s14 + $0x25e8] ss:$48 sps:$4 sm:$0xff]  }
 0x296   : > { %15078 = vmatpush2.bf16.msra.mxu1 %v21968_v1  ;;  %15038 = vmatprep.subr.bf16.mxu0 %v21973_v25  ;;  %v22010_v1 = vld [vmem:[%s25051_s14 + $0x2be8] ss:$48 sps:$4 sm:$0xff]  }
 0x297   : > { %15079 = vmatprep.subr.bf16.mxu1 %v21976_v27 }
 0x299   : > { %15039 = vmatpush2.bf16.msra.mxu0 %v21971_v29 }
 0x29a   : > { %15080 = vmatpush2.bf16.msra.mxu1 %v21974_v33  ;;  %15040 = vmatprep.subr.bf16.mxu0 %v21979_v34  ;;  %v22018_v34 = vld [vmem:[%s25051_s14 + $0x2b8c] ss:$48 sps:$4 sm:$0xff]  }
 0x29b   : > { %15081 = vmatprep.subr.bf16.mxu1 %v21982_v36  ;;  %v22013_v36 = vld [vmem:[%s25051_s14 + $0x2588] ss:$48 sps:$4 sm:$0xff]  }
 0x29d   : > { %15041 = vmatpush2.bf16.msra.mxu0 %v21977_v37  ;;  %v22016_v37 = vld [vmem:[%s25051_s14 + $0x2b88] ss:$48 sps:$4 sm:$0xff]  }
 0x29e   : > { %15082 = vmatpush2.bf16.msra.mxu1 %v21980_v39  ;;  %15042 = vmatprep.subr.bf16.mxu0 %v21985_v49  ;;  %v22021_v39 = vld [vmem:[%s25051_s14 + $0x252c] ss:$48 sps:$4 sm:$0xff]  }
 0x29f   : > { %15083 = vmatprep.subr.bf16.mxu1 %v21988_v9  ;;  %v22024_v49 = vld [vmem:[%s25051_s14 + $0x2b2c] ss:$48 sps:$4 sm:$0xff]   ;;  %v22019_v9 = vld [vmem:[%s25051_s14 + $0x2528] ss:$48 sps:$4 sm:$0xff]  }
 0x2a1   : > { %15043 = vmatpush2.bf16.msra.mxu0 %v21983_v32  ;;  %v22022_v32 = vld [vmem:[%s25051_s14 + $0x2b28] ss:$48 sps:$4 sm:$0xff]  }
 0x2a2   : > { %15084 = vmatpush2.bf16.msra.mxu1 %v21986_v45  ;;  %15044 = vmatprep.subr.bf16.mxu0 %v21991_v47  ;;  %v22027_v45 = vld [vmem:[%s25051_s14 + $0x24cc] ss:$48 sps:$4 sm:$0xff]  }
 0x2a3   : > { %15085 = vmatprep.subr.bf16.mxu1 %v21994_v48  ;;  %v22030_v47 = vld [vmem:[%s25051_s14 + $0x2acc] ss:$48 sps:$4 sm:$0xff]   ;;  %v22025_v48 = vld [vmem:[%s25051_s14 + $0x24c8] ss:$48 sps:$4 sm:$0xff]  }
 0x2a5   : > { %15045 = vmatpush2.bf16.msra.mxu0 %v21989_v51  ;;  %v22028_v51 = vld [vmem:[%s25051_s14 + $0x2ac8] ss:$48 sps:$4 sm:$0xff]  }
 0x2a6   : > { %15086 = vmatpush2.bf16.msra.mxu1 %v21992_v53  ;;  %15096 = vmatprep.subr.bf16.mxu0 %v21997_v56  ;;  %v22033_v53 = vld [vmem:[%s25051_s14 + $0x246c] ss:$48 sps:$4 sm:$0xff]  }
 0x2a7   : > { %15137 = vmatprep.subr.bf16.mxu1 %v22000_v57  ;;  %v22036_v56 = vld [vmem:[%s25051_s14 + $0x2a6c] ss:$48 sps:$4 sm:$0xff]   ;;  %v22031_v57 = vld [vmem:[%s25051_s14 + $0x2468] ss:$48 sps:$4 sm:$0xff]  }
 0x2a8   : > { %v14802_v7 = vpop.f32.mrf.mxu0  ;;  %15047 = vmatmul.mubr.bf16.vlgmr.msra.gmra.mxu0 %v25336_v50 }
 0x2a9   : > { %v14843_v61 = vpop.f32.mrf.mxu1  ;;  %15088 = vmatmul.mubr.bf16.vlgmr.msra.gmra.mxu1 %v25346_v55  ;;  %v14803_v58 = vadd.f32 %v14802_v7, %v25788_v8  ;;  %15097 = vmatpush1.bf16.msra.mxu0 %v21995_v46  ;;  %v22034_v46 = vld [vmem:[%s25051_s14 + $0x2a68] ss:$48 sps:$4 sm:$0xff]   ;;  %v22048_v7 = vld [vmem:[%s25051_s14 + $0x2fac] ss:$48 sps:$4 sm:$0xff]  }
 0x2aa   : > { %15138 = vmatpush1.bf16.msra.mxu1 %v21998_v62  ;;  %v14804_v10 = vpop.f32.mrf.mxu0  ;;  %15098 = vmatprep.subr.bf16.mxu0 %v22003_v63  ;;  %v22039_v62 = vld [vmem:[%s25051_s14 + $0x240c] ss:$48 sps:$4 sm:$0xff]  }
 0x2ab   : > { %v14845_v3 = vpop.f32.mrf.mxu1  ;;  %15139 = vmatprep.subr.bf16.mxu1 %v22006_v35  ;;  %v25862_v12 = vadd.f32 %v14843_v61, %v14803_v58  ;;  %v14805_v20 = vadd.f32 %v14804_v10, %v25795_v14  ;;  %15128 = vmatprep.mubr.bf16.mxu0 %v25342_v54  ;;  %v22015_v14 = vld [vmem:[%s25051_s14 + $0x258c] ss:$48 sps:$4 sm:$0xff]   ;;  %v22037_v35 = vld [vmem:[%s25051_s14 + $0x2408] ss:$48 sps:$4 sm:$0xff]  }
 0x2ac   : > { %15169 = vmatprep.mubr.bf16.mxu1 %v25354_v59  ;;  %v14806_v8 = vpop.f32.mrf.mxu0  ;;  %v22042_v63 = vld [vmem:[%s25051_s14 + $0x2a0c] ss:$48 sps:$4 sm:$0xff]   ;;  %v22043_v61 = vld [vmem:[%s25051_s14 + $0x29a8] ss:$48 sps:$4 sm:$0xff]  }
 0x2ad   : > { %v14847_v25 = vpop.f32.mrf.mxu1  ;;  %v25869_v27 = vadd.f32 %v14845_v3, %v14805_v20  ;;  %15099 = vmatpush1.bf16.msra.mxu0 %v22001_v52  ;;  %v22040_v52 = vld [vmem:[%s25051_s14 + $0x2a08] ss:$48 sps:$4 sm:$0xff]   ;;  %v22051_v10 = vld [vmem:[%s25051_s14 + $0x294c] ss:$48 sps:$4 sm:$0xff]  }
 0x2ae   : > { %15140 = vmatpush1.bf16.msra.mxu1 %v22004_v5  ;;  %v14807_v29 = vpop.f32.mrf.mxu0  ;;  %15100 = vmatprep.subr.bf16.mxu0 %v22009_v11  ;;  %v22045_v5 = vld [vmem:[%s25051_s14 + $0x29ac] ss:$48 sps:$4 sm:$0xff]   ;;  %v22046_v58 = vld [vmem:[%s25051_s14 + $0x2fa8] ss:$48 sps:$4 sm:$0xff]  }
 0x2af   : > { %v14848_v33 = vpop.f32.mrf.mxu1  ;;  %15141 = vmatprep.subr.bf16.mxu1 %v22012_v2  ;;  %v22054_v3 = vld [vmem:[%s25051_s14 + $0x2f4c] ss:$48 sps:$4 sm:$0xff]   ;;  %v22049_v11 = vld [vmem:[%s25051_s14 + $0x2948] ss:$48 sps:$4 sm:$0xff]  }
 0x2b0   : > { %v22052_v2 = vld [vmem:[%s25051_s14 + $0x2f48] ss:$48 sps:$4 sm:$0xff]   ;;  %v22057_v20 = vld [vmem:[%s25051_s14 + $0x28ec] ss:$48 sps:$4 sm:$0xff]  }
 0x2b1   : > { %15101 = vmatpush1.bf16.msra.mxu0 %v22007_v40  ;;  %v22060_v40 = vld [vmem:[%s25051_s14 + $0x2eec] ss:$48 sps:$4 sm:$0xff]   ;;  %v22058_v8 = vld [vmem:[%s25051_s14 + $0x2ee8] ss:$48 sps:$4 sm:$0xff]  }
 0x2b2   : > { %15142 = vmatpush1.bf16.msra.mxu1 %v22010_v1  ;;  %15102 = vmatprep.subr.bf16.mxu0 %v22015_v14  ;;  %v22055_v1 = vld [vmem:[%s25051_s14 + $0x28e8] ss:$48 sps:$4 sm:$0xff]   ;;  %v22063_v25 = vld [vmem:[%s25051_s14 + $0x288c] ss:$48 sps:$4 sm:$0xff]  }
 0x2b3   : > { %15143 = vmatprep.subr.bf16.mxu1 %v22018_v34  ;;  %v22066_v29 = vld [vmem:[%s25051_s14 + $0x2e8c] ss:$48 sps:$4 sm:$0xff]   ;;  %v22061_v33 = vld [vmem:[%s25051_s14 + $0x2888] ss:$48 sps:$4 sm:$0xff]  }
 0x2b4   : > { %v22064_v14 = vld [vmem:[%s25051_s14 + $0x2e88] ss:$48 sps:$4 sm:$0xff]   ;;  %v22069_v34 = vld [vmem:[%s25051_s14 + $0x282c] ss:$48 sps:$4 sm:$0xff]  }
 0x2b5   : > { %15103 = vmatpush1.bf16.msra.mxu0 %v22013_v36  ;;  %v22072_v36 = vld [vmem:[%s25051_s14 + $0x2e2c] ss:$48 sps:$4 sm:$0xff]  }
 0x2b6   : > { %15144 = vmatpush1.bf16.msra.mxu1 %v22016_v37  ;;  %15104 = vmatprep.subr.bf16.mxu0 %v22021_v39  ;;  %v22067_v37 = vld [vmem:[%s25051_s14 + $0x2828] ss:$48 sps:$4 sm:$0xff]  }
 0x2b7   : > { %15145 = vmatprep.subr.bf16.mxu1 %v22024_v49  ;;  %v22070_v39 = vld [vmem:[%s25051_s14 + $0x2e28] ss:$48 sps:$4 sm:$0xff]   ;;  %v22075_v49 = vld [vmem:[%s25051_s14 + $0x27cc] ss:$48 sps:$4 sm:$0xff]  }
 0x2b9   : > { %15105 = vmatpush1.bf16.msra.mxu0 %v22019_v9  ;;  %v22078_v9 = vld [vmem:[%s25051_s14 + $0x2dcc] ss:$48 sps:$4 sm:$0xff]  }
 0x2ba   : > { %15146 = vmatpush1.bf16.msra.mxu1 %v22022_v32  ;;  %15106 = vmatprep.subr.bf16.mxu0 %v22027_v45  ;;  %v22073_v32 = vld [vmem:[%s25051_s14 + $0x27c8] ss:$48 sps:$4 sm:$0xff]  }
 0x2bb   : > { %15147 = vmatprep.subr.bf16.mxu1 %v22030_v47  ;;  %v22076_v45 = vld [vmem:[%s25051_s14 + $0x2dc8] ss:$48 sps:$4 sm:$0xff]   ;;  %v22081_v47 = vld [vmem:[%s25051_s14 + $0x276c] ss:$48 sps:$4 sm:$0xff]  }
 0x2bd   : > { %15107 = vmatpush1.bf16.msra.mxu0 %v22025_v48  ;;  %v22084_v48 = vld [vmem:[%s25051_s14 + $0x2d6c] ss:$48 sps:$4 sm:$0xff]  }
 0x2be   : > { %15148 = vmatpush1.bf16.msra.mxu1 %v22028_v51  ;;  %15108 = vmatprep.subr.bf16.mxu0 %v22033_v53  ;;  %v22079_v51 = vld [vmem:[%s25051_s14 + $0x2768] ss:$48 sps:$4 sm:$0xff]  }
 0x2bf   : > { %15149 = vmatprep.subr.bf16.mxu1 %v22036_v56  ;;  %v22082_v53 = vld [vmem:[%s25051_s14 + $0x2d68] ss:$48 sps:$4 sm:$0xff]   ;;  %v22087_v56 = vld [vmem:[%s25051_s14 + $0x270c] ss:$48 sps:$4 sm:$0xff]  }
 0x2c1   : > { %15109 = vmatpush1.bf16.msra.mxu0 %v22031_v57  ;;  %v22090_v57 = vld [vmem:[%s25051_s14 + $0x2d0c] ss:$48 sps:$4 sm:$0xff]  }
 0x2c2   : > { %15150 = vmatpush1.bf16.msra.mxu1 %v22034_v46  ;;  %15110 = vmatprep.subr.bf16.mxu0 %v22039_v62  ;;  %v22085_v46 = vld [vmem:[%s25051_s14 + $0x2708] ss:$48 sps:$4 sm:$0xff]  }
 0x2c3   : > { %15151 = vmatprep.subr.bf16.mxu1 %v22042_v63  ;;  %v22088_v62 = vld [vmem:[%s25051_s14 + $0x2d08] ss:$48 sps:$4 sm:$0xff]   ;;  %v2614_v63 = vsub.s32 2, %v25104_v42 }
 0x2c5   : > { %15111 = vmatpush1.bf16.msra.mxu0 %v22037_v35  ;;  %v22093_v35 = vld [vmem:[%s25051_s14 + $0x32ac] ss:$48 sps:$4 sm:$0xff]  }
 0x2c6   : > { %15152 = vmatpush1.bf16.msra.mxu1 %v22040_v52  ;;  %15112 = vmatprep.subr.bf16.mxu0 %v22045_v5  ;;  %v22096_v52 = vld [vmem:[%s25051_s14 + $0x38ac] ss:$48 sps:$4 sm:$0xff]   ;;  %v22091_v5 = vld [vmem:[%s25051_s14 + $0x32a8] ss:$48 sps:$4 sm:$0xff]  }
 0x2c7   : > { %15153 = vmatprep.subr.bf16.mxu1 %v22048_v7  ;;  %v22094_v7 = vld [vmem:[%s25051_s14 + $0x38a8] ss:$48 sps:$4 sm:$0xff]  }
 0x2c9   : > { %15113 = vmatpush2.bf16.msra.mxu0 %v22043_v61  ;;  %v2618_v61 = vsub.s32 3, %v25104_v42 }
 0x2ca   : > { %15154 = vmatpush2.bf16.msra.mxu1 %v22046_v58  ;;  %15114 = vmatprep.subr.bf16.mxu0 %v22051_v10  ;;  %v24731_v58 = vld [vmem:[%s25059_s5] sm:$0xff] }
 0x2cb   : > { %15155 = vmatprep.subr.bf16.mxu1 %v22054_v3  ;;  %v2615_v10 = vrot.slane %v24731_v58, %v2614_v63  ;;  %v22099_v3 = vld [vmem:[%s25051_s14 + $0x324c] ss:$48 sps:$4 sm:$0xff]  }
 0x2cd   : > { %15115 = vmatpush2.bf16.msra.mxu0 %v22049_v11  ;;  %v22102_v11 = vld [vmem:[%s25051_s14 + $0x384c] ss:$48 sps:$4 sm:$0xff]  }
 0x2ce   : > { %15156 = vmatpush2.bf16.msra.mxu1 %v22052_v2  ;;  %15116 = vmatprep.subr.bf16.mxu0 %v22057_v20  ;;  %v2619_v2 = vrot.slane %v24731_v58, %v2618_v61  ;;  %v22097_v20 = vld [vmem:[%s25051_s14 + $0x3248] ss:$48 sps:$4 sm:$0xff]  }
 0x2cf   : > { %15157 = vmatprep.subr.bf16.mxu1 %v22060_v40  ;;  %v22100_v40 = vld [vmem:[%s25051_s14 + $0x3848] ss:$48 sps:$4 sm:$0xff]  }
 0x2d0   : > { %v22121_v58 = vld [vmem:[%s25051_s14 + $0x30c8] ss:$48 sps:$4 sm:$0xff]  }
 0x2d1   : > { %15117 = vmatpush2.bf16.msra.mxu0 %v22055_v1 }
 0x2d2   : > { %15158 = vmatpush2.bf16.msra.mxu1 %v22058_v8  ;;  %15118 = vmatprep.subr.bf16.mxu0 %v22063_v25 }
 0x2d3   : > { %15159 = vmatprep.subr.bf16.mxu1 %v22066_v29 }
 0x2d5   : > { %15119 = vmatpush2.bf16.msra.mxu0 %v22061_v33 }
 0x2d6   : > { %15160 = vmatpush2.bf16.msra.mxu1 %v22064_v14  ;;  %15120 = vmatprep.subr.bf16.mxu0 %v22069_v34  ;;  %v22105_v14 = vld [vmem:[%s25051_s14 + $0x31ec] ss:$48 sps:$4 sm:$0xff]  }
 0x2d7   : > { %15161 = vmatprep.subr.bf16.mxu1 %v22072_v36  ;;  %v22108_v34 = vld [vmem:[%s25051_s14 + $0x37ec] ss:$48 sps:$4 sm:$0xff]  }
 0x2d9   : > { %15121 = vmatpush2.bf16.msra.mxu0 %v22067_v37 }
 0x2da   : > { %15162 = vmatpush2.bf16.msra.mxu1 %v22070_v39  ;;  %15122 = vmatprep.subr.bf16.mxu0 %v22075_v49  ;;  %v22103_v39 = vld [vmem:[%s25051_s14 + $0x31e8] ss:$48 sps:$4 sm:$0xff]  }
 0x2db   : > { %15163 = vmatprep.subr.bf16.mxu1 %v22078_v9  ;;  %v22106_v49 = vld [vmem:[%s25051_s14 + $0x37e8] ss:$48 sps:$4 sm:$0xff]  }
 0x2dd   : > { %15123 = vmatpush2.bf16.msra.mxu0 %v22073_v32 }
 0x2de   : > { %15164 = vmatpush2.bf16.msra.mxu1 %v22076_v45  ;;  %15124 = vmatprep.subr.bf16.mxu0 %v22081_v47 }
 0x2df   : > { %15165 = vmatprep.subr.bf16.mxu1 %v22084_v48 }
 0x2e1   : > { %15125 = vmatpush2.bf16.msra.mxu0 %v22079_v51  ;;  %v22111_v51 = vld [vmem:[%s25051_s14 + $0x318c] ss:$48 sps:$4 sm:$0xff]  }
 0x2e2   : > { %15166 = vmatpush2.bf16.msra.mxu1 %v22082_v53  ;;  %15126 = vmatprep.subr.bf16.mxu0 %v22087_v56  ;;  %v22114_v53 = vld [vmem:[%s25051_s14 + $0x378c] ss:$48 sps:$4 sm:$0xff]   ;;  %v22109_v56 = vld [vmem:[%s25051_s14 + $0x3188] ss:$48 sps:$4 sm:$0xff]  }
 0x2e3   : > { %15167 = vmatprep.subr.bf16.mxu1 %v22090_v57  ;;  %v22112_v57 = vld [vmem:[%s25051_s14 + $0x3788] ss:$48 sps:$4 sm:$0xff]  }
 0x2e5   : > { %15127 = vmatpush2.bf16.msra.mxu0 %v22085_v46  ;;  %v22117_v46 = vld [vmem:[%s25051_s14 + $0x312c] ss:$48 sps:$4 sm:$0xff]  }
 0x2e6   : > { %15168 = vmatpush2.bf16.msra.mxu1 %v22088_v62  ;;  %15178 = vmatprep.subr.bf16.mxu0 %v22093_v35  ;;  %v22120_v62 = vld [vmem:[%s25051_s14 + $0x372c] ss:$48 sps:$4 sm:$0xff]   ;;  %v22115_v35 = vld [vmem:[%s25051_s14 + $0x3128] ss:$48 sps:$4 sm:$0xff]  }
 0x2e7   : > { %15219 = vmatprep.subr.bf16.mxu1 %v22096_v52  ;;  %v22118_v52 = vld [vmem:[%s25051_s14 + $0x3728] ss:$48 sps:$4 sm:$0xff]  }
 0x2e8   : > { %v14884_v1 = vpop.f32.mrf.mxu0  ;;  %15129 = vmatmul.mubr.bf16.vlgmr.msra.gmra.mxu0 %v25432_v15 }
 0x2e9   : > { %v14925_v8 = vpop.f32.mrf.mxu1  ;;  %15170 = vmatmul.mubr.bf16.vlgmr.msra.gmra.mxu1 %v25443_v24  ;;  %v14885_v25 = vadd.f32 %v14884_v1, %v2615_v10  ;;  %15179 = vmatpush1.bf16.msra.mxu0 %v22091_v5  ;;  %v22123_v5 = vld [vmem:[%s25051_s14 + $0x30cc] ss:$48 sps:$4 sm:$0xff]   ;;  %v22124_v10 = vld [vmem:[%s25051_s14 + $0x36c8] ss:$48 sps:$4 sm:$0xff]  }
 0x2ea   : > { %15220 = vmatpush1.bf16.msra.mxu1 %v22094_v7  ;;  %v14886_v29 = vpop.f32.mrf.mxu0  ;;  %15180 = vmatprep.subr.bf16.mxu0 %v22099_v3  ;;  %v22126_v7 = vld [vmem:[%s25051_s14 + $0x36cc] ss:$48 sps:$4 sm:$0xff]  }
 0x2eb   : > { %v14927_v33 = vpop.f32.mrf.mxu1  ;;  %15221 = vmatprep.subr.bf16.mxu1 %v22102_v11  ;;  %v25942_v36 = vadd.f32 %v14925_v8, %v14885_v25  ;;  %v14887_v37 = vadd.f32 %v14886_v29, %v2619_v2  ;;  %15210 = vmatprep.mubr.bf16.mxu0 %v25439_v22  ;;  %v22129_v3 = vld [vmem:[%s25051_s14 + $0x306c] ss:$48 sps:$4 sm:$0xff]   ;;  %v22127_v2 = vld [vmem:[%s25051_s14 + $0x3068] ss:$48 sps:$4 sm:$0xff]  }
 0x2ec   : > { %15251 = vmatprep.mubr.bf16.mxu1 %v25455_v6  ;;  %v14888_v9 = vpop.f32.mrf.mxu0  ;;  %v22132_v11 = vld [vmem:[%s25051_s14 + $0x366c] ss:$48 sps:$4 sm:$0xff]   ;;  %v22133_v8 = vld [vmem:[%s25051_s14 + $0x3008] ss:$48 sps:$4 sm:$0xff]  }
 0x2ed   : > { %v14929_v32 = vpop.f32.mrf.mxu1  ;;  %v25948_v45 = vadd.f32 %v14927_v33, %v14887_v37  ;;  %15181 = vmatpush1.bf16.msra.mxu0 %v22097_v20  ;;  %v22130_v20 = vld [vmem:[%s25051_s14 + $0x3668] ss:$48 sps:$4 sm:$0xff]   ;;  %v22138_v1 = vld [vmem:[%s25051_s14 + $0x360c] ss:$48 sps:$4 sm:$0xff]  }
 0x2ee   : > { %15222 = vmatpush1.bf16.msra.mxu1 %v22100_v40  ;;  %v14889_v47 = vpop.f32.mrf.mxu0  ;;  %15182 = vmatprep.subr.bf16.mxu0 %v22105_v14  ;;  %v22135_v40 = vld [vmem:[%s25051_s14 + $0x300c] ss:$48 sps:$4 sm:$0xff]   ;;  %v22136_v25 = vld [vmem:[%s25051_s14 + $0x3608] ss:$48 sps:$4 sm:$0xff]  }
 0x2ef   : > { %v14930_v48 = vpop.f32.mrf.mxu1  ;;  %15223 = vmatprep.subr.bf16.mxu1 %v22108_v34  ;;  %v22141_v29 = vld [vmem:[%s25051_s14 + $0x35ac] ss:$48 sps:$4 sm:$0xff]   ;;  %v22139_v14 = vld [vmem:[%s25051_s14 + $0x35a8] ss:$48 sps:$4 sm:$0xff]  }
 0x2f0   : > { %v22144_v33 = vld [vmem:[%s25051_s14 + $0x3bac] ss:$48 sps:$4 sm:$0xff]   ;;  %v22142_v34 = vld [vmem:[%s25051_s14 + $0x3ba8] ss:$48 sps:$4 sm:$0xff]  }
 0x2f1   : > { %15183 = vmatpush1.bf16.msra.mxu0 %v22103_v39  ;;  %v22147_v37 = vld [vmem:[%s25051_s14 + $0x354c] ss:$48 sps:$4 sm:$0xff]   ;;  %v22148_v9 = vld [vmem:[%s25051_s14 + $0x3b48] ss:$48 sps:$4 sm:$0xff]  }
 0x2f2   : > { %15224 = vmatpush1.bf16.msra.mxu1 %v22106_v49  ;;  %15184 = vmatprep.subr.bf16.mxu0 %v22111_v51  ;;  %v22150_v39 = vld [vmem:[%s25051_s14 + $0x3b4c] ss:$48 sps:$4 sm:$0xff]   ;;  %v22145_v49 = vld [vmem:[%s25051_s14 + $0x3548] ss:$48 sps:$4 sm:$0xff]  }
 0x2f3   : > { %15225 = vmatprep.subr.bf16.mxu1 %v22114_v53  ;;  %v22153_v32 = vld [vmem:[%s25051_s14 + $0x34ec] ss:$48 sps:$4 sm:$0xff]   ;;  %v22151_v48 = vld [vmem:[%s25051_s14 + $0x34e8] ss:$48 sps:$4 sm:$0xff]  }
 0x2f4   : > { %v22156_v47 = vld [vmem:[%s25051_s14 + $0x3aec] ss:$48 sps:$4 sm:$0xff]   ;;  %v22154_v51 = vld [vmem:[%s25051_s14 + $0x3ae8] ss:$48 sps:$4 sm:$0xff]  }
 0x2f5   : > { %15185 = vmatpush1.bf16.msra.mxu0 %v22109_v56  ;;  %v22159_v53 = vld [vmem:[%s25051_s14 + $0x348c] ss:$48 sps:$4 sm:$0xff]  }
 0x2f6   : > { %15226 = vmatpush1.bf16.msra.mxu1 %v22112_v57  ;;  %15186 = vmatprep.subr.bf16.mxu0 %v22117_v46  ;;  %v22162_v56 = vld [vmem:[%s25051_s14 + $0x3a8c] ss:$48 sps:$4 sm:$0xff]   ;;  %v22157_v57 = vld [vmem:[%s25051_s14 + $0x3488] ss:$48 sps:$4 sm:$0xff]  }
 0x2f7   : > { %15227 = vmatprep.subr.bf16.mxu1 %v22120_v62  ;;  %v22160_v46 = vld [vmem:[%s25051_s14 + $0x3a88] ss:$48 sps:$4 sm:$0xff]   ;;  %v22165_v62 = vld [vmem:[%s25051_s14 + $0x342c] ss:$48 sps:$4 sm:$0xff]  }
 0x2f9   : > { %15187 = vmatpush1.bf16.msra.mxu0 %v22115_v35  ;;  %v22168_v35 = vld [vmem:[%s25051_s14 + $0x3a2c] ss:$48 sps:$4 sm:$0xff]  }
 0x2fa   : > { %15228 = vmatpush1.bf16.msra.mxu1 %v22118_v52  ;;  %15188 = vmatprep.subr.bf16.mxu0 %v22123_v5  ;;  %v22163_v52 = vld [vmem:[%s25051_s14 + $0x3428] ss:$48 sps:$4 sm:$0xff]  }
 0x2fb   : > { %15229 = vmatprep.subr.bf16.mxu1 %v22126_v7  ;;  %v22166_v5 = vld [vmem:[%s25051_s14 + $0x3a28] ss:$48 sps:$4 sm:$0xff]   ;;  %v22171_v7 = vld [vmem:[%s25051_s14 + $0x33cc] ss:$48 sps:$4 sm:$0xff]  }
 0x2fd   : > { %15189 = vmatpush1.bf16.msra.mxu0 %v22121_v58  ;;  %v22174_v58 = vld [vmem:[%s25051_s14 + $0x39cc] ss:$48 sps:$4 sm:$0xff]  }
 0x2fe   : > { %15230 = vmatpush1.bf16.msra.mxu1 %v22124_v10  ;;  %15190 = vmatprep.subr.bf16.mxu0 %v22129_v3  ;;  %v22169_v10 = vld [vmem:[%s25051_s14 + $0x33c8] ss:$48 sps:$4 sm:$0xff]  }
 0x2ff   : > { %15231 = vmatprep.subr.bf16.mxu1 %v22132_v11  ;;  %v22172_v3 = vld [vmem:[%s25051_s14 + $0x39c8] ss:$48 sps:$4 sm:$0xff]   ;;  %v22177_v11 = vld [vmem:[%s25051_s14 + $0x336c] ss:$48 sps:$4 sm:$0xff]  }
 0x301   : > { %15191 = vmatpush1.bf16.msra.mxu0 %v22127_v2  ;;  %v22180_v2 = vld [vmem:[%s25051_s14 + $0x396c] ss:$48 sps:$4 sm:$0xff]  }
 0x302   : > { %15232 = vmatpush1.bf16.msra.mxu1 %v22130_v20  ;;  %15192 = vmatprep.subr.bf16.mxu0 %v22135_v40  ;;  %v22175_v20 = vld [vmem:[%s25051_s14 + $0x3368] ss:$48 sps:$4 sm:$0xff]  }
 0x303   : > { %15233 = vmatprep.subr.bf16.mxu1 %v22138_v1  ;;  %v22178_v40 = vld [vmem:[%s25051_s14 + $0x3968] ss:$48 sps:$4 sm:$0xff]   ;;  %v22183_v1 = vld [vmem:[%s25051_s14 + $0x330c] ss:$48 sps:$4 sm:$0xff]  }
 0x305   : > { %15193 = vmatpush1.bf16.msra.mxu0 %v22133_v8  ;;  %v22186_v8 = vld [vmem:[%s25051_s14 + $0x390c] ss:$48 sps:$4 sm:$0xff]  }
 0x306   : > { %15234 = vmatpush1.bf16.msra.mxu1 %v22136_v25  ;;  %15194 = vmatprep.subr.bf16.mxu0 %v22141_v29  ;;  %v22181_v25 = vld [vmem:[%s25051_s14 + $0x3308] ss:$48 sps:$4 sm:$0xff]  }
 0x307   : > { %15235 = vmatprep.subr.bf16.mxu1 %v22144_v33  ;;  %v22184_v29 = vld [vmem:[%s25051_s14 + $0x3908] ss:$48 sps:$4 sm:$0xff]   ;;  %v22189_v33 = vld [vmem:[%s25051_s14 + $0x3eac] ss:$48 sps:$4 sm:$0xff]  }
 0x309   : > { %15195 = vmatpush2.bf16.msra.mxu0 %v22139_v14  ;;  %v22192_v14 = vld [vmem:[%s25051_s14 + $0x44ac] ss:$48 sps:$4 sm:$0xff]  }
 0x30a   : > { %15236 = vmatpush2.bf16.msra.mxu1 %v22142_v34  ;;  %15196 = vmatprep.subr.bf16.mxu0 %v22147_v37  ;;  %v22187_v34 = vld [vmem:[%s25051_s14 + $0x3ea8] ss:$48 sps:$4 sm:$0xff]  }
 0x30b   : > { %15237 = vmatprep.subr.bf16.mxu1 %v22150_v39  ;;  %v22190_v37 = vld [vmem:[%s25051_s14 + $0x44a8] ss:$48 sps:$4 sm:$0xff]   ;;  %v22195_v39 = vld [vmem:[%s25051_s14 + $0x3e4c] ss:$48 sps:$4 sm:$0xff]  }
 0x30d   : > { %15197 = vmatpush2.bf16.msra.mxu0 %v22145_v49  ;;  %v22198_v49 = vld [vmem:[%s25051_s14 + $0x444c] ss:$48 sps:$4 sm:$0xff]  }
 0x30e   : > { %15238 = vmatpush2.bf16.msra.mxu1 %v22148_v9  ;;  %15198 = vmatprep.subr.bf16.mxu0 %v22153_v32  ;;  %v22193_v9 = vld [vmem:[%s25051_s14 + $0x3e48] ss:$48 sps:$4 sm:$0xff]  }
 0x30f   : > { %15239 = vmatprep.subr.bf16.mxu1 %v22156_v47  ;;  %v22196_v32 = vld [vmem:[%s25051_s14 + $0x4448] ss:$48 sps:$4 sm:$0xff]  }
 0x311   : > { %15199 = vmatpush2.bf16.msra.mxu0 %v22151_v48 }
 0x312   : > { %15240 = vmatpush2.bf16.msra.mxu1 %v22154_v51  ;;  %15200 = vmatprep.subr.bf16.mxu0 %v22159_v53 }
 0x313   : > { %15241 = vmatprep.subr.bf16.mxu1 %v22162_v56 }
 0x315   : > { %15201 = vmatpush2.bf16.msra.mxu0 %v22157_v57  ;;  %v22201_v57 = vld [vmem:[%s25051_s14 + $0x3dec] ss:$48 sps:$4 sm:$0xff]  }
 0x316   : > { %15242 = vmatpush2.bf16.msra.mxu1 %v22160_v46  ;;  %15202 = vmatprep.subr.bf16.mxu0 %v22165_v62  ;;  %v22204_v46 = vld [vmem:[%s25051_s14 + $0x43ec] ss:$48 sps:$4 sm:$0xff]  }
 0x317   : > { %15243 = vmatprep.subr.bf16.mxu1 %v22168_v35 }
 0x319   : > { %15203 = vmatpush2.bf16.msra.mxu0 %v22163_v52  ;;  %v22199_v52 = vld [vmem:[%s25051_s14 + $0x3de8] ss:$48 sps:$4 sm:$0xff]  }
 0x31a   : > { %15244 = vmatpush2.bf16.msra.mxu1 %v22166_v5  ;;  %15204 = vmatprep.subr.bf16.mxu0 %v22171_v7  ;;  %v22202_v5 = vld [vmem:[%s25051_s14 + $0x43e8] ss:$48 sps:$4 sm:$0xff]  }
 0x31b   : > { %15245 = vmatprep.subr.bf16.mxu1 %v22174_v58 }
 0x31d   : > { %15205 = vmatpush2.bf16.msra.mxu0 %v22169_v10 }
 0x31e   : > { %15246 = vmatpush2.bf16.msra.mxu1 %v22172_v3  ;;  %15206 = vmatprep.subr.bf16.mxu0 %v22177_v11  ;;  %v22210_v11 = vld [vmem:[%s25051_s14 + $0x438c] ss:$48 sps:$4 sm:$0xff]  }
 0x31f   : > { %15247 = vmatprep.subr.bf16.mxu1 %v22180_v2  ;;  %v22205_v2 = vld [vmem:[%s25051_s14 + $0x3d88] ss:$48 sps:$4 sm:$0xff]  }
 0x321   : > { %15207 = vmatpush2.bf16.msra.mxu0 %v22175_v20  ;;  %v22208_v20 = vld [vmem:[%s25051_s14 + $0x4388] ss:$48 sps:$4 sm:$0xff]  }
 0x322   : > { %15248 = vmatpush2.bf16.msra.mxu1 %v22178_v40  ;;  %15208 = vmatprep.subr.bf16.mxu0 %v22183_v1  ;;  %v22213_v40 = vld [vmem:[%s25051_s14 + $0x3d2c] ss:$48 sps:$4 sm:$0xff]  }
 0x323   : > { %15249 = vmatprep.subr.bf16.mxu1 %v22186_v8  ;;  %v22216_v1 = vld [vmem:[%s25051_s14 + $0x432c] ss:$48 sps:$4 sm:$0xff]   ;;  %v22211_v8 = vld [vmem:[%s25051_s14 + $0x3d28] ss:$48 sps:$4 sm:$0xff]  }
 0x325   : > { %15209 = vmatpush2.bf16.msra.mxu0 %v22181_v25  ;;  %v22214_v25 = vld [vmem:[%s25051_s14 + $0x4328] ss:$48 sps:$4 sm:$0xff]  }
 0x326   : > { %15250 = vmatpush2.bf16.msra.mxu1 %v22184_v29  ;;  %15260 = vmatprep.subr.bf16.mxu0 %v22189_v33  ;;  %v22219_v29 = vld [vmem:[%s25051_s14 + $0x3ccc] ss:$48 sps:$4 sm:$0xff]  }
 0x327   : > { %15301 = vmatprep.subr.bf16.mxu1 %v22192_v14  ;;  %v22222_v33 = vld [vmem:[%s25051_s14 + $0x42cc] ss:$48 sps:$4 sm:$0xff]   ;;  %v22217_v14 = vld [vmem:[%s25051_s14 + $0x3cc8] ss:$48 sps:$4 sm:$0xff]  }
 0x328   : > { %v14966_v47 = vpop.f32.mrf.mxu0  ;;  %15211 = vmatmul.mubr.bf16.vlgmr.msra.gmra.mxu0 %v25530_v19 }
 0x329   : > { %v15007_v48 = vpop.f32.mrf.mxu1  ;;  %15252 = vmatmul.mubr.bf16.vlgmr.msra.gmra.mxu1 %v25543_v4  ;;  %v14967_v51 = vadd.f32 %v14966_v47, %v25942_v36  ;;  %15261 = vmatpush1.bf16.msra.mxu0 %v22187_v34  ;;  %v22220_v34 = vld [vmem:[%s25051_s14 + $0x42c8] ss:$48 sps:$4 sm:$0xff]   ;;  %v22234_v47 = vld [vmem:[%s25051_s14 + $0x420c] ss:$48 sps:$4 sm:$0xff]  }
 0x32a   : > { %15302 = vmatpush1.bf16.msra.mxu1 %v22190_v37  ;;  %v14968_v53 = vpop.f32.mrf.mxu0  ;;  %15262 = vmatprep.subr.bf16.mxu0 %v22195_v39  ;;  %v22225_v37 = vld [vmem:[%s25051_s14 + $0x3c6c] ss:$48 sps:$4 sm:$0xff]  }
 0x32b   : > { %v15009_v56 = vpop.f32.mrf.mxu1  ;;  %15303 = vmatprep.subr.bf16.mxu1 %v22198_v49  ;;  %v26015_v62 = vadd.f32 %v15007_v48, %v14967_v51  ;;  %v14969_v35 = vadd.f32 %v14968_v53, %v25948_v45  ;;  %15292 = vmatprep.mubr.bf16.mxu0 %v25539_v31  ;;  %v22207_v45 = vld [vmem:[%s25051_s14 + $0x3d8c] ss:$48 sps:$4 sm:$0xff]   ;;  %v22223_v49 = vld [vmem:[%s25051_s14 + $0x3c68] ss:$48 sps:$4 sm:$0xff]  }
 0x32c   : > { %15333 = vmatprep.mubr.bf16.mxu1 %v25551_v38  ;;  %v14970_v36 = vpop.f32.mrf.mxu0  ;;  %v22228_v39 = vld [vmem:[%s25051_s14 + $0x426c] ss:$48 sps:$4 sm:$0xff]   ;;  %v22229_v48 = vld [vmem:[%s25051_s14 + $0x3c08] ss:$48 sps:$4 sm:$0xff]  }
 0x32d   : > { %v15011_v7 = vpop.f32.mrf.mxu1  ;;  %v26022_v58 = vadd.f32 %v15009_v56, %v14969_v35  ;;  %15263 = vmatpush1.bf16.msra.mxu0 %v22193_v9  ;;  %v22226_v9 = vld [vmem:[%s25051_s14 + $0x4268] ss:$48 sps:$4 sm:$0xff]   ;;  %v22237_v53 = vld [vmem:[%s25051_s14 + $0x41ac] ss:$48 sps:$4 sm:$0xff]  }
 0x32e   : > { %15304 = vmatpush1.bf16.msra.mxu1 %v22196_v32  ;;  %v14971_v10 = vpop.f32.mrf.mxu0  ;;  %15264 = vmatprep.subr.bf16.mxu0 %v22201_v57  ;;  %v22231_v32 = vld [vmem:[%s25051_s14 + $0x3c0c] ss:$48 sps:$4 sm:$0xff]   ;;  %v22232_v51 = vld [vmem:[%s25051_s14 + $0x4208] ss:$48 sps:$4 sm:$0xff]  }
 0x32f   : > { %v15012_v3 = vpop.f32.mrf.mxu1  ;;  %15305 = vmatprep.subr.bf16.mxu1 %v22204_v46  ;;  %v22240_v56 = vld [vmem:[%s25051_s14 + $0x47ac] ss:$48 sps:$4 sm:$0xff]   ;;  %v22235_v57 = vld [vmem:[%s25051_s14 + $0x41a8] ss:$48 sps:$4 sm:$0xff]  }
 0x330   : > { %v22238_v46 = vld [vmem:[%s25051_s14 + $0x47a8] ss:$48 sps:$4 sm:$0xff]   ;;  %v22243_v35 = vld [vmem:[%s25051_s14 + $0x414c] ss:$48 sps:$4 sm:$0xff]  }
 0x331   : > { %15265 = vmatpush1.bf16.msra.mxu0 %v22199_v52  ;;  %v22246_v52 = vld [vmem:[%s25051_s14 + $0x474c] ss:$48 sps:$4 sm:$0xff]   ;;  %v22244_v36 = vld [vmem:[%s25051_s14 + $0x4748] ss:$48 sps:$4 sm:$0xff]  }
 0x332   : > { %15306 = vmatpush1.bf16.msra.mxu1 %v22202_v5  ;;  %15266 = vmatprep.subr.bf16.mxu0 %v22207_v45  ;;  %v22241_v5 = vld [vmem:[%s25051_s14 + $0x4148] ss:$48 sps:$4 sm:$0xff]   ;;  %v22249_v7 = vld [vmem:[%s25051_s14 + $0x40ec] ss:$48 sps:$4 sm:$0xff]  }
 0x333   : > { %15307 = vmatprep.subr.bf16.mxu1 %v22210_v11  ;;  %v22252_v10 = vld [vmem:[%s25051_s14 + $0x46ec] ss:$48 sps:$4 sm:$0xff]   ;;  %v22247_v3 = vld [vmem:[%s25051_s14 + $0x40e8] ss:$48 sps:$4 sm:$0xff]  }
 0x334   : > { %v22250_v45 = vld [vmem:[%s25051_s14 + $0x46e8] ss:$48 sps:$4 sm:$0xff]   ;;  %v22255_v11 = vld [vmem:[%s25051_s14 + $0x408c] ss:$48 sps:$4 sm:$0xff]  }
 0x335   : > { %15267 = vmatpush1.bf16.msra.mxu0 %v22205_v2  ;;  %v22258_v2 = vld [vmem:[%s25051_s14 + $0x468c] ss:$48 sps:$4 sm:$0xff]  }
 0x336   : > { %15308 = vmatpush1.bf16.msra.mxu1 %v22208_v20  ;;  %15268 = vmatprep.subr.bf16.mxu0 %v22213_v40  ;;  %v22253_v20 = vld [vmem:[%s25051_s14 + $0x4088] ss:$48 sps:$4 sm:$0xff]  }
 0x337   : > { %15309 = vmatprep.subr.bf16.mxu1 %v22216_v1  ;;  %v22256_v40 = vld [vmem:[%s25051_s14 + $0x4688] ss:$48 sps:$4 sm:$0xff]   ;;  %v22261_v1 = vld [vmem:[%s25051_s14 + $0x402c] ss:$48 sps:$4 sm:$0xff]  }
 0x339   : > { %15269 = vmatpush1.bf16.msra.mxu0 %v22211_v8  ;;  %v22264_v8 = vld [vmem:[%s25051_s14 + $0x462c] ss:$48 sps:$4 sm:$0xff]  }
 0x33a   : > { %15310 = vmatpush1.bf16.msra.mxu1 %v22214_v25  ;;  %15270 = vmatprep.subr.bf16.mxu0 %v22219_v29  ;;  %v22259_v25 = vld [vmem:[%s25051_s14 + $0x4028] ss:$48 sps:$4 sm:$0xff]  }
 0x33b   : > { %15311 = vmatprep.subr.bf16.mxu1 %v22222_v33  ;;  %v22262_v29 = vld [vmem:[%s25051_s14 + $0x4628] ss:$48 sps:$4 sm:$0xff]   ;;  %v22267_v33 = vld [vmem:[%s25051_s14 + $0x3fcc] ss:$48 sps:$4 sm:$0xff]  }
 0x33d   : > { %15271 = vmatpush1.bf16.msra.mxu0 %v22217_v14  ;;  %v22270_v14 = vld [vmem:[%s25051_s14 + $0x45cc] ss:$48 sps:$4 sm:$0xff]  }
 0x33e   : > { %15312 = vmatpush1.bf16.msra.mxu1 %v22220_v34  ;;  %15272 = vmatprep.subr.bf16.mxu0 %v22225_v37  ;;  %v22265_v34 = vld [vmem:[%s25051_s14 + $0x3fc8] ss:$48 sps:$4 sm:$0xff]  }
 0x33f   : > { %15313 = vmatprep.subr.bf16.mxu1 %v22228_v39  ;;  %v22268_v37 = vld [vmem:[%s25051_s14 + $0x45c8] ss:$48 sps:$4 sm:$0xff]   ;;  %v22273_v39 = vld [vmem:[%s25051_s14 + $0x3f6c] ss:$48 sps:$4 sm:$0xff]  }
 0x341   : > { %15273 = vmatpush1.bf16.msra.mxu0 %v22223_v49  ;;  %v22276_v49 = vld [vmem:[%s25051_s14 + $0x456c] ss:$48 sps:$4 sm:$0xff]  }
 0x342   : > { %15314 = vmatpush1.bf16.msra.mxu1 %v22226_v9  ;;  %15274 = vmatprep.subr.bf16.mxu0 %v22231_v32  ;;  %v22271_v9 = vld [vmem:[%s25051_s14 + $0x3f68] ss:$48 sps:$4 sm:$0xff]  }
 0x343   : > { %15315 = vmatprep.subr.bf16.mxu1 %v22234_v47  ;;  %v22274_v32 = vld [vmem:[%s25051_s14 + $0x4568] ss:$48 sps:$4 sm:$0xff]   ;;  %v22279_v47 = vld [vmem:[%s25051_s14 + $0x3f0c] ss:$48 sps:$4 sm:$0xff]  }
 0x345   : > { %15275 = vmatpush1.bf16.msra.mxu0 %v22229_v48  ;;  %v22282_v48 = vld [vmem:[%s25051_s14 + $0x450c] ss:$48 sps:$4 sm:$0xff]  }
 0x346   : > { %15316 = vmatpush1.bf16.msra.mxu1 %v22232_v51  ;;  %15276 = vmatprep.subr.bf16.mxu0 %v22237_v53  ;;  %v22277_v51 = vld [vmem:[%s25051_s14 + $0x3f08] ss:$48 sps:$4 sm:$0xff]  }
 0x347   : > { %15317 = vmatprep.subr.bf16.mxu1 %v22240_v56  ;;  %v22280_v53 = vld [vmem:[%s25051_s14 + $0x4508] ss:$48 sps:$4 sm:$0xff]   ;;  %v22285_v56 = vld [vmem:[%s25051_s14 + $0x2b4] ss:$48 sps:$4 sm:$0xff]  }
 0x349   : > { %15277 = vmatpush2.bf16.msra.mxu0 %v22235_v57  ;;  %v22288_v57 = vld [vmem:[%s25051_s14 + $0x8b4] ss:$48 sps:$4 sm:$0xff]  }
 0x34a   : > { %15318 = vmatpush2.bf16.msra.mxu1 %v22238_v46  ;;  %15278 = vmatprep.subr.bf16.mxu0 %v22243_v35  ;;  %v22283_v46 = vld [vmem:[%s25051_s14 + $0x2b0] ss:$48 sps:$4 sm:$0xff]  }
 0x34b   : > { %15319 = vmatprep.subr.bf16.mxu1 %v22246_v52  ;;  %v22286_v35 = vld [vmem:[%s25051_s14 + $0x8b0] ss:$48 sps:$4 sm:$0xff]   ;;  %v22291_v52 = vld [vmem:[%s25051_s14 + $0x254] ss:$48 sps:$4 sm:$0xff]  }
 0x34d   : > { %15279 = vmatpush2.bf16.msra.mxu0 %v22241_v5  ;;  %v22294_v5 = vld [vmem:[%s25051_s14 + $0x854] ss:$48 sps:$4 sm:$0xff]  }
 0x34e   : > { %15320 = vmatpush2.bf16.msra.mxu1 %v22244_v36  ;;  %15280 = vmatprep.subr.bf16.mxu0 %v22249_v7  ;;  %v22289_v36 = vld [vmem:[%s25051_s14 + $0x250] ss:$48 sps:$4 sm:$0xff]  }
 0x34f   : > { %15321 = vmatprep.subr.bf16.mxu1 %v22252_v10  ;;  %v22292_v7 = vld [vmem:[%s25051_s14 + $0x850] ss:$48 sps:$4 sm:$0xff]  }
 0x351   : > { %15281 = vmatpush2.bf16.msra.mxu0 %v22247_v3 }
 0x352   : > { %15322 = vmatpush2.bf16.msra.mxu1 %v22250_v45  ;;  %15282 = vmatprep.subr.bf16.mxu0 %v22255_v11 }
 0x353   : > { %15323 = vmatprep.subr.bf16.mxu1 %v22258_v2 }
 0x355   : > { %15283 = vmatpush2.bf16.msra.mxu0 %v22253_v20  ;;  %v22297_v20 = vld [vmem:[%s25051_s14 + $0x1f4] ss:$48 sps:$4 sm:$0xff]  }
 0x356   : > { %15324 = vmatpush2.bf16.msra.mxu1 %v22256_v40  ;;  %15284 = vmatprep.subr.bf16.mxu0 %v22261_v1  ;;  %v22300_v40 = vld [vmem:[%s25051_s14 + $0x7f4] ss:$48 sps:$4 sm:$0xff]  }
 0x357   : > { %15325 = vmatprep.subr.bf16.mxu1 %v22264_v8 }
 0x359   : > { %15285 = vmatpush2.bf16.msra.mxu0 %v22259_v25  ;;  %v22295_v25 = vld [vmem:[%s25051_s14 + $0x1f0] ss:$48 sps:$4 sm:$0xff]  }
 0x35a   : > { %15326 = vmatpush2.bf16.msra.mxu1 %v22262_v29  ;;  %15286 = vmatprep.subr.bf16.mxu0 %v22267_v33  ;;  %v22298_v29 = vld [vmem:[%s25051_s14 + $0x7f0] ss:$48 sps:$4 sm:$0xff]  }
 0x35b   : > { %15327 = vmatprep.subr.bf16.mxu1 %v22270_v14 }
 0x35d   : > { %15287 = vmatpush2.bf16.msra.mxu0 %v22265_v34 }
 0x35e   : > { %15328 = vmatpush2.bf16.msra.mxu1 %v22268_v37  ;;  %15288 = vmatprep.subr.bf16.mxu0 %v22273_v39  ;;  %v22306_v39 = vld [vmem:[%s25051_s14 + $0x794] ss:$48 sps:$4 sm:$0xff]  }
 0x35f   : > { %15329 = vmatprep.subr.bf16.mxu1 %v22276_v49  ;;  %v22301_v49 = vld [vmem:[%s25051_s14 + $0x190] ss:$48 sps:$4 sm:$0xff]  }
 0x361   : > { %15289 = vmatpush2.bf16.msra.mxu0 %v22271_v9  ;;  %v22304_v9 = vld [vmem:[%s25051_s14 + $0x790] ss:$48 sps:$4 sm:$0xff]  }
 0x362   : > { %15330 = vmatpush2.bf16.msra.mxu1 %v22274_v32  ;;  %15290 = vmatprep.subr.bf16.mxu0 %v22279_v47  ;;  %v22309_v32 = vld [vmem:[%s25051_s14 + $0x134] ss:$48 sps:$4 sm:$0xff]  }
 0x363   : > { %15331 = vmatprep.subr.bf16.mxu1 %v22282_v48  ;;  %v22312_v47 = vld [vmem:[%s25051_s14 + $0x734] ss:$48 sps:$4 sm:$0xff]   ;;  %v22307_v48 = vld [vmem:[%s25051_s14 + $0x130] ss:$48 sps:$4 sm:$0xff]  }
 0x365   : > { %15291 = vmatpush2.bf16.msra.mxu0 %v22277_v51  ;;  %v22310_v51 = vld [vmem:[%s25051_s14 + $0x730] ss:$48 sps:$4 sm:$0xff]  }
 0x366   : > { %15332 = vmatpush2.bf16.msra.mxu1 %v22280_v53  ;;  %15342 = vmatprep.subr.bf16.mxu0 %v22285_v56  ;;  %v22315_v53 = vld [vmem:[%s25051_s14 + $0xd4] ss:$48 sps:$4 sm:$0xff]  }
 0x367   : > { %15383 = vmatprep.subr.bf16.mxu1 %v22288_v57  ;;  %v22318_v56 = vld [vmem:[%s25051_s14 + $0x6d4] ss:$48 sps:$4 sm:$0xff]   ;;  %v22313_v57 = vld [vmem:[%s25051_s14 + $0xd0] ss:$48 sps:$4 sm:$0xff]  }
 0x368   : > { %v15048_v10 = vpop.f32.mrf.mxu0  ;;  %15293 = vmatmul.mubr.bf16.vlgmr.msra.gmra.mxu0 %v25619_v28 }
 0x369   : > { %v15089_v3 = vpop.f32.mrf.mxu1  ;;  %15334 = vmatmul.mubr.bf16.vlgmr.msra.gmra.mxu1 %v25629_v44  ;;  %v15049_v45 = vadd.f32 %v15048_v10, %v26015_v62  ;;  %15343 = vmatpush1.bf16.msra.mxu0 %v22283_v46  ;;  %v22316_v46 = vld [vmem:[%s25051_s14 + $0x6d0] ss:$48 sps:$4 sm:$0xff]   ;;  %v22330_v10 = vld [vmem:[%s25051_s14 + $0x614] ss:$48 sps:$4 sm:$0xff]  }
 0x36a   : > { %15384 = vmatpush1.bf16.msra.mxu1 %v22286_v35  ;;  %v15050_v11 = vpop.f32.mrf.mxu0  ;;  %15344 = vmatprep.subr.bf16.mxu0 %v22291_v52  ;;  %v22321_v35 = vld [vmem:[%s25051_s14 + $0x74] ss:$48 sps:$4 sm:$0xff]  }
 0x36b   : > { %v15091_v2 = vpop.f32.mrf.mxu1  ;;  %15385 = vmatprep.subr.bf16.mxu1 %v22294_v5  ;;  %v26089_v1 = vadd.f32 %v15089_v3, %v15049_v45  ;;  %v15051_v8 = vadd.f32 %v15050_v11, %v26022_v58  ;;  %15374 = vmatprep.mubr.bf16.mxu0 %v25126_v60  ;;  %v22303_v58 = vld [vmem:[%s25051_s14 + $0x194] ss:$48 sps:$4 sm:$0xff]   ;;  %v22319_v5 = vld [vmem:[%s25051_s14 + $0x70] ss:$48 sps:$4 sm:$0xff]  }
 0x36c   : > { %15415 = vmatprep.mubr.bf16.mxu1 %v25133_v0  ;;  %v15052_v62 = vpop.f32.mrf.mxu0  ;;  %v22324_v52 = vld [vmem:[%s25051_s14 + $0x674] ss:$48 sps:$4 sm:$0xff]   ;;  %v22325_v3 = vld [vmem:[%s25051_s14 + $0x10] ss:$48 sps:$4 sm:$0xff]  }
 0x36d   : > { %v15093_v33 = vpop.f32.mrf.mxu1  ;;  %v26096_v14 = vadd.f32 %v15091_v2, %v15051_v8  ;;  %15345 = vmatpush1.bf16.msra.mxu0 %v22289_v36  ;;  %v22322_v36 = vld [vmem:[%s25051_s14 + $0x670] ss:$48 sps:$4 sm:$0xff]   ;;  %v22333_v11 = vld [vmem:[%s25051_s14 + $0x5b4] ss:$48 sps:$4 sm:$0xff]  }
 0x36e   : > { %15386 = vmatpush1.bf16.msra.mxu1 %v22292_v7  ;;  %v15053_v34 = vpop.f32.mrf.mxu0  ;;  %15346 = vmatprep.subr.bf16.mxu0 %v22297_v20  ;;  %v22327_v7 = vld [vmem:[%s25051_s14 + $0x14] ss:$48 sps:$4 sm:$0xff]   ;;  %v22328_v45 = vld [vmem:[%s25051_s14 + $0x610] ss:$48 sps:$4 sm:$0xff]  }
 0x36f   : > { %v15094_v37 = vpop.f32.mrf.mxu1  ;;  %15387 = vmatprep.subr.bf16.mxu1 %v22300_v40  ;;  %v22336_v2 = vld [vmem:[%s25051_s14 + $0xbb4] ss:$48 sps:$4 sm:$0xff]   ;;  %v22331_v20 = vld [vmem:[%s25051_s14 + $0x5b0] ss:$48 sps:$4 sm:$0xff]  }
 0x370   : > { %v22334_v40 = vld [vmem:[%s25051_s14 + $0xbb0] ss:$48 sps:$4 sm:$0xff]   ;;  %v22339_v8 = vld [vmem:[%s25051_s14 + $0x554] ss:$48 sps:$4 sm:$0xff]  }
 0x371   : > { %15347 = vmatpush1.bf16.msra.mxu0 %v22295_v25  ;;  %v22342_v25 = vld [vmem:[%s25051_s14 + $0xb54] ss:$48 sps:$4 sm:$0xff]   ;;  %v22340_v62 = vld [vmem:[%s25051_s14 + $0xb50] ss:$48 sps:$4 sm:$0xff]  }
 0x372   : > { %15388 = vmatpush1.bf16.msra.mxu1 %v22298_v29  ;;  %15348 = vmatprep.subr.bf16.mxu0 %v22303_v58  ;;  %v22337_v29 = vld [vmem:[%s25051_s14 + $0x550] ss:$48 sps:$4 sm:$0xff]   ;;  %v22345_v33 = vld [vmem:[%s25051_s14 + $0x4f4] ss:$48 sps:$4 sm:$0xff]  }
 0x373   : > { %15389 = vmatprep.subr.bf16.mxu1 %v22306_v39  ;;  %v22348_v34 = vld [vmem:[%s25051_s14 + $0xaf4] ss:$48 sps:$4 sm:$0xff]   ;;  %v22343_v37 = vld [vmem:[%s25051_s14 + $0x4f0] ss:$48 sps:$4 sm:$0xff]  }
 0x374   : > { %v22346_v58 = vld [vmem:[%s25051_s14 + $0xaf0] ss:$48 sps:$4 sm:$0xff]   ;;  %v22351_v39 = vld [vmem:[%s25051_s14 + $0x494] ss:$48 sps:$4 sm:$0xff]  }
 0x375   : > { %15349 = vmatpush1.bf16.msra.mxu0 %v22301_v49  ;;  %v22354_v49 = vld [vmem:[%s25051_s14 + $0xa94] ss:$48 sps:$4 sm:$0xff]  }
 0x376   : > { %15390 = vmatpush1.bf16.msra.mxu1 %v22304_v9  ;;  %15350 = vmatprep.subr.bf16.mxu0 %v22309_v32  ;;  %v22349_v9 = vld [vmem:[%s25051_s14 + $0x490] ss:$48 sps:$4 sm:$0xff]  }
 0x377   : > { %15391 = vmatprep.subr.bf16.mxu1 %v22312_v47  ;;  %v22352_v32 = vld [vmem:[%s25051_s14 + $0xa90] ss:$48 sps:$4 sm:$0xff]   ;;  %v22357_v47 = vld [vmem:[%s25051_s14 + $0x434] ss:$48 sps:$4 sm:$0xff]  }
 0x379   : > { %15351 = vmatpush1.bf16.msra.mxu0 %v22307_v48  ;;  %v22360_v48 = vld [vmem:[%s25051_s14 + $0xa34] ss:$48 sps:$4 sm:$0xff]  }
 0x37a   : > { %15392 = vmatpush1.bf16.msra.mxu1 %v22310_v51  ;;  %15352 = vmatprep.subr.bf16.mxu0 %v22315_v53  ;;  %v22355_v51 = vld [vmem:[%s25051_s14 + $0x430] ss:$48 sps:$4 sm:$0xff]  }
 0x37b   : > { %15393 = vmatprep.subr.bf16.mxu1 %v22318_v56  ;;  %v22358_v53 = vld [vmem:[%s25051_s14 + $0xa30] ss:$48 sps:$4 sm:$0xff]   ;;  %v22363_v56 = vld [vmem:[%s25051_s14 + $0x3d4] ss:$48 sps:$4 sm:$0xff]  }
 0x37d   : > { %15353 = vmatpush1.bf16.msra.mxu0 %v22313_v57  ;;  %v22366_v57 = vld [vmem:[%s25051_s14 + $0x9d4] ss:$48 sps:$4 sm:$0xff]  }
 0x37e   : > { %15394 = vmatpush1.bf16.msra.mxu1 %v22316_v46  ;;  %15354 = vmatprep.subr.bf16.mxu0 %v22321_v35  ;;  %v22361_v46 = vld [vmem:[%s25051_s14 + $0x3d0] ss:$48 sps:$4 sm:$0xff]  }
 0x37f   : > { %15395 = vmatprep.subr.bf16.mxu1 %v22324_v52  ;;  %v22364_v35 = vld [vmem:[%s25051_s14 + $0x9d0] ss:$48 sps:$4 sm:$0xff]   ;;  %v22369_v52 = vld [vmem:[%s25051_s14 + $0x374] ss:$48 sps:$4 sm:$0xff]  }
 0x381   : > { %15355 = vmatpush1.bf16.msra.mxu0 %v22319_v5  ;;  %v22372_v5 = vld [vmem:[%s25051_s14 + $0x974] ss:$48 sps:$4 sm:$0xff]  }
 0x382   : > { %15396 = vmatpush1.bf16.msra.mxu1 %v22322_v36  ;;  %15356 = vmatprep.subr.bf16.mxu0 %v22327_v7  ;;  %v22367_v36 = vld [vmem:[%s25051_s14 + $0x370] ss:$48 sps:$4 sm:$0xff]  }
 0x383   : > { %15397 = vmatprep.subr.bf16.mxu1 %v22330_v10  ;;  %v22370_v7 = vld [vmem:[%s25051_s14 + $0x970] ss:$48 sps:$4 sm:$0xff]   ;;  %v22375_v10 = vld [vmem:[%s25051_s14 + $0x314] ss:$48 sps:$4 sm:$0xff]  }
 0x385   : > { %15357 = vmatpush1.bf16.msra.mxu0 %v22325_v3  ;;  %v22378_v3 = vld [vmem:[%s25051_s14 + $0x914] ss:$48 sps:$4 sm:$0xff]  }
 0x386   : > { %15398 = vmatpush1.bf16.msra.mxu1 %v22328_v45  ;;  %15358 = vmatprep.subr.bf16.mxu0 %v22333_v11  ;;  %v22373_v45 = vld [vmem:[%s25051_s14 + $0x310] ss:$48 sps:$4 sm:$0xff]  }
 0x387   : > { %15399 = vmatprep.subr.bf16.mxu1 %v22336_v2  ;;  %v22376_v11 = vld [vmem:[%s25051_s14 + $0x910] ss:$48 sps:$4 sm:$0xff]   ;;  %v22381_v2 = vld [vmem:[%s25051_s14 + $0xeb4] ss:$48 sps:$4 sm:$0xff]  }
 0x389   : > { %15359 = vmatpush2.bf16.msra.mxu0 %v22331_v20  ;;  %v22384_v20 = vld [vmem:[%s25051_s14 + $0x14b4] ss:$48 sps:$4 sm:$0xff]  }
 0x38a   : > { %15400 = vmatpush2.bf16.msra.mxu1 %v22334_v40  ;;  %15360 = vmatprep.subr.bf16.mxu0 %v22339_v8  ;;  %v22379_v40 = vld [vmem:[%s25051_s14 + $0xeb0] ss:$48 sps:$4 sm:$0xff]  }
 0x38b   : > { %15401 = vmatprep.subr.bf16.mxu1 %v22342_v25  ;;  %v22382_v8 = vld [vmem:[%s25051_s14 + $0x14b0] ss:$48 sps:$4 sm:$0xff]   ;;  %v22387_v25 = vld [vmem:[%s25051_s14 + $0xe54] ss:$48 sps:$4 sm:$0xff]  }
 0x38d   : > { %15361 = vmatpush2.bf16.msra.mxu0 %v22337_v29  ;;  %v22390_v29 = vld [vmem:[%s25051_s14 + $0x1454] ss:$48 sps:$4 sm:$0xff]  }
 0x38e   : > { %15402 = vmatpush2.bf16.msra.mxu1 %v22340_v62  ;;  %15362 = vmatprep.subr.bf16.mxu0 %v22345_v33  ;;  %v22385_v62 = vld [vmem:[%s25051_s14 + $0xe50] ss:$48 sps:$4 sm:$0xff]  }
 0x38f   : > { %15403 = vmatprep.subr.bf16.mxu1 %v22348_v34  ;;  %v22388_v33 = vld [vmem:[%s25051_s14 + $0x1450] ss:$48 sps:$4 sm:$0xff]  }
 0x391   : > { %15363 = vmatpush2.bf16.msra.mxu0 %v22343_v37 }
 0x392   : > { %15404 = vmatpush2.bf16.msra.mxu1 %v22346_v58  ;;  %15364 = vmatprep.subr.bf16.mxu0 %v22351_v39 }
 0x393   : > { %15405 = vmatprep.subr.bf16.mxu1 %v22354_v49 }
 0x395   : > { %15365 = vmatpush2.bf16.msra.mxu0 %v22349_v9  ;;  %v22393_v9 = vld [vmem:[%s25051_s14 + $0xdf4] ss:$48 sps:$4 sm:$0xff]  }
 0x396   : > { %15406 = vmatpush2.bf16.msra.mxu1 %v22352_v32  ;;  %15366 = vmatprep.subr.bf16.mxu0 %v22357_v47  ;;  %v22396_v32 = vld [vmem:[%s25051_s14 + $0x13f4] ss:$48 sps:$4 sm:$0xff]  }
 0x397   : > { %15407 = vmatprep.subr.bf16.mxu1 %v22360_v48 }
 0x399   : > { %15367 = vmatpush2.bf16.msra.mxu0 %v22355_v51  ;;  %v22391_v51 = vld [vmem:[%s25051_s14 + $0xdf0] ss:$48 sps:$4 sm:$0xff]  }
 0x39a   : > { %15408 = vmatpush2.bf16.msra.mxu1 %v22358_v53  ;;  %15368 = vmatprep.subr.bf16.mxu0 %v22363_v56  ;;  %v22394_v53 = vld [vmem:[%s25051_s14 + $0x13f0] ss:$48 sps:$4 sm:$0xff]  }
 0x39b   : > { %15409 = vmatprep.subr.bf16.mxu1 %v22366_v57 }
 0x39d   : > { %15369 = vmatpush2.bf16.msra.mxu0 %v22361_v46 }
 0x39e   : > { %15410 = vmatpush2.bf16.msra.mxu1 %v22364_v35  ;;  %15370 = vmatprep.subr.bf16.mxu0 %v22369_v52  ;;  %v22399_v35 = vld [vmem:[%s25051_s14 + $0xd94] ss:$48 sps:$4 sm:$0xff]  }
 0x39f   : > { %15411 = vmatprep.subr.bf16.mxu1 %v22372_v5  ;;  %v22402_v52 = vld [vmem:[%s25051_s14 + $0x1394] ss:$48 sps:$4 sm:$0xff]   ;;  %v22397_v5 = vld [vmem:[%s25051_s14 + $0xd90] ss:$48 sps:$4 sm:$0xff]  }
 0x3a1   : > { %15371 = vmatpush2.bf16.msra.mxu0 %v22367_v36  ;;  %v22400_v36 = vld [vmem:[%s25051_s14 + $0x1390] ss:$48 sps:$4 sm:$0xff]  }
 0x3a2   : > { %15412 = vmatpush2.bf16.msra.mxu1 %v22370_v7  ;;  %15372 = vmatprep.subr.bf16.mxu0 %v22375_v10  ;;  %v22405_v7 = vld [vmem:[%s25051_s14 + $0xd34] ss:$48 sps:$4 sm:$0xff]  }
 0x3a3   : > { %15413 = vmatprep.subr.bf16.mxu1 %v22378_v3  ;;  %v22408_v10 = vld [vmem:[%s25051_s14 + $0x1334] ss:$48 sps:$4 sm:$0xff]   ;;  %v22403_v3 = vld [vmem:[%s25051_s14 + $0xd30] ss:$48 sps:$4 sm:$0xff]  }
 0x3a5   : > { %15373 = vmatpush2.bf16.msra.mxu0 %v22373_v45  ;;  %v22406_v45 = vld [vmem:[%s25051_s14 + $0x1330] ss:$48 sps:$4 sm:$0xff]  }
 0x3a6   : > { %15414 = vmatpush2.bf16.msra.mxu1 %v22376_v11  ;;  %15424 = vmatprep.subr.bf16.mxu0 %v22381_v2  ;;  %v22411_v11 = vld [vmem:[%s25051_s14 + $0xcd4] ss:$48 sps:$4 sm:$0xff]  }
 0x3a7   : > { %15465 = vmatprep.subr.bf16.mxu1 %v22384_v20  ;;  %v22414_v2 = vld [vmem:[%s25051_s14 + $0x12d4] ss:$48 sps:$4 sm:$0xff]   ;;  %v22409_v20 = vld [vmem:[%s25051_s14 + $0xcd0] ss:$48 sps:$4 sm:$0xff]  }
 0x3a8   : > { %v15130_v34 = vpop.f32.mrf.mxu0  ;;  %15375 = vmatmul.mubr.bf16.vlgmr.msra.gmra.mxu0 %v25152_v13 }
 0x3a9   : > { %v15171_v37 = vpop.f32.mrf.mxu1  ;;  %15416 = vmatmul.mubr.bf16.vlgmr.msra.gmra.mxu1 %v25162_v18  ;;  %v15131_v58 = vadd.f32 %v15130_v34, %v26089_v1  ;;  %15425 = vmatpush1.bf16.msra.mxu0 %v22379_v40  ;;  %v22412_v40 = vld [vmem:[%s25051_s14 + $0x12d0] ss:$48 sps:$4 sm:$0xff]   ;;  %v22426_v34 = vld [vmem:[%s25051_s14 + $0x1214] ss:$48 sps:$4 sm:$0xff]  }
 0x3aa   : > { %15466 = vmatpush1.bf16.msra.mxu1 %v22382_v8  ;;  %v15132_v39 = vpop.f32.mrf.mxu0  ;;  %15426 = vmatprep.subr.bf16.mxu0 %v22387_v25  ;;  %v22417_v8 = vld [vmem:[%s25051_s14 + $0xc74] ss:$48 sps:$4 sm:$0xff]  }
 0x3ab   : > { %v15173_v49 = vpop.f32.mrf.mxu1  ;;  %15467 = vmatprep.subr.bf16.mxu1 %v22390_v29  ;;  %v26163_v47 = vadd.f32 %v15171_v37, %v15131_v58  ;;  %v15133_v48 = vadd.f32 %v15132_v39, %v26096_v14  ;;  %15456 = vmatprep.mubr.bf16.mxu0 %v25158_v17  ;;  %v22420_v25 = vld [vmem:[%s25051_s14 + $0x1274] ss:$48 sps:$4 sm:$0xff]   ;;  %v22415_v29 = vld [vmem:[%s25051_s14 + $0xc70] ss:$48 sps:$4 sm:$0xff]  }
 0x3ac   : > { %15497 = vmatprep.mubr.bf16.mxu1 %v25170_v23  ;;  %v15134_v1 = vpop.f32.mrf.mxu0  ;;  %v22421_v37 = vld [vmem:[%s25051_s14 + $0xc10] ss:$48 sps:$4 sm:$0xff]   ;;  %v22429_v39 = vld [vmem:[%s25051_s14 + $0x11b4] ss:$48 sps:$4 sm:$0xff]  }
 0x3ad   : > { %v15175_v56 = vpop.f32.mrf.mxu1  ;;  %v26170_v57 = vadd.f32 %v15173_v49, %v15133_v48  ;;  %15427 = vmatpush1.bf16.msra.mxu0 %v22385_v62  ;;  %v22418_v62 = vld [vmem:[%s25051_s14 + $0x1270] ss:$48 sps:$4 sm:$0xff]   ;;  %v22432_v49 = vld [vmem:[%s25051_s14 + $0x17b4] ss:$48 sps:$4 sm:$0xff]  }
 0x3ae   : > { %15468 = vmatpush1.bf16.msra.mxu1 %v22388_v33  ;;  %v15135_v46 = vpop.f32.mrf.mxu0  ;;  %15428 = vmatprep.subr.bf16.mxu0 %v22393_v9  ;;  %v22423_v33 = vld [vmem:[%s25051_s14 + $0xc14] ss:$48 sps:$4 sm:$0xff]   ;;  %v22424_v58 = vld [vmem:[%s25051_s14 + $0x1210] ss:$48 sps:$4 sm:$0xff]  }
 0x3af   : > { %v15176_v14 = vpop.f32.mrf.mxu1  ;;  %15469 = vmatprep.subr.bf16.mxu1 %v22396_v32  ;;  %v22427_v9 = vld [vmem:[%s25051_s14 + $0x11b0] ss:$48 sps:$4 sm:$0xff]   ;;  %v22435_v48 = vld [vmem:[%s25051_s14 + $0x1154] ss:$48 sps:$4 sm:$0xff]  }
 0x3b0   : > { %v22430_v32 = vld [vmem:[%s25051_s14 + $0x17b0] ss:$48 sps:$4 sm:$0xff]   ;;  %v22441_v56 = vld [vmem:[%s25051_s14 + $0x10f4] ss:$48 sps:$4 sm:$0xff]  }
 0x3b1   : > { %15429 = vmatpush1.bf16.msra.mxu0 %v22391_v51  ;;  %v22438_v51 = vld [vmem:[%s25051_s14 + $0x1754] ss:$48 sps:$4 sm:$0xff]   ;;  %v22436_v1 = vld [vmem:[%s25051_s14 + $0x1750] ss:$48 sps:$4 sm:$0xff]  }
 0x3b2   : > { %15470 = vmatpush1.bf16.msra.mxu1 %v22394_v53  ;;  %15430 = vmatprep.subr.bf16.mxu0 %v22399_v35  ;;  %v22433_v53 = vld [vmem:[%s25051_s14 + $0x1150] ss:$48 sps:$4 sm:$0xff]   ;;  %v22444_v46 = vld [vmem:[%s25051_s14 + $0x16f4] ss:$48 sps:$4 sm:$0xff]  }
 0x3b3   : > { %15471 = vmatprep.subr.bf16.mxu1 %v22402_v52  ;;  %v22439_v14 = vld [vmem:[%s25051_s14 + $0x10f0] ss:$48 sps:$4 sm:$0xff]   ;;  %v22447_v52 = vld [vmem:[%s25051_s14 + $0x1094] ss:$48 sps:$4 sm:$0xff]  }
 0x3b4   : > { %v22442_v35 = vld [vmem:[%s25051_s14 + $0x16f0] ss:$48 sps:$4 sm:$0xff]  }
 0x3b5   : > { %15431 = vmatpush1.bf16.msra.mxu0 %v22397_v5  ;;  %v22450_v5 = vld [vmem:[%s25051_s14 + $0x1694] ss:$48 sps:$4 sm:$0xff]  }
 0x3b6   : > { %15472 = vmatpush1.bf16.msra.mxu1 %v22400_v36  ;;  %15432 = vmatprep.subr.bf16.mxu0 %v22405_v7  ;;  %v22445_v36 = vld [vmem:[%s25051_s14 + $0x1090] ss:$48 sps:$4 sm:$0xff]  }
 0x3b7   : > { %15473 = vmatprep.subr.bf16.mxu1 %v22408_v10  ;;  %v22448_v7 = vld [vmem:[%s25051_s14 + $0x1690] ss:$48 sps:$4 sm:$0xff]   ;;  %v22453_v10 = vld [vmem:[%s25051_s14 + $0x1034] ss:$48 sps:$4 sm:$0xff]  }
 0x3b9   : > { %15433 = vmatpush1.bf16.msra.mxu0 %v22403_v3  ;;  %v22456_v3 = vld [vmem:[%s25051_s14 + $0x1634] ss:$48 sps:$4 sm:$0xff]  }
 0x3ba   : > { %15474 = vmatpush1.bf16.msra.mxu1 %v22406_v45  ;;  %15434 = vmatprep.subr.bf16.mxu0 %v22411_v11  ;;  %v22451_v45 = vld [vmem:[%s25051_s14 + $0x1030] ss:$48 sps:$4 sm:$0xff]  }
 0x3bb   : > { %15475 = vmatprep.subr.bf16.mxu1 %v22414_v2  ;;  %v22454_v11 = vld [vmem:[%s25051_s14 + $0x1630] ss:$48 sps:$4 sm:$0xff]   ;;  %v22459_v2 = vld [vmem:[%s25051_s14 + $0xfd4] ss:$48 sps:$4 sm:$0xff]  }
 0x3bd   : > { %15435 = vmatpush1.bf16.msra.mxu0 %v22409_v20  ;;  %v22462_v20 = vld [vmem:[%s25051_s14 + $0x15d4] ss:$48 sps:$4 sm:$0xff]  }
 0x3be   : > { %15476 = vmatpush1.bf16.msra.mxu1 %v22412_v40  ;;  %15436 = vmatprep.subr.bf16.mxu0 %v22417_v8  ;;  %v22457_v40 = vld [vmem:[%s25051_s14 + $0xfd0] ss:$48 sps:$4 sm:$0xff]  }
 0x3bf   : > { %15477 = vmatprep.subr.bf16.mxu1 %v22420_v25  ;;  %v22460_v8 = vld [vmem:[%s25051_s14 + $0x15d0] ss:$48 sps:$4 sm:$0xff]   ;;  %v22465_v25 = vld [vmem:[%s25051_s14 + $0xf74] ss:$48 sps:$4 sm:$0xff]  }
 0x3c1   : > { %15437 = vmatpush1.bf16.msra.mxu0 %v22415_v29  ;;  %v22468_v29 = vld [vmem:[%s25051_s14 + $0x1574] ss:$48 sps:$4 sm:$0xff]  }
 0x3c2   : > { %15478 = vmatpush1.bf16.msra.mxu1 %v22418_v62  ;;  %15438 = vmatprep.subr.bf16.mxu0 %v22423_v33  ;;  %v22463_v62 = vld [vmem:[%s25051_s14 + $0xf70] ss:$48 sps:$4 sm:$0xff]  }
 0x3c3   : > { %15479 = vmatprep.subr.bf16.mxu1 %v22426_v34  ;;  %v22466_v33 = vld [vmem:[%s25051_s14 + $0x1570] ss:$48 sps:$4 sm:$0xff]   ;;  %v22471_v34 = vld [vmem:[%s25051_s14 + $0xf14] ss:$48 sps:$4 sm:$0xff]  }
 0x3c5   : > { %15439 = vmatpush1.bf16.msra.mxu0 %v22421_v37  ;;  %v22474_v37 = vld [vmem:[%s25051_s14 + $0x1514] ss:$48 sps:$4 sm:$0xff]  }
 0x3c6   : > { %15480 = vmatpush1.bf16.msra.mxu1 %v22424_v58  ;;  %15440 = vmatprep.subr.bf16.mxu0 %v22429_v39  ;;  %v22469_v58 = vld [vmem:[%s25051_s14 + $0xf10] ss:$48 sps:$4 sm:$0xff]  }
 0x3c7   : > { %15481 = vmatprep.subr.bf16.mxu1 %v22432_v49  ;;  %v22472_v39 = vld [vmem:[%s25051_s14 + $0x1510] ss:$48 sps:$4 sm:$0xff]   ;;  %v22477_v49 = vld [vmem:[%s25051_s14 + $0x1ab4] ss:$48 sps:$4 sm:$0xff]  }
 0x3c9   : > { %15441 = vmatpush2.bf16.msra.mxu0 %v22427_v9  ;;  %v22480_v9 = vld [vmem:[%s25051_s14 + $0x20b4] ss:$48 sps:$4 sm:$0xff]  }
 0x3ca   : > { %15482 = vmatpush2.bf16.msra.mxu1 %v22430_v32  ;;  %15442 = vmatprep.subr.bf16.mxu0 %v22435_v48  ;;  %v22475_v32 = vld [vmem:[%s25051_s14 + $0x1ab0] ss:$48 sps:$4 sm:$0xff]  }
 0x3cb   : > { %15483 = vmatprep.subr.bf16.mxu1 %v22438_v51  ;;  %v22478_v48 = vld [vmem:[%s25051_s14 + $0x20b0] ss:$48 sps:$4 sm:$0xff]   ;;  %v22483_v51 = vld [vmem:[%s25051_s14 + $0x1a54] ss:$48 sps:$4 sm:$0xff]  }
 0x3cd   : > { %15443 = vmatpush2.bf16.msra.mxu0 %v22433_v53  ;;  %v22486_v53 = vld [vmem:[%s25051_s14 + $0x2054] ss:$48 sps:$4 sm:$0xff]  }
 0x3ce   : > { %15484 = vmatpush2.bf16.msra.mxu1 %v22436_v1  ;;  %15444 = vmatprep.subr.bf16.mxu0 %v22441_v56  ;;  %v22481_v1 = vld [vmem:[%s25051_s14 + $0x1a50] ss:$48 sps:$4 sm:$0xff]  }
 0x3cf   : > { %15485 = vmatprep.subr.bf16.mxu1 %v22444_v46  ;;  %v22484_v56 = vld [vmem:[%s25051_s14 + $0x2050] ss:$48 sps:$4 sm:$0xff]  }
 0x3d1   : > { %15445 = vmatpush2.bf16.msra.mxu0 %v22439_v14 }
 0x3d2   : > { %15486 = vmatpush2.bf16.msra.mxu1 %v22442_v35  ;;  %15446 = vmatprep.subr.bf16.mxu0 %v22447_v52 }
 0x3d3   : > { %15487 = vmatprep.subr.bf16.mxu1 %v22450_v5 }
 0x3d5   : > { %15447 = vmatpush2.bf16.msra.mxu0 %v22445_v36  ;;  %v22489_v36 = vld [vmem:[%s25051_s14 + $0x19f4] ss:$48 sps:$4 sm:$0xff]  }
 0x3d6   : > { %15488 = vmatpush2.bf16.msra.mxu1 %v22448_v7  ;;  %15448 = vmatprep.subr.bf16.mxu0 %v22453_v10  ;;  %v22492_v7 = vld [vmem:[%s25051_s14 + $0x1ff4] ss:$48 sps:$4 sm:$0xff]  }
 0x3d7   : > { %15489 = vmatprep.subr.bf16.mxu1 %v22456_v3 }
 0x3d9   : > { %15449 = vmatpush2.bf16.msra.mxu0 %v22451_v45  ;;  %v22487_v45 = vld [vmem:[%s25051_s14 + $0x19f0] ss:$48 sps:$4 sm:$0xff]  }
 0x3da   : > { %15490 = vmatpush2.bf16.msra.mxu1 %v22454_v11  ;;  %15450 = vmatprep.subr.bf16.mxu0 %v22459_v2  ;;  %v22490_v11 = vld [vmem:[%s25051_s14 + $0x1ff0] ss:$48 sps:$4 sm:$0xff]  }
 0x3db   : > { %15491 = vmatprep.subr.bf16.mxu1 %v22462_v20 }
 0x3dd   : > { %15451 = vmatpush2.bf16.msra.mxu0 %v22457_v40 }
 0x3de   : > { %15492 = vmatpush2.bf16.msra.mxu1 %v22460_v8  ;;  %15452 = vmatprep.subr.bf16.mxu0 %v22465_v25  ;;  %v22498_v25 = vld [vmem:[%s25051_s14 + $0x1f94] ss:$48 sps:$4 sm:$0xff]  }
 0x3df   : > { %15493 = vmatprep.subr.bf16.mxu1 %v22468_v29  ;;  %v22493_v29 = vld [vmem:[%s25051_s14 + $0x1990] ss:$48 sps:$4 sm:$0xff]  }
 0x3e1   : > { %15453 = vmatpush2.bf16.msra.mxu0 %v22463_v62  ;;  %v22496_v62 = vld [vmem:[%s25051_s14 + $0x1f90] ss:$48 sps:$4 sm:$0xff]  }
 0x3e2   : > { %15494 = vmatpush2.bf16.msra.mxu1 %v22466_v33  ;;  %15454 = vmatprep.subr.bf16.mxu0 %v22471_v34  ;;  %v22501_v33 = vld [vmem:[%s25051_s14 + $0x1934] ss:$48 sps:$4 sm:$0xff]  }
 0x3e3   : > { %15495 = vmatprep.subr.bf16.mxu1 %v22474_v37  ;;  %v22504_v34 = vld [vmem:[%s25051_s14 + $0x1f34] ss:$48 sps:$4 sm:$0xff]   ;;  %v22499_v37 = vld [vmem:[%s25051_s14 + $0x1930] ss:$48 sps:$4 sm:$0xff]  }
 0x3e5   : > { %15455 = vmatpush2.bf16.msra.mxu0 %v22469_v58  ;;  %v22502_v58 = vld [vmem:[%s25051_s14 + $0x1f30] ss:$48 sps:$4 sm:$0xff]  }
 0x3e6   : > { %15496 = vmatpush2.bf16.msra.mxu1 %v22472_v39  ;;  %15506 = vmatprep.subr.bf16.mxu0 %v22477_v49  ;;  %v22507_v39 = vld [vmem:[%s25051_s14 + $0x18d4] ss:$48 sps:$4 sm:$0xff]  }
 0x3e7   : > { %15547 = vmatprep.subr.bf16.mxu1 %v22480_v9  ;;  %v22510_v49 = vld [vmem:[%s25051_s14 + $0x1ed4] ss:$48 sps:$4 sm:$0xff]   ;;  %v22505_v9 = vld [vmem:[%s25051_s14 + $0x18d0] ss:$48 sps:$4 sm:$0xff]  }
 0x3e8   : > { %v15212_v46 = vpop.f32.mrf.mxu0  ;;  %15457 = vmatmul.mubr.bf16.vlgmr.msra.gmra.mxu0 %v25235_v26 }
 0x3e9   : > { %v15253_v14 = vpop.f32.mrf.mxu1  ;;  %15498 = vmatmul.mubr.bf16.vlgmr.msra.gmra.mxu1 %v25242_v30  ;;  %v15213_v35 = vadd.f32 %v15212_v46, %v26163_v47  ;;  %15507 = vmatpush1.bf16.msra.mxu0 %v22475_v32  ;;  %v22508_v32 = vld [vmem:[%s25051_s14 + $0x1ed0] ss:$48 sps:$4 sm:$0xff]   ;;  %v22522_v46 = vld [vmem:[%s25051_s14 + $0x1e14] ss:$48 sps:$4 sm:$0xff]  }
 0x3ea   : > { %15548 = vmatpush1.bf16.msra.mxu1 %v22478_v48  ;;  %v15214_v52 = vpop.f32.mrf.mxu0  ;;  %15508 = vmatprep.subr.bf16.mxu0 %v22483_v51  ;;  %v22513_v48 = vld [vmem:[%s25051_s14 + $0x1874] ss:$48 sps:$4 sm:$0xff]  }
 0x3eb   : > { %v15255_v5 = vpop.f32.mrf.mxu1  ;;  %15549 = vmatprep.subr.bf16.mxu1 %v22486_v53  ;;  %v26237_v10 = vadd.f32 %v15253_v14, %v15213_v35  ;;  %v15215_v3 = vadd.f32 %v15214_v52, %v26170_v57  ;;  %15538 = vmatprep.mubr.bf16.mxu0 %v25266_v41  ;;  %v22495_v57 = vld [vmem:[%s25051_s14 + $0x1994] ss:$48 sps:$4 sm:$0xff]   ;;  %v22511_v53 = vld [vmem:[%s25051_s14 + $0x1870] ss:$48 sps:$4 sm:$0xff]  }
 0x3ec   : > { %15579 = vmatprep.mubr.bf16.mxu1 %v25271_v43  ;;  %v15216_v47 = vpop.f32.mrf.mxu0  ;;  %v22516_v51 = vld [vmem:[%s25051_s14 + $0x1e74] ss:$48 sps:$4 sm:$0xff]   ;;  %v22517_v14 = vld [vmem:[%s25051_s14 + $0x1810] ss:$48 sps:$4 sm:$0xff]  }
 0x3ed   : > { %v15257_v2 = vpop.f32.mrf.mxu1  ;;  %v26244_v20 = vadd.f32 %v15255_v5, %v15215_v3  ;;  %15509 = vmatpush1.bf16.msra.mxu0 %v22481_v1  ;;  %v22514_v1 = vld [vmem:[%s25051_s14 + $0x1e70] ss:$48 sps:$4 sm:$0xff]   ;;  %v22525_v52 = vld [vmem:[%s25051_s14 + $0x1db4] ss:$48 sps:$4 sm:$0xff]  }
 0x3ee   : > { %15550 = vmatpush1.bf16.msra.mxu1 %v22484_v56  ;;  %v15217_v40 = vpop.f32.mrf.mxu0  ;;  %15510 = vmatprep.subr.bf16.mxu0 %v22489_v36  ;;  %v22519_v56 = vld [vmem:[%s25051_s14 + $0x1814] ss:$48 sps:$4 sm:$0xff]   ;;  %v22520_v35 = vld [vmem:[%s25051_s14 + $0x1e10] ss:$48 sps:$4 sm:$0xff]  }
 0x3ef   : > { %v15258_v8 = vpop.f32.mrf.mxu1  ;;  %15551 = vmatprep.subr.bf16.mxu1 %v22492_v7  ;;  %v22528_v5 = vld [vmem:[%s25051_s14 + $0x23b4] ss:$48 sps:$4 sm:$0xff]   ;;  %v22523_v36 = vld [vmem:[%s25051_s14 + $0x1db0] ss:$48 sps:$4 sm:$0xff]  }
 0x3f0   : > { %v22526_v7 = vld [vmem:[%s25051_s14 + $0x23b0] ss:$48 sps:$4 sm:$0xff]   ;;  %v22531_v3 = vld [vmem:[%s25051_s14 + $0x1d54] ss:$48 sps:$4 sm:$0xff]  }
 0x3f1   : > { %15511 = vmatpush1.bf16.msra.mxu0 %v22487_v45  ;;  %v22534_v45 = vld [vmem:[%s25051_s14 + $0x2354] ss:$48 sps:$4 sm:$0xff]   ;;  %v22532_v47 = vld [vmem:[%s25051_s14 + $0x2350] ss:$48 sps:$4 sm:$0xff]  }
 0x3f2   : > { %15552 = vmatpush1.bf16.msra.mxu1 %v22490_v11  ;;  %15512 = vmatprep.subr.bf16.mxu0 %v22495_v57  ;;  %v22529_v11 = vld [vmem:[%s25051_s14 + $0x1d50] ss:$48 sps:$4 sm:$0xff]   ;;  %v22537_v2 = vld [vmem:[%s25051_s14 + $0x1cf4] ss:$48 sps:$4 sm:$0xff]  }
 0x3f3   : > { %15553 = vmatprep.subr.bf16.mxu1 %v22498_v25  ;;  %v22540_v40 = vld [vmem:[%s25051_s14 + $0x22f4] ss:$48 sps:$4 sm:$0xff]   ;;  %v22535_v8 = vld [vmem:[%s25051_s14 + $0x1cf0] ss:$48 sps:$4 sm:$0xff]  }
 0x3f4   : > { %v22538_v57 = vld [vmem:[%s25051_s14 + $0x22f0] ss:$48 sps:$4 sm:$0xff]   ;;  %v22543_v25 = vld [vmem:[%s25051_s14 + $0x1c94] ss:$48 sps:$4 sm:$0xff]  }
 0x3f5   : > { %15513 = vmatpush1.bf16.msra.mxu0 %v22493_v29  ;;  %v22546_v29 = vld [vmem:[%s25051_s14 + $0x2294] ss:$48 sps:$4 sm:$0xff]  }
 0x3f6   : > { %15554 = vmatpush1.bf16.msra.mxu1 %v22496_v62  ;;  %15514 = vmatprep.subr.bf16.mxu0 %v22501_v33  ;;  %v22541_v62 = vld [vmem:[%s25051_s14 + $0x1c90] ss:$48 sps:$4 sm:$0xff]  }
 0x3f7   : > { %15555 = vmatprep.subr.bf16.mxu1 %v22504_v34  ;;  %v22544_v33 = vld [vmem:[%s25051_s14 + $0x2290] ss:$48 sps:$4 sm:$0xff]   ;;  %v22549_v34 = vld [vmem:[%s25051_s14 + $0x1c34] ss:$48 sps:$4 sm:$0xff]  }
 0x3f9   : > { %15515 = vmatpush1.bf16.msra.mxu0 %v22499_v37  ;;  %v22552_v37 = vld [vmem:[%s25051_s14 + $0x2234] ss:$48 sps:$4 sm:$0xff]  }
 0x3fa   : > { %15556 = vmatpush1.bf16.msra.mxu1 %v22502_v58  ;;  %15516 = vmatprep.subr.bf16.mxu0 %v22507_v39  ;;  %v22547_v58 = vld [vmem:[%s25051_s14 + $0x1c30] ss:$48 sps:$4 sm:$0xff]  }
 0x3fb   : > { %15557 = vmatprep.subr.bf16.mxu1 %v22510_v49  ;;  %v22550_v39 = vld [vmem:[%s25051_s14 + $0x2230] ss:$48 sps:$4 sm:$0xff]   ;;  %v22555_v49 = vld [vmem:[%s25051_s14 + $0x1bd4] ss:$48 sps:$4 sm:$0xff]  }
 0x3fd   : > { %15517 = vmatpush1.bf16.msra.mxu0 %v22505_v9  ;;  %v22558_v9 = vld [vmem:[%s25051_s14 + $0x21d4] ss:$48 sps:$4 sm:$0xff]  }
 0x3fe   : > { %15558 = vmatpush1.bf16.msra.mxu1 %v22508_v32  ;;  %15518 = vmatprep.subr.bf16.mxu0 %v22513_v48  ;;  %v22553_v32 = vld [vmem:[%s25051_s14 + $0x1bd0] ss:$48 sps:$4 sm:$0xff]  }
 0x3ff   : > { %15559 = vmatprep.subr.bf16.mxu1 %v22516_v51  ;;  %v22556_v48 = vld [vmem:[%s25051_s14 + $0x21d0] ss:$48 sps:$4 sm:$0xff]   ;;  %v22561_v51 = vld [vmem:[%s25051_s14 + $0x1b74] ss:$48 sps:$4 sm:$0xff]  }
 0x401   : > { %15519 = vmatpush1.bf16.msra.mxu0 %v22511_v53  ;;  %v22564_v53 = vld [vmem:[%s25051_s14 + $0x2174] ss:$48 sps:$4 sm:$0xff]  }
 0x402   : > { %15560 = vmatpush1.bf16.msra.mxu1 %v22514_v1  ;;  %15520 = vmatprep.subr.bf16.mxu0 %v22519_v56  ;;  %v22559_v1 = vld [vmem:[%s25051_s14 + $0x1b70] ss:$48 sps:$4 sm:$0xff]  }
 0x403   : > { %15561 = vmatprep.subr.bf16.mxu1 %v22522_v46  ;;  %v22562_v56 = vld [vmem:[%s25051_s14 + $0x2170] ss:$48 sps:$4 sm:$0xff]   ;;  %v22567_v46 = vld [vmem:[%s25051_s14 + $0x1b14] ss:$48 sps:$4 sm:$0xff]  }
 0x405   : > { %15521 = vmatpush1.bf16.msra.mxu0 %v22517_v14  ;;  %v22570_v14 = vld [vmem:[%s25051_s14 + $0x2114] ss:$48 sps:$4 sm:$0xff]  }
 0x406   : > { %15562 = vmatpush1.bf16.msra.mxu1 %v22520_v35  ;;  %15522 = vmatprep.subr.bf16.mxu0 %v22525_v52  ;;  %v22565_v35 = vld [vmem:[%s25051_s14 + $0x1b10] ss:$48 sps:$4 sm:$0xff]  }
 0x407   : > { %15563 = vmatprep.subr.bf16.mxu1 %v22528_v5  ;;  %v22568_v52 = vld [vmem:[%s25051_s14 + $0x2110] ss:$48 sps:$4 sm:$0xff]   ;;  %v22573_v5 = vld [vmem:[%s25051_s14 + $0x26b4] ss:$48 sps:$4 sm:$0xff]  }
 0x409   : > { %15523 = vmatpush2.bf16.msra.mxu0 %v22523_v36  ;;  %v22576_v36 = vld [vmem:[%s25051_s14 + $0x2cb4] ss:$48 sps:$4 sm:$0xff]  }
 0x40a   : > { %15564 = vmatpush2.bf16.msra.mxu1 %v22526_v7  ;;  %15524 = vmatprep.subr.bf16.mxu0 %v22531_v3  ;;  %v22571_v7 = vld [vmem:[%s25051_s14 + $0x26b0] ss:$48 sps:$4 sm:$0xff]  }
 0x40b   : > { %15565 = vmatprep.subr.bf16.mxu1 %v22534_v45  ;;  %v22574_v3 = vld [vmem:[%s25051_s14 + $0x2cb0] ss:$48 sps:$4 sm:$0xff]   ;;  %v22579_v45 = vld [vmem:[%s25051_s14 + $0x2654] ss:$48 sps:$4 sm:$0xff]  }
 0x40d   : > { %15525 = vmatpush2.bf16.msra.mxu0 %v22529_v11  ;;  %v22582_v11 = vld [vmem:[%s25051_s14 + $0x2c54] ss:$48 sps:$4 sm:$0xff]  }
 0x40e   : > { %15566 = vmatpush2.bf16.msra.mxu1 %v22532_v47  ;;  %15526 = vmatprep.subr.bf16.mxu0 %v22537_v2  ;;  %v22577_v47 = vld [vmem:[%s25051_s14 + $0x2650] ss:$48 sps:$4 sm:$0xff]  }
 0x40f   : > { %15567 = vmatprep.subr.bf16.mxu1 %v22540_v40  ;;  %v22580_v2 = vld [vmem:[%s25051_s14 + $0x2c50] ss:$48 sps:$4 sm:$0xff]  }
 0x411   : > { %15527 = vmatpush2.bf16.msra.mxu0 %v22535_v8 }
 0x412   : > { %15568 = vmatpush2.bf16.msra.mxu1 %v22538_v57  ;;  %15528 = vmatprep.subr.bf16.mxu0 %v22543_v25 }
 0x413   : > { %15569 = vmatprep.subr.bf16.mxu1 %v22546_v29 }
 0x415   : > { %15529 = vmatpush2.bf16.msra.mxu0 %v22541_v62  ;;  %v22585_v62 = vld [vmem:[%s25051_s14 + $0x25f4] ss:$48 sps:$4 sm:$0xff]  }
 0x416   : > { %15570 = vmatpush2.bf16.msra.mxu1 %v22544_v33  ;;  %15530 = vmatprep.subr.bf16.mxu0 %v22549_v34  ;;  %v22588_v33 = vld [vmem:[%s25051_s14 + $0x2bf4] ss:$48 sps:$4 sm:$0xff]  }
 0x417   : > { %15571 = vmatprep.subr.bf16.mxu1 %v22552_v37 }
 0x419   : > { %15531 = vmatpush2.bf16.msra.mxu0 %v22547_v58  ;;  %v22583_v58 = vld [vmem:[%s25051_s14 + $0x25f0] ss:$48 sps:$4 sm:$0xff]  }
 0x41a   : > { %15572 = vmatpush2.bf16.msra.mxu1 %v22550_v39  ;;  %15532 = vmatprep.subr.bf16.mxu0 %v22555_v49  ;;  %v22586_v39 = vld [vmem:[%s25051_s14 + $0x2bf0] ss:$48 sps:$4 sm:$0xff]  }
 0x41b   : > { %15573 = vmatprep.subr.bf16.mxu1 %v22558_v9 }
 0x41d   : > { %15533 = vmatpush2.bf16.msra.mxu0 %v22553_v32 }
 0x41e   : > { %15574 = vmatpush2.bf16.msra.mxu1 %v22556_v48  ;;  %15534 = vmatprep.subr.bf16.mxu0 %v22561_v51  ;;  %v22594_v51 = vld [vmem:[%s25051_s14 + $0x2b94] ss:$48 sps:$4 sm:$0xff]  }
 0x41f   : > { %15575 = vmatprep.subr.bf16.mxu1 %v22564_v53  ;;  %v22589_v53 = vld [vmem:[%s25051_s14 + $0x2590] ss:$48 sps:$4 sm:$0xff]  }
 0x421   : > { %15535 = vmatpush2.bf16.msra.mxu0 %v22559_v1  ;;  %v22592_v1 = vld [vmem:[%s25051_s14 + $0x2b90] ss:$48 sps:$4 sm:$0xff]  }
 0x422   : > { %15576 = vmatpush2.bf16.msra.mxu1 %v22562_v56  ;;  %15536 = vmatprep.subr.bf16.mxu0 %v22567_v46  ;;  %v22597_v56 = vld [vmem:[%s25051_s14 + $0x2534] ss:$48 sps:$4 sm:$0xff]  }
 0x423   : > { %15577 = vmatprep.subr.bf16.mxu1 %v22570_v14  ;;  %v22600_v46 = vld [vmem:[%s25051_s14 + $0x2b34] ss:$48 sps:$4 sm:$0xff]   ;;  %v22595_v14 = vld [vmem:[%s25051_s14 + $0x2530] ss:$48 sps:$4 sm:$0xff]  }
 0x425   : > { %15537 = vmatpush2.bf16.msra.mxu0 %v22565_v35  ;;  %v22598_v35 = vld [vmem:[%s25051_s14 + $0x2b30] ss:$48 sps:$4 sm:$0xff]  }
 0x426   : > { %15578 = vmatpush2.bf16.msra.mxu1 %v22568_v52  ;;  %15588 = vmatprep.subr.bf16.mxu0 %v22573_v5  ;;  %v22603_v52 = vld [vmem:[%s25051_s14 + $0x24d4] ss:$48 sps:$4 sm:$0xff]  }
 0x427   : > { %15629 = vmatprep.subr.bf16.mxu1 %v22576_v36  ;;  %v22606_v5 = vld [vmem:[%s25051_s14 + $0x2ad4] ss:$48 sps:$4 sm:$0xff]   ;;  %v22601_v36 = vld [vmem:[%s25051_s14 + $0x24d0] ss:$48 sps:$4 sm:$0xff]  }
 0x428   : > { %v15294_v40 = vpop.f32.mrf.mxu0  ;;  %15539 = vmatmul.mubr.bf16.vlgmr.msra.gmra.mxu0 %v25336_v50 }
 0x429   : > { %v15335_v8 = vpop.f32.mrf.mxu1  ;;  %15580 = vmatmul.mubr.bf16.vlgmr.msra.gmra.mxu1 %v25346_v55  ;;  %v15295_v57 = vadd.f32 %v15294_v40, %v26237_v10  ;;  %15589 = vmatpush1.bf16.msra.mxu0 %v22571_v7  ;;  %v22604_v7 = vld [vmem:[%s25051_s14 + $0x2ad0] ss:$48 sps:$4 sm:$0xff]   ;;  %v22618_v40 = vld [vmem:[%s25051_s14 + $0x2a14] ss:$48 sps:$4 sm:$0xff]  }
 0x42a   : > { %15630 = vmatpush1.bf16.msra.mxu1 %v22574_v3  ;;  %v15296_v25 = vpop.f32.mrf.mxu0  ;;  %15590 = vmatprep.subr.bf16.mxu0 %v22579_v45  ;;  %v22609_v3 = vld [vmem:[%s25051_s14 + $0x2474] ss:$48 sps:$4 sm:$0xff]  }
 0x42b   : > { %v15337_v29 = vpop.f32.mrf.mxu1  ;;  %15631 = vmatprep.subr.bf16.mxu1 %v22582_v11  ;;  %v26311_v34 = vadd.f32 %v15335_v8, %v15295_v57  ;;  %v15297_v37 = vadd.f32 %v15296_v25, %v26244_v20  ;;  %15620 = vmatprep.mubr.bf16.mxu0 %v25342_v54  ;;  %v22591_v20 = vld [vmem:[%s25051_s14 + $0x2594] ss:$48 sps:$4 sm:$0xff]   ;;  %v22607_v11 = vld [vmem:[%s25051_s14 + $0x2470] ss:$48 sps:$4 sm:$0xff]  }
 0x42c   : > { %15661 = vmatprep.mubr.bf16.mxu1 %v25354_v59  ;;  %v15298_v10 = vpop.f32.mrf.mxu0  ;;  %v22612_v45 = vld [vmem:[%s25051_s14 + $0x2a74] ss:$48 sps:$4 sm:$0xff]   ;;  %v22613_v8 = vld [vmem:[%s25051_s14 + $0x2410] ss:$48 sps:$4 sm:$0xff]  }
 0x42d   : > { %v15339_v49 = vpop.f32.mrf.mxu1  ;;  %v26318_v9 = vadd.f32 %v15337_v29, %v15297_v37  ;;  %15591 = vmatpush1.bf16.msra.mxu0 %v22577_v47  ;;  %v22610_v47 = vld [vmem:[%s25051_s14 + $0x2a70] ss:$48 sps:$4 sm:$0xff]   ;;  %v22621_v25 = vld [vmem:[%s25051_s14 + $0x29b4] ss:$48 sps:$4 sm:$0xff]  }
 0x42e   : > { %15632 = vmatpush1.bf16.msra.mxu1 %v22580_v2  ;;  %v15299_v32 = vpop.f32.mrf.mxu0  ;;  %15592 = vmatprep.subr.bf16.mxu0 %v22585_v62  ;;  %v22615_v2 = vld [vmem:[%s25051_s14 + $0x2414] ss:$48 sps:$4 sm:$0xff]   ;;  %v22616_v57 = vld [vmem:[%s25051_s14 + $0x2a10] ss:$48 sps:$4 sm:$0xff]  }
 0x42f   : > { %v15340_v48 = vpop.f32.mrf.mxu1  ;;  %15633 = vmatprep.subr.bf16.mxu1 %v22588_v33  ;;  %v22624_v29 = vld [vmem:[%s25051_s14 + $0x2fb4] ss:$48 sps:$4 sm:$0xff]   ;;  %v22619_v62 = vld [vmem:[%s25051_s14 + $0x29b0] ss:$48 sps:$4 sm:$0xff]  }
 0x430   : > { %v22622_v33 = vld [vmem:[%s25051_s14 + $0x2fb0] ss:$48 sps:$4 sm:$0xff]   ;;  %v22627_v37 = vld [vmem:[%s25051_s14 + $0x2954] ss:$48 sps:$4 sm:$0xff]  }
 0x431   : > { %15593 = vmatpush1.bf16.msra.mxu0 %v22583_v58  ;;  %v22630_v58 = vld [vmem:[%s25051_s14 + $0x2f54] ss:$48 sps:$4 sm:$0xff]   ;;  %v22628_v10 = vld [vmem:[%s25051_s14 + $0x2f50] ss:$48 sps:$4 sm:$0xff]  }
 0x432   : > { %15634 = vmatpush1.bf16.msra.mxu1 %v22586_v39  ;;  %15594 = vmatprep.subr.bf16.mxu0 %v22591_v20  ;;  %v22625_v39 = vld [vmem:[%s25051_s14 + $0x2950] ss:$48 sps:$4 sm:$0xff]   ;;  %v22633_v49 = vld [vmem:[%s25051_s14 + $0x28f4] ss:$48 sps:$4 sm:$0xff]  }
 0x433   : > { %15635 = vmatprep.subr.bf16.mxu1 %v22594_v51  ;;  %v22636_v32 = vld [vmem:[%s25051_s14 + $0x2ef4] ss:$48 sps:$4 sm:$0xff]   ;;  %v22631_v48 = vld [vmem:[%s25051_s14 + $0x28f0] ss:$48 sps:$4 sm:$0xff]  }
 0x434   : > { %v22634_v20 = vld [vmem:[%s25051_s14 + $0x2ef0] ss:$48 sps:$4 sm:$0xff]   ;;  %v22639_v51 = vld [vmem:[%s25051_s14 + $0x2894] ss:$48 sps:$4 sm:$0xff]  }
 0x435   : > { %15595 = vmatpush1.bf16.msra.mxu0 %v22589_v53  ;;  %v22642_v53 = vld [vmem:[%s25051_s14 + $0x2e94] ss:$48 sps:$4 sm:$0xff]  }
 0x436   : > { %15636 = vmatpush1.bf16.msra.mxu1 %v22592_v1  ;;  %15596 = vmatprep.subr.bf16.mxu0 %v22597_v56  ;;  %v22637_v1 = vld [vmem:[%s25051_s14 + $0x2890] ss:$48 sps:$4 sm:$0xff]  }
 0x437   : > { %15637 = vmatprep.subr.bf16.mxu1 %v22600_v46  ;;  %v22640_v56 = vld [vmem:[%s25051_s14 + $0x2e90] ss:$48 sps:$4 sm:$0xff]   ;;  %v22645_v46 = vld [vmem:[%s25051_s14 + $0x2834] ss:$48 sps:$4 sm:$0xff]  }
 0x439   : > { %15597 = vmatpush1.bf16.msra.mxu0 %v22595_v14  ;;  %v22648_v14 = vld [vmem:[%s25051_s14 + $0x2e34] ss:$48 sps:$4 sm:$0xff]  }
 0x43a   : > { %15638 = vmatpush1.bf16.msra.mxu1 %v22598_v35  ;;  %15598 = vmatprep.subr.bf16.mxu0 %v22603_v52  ;;  %v22643_v35 = vld [vmem:[%s25051_s14 + $0x2830] ss:$48 sps:$4 sm:$0xff]  }
 0x43b   : > { %15639 = vmatprep.subr.bf16.mxu1 %v22606_v5  ;;  %v22646_v52 = vld [vmem:[%s25051_s14 + $0x2e30] ss:$48 sps:$4 sm:$0xff]   ;;  %v22651_v5 = vld [vmem:[%s25051_s14 + $0x27d4] ss:$48 sps:$4 sm:$0xff]  }
 0x43d   : > { %15599 = vmatpush1.bf16.msra.mxu0 %v22601_v36  ;;  %v22654_v36 = vld [vmem:[%s25051_s14 + $0x2dd4] ss:$48 sps:$4 sm:$0xff]  }
 0x43e   : > { %15640 = vmatpush1.bf16.msra.mxu1 %v22604_v7  ;;  %15600 = vmatprep.subr.bf16.mxu0 %v22609_v3  ;;  %v22649_v7 = vld [vmem:[%s25051_s14 + $0x27d0] ss:$48 sps:$4 sm:$0xff]  }
 0x43f   : > { %15641 = vmatprep.subr.bf16.mxu1 %v22612_v45  ;;  %v22652_v3 = vld [vmem:[%s25051_s14 + $0x2dd0] ss:$48 sps:$4 sm:$0xff]   ;;  %v22657_v45 = vld [vmem:[%s25051_s14 + $0x2774] ss:$48 sps:$4 sm:$0xff]  }
 0x441   : > { %15601 = vmatpush1.bf16.msra.mxu0 %v22607_v11  ;;  %v22660_v11 = vld [vmem:[%s25051_s14 + $0x2d74] ss:$48 sps:$4 sm:$0xff]  }
 0x442   : > { %15642 = vmatpush1.bf16.msra.mxu1 %v22610_v47  ;;  %15602 = vmatprep.subr.bf16.mxu0 %v22615_v2  ;;  %v22655_v47 = vld [vmem:[%s25051_s14 + $0x2770] ss:$48 sps:$4 sm:$0xff]  }
 0x443   : > { %15643 = vmatprep.subr.bf16.mxu1 %v22618_v40  ;;  %v22658_v2 = vld [vmem:[%s25051_s14 + $0x2d70] ss:$48 sps:$4 sm:$0xff]   ;;  %v22663_v40 = vld [vmem:[%s25051_s14 + $0x2714] ss:$48 sps:$4 sm:$0xff]  }
 0x445   : > { %15603 = vmatpush1.bf16.msra.mxu0 %v22613_v8  ;;  %v22666_v8 = vld [vmem:[%s25051_s14 + $0x2d14] ss:$48 sps:$4 sm:$0xff]  }
 0x446   : > { %15644 = vmatpush1.bf16.msra.mxu1 %v22616_v57  ;;  %15604 = vmatprep.subr.bf16.mxu0 %v22621_v25  ;;  %v22661_v57 = vld [vmem:[%s25051_s14 + $0x2710] ss:$48 sps:$4 sm:$0xff]  }
 0x447   : > { %15645 = vmatprep.subr.bf16.mxu1 %v22624_v29  ;;  %v22664_v25 = vld [vmem:[%s25051_s14 + $0x2d10] ss:$48 sps:$4 sm:$0xff]   ;;  %v2622_v29 = vsub.s32 4, %v25104_v42 }
 0x449   : > { %15605 = vmatpush2.bf16.msra.mxu0 %v22619_v62  ;;  %v22669_v62 = vld [vmem:[%s25051_s14 + $0x32b4] ss:$48 sps:$4 sm:$0xff]  }
 0x44a   : > { %15646 = vmatpush2.bf16.msra.mxu1 %v22622_v33  ;;  %15606 = vmatprep.subr.bf16.mxu0 %v22627_v37  ;;  %v22672_v33 = vld [vmem:[%s25051_s14 + $0x38b4] ss:$48 sps:$4 sm:$0xff]   ;;  %v22667_v37 = vld [vmem:[%s25051_s14 + $0x32b0] ss:$48 sps:$4 sm:$0xff]  }
 0x44b   : > { %15647 = vmatprep.subr.bf16.mxu1 %v22630_v58  ;;  %v22670_v58 = vld [vmem:[%s25051_s14 + $0x38b0] ss:$48 sps:$4 sm:$0xff]  }
 0x44d   : > { %15607 = vmatpush2.bf16.msra.mxu0 %v22625_v39  ;;  %v2626_v39 = vsub.s32 5, %v25104_v42 }
 0x44e   : > { %15648 = vmatpush2.bf16.msra.mxu1 %v22628_v10  ;;  %15608 = vmatprep.subr.bf16.mxu0 %v22633_v49  ;;  %v24732_v10 = vld [vmem:[%s25059_s5] sm:$0xff] }
 0x44f   : > { %15649 = vmatprep.subr.bf16.mxu1 %v22636_v32  ;;  %v2623_v49 = vrot.slane %v24732_v10, %v2622_v29  ;;  %v22675_v32 = vld [vmem:[%s25051_s14 + $0x3254] ss:$48 sps:$4 sm:$0xff]   ;;  %v22685_v29 = vld [vmem:[%s25051_s14 + $0x3190] ss:$48 sps:$4 sm:$0xff]  }
 0x451   : > { %15609 = vmatpush2.bf16.msra.mxu0 %v22631_v48  ;;  %v22678_v48 = vld [vmem:[%s25051_s14 + $0x3854] ss:$48 sps:$4 sm:$0xff]  }
 0x452   : > { %15650 = vmatpush2.bf16.msra.mxu1 %v22634_v20  ;;  %15610 = vmatprep.subr.bf16.mxu0 %v22639_v51  ;;  %v2627_v20 = vrot.slane %v24732_v10, %v2626_v39  ;;  %v22673_v51 = vld [vmem:[%s25051_s14 + $0x3250] ss:$48 sps:$4 sm:$0xff]   ;;  %v22699_v10 = vld [vmem:[%s25051_s14 + $0x30d4] ss:$48 sps:$4 sm:$0xff]  }
 0x453   : > { %15651 = vmatprep.subr.bf16.mxu1 %v22642_v53  ;;  %v22676_v53 = vld [vmem:[%s25051_s14 + $0x3850] ss:$48 sps:$4 sm:$0xff]  }
 0x454   : > { %v22694_v39 = vld [vmem:[%s25051_s14 + $0x3730] ss:$48 sps:$4 sm:$0xff]  }
 0x455   : > { %15611 = vmatpush2.bf16.msra.mxu0 %v22637_v1 }
 0x456   : > { %15652 = vmatpush2.bf16.msra.mxu1 %v22640_v56  ;;  %15612 = vmatprep.subr.bf16.mxu0 %v22645_v46 }
 0x457   : > { %15653 = vmatprep.subr.bf16.mxu1 %v22648_v14 }
 0x459   : > { %15613 = vmatpush2.bf16.msra.mxu0 %v22643_v35 }
 0x45a   : > { %15654 = vmatpush2.bf16.msra.mxu1 %v22646_v52  ;;  %15614 = vmatprep.subr.bf16.mxu0 %v22651_v5  ;;  %v22681_v52 = vld [vmem:[%s25051_s14 + $0x31f4] ss:$48 sps:$4 sm:$0xff]  }
 0x45b   : > { %15655 = vmatprep.subr.bf16.mxu1 %v22654_v36  ;;  %v22684_v5 = vld [vmem:[%s25051_s14 + $0x37f4] ss:$48 sps:$4 sm:$0xff]  }
 0x45d   : > { %15615 = vmatpush2.bf16.msra.mxu0 %v22649_v7 }
 0x45e   : > { %15656 = vmatpush2.bf16.msra.mxu1 %v22652_v3  ;;  %15616 = vmatprep.subr.bf16.mxu0 %v22657_v45  ;;  %v22679_v3 = vld [vmem:[%s25051_s14 + $0x31f0] ss:$48 sps:$4 sm:$0xff]  }
 0x45f   : > { %15657 = vmatprep.subr.bf16.mxu1 %v22660_v11  ;;  %v22682_v45 = vld [vmem:[%s25051_s14 + $0x37f0] ss:$48 sps:$4 sm:$0xff]  }
 0x461   : > { %15617 = vmatpush2.bf16.msra.mxu0 %v22655_v47 }
 0x462   : > { %15658 = vmatpush2.bf16.msra.mxu1 %v22658_v2  ;;  %15618 = vmatprep.subr.bf16.mxu0 %v22663_v40 }
 0x463   : > { %15659 = vmatprep.subr.bf16.mxu1 %v22666_v8 }
 0x465   : > { %15619 = vmatpush2.bf16.msra.mxu0 %v22661_v57  ;;  %v22687_v57 = vld [vmem:[%s25051_s14 + $0x3194] ss:$48 sps:$4 sm:$0xff]  }
 0x466   : > { %15660 = vmatpush2.bf16.msra.mxu1 %v22664_v25  ;;  %15670 = vmatprep.subr.bf16.mxu0 %v22669_v62  ;;  %v22690_v25 = vld [vmem:[%s25051_s14 + $0x3794] ss:$48 sps:$4 sm:$0xff]   ;;  %v22688_v62 = vld [vmem:[%s25051_s14 + $0x3790] ss:$48 sps:$4 sm:$0xff]  }
 0x467   : > { %15711 = vmatprep.subr.bf16.mxu1 %v22672_v33  ;;  %v22693_v33 = vld [vmem:[%s25051_s14 + $0x3134] ss:$48 sps:$4 sm:$0xff]  }
 0x468   : > { %v15376_v1 = vpop.f32.mrf.mxu0  ;;  %15621 = vmatmul.mubr.bf16.vlgmr.msra.gmra.mxu0 %v25432_v15 }
 0x469   : > { %v15417_v56 = vpop.f32.mrf.mxu1  ;;  %15662 = vmatmul.mubr.bf16.vlgmr.msra.gmra.mxu1 %v25443_v24  ;;  %v15377_v46 = vadd.f32 %v15376_v1, %v2623_v49  ;;  %15671 = vmatpush1.bf16.msra.mxu0 %v22667_v37  ;;  %v22696_v37 = vld [vmem:[%s25051_s14 + $0x3734] ss:$48 sps:$4 sm:$0xff]   ;;  %v22706_v1 = vld [vmem:[%s25051_s14 + $0x3670] ss:$48 sps:$4 sm:$0xff]  }
 0x46a   : > { %15712 = vmatpush1.bf16.msra.mxu1 %v22670_v58  ;;  %v15378_v14 = vpop.f32.mrf.mxu0  ;;  %15672 = vmatprep.subr.bf16.mxu0 %v22675_v32  ;;  %v22691_v58 = vld [vmem:[%s25051_s14 + $0x3130] ss:$48 sps:$4 sm:$0xff]   ;;  %v22702_v49 = vld [vmem:[%s25051_s14 + $0x36d4] ss:$48 sps:$4 sm:$0xff]  }
 0x46b   : > { %v15419_v35 = vpop.f32.mrf.mxu1  ;;  %15713 = vmatprep.subr.bf16.mxu1 %v22678_v48  ;;  %v26387_v36 = vadd.f32 %v15417_v56, %v15377_v46  ;;  %v15379_v7 = vadd.f32 %v15378_v14, %v2627_v20  ;;  %15702 = vmatprep.mubr.bf16.mxu0 %v25439_v22  ;;  %v22697_v32 = vld [vmem:[%s25051_s14 + $0x30d0] ss:$48 sps:$4 sm:$0xff]   ;;  %v22705_v20 = vld [vmem:[%s25051_s14 + $0x3074] ss:$48 sps:$4 sm:$0xff]  }
 0x46c   : > { %15743 = vmatprep.mubr.bf16.mxu1 %v25455_v6  ;;  %v15380_v11 = vpop.f32.mrf.mxu0  ;;  %v22700_v48 = vld [vmem:[%s25051_s14 + $0x36d0] ss:$48 sps:$4 sm:$0xff]   ;;  %v22711_v56 = vld [vmem:[%s25051_s14 + $0x3014] ss:$48 sps:$4 sm:$0xff]  }
 0x46d   : > { %v15421_v47 = vpop.f32.mrf.mxu1  ;;  %v26393_v2 = vadd.f32 %v15419_v35, %v15379_v7  ;;  %15673 = vmatpush1.bf16.msra.mxu0 %v22673_v51  ;;  %v22708_v51 = vld [vmem:[%s25051_s14 + $0x3674] ss:$48 sps:$4 sm:$0xff]   ;;  %v22709_v14 = vld [vmem:[%s25051_s14 + $0x3010] ss:$48 sps:$4 sm:$0xff]  }
 0x46e   : > { %15714 = vmatpush1.bf16.msra.mxu1 %v22676_v53  ;;  %v15381_v40 = vpop.f32.mrf.mxu0  ;;  %15674 = vmatprep.subr.bf16.mxu0 %v22681_v52  ;;  %v22703_v53 = vld [vmem:[%s25051_s14 + $0x3070] ss:$48 sps:$4 sm:$0xff]   ;;  %v22714_v46 = vld [vmem:[%s25051_s14 + $0x3614] ss:$48 sps:$4 sm:$0xff]  }
 0x46f   : > { %v15422_v8 = vpop.f32.mrf.mxu1  ;;  %15715 = vmatprep.subr.bf16.mxu1 %v22684_v5  ;;  %v22712_v35 = vld [vmem:[%s25051_s14 + $0x3610] ss:$48 sps:$4 sm:$0xff]   ;;  %v22717_v52 = vld [vmem:[%s25051_s14 + $0x35b4] ss:$48 sps:$4 sm:$0xff]  }
 0x470   : > { %v22720_v5 = vld [vmem:[%s25051_s14 + $0x3bb4] ss:$48 sps:$4 sm:$0xff]   ;;  %v22715_v7 = vld [vmem:[%s25051_s14 + $0x35b0] ss:$48 sps:$4 sm:$0xff]  }
 0x471   : > { %15675 = vmatpush1.bf16.msra.mxu0 %v22679_v3  ;;  %v22718_v3 = vld [vmem:[%s25051_s14 + $0x3bb0] ss:$48 sps:$4 sm:$0xff]   ;;  %v22726_v11 = vld [vmem:[%s25051_s14 + $0x3b54] ss:$48 sps:$4 sm:$0xff]  }
 0x472   : > { %15716 = vmatpush1.bf16.msra.mxu1 %v22682_v45  ;;  %15676 = vmatprep.subr.bf16.mxu0 %v22687_v57  ;;  %v22723_v45 = vld [vmem:[%s25051_s14 + $0x3554] ss:$48 sps:$4 sm:$0xff]   ;;  %v22721_v47 = vld [vmem:[%s25051_s14 + $0x3550] ss:$48 sps:$4 sm:$0xff]  }
 0x473   : > { %15717 = vmatprep.subr.bf16.mxu1 %v22690_v25  ;;  %v22724_v40 = vld [vmem:[%s25051_s14 + $0x3b50] ss:$48 sps:$4 sm:$0xff]   ;;  %v22729_v8 = vld [vmem:[%s25051_s14 + $0x34f4] ss:$48 sps:$4 sm:$0xff]  }
 0x474   : > { %v22732_v57 = vld [vmem:[%s25051_s14 + $0x3af4] ss:$48 sps:$4 sm:$0xff]   ;;  %v22727_v25 = vld [vmem:[%s25051_s14 + $0x34f0] ss:$48 sps:$4 sm:$0xff]  }
 0x475   : > { %15677 = vmatpush1.bf16.msra.mxu0 %v22685_v29  ;;  %v22730_v29 = vld [vmem:[%s25051_s14 + $0x3af0] ss:$48 sps:$4 sm:$0xff]  }
 0x476   : > { %15718 = vmatpush1.bf16.msra.mxu1 %v22688_v62  ;;  %15678 = vmatprep.subr.bf16.mxu0 %v22693_v33  ;;  %v22735_v62 = vld [vmem:[%s25051_s14 + $0x3494] ss:$48 sps:$4 sm:$0xff]  }
 0x477   : > { %15719 = vmatprep.subr.bf16.mxu1 %v22696_v37  ;;  %v22738_v33 = vld [vmem:[%s25051_s14 + $0x3a94] ss:$48 sps:$4 sm:$0xff]   ;;  %v22733_v37 = vld [vmem:[%s25051_s14 + $0x3490] ss:$48 sps:$4 sm:$0xff]  }
 0x479   : > { %15679 = vmatpush1.bf16.msra.mxu0 %v22691_v58  ;;  %v22736_v58 = vld [vmem:[%s25051_s14 + $0x3a90] ss:$48 sps:$4 sm:$0xff]  }
 0x47a   : > { %15720 = vmatpush1.bf16.msra.mxu1 %v22694_v39  ;;  %15680 = vmatprep.subr.bf16.mxu0 %v22699_v10  ;;  %v22741_v39 = vld [vmem:[%s25051_s14 + $0x3434] ss:$48 sps:$4 sm:$0xff]  }
 0x47b   : > { %15721 = vmatprep.subr.bf16.mxu1 %v22702_v49  ;;  %v22744_v10 = vld [vmem:[%s25051_s14 + $0x3a34] ss:$48 sps:$4 sm:$0xff]   ;;  %v22739_v49 = vld [vmem:[%s25051_s14 + $0x3430] ss:$48 sps:$4 sm:$0xff]  }
 0x47d   : > { %15681 = vmatpush1.bf16.msra.mxu0 %v22697_v32  ;;  %v22742_v32 = vld [vmem:[%s25051_s14 + $0x3a30] ss:$48 sps:$4 sm:$0xff]  }
 0x47e   : > { %15722 = vmatpush1.bf16.msra.mxu1 %v22700_v48  ;;  %15682 = vmatprep.subr.bf16.mxu0 %v22705_v20  ;;  %v22747_v48 = vld [vmem:[%s25051_s14 + $0x33d4] ss:$48 sps:$4 sm:$0xff]  }
 0x47f   : > { %15723 = vmatprep.subr.bf16.mxu1 %v22708_v51  ;;  %v22750_v20 = vld [vmem:[%s25051_s14 + $0x39d4] ss:$48 sps:$4 sm:$0xff]   ;;  %v22745_v51 = vld [vmem:[%s25051_s14 + $0x33d0] ss:$48 sps:$4 sm:$0xff]  }
 0x481   : > { %15683 = vmatpush1.bf16.msra.mxu0 %v22703_v53  ;;  %v22748_v53 = vld [vmem:[%s25051_s14 + $0x39d0] ss:$48 sps:$4 sm:$0xff]  }
 0x482   : > { %15724 = vmatpush1.bf16.msra.mxu1 %v22706_v1  ;;  %15684 = vmatprep.subr.bf16.mxu0 %v22711_v56  ;;  %v22753_v1 = vld [vmem:[%s25051_s14 + $0x3374] ss:$48 sps:$4 sm:$0xff]  }
 0x483   : > { %15725 = vmatprep.subr.bf16.mxu1 %v22714_v46  ;;  %v22756_v56 = vld [vmem:[%s25051_s14 + $0x3974] ss:$48 sps:$4 sm:$0xff]   ;;  %v22751_v46 = vld [vmem:[%s25051_s14 + $0x3370] ss:$48 sps:$4 sm:$0xff]  }
 0x485   : > { %15685 = vmatpush1.bf16.msra.mxu0 %v22709_v14  ;;  %v22754_v14 = vld [vmem:[%s25051_s14 + $0x3970] ss:$48 sps:$4 sm:$0xff]  }
 0x486   : > { %15726 = vmatpush1.bf16.msra.mxu1 %v22712_v35  ;;  %15686 = vmatprep.subr.bf16.mxu0 %v22717_v52  ;;  %v22759_v35 = vld [vmem:[%s25051_s14 + $0x3314] ss:$48 sps:$4 sm:$0xff]  }
 0x487   : > { %15727 = vmatprep.subr.bf16.mxu1 %v22720_v5  ;;  %v22762_v52 = vld [vmem:[%s25051_s14 + $0x3914] ss:$48 sps:$4 sm:$0xff]   ;;  %v22757_v5 = vld [vmem:[%s25051_s14 + $0x3310] ss:$48 sps:$4 sm:$0xff]  }
 0x489   : > { %15687 = vmatpush2.bf16.msra.mxu0 %v22715_v7  ;;  %v22760_v7 = vld [vmem:[%s25051_s14 + $0x3910] ss:$48 sps:$4 sm:$0xff]  }
 0x48a   : > { %15728 = vmatpush2.bf16.msra.mxu1 %v22718_v3  ;;  %15688 = vmatprep.subr.bf16.mxu0 %v22723_v45  ;;  %v22765_v3 = vld [vmem:[%s25051_s14 + $0x3eb4] ss:$48 sps:$4 sm:$0xff]  }
 0x48b   : > { %15729 = vmatprep.subr.bf16.mxu1 %v22726_v11  ;;  %v22768_v45 = vld [vmem:[%s25051_s14 + $0x44b4] ss:$48 sps:$4 sm:$0xff]   ;;  %v22763_v11 = vld [vmem:[%s25051_s14 + $0x3eb0] ss:$48 sps:$4 sm:$0xff]  }
 0x48d   : > { %15689 = vmatpush2.bf16.msra.mxu0 %v22721_v47  ;;  %v22766_v47 = vld [vmem:[%s25051_s14 + $0x44b0] ss:$48 sps:$4 sm:$0xff]  }
 0x48e   : > { %15730 = vmatpush2.bf16.msra.mxu1 %v22724_v40  ;;  %15690 = vmatprep.subr.bf16.mxu0 %v22729_v8  ;;  %v22771_v40 = vld [vmem:[%s25051_s14 + $0x3e54] ss:$48 sps:$4 sm:$0xff]  }
 0x48f   : > { %15731 = vmatprep.subr.bf16.mxu1 %v22732_v57  ;;  %v22774_v8 = vld [vmem:[%s25051_s14 + $0x4454] ss:$48 sps:$4 sm:$0xff]   ;;  %v22769_v57 = vld [vmem:[%s25051_s14 + $0x3e50] ss:$48 sps:$4 sm:$0xff]  }
 0x491   : > { %15691 = vmatpush2.bf16.msra.mxu0 %v22727_v25  ;;  %v22772_v25 = vld [vmem:[%s25051_s14 + $0x4450] ss:$48 sps:$4 sm:$0xff]  }
 0x492   : > { %15732 = vmatpush2.bf16.msra.mxu1 %v22730_v29  ;;  %15692 = vmatprep.subr.bf16.mxu0 %v22735_v62 }
 0x493   : > { %15733 = vmatprep.subr.bf16.mxu1 %v22738_v33 }
 0x495   : > { %15693 = vmatpush2.bf16.msra.mxu0 %v22733_v37 }
 0x496   : > { %15734 = vmatpush2.bf16.msra.mxu1 %v22736_v58  ;;  %15694 = vmatprep.subr.bf16.mxu0 %v22741_v39  ;;  %v22777_v39 = vld [vmem:[%s25051_s14 + $0x3df4] ss:$48 sps:$4 sm:$0xff]  }
 0x497   : > { %15735 = vmatprep.subr.bf16.mxu1 %v22744_v10  ;;  %v22780_v10 = vld [vmem:[%s25051_s14 + $0x43f4] ss:$48 sps:$4 sm:$0xff]  }
 0x499   : > { %15695 = vmatpush2.bf16.msra.mxu0 %v22739_v49 }
 0x49a   : > { %15736 = vmatpush2.bf16.msra.mxu1 %v22742_v32  ;;  %15696 = vmatprep.subr.bf16.mxu0 %v22747_v48  ;;  %v22775_v48 = vld [vmem:[%s25051_s14 + $0x3df0] ss:$48 sps:$4 sm:$0xff]  }
 0x49b   : > { %15737 = vmatprep.subr.bf16.mxu1 %v22750_v20  ;;  %v22778_v20 = vld [vmem:[%s25051_s14 + $0x43f0] ss:$48 sps:$4 sm:$0xff]  }
 0x49d   : > { %15697 = vmatpush2.bf16.msra.mxu0 %v22745_v51 }
 0x49e   : > { %15738 = vmatpush2.bf16.msra.mxu1 %v22748_v53  ;;  %15698 = vmatprep.subr.bf16.mxu0 %v22753_v1 }
 0x49f   : > { %15739 = vmatprep.subr.bf16.mxu1 %v22756_v56 }
 0x4a1   : > { %15699 = vmatpush2.bf16.msra.mxu0 %v22751_v46  ;;  %v22786_v46 = vld [vmem:[%s25051_s14 + $0x4394] ss:$48 sps:$4 sm:$0xff]  }
 0x4a2   : > { %15740 = vmatpush2.bf16.msra.mxu1 %v22754_v14  ;;  %15700 = vmatprep.subr.bf16.mxu0 %v22759_v35  ;;  %v22781_v14 = vld [vmem:[%s25051_s14 + $0x3d90] ss:$48 sps:$4 sm:$0xff]  }
 0x4a3   : > { %15741 = vmatprep.subr.bf16.mxu1 %v22762_v52  ;;  %v22784_v35 = vld [vmem:[%s25051_s14 + $0x4390] ss:$48 sps:$4 sm:$0xff]   ;;  %v22789_v52 = vld [vmem:[%s25051_s14 + $0x3d34] ss:$48 sps:$4 sm:$0xff]  }
 0x4a5   : > { %15701 = vmatpush2.bf16.msra.mxu0 %v22757_v5  ;;  %v22792_v5 = vld [vmem:[%s25051_s14 + $0x4334] ss:$48 sps:$4 sm:$0xff]  }
 0x4a6   : > { %15742 = vmatpush2.bf16.msra.mxu1 %v22760_v7  ;;  %15752 = vmatprep.subr.bf16.mxu0 %v22765_v3  ;;  %v22787_v7 = vld [vmem:[%s25051_s14 + $0x3d30] ss:$48 sps:$4 sm:$0xff]  }
 0x4a7   : > { %15793 = vmatprep.subr.bf16.mxu1 %v22768_v45  ;;  %v22790_v3 = vld [vmem:[%s25051_s14 + $0x4330] ss:$48 sps:$4 sm:$0xff]   ;;  %v22795_v45 = vld [vmem:[%s25051_s14 + $0x3cd4] ss:$48 sps:$4 sm:$0xff]  }
 0x4a8   : > { %v15458_v29 = vpop.f32.mrf.mxu0  ;;  %15703 = vmatmul.mubr.bf16.vlgmr.msra.gmra.mxu0 %v25530_v19 }
 0x4a9   : > { %v15499_v62 = vpop.f32.mrf.mxu1  ;;  %15744 = vmatmul.mubr.bf16.vlgmr.msra.gmra.mxu1 %v25543_v4  ;;  %v15459_v33 = vadd.f32 %v15458_v29, %v26387_v36  ;;  %15753 = vmatpush1.bf16.msra.mxu0 %v22763_v11  ;;  %v22798_v11 = vld [vmem:[%s25051_s14 + $0x42d4] ss:$48 sps:$4 sm:$0xff]   ;;  %v22802_v29 = vld [vmem:[%s25051_s14 + $0x4270] ss:$48 sps:$4 sm:$0xff]  }
 0x4aa   : > { %15794 = vmatpush1.bf16.msra.mxu1 %v22766_v47  ;;  %v15460_v37 = vpop.f32.mrf.mxu0  ;;  %15754 = vmatprep.subr.bf16.mxu0 %v22771_v40  ;;  %v22793_v47 = vld [vmem:[%s25051_s14 + $0x3cd0] ss:$48 sps:$4 sm:$0xff]  }
 0x4ab   : > { %v15501_v58 = vpop.f32.mrf.mxu1  ;;  %15795 = vmatprep.subr.bf16.mxu1 %v22774_v8  ;;  %v26460_v49 = vadd.f32 %v15499_v62, %v15459_v33  ;;  %v15461_v32 = vadd.f32 %v15460_v37, %v26393_v2  ;;  %15784 = vmatprep.mubr.bf16.mxu0 %v25539_v31  ;;  %v22783_v2 = vld [vmem:[%s25051_s14 + $0x3d94] ss:$48 sps:$4 sm:$0xff]   ;;  %v22796_v40 = vld [vmem:[%s25051_s14 + $0x42d0] ss:$48 sps:$4 sm:$0xff]  }
 0x4ac   : > { %15825 = vmatprep.mubr.bf16.mxu1 %v25551_v38  ;;  %v15462_v36 = vpop.f32.mrf.mxu0  ;;  %v22801_v8 = vld [vmem:[%s25051_s14 + $0x3c74] ss:$48 sps:$4 sm:$0xff]   ;;  %v22805_v37 = vld [vmem:[%s25051_s14 + $0x3c10] ss:$48 sps:$4 sm:$0xff]  }
 0x4ad   : > { %v15503_v51 = vpop.f32.mrf.mxu1  ;;  %v26467_v53 = vadd.f32 %v15501_v58, %v15461_v32  ;;  %15755 = vmatpush1.bf16.msra.mxu0 %v22769_v57  ;;  %v22804_v57 = vld [vmem:[%s25051_s14 + $0x4274] ss:$48 sps:$4 sm:$0xff]   ;;  %v22808_v58 = vld [vmem:[%s25051_s14 + $0x4210] ss:$48 sps:$4 sm:$0xff]  }
 0x4ae   : > { %15796 = vmatpush1.bf16.msra.mxu1 %v22772_v25  ;;  %v15463_v1 = vpop.f32.mrf.mxu0  ;;  %15756 = vmatprep.subr.bf16.mxu0 %v22777_v39  ;;  %v22799_v25 = vld [vmem:[%s25051_s14 + $0x3c70] ss:$48 sps:$4 sm:$0xff]   ;;  %v22807_v62 = vld [vmem:[%s25051_s14 + $0x3c14] ss:$48 sps:$4 sm:$0xff]  }
 0x4af   : > { %v15504_v56 = vpop.f32.mrf.mxu1  ;;  %15797 = vmatprep.subr.bf16.mxu1 %v22780_v10  ;;  %v22810_v33 = vld [vmem:[%s25051_s14 + $0x4214] ss:$48 sps:$4 sm:$0xff]   ;;  %v22811_v32 = vld [vmem:[%s25051_s14 + $0x41b0] ss:$48 sps:$4 sm:$0xff]  }
 0x4b0   : > { %v22813_v39 = vld [vmem:[%s25051_s14 + $0x41b4] ss:$48 sps:$4 sm:$0xff]   ;;  %v22817_v51 = vld [vmem:[%s25051_s14 + $0x4150] ss:$48 sps:$4 sm:$0xff]  }
 0x4b1   : > { %15757 = vmatpush1.bf16.msra.mxu0 %v22775_v48  ;;  %v22816_v10 = vld [vmem:[%s25051_s14 + $0x47b4] ss:$48 sps:$4 sm:$0xff]   ;;  %v22814_v48 = vld [vmem:[%s25051_s14 + $0x47b0] ss:$48 sps:$4 sm:$0xff]  }
 0x4b2   : > { %15798 = vmatpush1.bf16.msra.mxu1 %v22778_v20  ;;  %15758 = vmatprep.subr.bf16.mxu0 %v22783_v2  ;;  %v22819_v20 = vld [vmem:[%s25051_s14 + $0x4154] ss:$48 sps:$4 sm:$0xff]   ;;  %v22820_v1 = vld [vmem:[%s25051_s14 + $0x4750] ss:$48 sps:$4 sm:$0xff]  }
 0x4b3   : > { %15799 = vmatprep.subr.bf16.mxu1 %v22786_v46  ;;  %v22822_v36 = vld [vmem:[%s25051_s14 + $0x4754] ss:$48 sps:$4 sm:$0xff]   ;;  %v22823_v46 = vld [vmem:[%s25051_s14 + $0x40f0] ss:$48 sps:$4 sm:$0xff]  }
 0x4b4   : > { %v22825_v56 = vld [vmem:[%s25051_s14 + $0x40f4] ss:$48 sps:$4 sm:$0xff]  }
 0x4b5   : > { %15759 = vmatpush1.bf16.msra.mxu0 %v22781_v14  ;;  %v22828_v2 = vld [vmem:[%s25051_s14 + $0x46f4] ss:$48 sps:$4 sm:$0xff]   ;;  %v22826_v14 = vld [vmem:[%s25051_s14 + $0x46f0] ss:$48 sps:$4 sm:$0xff]  }
 0x4b6   : > { %15800 = vmatpush1.bf16.msra.mxu1 %v22784_v35  ;;  %15760 = vmatprep.subr.bf16.mxu0 %v22789_v52  ;;  %v22831_v35 = vld [vmem:[%s25051_s14 + $0x4094] ss:$48 sps:$4 sm:$0xff]  }
 0x4b7   : > { %15801 = vmatprep.subr.bf16.mxu1 %v22792_v5  ;;  %v22834_v52 = vld [vmem:[%s25051_s14 + $0x4694] ss:$48 sps:$4 sm:$0xff]   ;;  %v22829_v5 = vld [vmem:[%s25051_s14 + $0x4090] ss:$48 sps:$4 sm:$0xff]  }
 0x4b9   : > { %15761 = vmatpush1.bf16.msra.mxu0 %v22787_v7  ;;  %v22832_v7 = vld [vmem:[%s25051_s14 + $0x4690] ss:$48 sps:$4 sm:$0xff]  }
 0x4ba   : > { %15802 = vmatpush1.bf16.msra.mxu1 %v22790_v3  ;;  %15762 = vmatprep.subr.bf16.mxu0 %v22795_v45  ;;  %v22837_v3 = vld [vmem:[%s25051_s14 + $0x4034] ss:$48 sps:$4 sm:$0xff]  }
 0x4bb   : > { %15803 = vmatprep.subr.bf16.mxu1 %v22798_v11  ;;  %v22840_v45 = vld [vmem:[%s25051_s14 + $0x4634] ss:$48 sps:$4 sm:$0xff]   ;;  %v22835_v11 = vld [vmem:[%s25051_s14 + $0x4030] ss:$48 sps:$4 sm:$0xff]  }
 0x4bd   : > { %15763 = vmatpush1.bf16.msra.mxu0 %v22793_v47  ;;  %v22838_v47 = vld [vmem:[%s25051_s14 + $0x4630] ss:$48 sps:$4 sm:$0xff]  }
 0x4be   : > { %15804 = vmatpush1.bf16.msra.mxu1 %v22796_v40  ;;  %15764 = vmatprep.subr.bf16.mxu0 %v22801_v8  ;;  %v22843_v40 = vld [vmem:[%s25051_s14 + $0x3fd4] ss:$48 sps:$4 sm:$0xff]  }
 0x4bf   : > { %15805 = vmatprep.subr.bf16.mxu1 %v22804_v57  ;;  %v22846_v8 = vld [vmem:[%s25051_s14 + $0x45d4] ss:$48 sps:$4 sm:$0xff]   ;;  %v22841_v57 = vld [vmem:[%s25051_s14 + $0x3fd0] ss:$48 sps:$4 sm:$0xff]  }
 0x4c1   : > { %15765 = vmatpush1.bf16.msra.mxu0 %v22799_v25  ;;  %v22844_v25 = vld [vmem:[%s25051_s14 + $0x45d0] ss:$48 sps:$4 sm:$0xff]  }
 0x4c2   : > { %15806 = vmatpush1.bf16.msra.mxu1 %v22802_v29  ;;  %15766 = vmatprep.subr.bf16.mxu0 %v22807_v62  ;;  %v22849_v29 = vld [vmem:[%s25051_s14 + $0x3f74] ss:$48 sps:$4 sm:$0xff]  }
 0x4c3   : > { %15807 = vmatprep.subr.bf16.mxu1 %v22810_v33  ;;  %v22852_v62 = vld [vmem:[%s25051_s14 + $0x4574] ss:$48 sps:$4 sm:$0xff]   ;;  %v22847_v33 = vld [vmem:[%s25051_s14 + $0x3f70] ss:$48 sps:$4 sm:$0xff]  }
 0x4c5   : > { %15767 = vmatpush1.bf16.msra.mxu0 %v22805_v37  ;;  %v22850_v37 = vld [vmem:[%s25051_s14 + $0x4570] ss:$48 sps:$4 sm:$0xff]  }
 0x4c6   : > { %15808 = vmatpush1.bf16.msra.mxu1 %v22808_v58  ;;  %15768 = vmatprep.subr.bf16.mxu0 %v22813_v39  ;;  %v22855_v58 = vld [vmem:[%s25051_s14 + $0x3f14] ss:$48 sps:$4 sm:$0xff]  }
 0x4c7   : > { %15809 = vmatprep.subr.bf16.mxu1 %v22816_v10  ;;  %v22858_v39 = vld [vmem:[%s25051_s14 + $0x4514] ss:$48 sps:$4 sm:$0xff]   ;;  %v22853_v10 = vld [vmem:[%s25051_s14 + $0x3f10] ss:$48 sps:$4 sm:$0xff]  }
 0x4c9   : > { %15769 = vmatpush2.bf16.msra.mxu0 %v22811_v32  ;;  %v22856_v32 = vld [vmem:[%s25051_s14 + $0x4510] ss:$48 sps:$4 sm:$0xff]  }
 0x4ca   : > { %15810 = vmatpush2.bf16.msra.mxu1 %v22814_v48  ;;  %15770 = vmatprep.subr.bf16.mxu0 %v22819_v20  ;;  %v22861_v48 = vld [vmem:[%s25051_s14 + $0x2bc] ss:$48 sps:$4 sm:$0xff]  }
 0x4cb   : > { %15811 = vmatprep.subr.bf16.mxu1 %v22822_v36  ;;  %v22864_v20 = vld [vmem:[%s25051_s14 + $0x8bc] ss:$48 sps:$4 sm:$0xff]   ;;  %v22859_v36 = vld [vmem:[%s25051_s14 + $0x2b8] ss:$48 sps:$4 sm:$0xff]  }
 0x4cd   : > { %15771 = vmatpush2.bf16.msra.mxu0 %v22817_v51  ;;  %v22862_v51 = vld [vmem:[%s25051_s14 + $0x8b8] ss:$48 sps:$4 sm:$0xff]  }
 0x4ce   : > { %15812 = vmatpush2.bf16.msra.mxu1 %v22820_v1  ;;  %15772 = vmatprep.subr.bf16.mxu0 %v22825_v56  ;;  %v22867_v1 = vld [vmem:[%s25051_s14 + $0x25c] ss:$48 sps:$4 sm:$0xff]  }
 0x4cf   : > { %15813 = vmatprep.subr.bf16.mxu1 %v22828_v2  ;;  %v22870_v56 = vld [vmem:[%s25051_s14 + $0x85c] ss:$48 sps:$4 sm:$0xff]   ;;  %v22865_v2 = vld [vmem:[%s25051_s14 + $0x258] ss:$48 sps:$4 sm:$0xff]  }
 0x4d1   : > { %15773 = vmatpush2.bf16.msra.mxu0 %v22823_v46  ;;  %v22868_v46 = vld [vmem:[%s25051_s14 + $0x858] ss:$48 sps:$4 sm:$0xff]  }
 0x4d2   : > { %15814 = vmatpush2.bf16.msra.mxu1 %v22826_v14  ;;  %15774 = vmatprep.subr.bf16.mxu0 %v22831_v35 }
 0x4d3   : > { %15815 = vmatprep.subr.bf16.mxu1 %v22834_v52 }
 0x4d5   : > { %15775 = vmatpush2.bf16.msra.mxu0 %v22829_v5 }
 0x4d6   : > { %15816 = vmatpush2.bf16.msra.mxu1 %v22832_v7  ;;  %15776 = vmatprep.subr.bf16.mxu0 %v22837_v3  ;;  %v22873_v3 = vld [vmem:[%s25051_s14 + $0x1fc] ss:$48 sps:$4 sm:$0xff]  }
 0x4d7   : > { %15817 = vmatprep.subr.bf16.mxu1 %v22840_v45  ;;  %v22876_v45 = vld [vmem:[%s25051_s14 + $0x7fc] ss:$48 sps:$4 sm:$0xff]  }
 0x4d9   : > { %15777 = vmatpush2.bf16.msra.mxu0 %v22835_v11 }
 0x4da   : > { %15818 = vmatpush2.bf16.msra.mxu1 %v22838_v47  ;;  %15778 = vmatprep.subr.bf16.mxu0 %v22843_v40  ;;  %v22871_v40 = vld [vmem:[%s25051_s14 + $0x1f8] ss:$48 sps:$4 sm:$0xff]  }
 0x4db   : > { %15819 = vmatprep.subr.bf16.mxu1 %v22846_v8  ;;  %v22874_v8 = vld [vmem:[%s25051_s14 + $0x7f8] ss:$48 sps:$4 sm:$0xff]  }
 0x4dd   : > { %15779 = vmatpush2.bf16.msra.mxu0 %v22841_v57 }
 0x4de   : > { %15820 = vmatpush2.bf16.msra.mxu1 %v22844_v25  ;;  %15780 = vmatprep.subr.bf16.mxu0 %v22849_v29 }
 0x4df   : > { %15821 = vmatprep.subr.bf16.mxu1 %v22852_v62 }
 0x4e1   : > { %15781 = vmatpush2.bf16.msra.mxu0 %v22847_v33  ;;  %v22882_v33 = vld [vmem:[%s25051_s14 + $0x79c] ss:$48 sps:$4 sm:$0xff]  }
 0x4e2   : > { %15822 = vmatpush2.bf16.msra.mxu1 %v22850_v37  ;;  %15782 = vmatprep.subr.bf16.mxu0 %v22855_v58  ;;  %v22877_v37 = vld [vmem:[%s25051_s14 + $0x198] ss:$48 sps:$4 sm:$0xff]  }
 0x4e3   : > { %15823 = vmatprep.subr.bf16.mxu1 %v22858_v39  ;;  %v22880_v58 = vld [vmem:[%s25051_s14 + $0x798] ss:$48 sps:$4 sm:$0xff]   ;;  %v22885_v39 = vld [vmem:[%s25051_s14 + $0x13c] ss:$48 sps:$4 sm:$0xff]  }
 0x4e5   : > { %15783 = vmatpush2.bf16.msra.mxu0 %v22853_v10  ;;  %v22888_v10 = vld [vmem:[%s25051_s14 + $0x73c] ss:$48 sps:$4 sm:$0xff]  }
 0x4e6   : > { %15824 = vmatpush2.bf16.msra.mxu1 %v22856_v32  ;;  %15834 = vmatprep.subr.bf16.mxu0 %v22861_v48  ;;  %v22883_v32 = vld [vmem:[%s25051_s14 + $0x138] ss:$48 sps:$4 sm:$0xff]  }
 0x4e7   : > { %15875 = vmatprep.subr.bf16.mxu1 %v22864_v20  ;;  %v22886_v48 = vld [vmem:[%s25051_s14 + $0x738] ss:$48 sps:$4 sm:$0xff]   ;;  %v22891_v20 = vld [vmem:[%s25051_s14 + $0xdc] ss:$48 sps:$4 sm:$0xff]  }
 0x4e8   : > { %v15540_v14 = vpop.f32.mrf.mxu0  ;;  %15785 = vmatmul.mubr.bf16.vlgmr.msra.gmra.mxu0 %v25619_v28 }
 0x4e9   : > { %v15581_v35 = vpop.f32.mrf.mxu1  ;;  %15826 = vmatmul.mubr.bf16.vlgmr.msra.gmra.mxu1 %v25629_v44  ;;  %v15541_v52 = vadd.f32 %v15540_v14, %v26460_v49  ;;  %15835 = vmatpush1.bf16.msra.mxu0 %v22859_v36  ;;  %v22894_v36 = vld [vmem:[%s25051_s14 + $0x6dc] ss:$48 sps:$4 sm:$0xff]   ;;  %v22898_v14 = vld [vmem:[%s25051_s14 + $0x678] ss:$48 sps:$4 sm:$0xff]  }
 0x4ea   : > { %15876 = vmatpush1.bf16.msra.mxu1 %v22862_v51  ;;  %v15542_v5 = vpop.f32.mrf.mxu0  ;;  %15836 = vmatprep.subr.bf16.mxu0 %v22867_v1  ;;  %v22889_v51 = vld [vmem:[%s25051_s14 + $0xd8] ss:$48 sps:$4 sm:$0xff]  }
 0x4eb   : > { %v15583_v7 = vpop.f32.mrf.mxu1  ;;  %15877 = vmatprep.subr.bf16.mxu1 %v22870_v56  ;;  %v26534_v11 = vadd.f32 %v15581_v35, %v15541_v52  ;;  %v15543_v47 = vadd.f32 %v15542_v5, %v26467_v53  ;;  %15866 = vmatprep.mubr.bf16.mxu0 %v25126_v60  ;;  %v22879_v53 = vld [vmem:[%s25051_s14 + $0x19c] ss:$48 sps:$4 sm:$0xff]   ;;  %v22892_v1 = vld [vmem:[%s25051_s14 + $0x6d8] ss:$48 sps:$4 sm:$0xff]  }
 0x4ec   : > { %15907 = vmatprep.mubr.bf16.mxu1 %v25133_v0  ;;  %v15544_v49 = vpop.f32.mrf.mxu0  ;;  %v22897_v56 = vld [vmem:[%s25051_s14 + $0x7c] ss:$48 sps:$4 sm:$0xff]   ;;  %v22901_v5 = vld [vmem:[%s25051_s14 + $0x18] ss:$48 sps:$4 sm:$0xff]  }
 0x4ed   : > { %v15585_v57 = vpop.f32.mrf.mxu1  ;;  %v26541_v25 = vadd.f32 %v15583_v7, %v15543_v47  ;;  %15837 = vmatpush1.bf16.msra.mxu0 %v22865_v2  ;;  %v22900_v2 = vld [vmem:[%s25051_s14 + $0x67c] ss:$48 sps:$4 sm:$0xff]   ;;  %v22904_v7 = vld [vmem:[%s25051_s14 + $0x618] ss:$48 sps:$4 sm:$0xff]  }
 0x4ee   : > { %15878 = vmatpush1.bf16.msra.mxu1 %v22868_v46  ;;  %v15545_v29 = vpop.f32.mrf.mxu0  ;;  %15838 = vmatprep.subr.bf16.mxu0 %v22873_v3  ;;  %v22895_v46 = vld [vmem:[%s25051_s14 + $0x78] ss:$48 sps:$4 sm:$0xff]   ;;  %v22903_v35 = vld [vmem:[%s25051_s14 + $0x1c] ss:$48 sps:$4 sm:$0xff]  }
 0x4ef   : > { %v15586_v62 = vpop.f32.mrf.mxu1  ;;  %15879 = vmatprep.subr.bf16.mxu1 %v22876_v45  ;;  %v22906_v52 = vld [vmem:[%s25051_s14 + $0x61c] ss:$48 sps:$4 sm:$0xff]   ;;  %v22907_v47 = vld [vmem:[%s25051_s14 + $0x5b8] ss:$48 sps:$4 sm:$0xff]  }
 0x4f0   : > { %v22909_v3 = vld [vmem:[%s25051_s14 + $0x5bc] ss:$48 sps:$4 sm:$0xff]   ;;  %v22913_v57 = vld [vmem:[%s25051_s14 + $0x558] ss:$48 sps:$4 sm:$0xff]  }
 0x4f1   : > { %15839 = vmatpush1.bf16.msra.mxu0 %v22871_v40  ;;  %v22912_v45 = vld [vmem:[%s25051_s14 + $0xbbc] ss:$48 sps:$4 sm:$0xff]   ;;  %v22910_v40 = vld [vmem:[%s25051_s14 + $0xbb8] ss:$48 sps:$4 sm:$0xff]  }
 0x4f2   : > { %15880 = vmatpush1.bf16.msra.mxu1 %v22874_v8  ;;  %15840 = vmatprep.subr.bf16.mxu0 %v22879_v53  ;;  %v22915_v8 = vld [vmem:[%s25051_s14 + $0x55c] ss:$48 sps:$4 sm:$0xff]   ;;  %v22916_v29 = vld [vmem:[%s25051_s14 + $0xb58] ss:$48 sps:$4 sm:$0xff]  }
 0x4f3   : > { %15881 = vmatprep.subr.bf16.mxu1 %v22882_v33  ;;  %v22918_v49 = vld [vmem:[%s25051_s14 + $0xb5c] ss:$48 sps:$4 sm:$0xff]   ;;  %v22919_v33 = vld [vmem:[%s25051_s14 + $0x4f8] ss:$48 sps:$4 sm:$0xff]  }
 0x4f4   : > { %v22921_v62 = vld [vmem:[%s25051_s14 + $0x4fc] ss:$48 sps:$4 sm:$0xff]  }
 0x4f5   : > { %15841 = vmatpush1.bf16.msra.mxu0 %v22877_v37  ;;  %v22924_v53 = vld [vmem:[%s25051_s14 + $0xafc] ss:$48 sps:$4 sm:$0xff]   ;;  %v22922_v37 = vld [vmem:[%s25051_s14 + $0xaf8] ss:$48 sps:$4 sm:$0xff]  }
 0x4f6   : > { %15882 = vmatpush1.bf16.msra.mxu1 %v22880_v58  ;;  %15842 = vmatprep.subr.bf16.mxu0 %v22885_v39  ;;  %v22927_v58 = vld [vmem:[%s25051_s14 + $0x49c] ss:$48 sps:$4 sm:$0xff]  }
 0x4f7   : > { %15883 = vmatprep.subr.bf16.mxu1 %v22888_v10  ;;  %v22930_v39 = vld [vmem:[%s25051_s14 + $0xa9c] ss:$48 sps:$4 sm:$0xff]   ;;  %v22925_v10 = vld [vmem:[%s25051_s14 + $0x498] ss:$48 sps:$4 sm:$0xff]  }
 0x4f9   : > { %15843 = vmatpush1.bf16.msra.mxu0 %v22883_v32  ;;  %v22928_v32 = vld [vmem:[%s25051_s14 + $0xa98] ss:$48 sps:$4 sm:$0xff]  }
 0x4fa   : > { %15884 = vmatpush1.bf16.msra.mxu1 %v22886_v48  ;;  %15844 = vmatprep.subr.bf16.mxu0 %v22891_v20  ;;  %v22933_v48 = vld [vmem:[%s25051_s14 + $0x43c] ss:$48 sps:$4 sm:$0xff]  }
 0x4fb   : > { %15885 = vmatprep.subr.bf16.mxu1 %v22894_v36  ;;  %v22936_v20 = vld [vmem:[%s25051_s14 + $0xa3c] ss:$48 sps:$4 sm:$0xff]   ;;  %v22931_v36 = vld [vmem:[%s25051_s14 + $0x438] ss:$48 sps:$4 sm:$0xff]  }
 0x4fd   : > { %15845 = vmatpush1.bf16.msra.mxu0 %v22889_v51  ;;  %v22934_v51 = vld [vmem:[%s25051_s14 + $0xa38] ss:$48 sps:$4 sm:$0xff]  }
 0x4fe   : > { %15886 = vmatpush1.bf16.msra.mxu1 %v22892_v1  ;;  %15846 = vmatprep.subr.bf16.mxu0 %v22897_v56  ;;  %v22939_v1 = vld [vmem:[%s25051_s14 + $0x3dc] ss:$48 sps:$4 sm:$0xff]  }
 0x4ff   : > { %15887 = vmatprep.subr.bf16.mxu1 %v22900_v2  ;;  %v22942_v56 = vld [vmem:[%s25051_s14 + $0x9dc] ss:$48 sps:$4 sm:$0xff]   ;;  %v22937_v2 = vld [vmem:[%s25051_s14 + $0x3d8] ss:$48 sps:$4 sm:$0xff]  }
 0x501   : > { %15847 = vmatpush1.bf16.msra.mxu0 %v22895_v46  ;;  %v22940_v46 = vld [vmem:[%s25051_s14 + $0x9d8] ss:$48 sps:$4 sm:$0xff]  }
 0x502   : > { %15888 = vmatpush1.bf16.msra.mxu1 %v22898_v14  ;;  %15848 = vmatprep.subr.bf16.mxu0 %v22903_v35  ;;  %v22945_v14 = vld [vmem:[%s25051_s14 + $0x37c] ss:$48 sps:$4 sm:$0xff]  }
 0x503   : > { %15889 = vmatprep.subr.bf16.mxu1 %v22906_v52  ;;  %v22948_v35 = vld [vmem:[%s25051_s14 + $0x97c] ss:$48 sps:$4 sm:$0xff]   ;;  %v22943_v52 = vld [vmem:[%s25051_s14 + $0x378] ss:$48 sps:$4 sm:$0xff]  }
 0x505   : > { %15849 = vmatpush1.bf16.msra.mxu0 %v22901_v5  ;;  %v22946_v5 = vld [vmem:[%s25051_s14 + $0x978] ss:$48 sps:$4 sm:$0xff]  }
 0x506   : > { %15890 = vmatpush1.bf16.msra.mxu1 %v22904_v7  ;;  %15850 = vmatprep.subr.bf16.mxu0 %v22909_v3  ;;  %v22951_v7 = vld [vmem:[%s25051_s14 + $0x31c] ss:$48 sps:$4 sm:$0xff]  }
 0x507   : > { %15891 = vmatprep.subr.bf16.mxu1 %v22912_v45  ;;  %v22954_v3 = vld [vmem:[%s25051_s14 + $0x91c] ss:$48 sps:$4 sm:$0xff]   ;;  %v22949_v45 = vld [vmem:[%s25051_s14 + $0x318] ss:$48 sps:$4 sm:$0xff]  }
 0x509   : > { %15851 = vmatpush2.bf16.msra.mxu0 %v22907_v47  ;;  %v22952_v47 = vld [vmem:[%s25051_s14 + $0x918] ss:$48 sps:$4 sm:$0xff]  }
 0x50a   : > { %15892 = vmatpush2.bf16.msra.mxu1 %v22910_v40  ;;  %15852 = vmatprep.subr.bf16.mxu0 %v22915_v8  ;;  %v22957_v40 = vld [vmem:[%s25051_s14 + $0xebc] ss:$48 sps:$4 sm:$0xff]  }
 0x50b   : > { %15893 = vmatprep.subr.bf16.mxu1 %v22918_v49  ;;  %v22960_v8 = vld [vmem:[%s25051_s14 + $0x14bc] ss:$48 sps:$4 sm:$0xff]   ;;  %v22955_v49 = vld [vmem:[%s25051_s14 + $0xeb8] ss:$48 sps:$4 sm:$0xff]  }
 0x50d   : > { %15853 = vmatpush2.bf16.msra.mxu0 %v22913_v57  ;;  %v22958_v57 = vld [vmem:[%s25051_s14 + $0x14b8] ss:$48 sps:$4 sm:$0xff]  }
 0x50e   : > { %15894 = vmatpush2.bf16.msra.mxu1 %v22916_v29  ;;  %15854 = vmatprep.subr.bf16.mxu0 %v22921_v62  ;;  %v22963_v29 = vld [vmem:[%s25051_s14 + $0xe5c] ss:$48 sps:$4 sm:$0xff]  }
 0x50f   : > { %15895 = vmatprep.subr.bf16.mxu1 %v22924_v53  ;;  %v22966_v62 = vld [vmem:[%s25051_s14 + $0x145c] ss:$48 sps:$4 sm:$0xff]  }
 0x511   : > { %15855 = vmatpush2.bf16.msra.mxu0 %v22919_v33 }
 0x512   : > { %15896 = vmatpush2.bf16.msra.mxu1 %v22922_v37  ;;  %15856 = vmatprep.subr.bf16.mxu0 %v22927_v58  ;;  %v22961_v58 = vld [vmem:[%s25051_s14 + $0xe58] ss:$48 sps:$4 sm:$0xff]  }
 0x513   : > { %15897 = vmatprep.subr.bf16.mxu1 %v22930_v39  ;;  %v22964_v39 = vld [vmem:[%s25051_s14 + $0x1458] ss:$48 sps:$4 sm:$0xff]  }
 0x515   : > { %15857 = vmatpush2.bf16.msra.mxu0 %v22925_v10 }
 0x516   : > { %15898 = vmatpush2.bf16.msra.mxu1 %v22928_v32  ;;  %15858 = vmatprep.subr.bf16.mxu0 %v22933_v48  ;;  %v22969_v48 = vld [vmem:[%s25051_s14 + $0xdfc] ss:$48 sps:$4 sm:$0xff]  }
 0x517   : > { %15899 = vmatprep.subr.bf16.mxu1 %v22936_v20  ;;  %v22972_v20 = vld [vmem:[%s25051_s14 + $0x13fc] ss:$48 sps:$4 sm:$0xff]  }
 0x519   : > { %15859 = vmatpush2.bf16.msra.mxu0 %v22931_v36 }
 0x51a   : > { %15900 = vmatpush2.bf16.msra.mxu1 %v22934_v51  ;;  %15860 = vmatprep.subr.bf16.mxu0 %v22939_v1 }
 0x51b   : > { %15901 = vmatprep.subr.bf16.mxu1 %v22942_v56 }
 0x51d   : > { %15861 = vmatpush2.bf16.msra.mxu0 %v22937_v2  ;;  %v22967_v2 = vld [vmem:[%s25051_s14 + $0xdf8] ss:$48 sps:$4 sm:$0xff]  }
 0x51e   : > { %15902 = vmatpush2.bf16.msra.mxu1 %v22940_v46  ;;  %15862 = vmatprep.subr.bf16.mxu0 %v22945_v14  ;;  %v22970_v46 = vld [vmem:[%s25051_s14 + $0x13f8] ss:$48 sps:$4 sm:$0xff]  }
 0x51f   : > { %15903 = vmatprep.subr.bf16.mxu1 %v22948_v35 }
 0x521   : > { %15863 = vmatpush2.bf16.msra.mxu0 %v22943_v52  ;;  %v22978_v52 = vld [vmem:[%s25051_s14 + $0x139c] ss:$48 sps:$4 sm:$0xff]  }
 0x522   : > { %15904 = vmatpush2.bf16.msra.mxu1 %v22946_v5  ;;  %15864 = vmatprep.subr.bf16.mxu0 %v22951_v7  ;;  %v22973_v5 = vld [vmem:[%s25051_s14 + $0xd98] ss:$48 sps:$4 sm:$0xff]  }
 0x523   : > { %15905 = vmatprep.subr.bf16.mxu1 %v22954_v3  ;;  %v22976_v7 = vld [vmem:[%s25051_s14 + $0x1398] ss:$48 sps:$4 sm:$0xff]   ;;  %v22981_v3 = vld [vmem:[%s25051_s14 + $0xd3c] ss:$48 sps:$4 sm:$0xff]  }
 0x525   : > { %15865 = vmatpush2.bf16.msra.mxu0 %v22949_v45  ;;  %v22984_v45 = vld [vmem:[%s25051_s14 + $0x133c] ss:$48 sps:$4 sm:$0xff]  }
 0x526   : > { %15906 = vmatpush2.bf16.msra.mxu1 %v22952_v47  ;;  %15916 = vmatprep.subr.bf16.mxu0 %v22957_v40  ;;  %v22979_v47 = vld [vmem:[%s25051_s14 + $0xd38] ss:$48 sps:$4 sm:$0xff]  }
 0x527   : > { %15957 = vmatprep.subr.bf16.mxu1 %v22960_v8  ;;  %v22982_v40 = vld [vmem:[%s25051_s14 + $0x1338] ss:$48 sps:$4 sm:$0xff]   ;;  %v22987_v8 = vld [vmem:[%s25051_s14 + $0xcdc] ss:$48 sps:$4 sm:$0xff]  }
 0x528   : > { %v15622_v53 = vpop.f32.mrf.mxu0  ;;  %15867 = vmatmul.mubr.bf16.vlgmr.msra.gmra.mxu0 %v25152_v13 }
 0x529   : > { %v15663_v33 = vpop.f32.mrf.mxu1  ;;  %15908 = vmatmul.mubr.bf16.vlgmr.msra.gmra.mxu1 %v25162_v18  ;;  %v15623_v37 = vadd.f32 %v15622_v53, %v26534_v11  ;;  %15917 = vmatpush1.bf16.msra.mxu0 %v22955_v49  ;;  %v22990_v49 = vld [vmem:[%s25051_s14 + $0x12dc] ss:$48 sps:$4 sm:$0xff]  }
 0x52a   : > { %15958 = vmatpush1.bf16.msra.mxu1 %v22958_v57  ;;  %v15624_v10 = vpop.f32.mrf.mxu0  ;;  %15918 = vmatprep.subr.bf16.mxu0 %v22963_v29  ;;  %v22985_v57 = vld [vmem:[%s25051_s14 + $0xcd8] ss:$48 sps:$4 sm:$0xff]   ;;  %v22996_v53 = vld [vmem:[%s25051_s14 + $0x127c] ss:$48 sps:$4 sm:$0xff]  }
 0x52b   : > { %v15665_v32 = vpop.f32.mrf.mxu1  ;;  %15959 = vmatprep.subr.bf16.mxu1 %v22966_v62  ;;  %v26608_v36 = vadd.f32 %v15663_v33, %v15623_v37  ;;  %v15625_v51 = vadd.f32 %v15624_v10, %v26541_v25  ;;  %15948 = vmatprep.mubr.bf16.mxu0 %v25158_v17  ;;  %v22975_v25 = vld [vmem:[%s25051_s14 + $0xd9c] ss:$48 sps:$4 sm:$0xff]   ;;  %v22988_v29 = vld [vmem:[%s25051_s14 + $0x12d8] ss:$48 sps:$4 sm:$0xff]  }
 0x52c   : > { %15989 = vmatprep.mubr.bf16.mxu1 %v25170_v23  ;;  %v15626_v11 = vpop.f32.mrf.mxu0  ;;  %v22993_v62 = vld [vmem:[%s25051_s14 + $0xc7c] ss:$48 sps:$4 sm:$0xff]   ;;  %v22991_v33 = vld [vmem:[%s25051_s14 + $0xc78] ss:$48 sps:$4 sm:$0xff]  }
 0x52d   : > { %v15667_v1 = vpop.f32.mrf.mxu1  ;;  %v26613_v56 = vadd.f32 %v15665_v32, %v15625_v51  ;;  %15919 = vmatpush1.bf16.msra.mxu0 %v22961_v58  ;;  %v22994_v37 = vld [vmem:[%s25051_s14 + $0x1278] ss:$48 sps:$4 sm:$0xff]   ;;  %v22999_v58 = vld [vmem:[%s25051_s14 + $0xc1c] ss:$48 sps:$4 sm:$0xff]  }
 0x52e   : > { %15960 = vmatpush1.bf16.msra.mxu1 %v22964_v39  ;;  %v15627_v14 = vpop.f32.mrf.mxu0  ;;  %15920 = vmatprep.subr.bf16.mxu0 %v22969_v48  ;;  %v23002_v39 = vld [vmem:[%s25051_s14 + $0x121c] ss:$48 sps:$4 sm:$0xff]   ;;  %v22997_v10 = vld [vmem:[%s25051_s14 + $0xc18] ss:$48 sps:$4 sm:$0xff]  }
 0x52f   : > { %v15668_v35 = vpop.f32.mrf.mxu1  ;;  %15961 = vmatprep.subr.bf16.mxu1 %v22972_v20  ;;  %v23000_v32 = vld [vmem:[%s25051_s14 + $0x1218] ss:$48 sps:$4 sm:$0xff]   ;;  %v23005_v48 = vld [vmem:[%s25051_s14 + $0x11bc] ss:$48 sps:$4 sm:$0xff]  }
 0x530   : > { %v23008_v20 = vld [vmem:[%s25051_s14 + $0x17bc] ss:$48 sps:$4 sm:$0xff]   ;;  %v23003_v51 = vld [vmem:[%s25051_s14 + $0x11b8] ss:$48 sps:$4 sm:$0xff]  }
 0x531   : > { %15921 = vmatpush1.bf16.msra.mxu0 %v22967_v2  ;;  %v23006_v11 = vld [vmem:[%s25051_s14 + $0x17b8] ss:$48 sps:$4 sm:$0xff]   ;;  %v23011_v1 = vld [vmem:[%s25051_s14 + $0x115c] ss:$48 sps:$4 sm:$0xff]  }
 0x532   : > { %15962 = vmatpush1.bf16.msra.mxu1 %v22970_v46  ;;  %15922 = vmatprep.subr.bf16.mxu0 %v22975_v25  ;;  %v23014_v2 = vld [vmem:[%s25051_s14 + $0x175c] ss:$48 sps:$4 sm:$0xff]   ;;  %v23009_v46 = vld [vmem:[%s25051_s14 + $0x1158] ss:$48 sps:$4 sm:$0xff]  }
 0x533   : > { %15963 = vmatprep.subr.bf16.mxu1 %v22978_v52  ;;  %v23012_v14 = vld [vmem:[%s25051_s14 + $0x1758] ss:$48 sps:$4 sm:$0xff]   ;;  %v23017_v35 = vld [vmem:[%s25051_s14 + $0x10fc] ss:$48 sps:$4 sm:$0xff]  }
 0x534   : > { %v23020_v25 = vld [vmem:[%s25051_s14 + $0x16fc] ss:$48 sps:$4 sm:$0xff]   ;;  %v23015_v52 = vld [vmem:[%s25051_s14 + $0x10f8] ss:$48 sps:$4 sm:$0xff]  }
 0x535   : > { %15923 = vmatpush1.bf16.msra.mxu0 %v22973_v5  ;;  %v23018_v5 = vld [vmem:[%s25051_s14 + $0x16f8] ss:$48 sps:$4 sm:$0xff]  }
 0x536   : > { %15964 = vmatpush1.bf16.msra.mxu1 %v22976_v7  ;;  %15924 = vmatprep.subr.bf16.mxu0 %v22981_v3  ;;  %v23023_v7 = vld [vmem:[%s25051_s14 + $0x109c] ss:$48 sps:$4 sm:$0xff]  }
 0x537   : > { %15965 = vmatprep.subr.bf16.mxu1 %v22984_v45  ;;  %v23026_v3 = vld [vmem:[%s25051_s14 + $0x169c] ss:$48 sps:$4 sm:$0xff]   ;;  %v23021_v45 = vld [vmem:[%s25051_s14 + $0x1098] ss:$48 sps:$4 sm:$0xff]  }
 0x539   : > { %15925 = vmatpush1.bf16.msra.mxu0 %v22979_v47  ;;  %v23024_v47 = vld [vmem:[%s25051_s14 + $0x1698] ss:$48 sps:$4 sm:$0xff]  }
 0x53a   : > { %15966 = vmatpush1.bf16.msra.mxu1 %v22982_v40  ;;  %15926 = vmatprep.subr.bf16.mxu0 %v22987_v8  ;;  %v23029_v40 = vld [vmem:[%s25051_s14 + $0x103c] ss:$48 sps:$4 sm:$0xff]  }
 0x53b   : > { %15967 = vmatprep.subr.bf16.mxu1 %v22990_v49  ;;  %v23032_v8 = vld [vmem:[%s25051_s14 + $0x163c] ss:$48 sps:$4 sm:$0xff]   ;;  %v23027_v49 = vld [vmem:[%s25051_s14 + $0x1038] ss:$48 sps:$4 sm:$0xff]  }
 0x53d   : > { %15927 = vmatpush1.bf16.msra.mxu0 %v22985_v57  ;;  %v23030_v57 = vld [vmem:[%s25051_s14 + $0x1638] ss:$48 sps:$4 sm:$0xff]  }
 0x53e   : > { %15968 = vmatpush1.bf16.msra.mxu1 %v22988_v29  ;;  %15928 = vmatprep.subr.bf16.mxu0 %v22993_v62  ;;  %v23035_v29 = vld [vmem:[%s25051_s14 + $0xfdc] ss:$48 sps:$4 sm:$0xff]  }
 0x53f   : > { %15969 = vmatprep.subr.bf16.mxu1 %v22996_v53  ;;  %v23038_v62 = vld [vmem:[%s25051_s14 + $0x15dc] ss:$48 sps:$4 sm:$0xff]   ;;  %v23033_v53 = vld [vmem:[%s25051_s14 + $0xfd8] ss:$48 sps:$4 sm:$0xff]  }
 0x541   : > { %15929 = vmatpush1.bf16.msra.mxu0 %v22991_v33  ;;  %v23036_v33 = vld [vmem:[%s25051_s14 + $0x15d8] ss:$48 sps:$4 sm:$0xff]  }
 0x542   : > { %15970 = vmatpush1.bf16.msra.mxu1 %v22994_v37  ;;  %15930 = vmatprep.subr.bf16.mxu0 %v22999_v58  ;;  %v23041_v37 = vld [vmem:[%s25051_s14 + $0xf7c] ss:$48 sps:$4 sm:$0xff]  }
 0x543   : > { %15971 = vmatprep.subr.bf16.mxu1 %v23002_v39  ;;  %v23044_v58 = vld [vmem:[%s25051_s14 + $0x157c] ss:$48 sps:$4 sm:$0xff]   ;;  %v23039_v39 = vld [vmem:[%s25051_s14 + $0xf78] ss:$48 sps:$4 sm:$0xff]  }
 0x545   : > { %15931 = vmatpush1.bf16.msra.mxu0 %v22997_v10  ;;  %v23042_v10 = vld [vmem:[%s25051_s14 + $0x1578] ss:$48 sps:$4 sm:$0xff]  }
 0x546   : > { %15972 = vmatpush1.bf16.msra.mxu1 %v23000_v32  ;;  %15932 = vmatprep.subr.bf16.mxu0 %v23005_v48  ;;  %v23047_v32 = vld [vmem:[%s25051_s14 + $0xf1c] ss:$48 sps:$4 sm:$0xff]  }
 0x547   : > { %15973 = vmatprep.subr.bf16.mxu1 %v23008_v20  ;;  %v23050_v48 = vld [vmem:[%s25051_s14 + $0x151c] ss:$48 sps:$4 sm:$0xff]   ;;  %v23045_v20 = vld [vmem:[%s25051_s14 + $0xf18] ss:$48 sps:$4 sm:$0xff]  }
 0x549   : > { %15933 = vmatpush2.bf16.msra.mxu0 %v23003_v51  ;;  %v23048_v51 = vld [vmem:[%s25051_s14 + $0x1518] ss:$48 sps:$4 sm:$0xff]  }
 0x54a   : > { %15974 = vmatpush2.bf16.msra.mxu1 %v23006_v11  ;;  %15934 = vmatprep.subr.bf16.mxu0 %v23011_v1  ;;  %v23053_v11 = vld [vmem:[%s25051_s14 + $0x1abc] ss:$48 sps:$4 sm:$0xff]  }
 0x54b   : > { %15975 = vmatprep.subr.bf16.mxu1 %v23014_v2  ;;  %v23056_v1 = vld [vmem:[%s25051_s14 + $0x20bc] ss:$48 sps:$4 sm:$0xff]   ;;  %v23051_v2 = vld [vmem:[%s25051_s14 + $0x1ab8] ss:$48 sps:$4 sm:$0xff]  }
 0x54d   : > { %15935 = vmatpush2.bf16.msra.mxu0 %v23009_v46  ;;  %v23054_v46 = vld [vmem:[%s25051_s14 + $0x20b8] ss:$48 sps:$4 sm:$0xff]  }
 0x54e   : > { %15976 = vmatpush2.bf16.msra.mxu1 %v23012_v14  ;;  %15936 = vmatprep.subr.bf16.mxu0 %v23017_v35  ;;  %v23059_v14 = vld [vmem:[%s25051_s14 + $0x1a5c] ss:$48 sps:$4 sm:$0xff]  }
 0x54f   : > { %15977 = vmatprep.subr.bf16.mxu1 %v23020_v25  ;;  %v23062_v35 = vld [vmem:[%s25051_s14 + $0x205c] ss:$48 sps:$4 sm:$0xff]  }
 0x551   : > { %15937 = vmatpush2.bf16.msra.mxu0 %v23015_v52 }
 0x552   : > { %15978 = vmatpush2.bf16.msra.mxu1 %v23018_v5  ;;  %15938 = vmatprep.subr.bf16.mxu0 %v23023_v7  ;;  %v23057_v7 = vld [vmem:[%s25051_s14 + $0x1a58] ss:$48 sps:$4 sm:$0xff]  }
 0x553   : > { %15979 = vmatprep.subr.bf16.mxu1 %v23026_v3  ;;  %v23060_v3 = vld [vmem:[%s25051_s14 + $0x2058] ss:$48 sps:$4 sm:$0xff]  }
 0x555   : > { %15939 = vmatpush2.bf16.msra.mxu0 %v23021_v45 }
 0x556   : > { %15980 = vmatpush2.bf16.msra.mxu1 %v23024_v47  ;;  %15940 = vmatprep.subr.bf16.mxu0 %v23029_v40  ;;  %v23065_v40 = vld [vmem:[%s25051_s14 + $0x19fc] ss:$48 sps:$4 sm:$0xff]  }
 0x557   : > { %15981 = vmatprep.subr.bf16.mxu1 %v23032_v8  ;;  %v23068_v8 = vld [vmem:[%s25051_s14 + $0x1ffc] ss:$48 sps:$4 sm:$0xff]  }
 0x559   : > { %15941 = vmatpush2.bf16.msra.mxu0 %v23027_v49 }
 0x55a   : > { %15982 = vmatpush2.bf16.msra.mxu1 %v23030_v57  ;;  %15942 = vmatprep.subr.bf16.mxu0 %v23035_v29 }
 0x55b   : > { %15983 = vmatprep.subr.bf16.mxu1 %v23038_v62 }
 0x55d   : > { %15943 = vmatpush2.bf16.msra.mxu0 %v23033_v53  ;;  %v23063_v53 = vld [vmem:[%s25051_s14 + $0x19f8] ss:$48 sps:$4 sm:$0xff]  }
 0x55e   : > { %15984 = vmatpush2.bf16.msra.mxu1 %v23036_v33  ;;  %15944 = vmatprep.subr.bf16.mxu0 %v23041_v37  ;;  %v23066_v33 = vld [vmem:[%s25051_s14 + $0x1ff8] ss:$48 sps:$4 sm:$0xff]  }
 0x55f   : > { %15985 = vmatprep.subr.bf16.mxu1 %v23044_v58 }
 0x561   : > { %15945 = vmatpush2.bf16.msra.mxu0 %v23039_v39  ;;  %v23074_v39 = vld [vmem:[%s25051_s14 + $0x1f9c] ss:$48 sps:$4 sm:$0xff]  }
 0x562   : > { %15986 = vmatpush2.bf16.msra.mxu1 %v23042_v10  ;;  %15946 = vmatprep.subr.bf16.mxu0 %v23047_v32  ;;  %v23069_v10 = vld [vmem:[%s25051_s14 + $0x1998] ss:$48 sps:$4 sm:$0xff]  }
 0x563   : > { %15987 = vmatprep.subr.bf16.mxu1 %v23050_v48  ;;  %v23072_v32 = vld [vmem:[%s25051_s14 + $0x1f98] ss:$48 sps:$4 sm:$0xff]   ;;  %v23077_v48 = vld [vmem:[%s25051_s14 + $0x193c] ss:$48 sps:$4 sm:$0xff]  }
 0x565   : > { %15947 = vmatpush2.bf16.msra.mxu0 %v23045_v20  ;;  %v23080_v20 = vld [vmem:[%s25051_s14 + $0x1f3c] ss:$48 sps:$4 sm:$0xff]  }
 0x566   : > { %15988 = vmatpush2.bf16.msra.mxu1 %v23048_v51  ;;  %15998 = vmatprep.subr.bf16.mxu0 %v23053_v11  ;;  %v23075_v51 = vld [vmem:[%s25051_s14 + $0x1938] ss:$48 sps:$4 sm:$0xff]  }
 0x567   : > { %16039 = vmatprep.subr.bf16.mxu1 %v23056_v1  ;;  %v23078_v11 = vld [vmem:[%s25051_s14 + $0x1f38] ss:$48 sps:$4 sm:$0xff]   ;;  %v23083_v1 = vld [vmem:[%s25051_s14 + $0x18dc] ss:$48 sps:$4 sm:$0xff]  }
 0x568   : > { %v15704_v25 = vpop.f32.mrf.mxu0  ;;  %15949 = vmatmul.mubr.bf16.vlgmr.msra.gmra.mxu0 %v25235_v26 }
 0x569   : > { %v15745_v52 = vpop.f32.mrf.mxu1  ;;  %15990 = vmatmul.mubr.bf16.vlgmr.msra.gmra.mxu1 %v25242_v30  ;;  %v15705_v5 = vadd.f32 %v15704_v25, %v26608_v36  ;;  %15999 = vmatpush1.bf16.msra.mxu0 %v23051_v2  ;;  %v23086_v2 = vld [vmem:[%s25051_s14 + $0x1edc] ss:$48 sps:$4 sm:$0xff]  }
 0x56a   : > { %16040 = vmatpush1.bf16.msra.mxu1 %v23054_v46  ;;  %v15706_v45 = vpop.f32.mrf.mxu0  ;;  %16000 = vmatprep.subr.bf16.mxu0 %v23059_v14  ;;  %v23081_v46 = vld [vmem:[%s25051_s14 + $0x18d8] ss:$48 sps:$4 sm:$0xff]   ;;  %v23092_v25 = vld [vmem:[%s25051_s14 + $0x1e7c] ss:$48 sps:$4 sm:$0xff]  }
 0x56b   : > { %v15747_v47 = vpop.f32.mrf.mxu1  ;;  %16041 = vmatprep.subr.bf16.mxu1 %v23062_v35  ;;  %v26682_v49 = vadd.f32 %v15745_v52, %v15705_v5  ;;  %v15707_v57 = vadd.f32 %v15706_v45, %v26613_v56  ;;  %16030 = vmatprep.mubr.bf16.mxu0 %v25266_v41  ;;  %v23071_v56 = vld [vmem:[%s25051_s14 + $0x199c] ss:$48 sps:$4 sm:$0xff]   ;;  %v23084_v14 = vld [vmem:[%s25051_s14 + $0x1ed8] ss:$48 sps:$4 sm:$0xff]  }
 0x56c   : > { %16071 = vmatprep.mubr.bf16.mxu1 %v25271_v43  ;;  %v15708_v36 = vpop.f32.mrf.mxu0  ;;  %v23089_v35 = vld [vmem:[%s25051_s14 + $0x187c] ss:$48 sps:$4 sm:$0xff]   ;;  %v23087_v52 = vld [vmem:[%s25051_s14 + $0x1878] ss:$48 sps:$4 sm:$0xff]  }
 0x56d   : > { %v15749_v29 = vpop.f32.mrf.mxu1  ;;  %v26687_v62 = vadd.f32 %v15747_v47, %v15707_v57  ;;  %16001 = vmatpush1.bf16.msra.mxu0 %v23057_v7  ;;  %v23090_v5 = vld [vmem:[%s25051_s14 + $0x1e78] ss:$48 sps:$4 sm:$0xff]   ;;  %v23095_v7 = vld [vmem:[%s25051_s14 + $0x181c] ss:$48 sps:$4 sm:$0xff]  }
 0x56e   : > { %16042 = vmatpush1.bf16.msra.mxu1 %v23060_v3  ;;  %v15709_v37 = vpop.f32.mrf.mxu0  ;;  %16002 = vmatprep.subr.bf16.mxu0 %v23065_v40  ;;  %v23098_v3 = vld [vmem:[%s25051_s14 + $0x1e1c] ss:$48 sps:$4 sm:$0xff]   ;;  %v23093_v45 = vld [vmem:[%s25051_s14 + $0x1818] ss:$48 sps:$4 sm:$0xff]  }
 0x56f   : > { %v15750_v58 = vpop.f32.mrf.mxu1  ;;  %16043 = vmatprep.subr.bf16.mxu1 %v23068_v8  ;;  %v23096_v47 = vld [vmem:[%s25051_s14 + $0x1e18] ss:$48 sps:$4 sm:$0xff]   ;;  %v23101_v40 = vld [vmem:[%s25051_s14 + $0x1dbc] ss:$48 sps:$4 sm:$0xff]  }
 0x570   : > { %v23104_v8 = vld [vmem:[%s25051_s14 + $0x23bc] ss:$48 sps:$4 sm:$0xff]   ;;  %v23099_v57 = vld [vmem:[%s25051_s14 + $0x1db8] ss:$48 sps:$4 sm:$0xff]  }
 0x571   : > { %16003 = vmatpush1.bf16.msra.mxu0 %v23063_v53  ;;  %v23102_v36 = vld [vmem:[%s25051_s14 + $0x23b8] ss:$48 sps:$4 sm:$0xff]   ;;  %v23107_v29 = vld [vmem:[%s25051_s14 + $0x1d5c] ss:$48 sps:$4 sm:$0xff]  }
 0x572   : > { %16044 = vmatpush1.bf16.msra.mxu1 %v23066_v33  ;;  %16004 = vmatprep.subr.bf16.mxu0 %v23071_v56  ;;  %v23110_v53 = vld [vmem:[%s25051_s14 + $0x235c] ss:$48 sps:$4 sm:$0xff]   ;;  %v23105_v33 = vld [vmem:[%s25051_s14 + $0x1d58] ss:$48 sps:$4 sm:$0xff]  }
 0x573   : > { %16045 = vmatprep.subr.bf16.mxu1 %v23074_v39  ;;  %v23108_v37 = vld [vmem:[%s25051_s14 + $0x2358] ss:$48 sps:$4 sm:$0xff]   ;;  %v23113_v58 = vld [vmem:[%s25051_s14 + $0x1cfc] ss:$48 sps:$4 sm:$0xff]  }
 0x574   : > { %v23116_v56 = vld [vmem:[%s25051_s14 + $0x22fc] ss:$48 sps:$4 sm:$0xff]   ;;  %v23111_v39 = vld [vmem:[%s25051_s14 + $0x1cf8] ss:$48 sps:$4 sm:$0xff]  }
 0x575   : > { %16005 = vmatpush1.bf16.msra.mxu0 %v23069_v10  ;;  %v23114_v10 = vld [vmem:[%s25051_s14 + $0x22f8] ss:$48 sps:$4 sm:$0xff]  }
 0x576   : > { %16046 = vmatpush1.bf16.msra.mxu1 %v23072_v32  ;;  %16006 = vmatprep.subr.bf16.mxu0 %v23077_v48  ;;  %v23119_v32 = vld [vmem:[%s25051_s14 + $0x1c9c] ss:$48 sps:$4 sm:$0xff]  }
 0x577   : > { %16047 = vmatprep.subr.bf16.mxu1 %v23080_v20  ;;  %v23122_v48 = vld [vmem:[%s25051_s14 + $0x229c] ss:$48 sps:$4 sm:$0xff]   ;;  %v23117_v20 = vld [vmem:[%s25051_s14 + $0x1c98] ss:$48 sps:$4 sm:$0xff]  }
 0x579   : > { %16007 = vmatpush1.bf16.msra.mxu0 %v23075_v51  ;;  %v23120_v51 = vld [vmem:[%s25051_s14 + $0x2298] ss:$48 sps:$4 sm:$0xff]  }
 0x57a   : > { %16048 = vmatpush1.bf16.msra.mxu1 %v23078_v11  ;;  %16008 = vmatprep.subr.bf16.mxu0 %v23083_v1  ;;  %v23125_v11 = vld [vmem:[%s25051_s14 + $0x1c3c] ss:$48 sps:$4 sm:$0xff]  }
 0x57b   : > { %16049 = vmatprep.subr.bf16.mxu1 %v23086_v2  ;;  %v23128_v1 = vld [vmem:[%s25051_s14 + $0x223c] ss:$48 sps:$4 sm:$0xff]   ;;  %v23123_v2 = vld [vmem:[%s25051_s14 + $0x1c38] ss:$48 sps:$4 sm:$0xff]  }
 0x57d   : > { %16009 = vmatpush1.bf16.msra.mxu0 %v23081_v46  ;;  %v23126_v46 = vld [vmem:[%s25051_s14 + $0x2238] ss:$48 sps:$4 sm:$0xff]  }
 0x57e   : > { %16050 = vmatpush1.bf16.msra.mxu1 %v23084_v14  ;;  %16010 = vmatprep.subr.bf16.mxu0 %v23089_v35  ;;  %v23131_v14 = vld [vmem:[%s25051_s14 + $0x1bdc] ss:$48 sps:$4 sm:$0xff]  }
 0x57f   : > { %16051 = vmatprep.subr.bf16.mxu1 %v23092_v25  ;;  %v23134_v35 = vld [vmem:[%s25051_s14 + $0x21dc] ss:$48 sps:$4 sm:$0xff]   ;;  %v23129_v25 = vld [vmem:[%s25051_s14 + $0x1bd8] ss:$48 sps:$4 sm:$0xff]  }
 0x581   : > { %16011 = vmatpush1.bf16.msra.mxu0 %v23087_v52  ;;  %v23132_v52 = vld [vmem:[%s25051_s14 + $0x21d8] ss:$48 sps:$4 sm:$0xff]  }
 0x582   : > { %16052 = vmatpush1.bf16.msra.mxu1 %v23090_v5  ;;  %16012 = vmatprep.subr.bf16.mxu0 %v23095_v7  ;;  %v23137_v5 = vld [vmem:[%s25051_s14 + $0x1b7c] ss:$48 sps:$4 sm:$0xff]  }
 0x583   : > { %16053 = vmatprep.subr.bf16.mxu1 %v23098_v3  ;;  %v23140_v7 = vld [vmem:[%s25051_s14 + $0x217c] ss:$48 sps:$4 sm:$0xff]   ;;  %v23135_v3 = vld [vmem:[%s25051_s14 + $0x1b78] ss:$48 sps:$4 sm:$0xff]  }
 0x585   : > { %16013 = vmatpush1.bf16.msra.mxu0 %v23093_v45  ;;  %v23138_v45 = vld [vmem:[%s25051_s14 + $0x2178] ss:$48 sps:$4 sm:$0xff]  }
 0x586   : > { %16054 = vmatpush1.bf16.msra.mxu1 %v23096_v47  ;;  %16014 = vmatprep.subr.bf16.mxu0 %v23101_v40  ;;  %v23143_v47 = vld [vmem:[%s25051_s14 + $0x1b1c] ss:$48 sps:$4 sm:$0xff]  }
 0x587   : > { %16055 = vmatprep.subr.bf16.mxu1 %v23104_v8  ;;  %v23146_v40 = vld [vmem:[%s25051_s14 + $0x211c] ss:$48 sps:$4 sm:$0xff]   ;;  %v23141_v8 = vld [vmem:[%s25051_s14 + $0x1b18] ss:$48 sps:$4 sm:$0xff]  }
 0x589   : > { %16015 = vmatpush2.bf16.msra.mxu0 %v23099_v57  ;;  %v23144_v57 = vld [vmem:[%s25051_s14 + $0x2118] ss:$48 sps:$4 sm:$0xff]  }
 0x58a   : > { %16056 = vmatpush2.bf16.msra.mxu1 %v23102_v36  ;;  %16016 = vmatprep.subr.bf16.mxu0 %v23107_v29  ;;  %v23149_v36 = vld [vmem:[%s25051_s14 + $0x26bc] ss:$48 sps:$4 sm:$0xff]  }
 0x58b   : > { %16057 = vmatprep.subr.bf16.mxu1 %v23110_v53  ;;  %v23152_v29 = vld [vmem:[%s25051_s14 + $0x2cbc] ss:$48 sps:$4 sm:$0xff]   ;;  %v23147_v53 = vld [vmem:[%s25051_s14 + $0x26b8] ss:$48 sps:$4 sm:$0xff]  }
 0x58d   : > { %16017 = vmatpush2.bf16.msra.mxu0 %v23105_v33  ;;  %v23150_v33 = vld [vmem:[%s25051_s14 + $0x2cb8] ss:$48 sps:$4 sm:$0xff]  }
 0x58e   : > { %16058 = vmatpush2.bf16.msra.mxu1 %v23108_v37  ;;  %16018 = vmatprep.subr.bf16.mxu0 %v23113_v58  ;;  %v23155_v37 = vld [vmem:[%s25051_s14 + $0x265c] ss:$48 sps:$4 sm:$0xff]  }
 0x58f   : > { %16059 = vmatprep.subr.bf16.mxu1 %v23116_v56  ;;  %v23158_v58 = vld [vmem:[%s25051_s14 + $0x2c5c] ss:$48 sps:$4 sm:$0xff]  }
 0x591   : > { %16019 = vmatpush2.bf16.msra.mxu0 %v23111_v39 }
 0x592   : > { %16060 = vmatpush2.bf16.msra.mxu1 %v23114_v10  ;;  %16020 = vmatprep.subr.bf16.mxu0 %v23119_v32  ;;  %v23153_v32 = vld [vmem:[%s25051_s14 + $0x2658] ss:$48 sps:$4 sm:$0xff]  }
 0x593   : > { %16061 = vmatprep.subr.bf16.mxu1 %v23122_v48  ;;  %v23156_v48 = vld [vmem:[%s25051_s14 + $0x2c58] ss:$48 sps:$4 sm:$0xff]  }
 0x595   : > { %16021 = vmatpush2.bf16.msra.mxu0 %v23117_v20 }
 0x596   : > { %16062 = vmatpush2.bf16.msra.mxu1 %v23120_v51  ;;  %16022 = vmatprep.subr.bf16.mxu0 %v23125_v11  ;;  %v23161_v11 = vld [vmem:[%s25051_s14 + $0x25fc] ss:$48 sps:$4 sm:$0xff]  }
 0x597   : > { %16063 = vmatprep.subr.bf16.mxu1 %v23128_v1  ;;  %v23164_v1 = vld [vmem:[%s25051_s14 + $0x2bfc] ss:$48 sps:$4 sm:$0xff]  }
 0x599   : > { %16023 = vmatpush2.bf16.msra.mxu0 %v23123_v2 }
 0x59a   : > { %16064 = vmatpush2.bf16.msra.mxu1 %v23126_v46  ;;  %16024 = vmatprep.subr.bf16.mxu0 %v23131_v14 }
 0x59b   : > { %16065 = vmatprep.subr.bf16.mxu1 %v23134_v35 }
 0x59d   : > { %16025 = vmatpush2.bf16.msra.mxu0 %v23129_v25  ;;  %v23159_v25 = vld [vmem:[%s25051_s14 + $0x25f8] ss:$48 sps:$4 sm:$0xff]  }
 0x59e   : > { %16066 = vmatpush2.bf16.msra.mxu1 %v23132_v52  ;;  %16026 = vmatprep.subr.bf16.mxu0 %v23137_v5  ;;  %v23162_v52 = vld [vmem:[%s25051_s14 + $0x2bf8] ss:$48 sps:$4 sm:$0xff]  }
 0x59f   : > { %16067 = vmatprep.subr.bf16.mxu1 %v23140_v7 }
 0x5a1   : > { %16027 = vmatpush2.bf16.msra.mxu0 %v23135_v3  ;;  %v23170_v3 = vld [vmem:[%s25051_s14 + $0x2b9c] ss:$48 sps:$4 sm:$0xff]  }
 0x5a2   : > { %16068 = vmatpush2.bf16.msra.mxu1 %v23138_v45  ;;  %16028 = vmatprep.subr.bf16.mxu0 %v23143_v47  ;;  %v23165_v45 = vld [vmem:[%s25051_s14 + $0x2598] ss:$48 sps:$4 sm:$0xff]  }
 0x5a3   : > { %16069 = vmatprep.subr.bf16.mxu1 %v23146_v40  ;;  %v23168_v47 = vld [vmem:[%s25051_s14 + $0x2b98] ss:$48 sps:$4 sm:$0xff]   ;;  %v23173_v40 = vld [vmem:[%s25051_s14 + $0x253c] ss:$48 sps:$4 sm:$0xff]  }
 0x5a5   : > { %16029 = vmatpush2.bf16.msra.mxu0 %v23141_v8  ;;  %v23176_v8 = vld [vmem:[%s25051_s14 + $0x2b3c] ss:$48 sps:$4 sm:$0xff]  }
 0x5a6   : > { %16070 = vmatpush2.bf16.msra.mxu1 %v23144_v57  ;;  %16080 = vmatprep.subr.bf16.mxu0 %v23149_v36  ;;  %v23171_v57 = vld [vmem:[%s25051_s14 + $0x2538] ss:$48 sps:$4 sm:$0xff]  }
 0x5a7   : > { %16121 = vmatprep.subr.bf16.mxu1 %v23152_v29  ;;  %v23174_v36 = vld [vmem:[%s25051_s14 + $0x2b38] ss:$48 sps:$4 sm:$0xff]   ;;  %v23179_v29 = vld [vmem:[%s25051_s14 + $0x24dc] ss:$48 sps:$4 sm:$0xff]  }
 0x5a8   : > { %v15786_v56 = vpop.f32.mrf.mxu0  ;;  %16031 = vmatmul.mubr.bf16.vlgmr.msra.gmra.mxu0 %v25336_v50 }
 0x5a9   : > { %v15827_v39 = vpop.f32.mrf.mxu1  ;;  %16072 = vmatmul.mubr.bf16.vlgmr.msra.gmra.mxu1 %v25346_v55  ;;  %v15787_v10 = vadd.f32 %v15786_v56, %v26682_v49  ;;  %16081 = vmatpush1.bf16.msra.mxu0 %v23147_v53  ;;  %v23182_v53 = vld [vmem:[%s25051_s14 + $0x2adc] ss:$48 sps:$4 sm:$0xff]  }
 0x5aa   : > { %16122 = vmatpush1.bf16.msra.mxu1 %v23150_v33  ;;  %v15788_v20 = vpop.f32.mrf.mxu0  ;;  %16082 = vmatprep.subr.bf16.mxu0 %v23155_v37  ;;  %v23177_v33 = vld [vmem:[%s25051_s14 + $0x24d8] ss:$48 sps:$4 sm:$0xff]   ;;  %v23188_v56 = vld [vmem:[%s25051_s14 + $0x2a7c] ss:$48 sps:$4 sm:$0xff]  }
 0x5ab   : > { %v15829_v51 = vpop.f32.mrf.mxu1  ;;  %16123 = vmatprep.subr.bf16.mxu1 %v23158_v58  ;;  %v26756_v2 = vadd.f32 %v15827_v39, %v15787_v10  ;;  %v15789_v46 = vadd.f32 %v15788_v20, %v26687_v62  ;;  %16112 = vmatprep.mubr.bf16.mxu0 %v25342_v54  ;;  %v23167_v62 = vld [vmem:[%s25051_s14 + $0x259c] ss:$48 sps:$4 sm:$0xff]   ;;  %v23180_v37 = vld [vmem:[%s25051_s14 + $0x2ad8] ss:$48 sps:$4 sm:$0xff]  }
 0x5ac   : > { %16153 = vmatprep.mubr.bf16.mxu1 %v25354_v59  ;;  %v15790_v49 = vpop.f32.mrf.mxu0  ;;  %v23185_v58 = vld [vmem:[%s25051_s14 + $0x247c] ss:$48 sps:$4 sm:$0xff]   ;;  %v23183_v39 = vld [vmem:[%s25051_s14 + $0x2478] ss:$48 sps:$4 sm:$0xff]  }
 0x5ad   : > { %v15831_v14 = vpop.f32.mrf.mxu1  ;;  %v26761_v35 = vadd.f32 %v15829_v51, %v15789_v46  ;;  %16083 = vmatpush1.bf16.msra.mxu0 %v23153_v32  ;;  %v23186_v10 = vld [vmem:[%s25051_s14 + $0x2a78] ss:$48 sps:$4 sm:$0xff]   ;;  %v23191_v32 = vld [vmem:[%s25051_s14 + $0x241c] ss:$48 sps:$4 sm:$0xff]  }
 0x5ae   : > { %16124 = vmatpush1.bf16.msra.mxu1 %v23156_v48  ;;  %v15791_v5 = vpop.f32.mrf.mxu0  ;;  %16084 = vmatprep.subr.bf16.mxu0 %v23161_v11  ;;  %v23194_v48 = vld [vmem:[%s25051_s14 + $0x2a1c] ss:$48 sps:$4 sm:$0xff]   ;;  %v23189_v20 = vld [vmem:[%s25051_s14 + $0x2418] ss:$48 sps:$4 sm:$0xff]  }
 0x5af   : > { %v15832_v7 = vpop.f32.mrf.mxu1  ;;  %16125 = vmatprep.subr.bf16.mxu1 %v23164_v1  ;;  %v23192_v51 = vld [vmem:[%s25051_s14 + $0x2a18] ss:$48 sps:$4 sm:$0xff]   ;;  %v23197_v11 = vld [vmem:[%s25051_s14 + $0x29bc] ss:$48 sps:$4 sm:$0xff]  }
 0x5b0   : > { %v23200_v1 = vld [vmem:[%s25051_s14 + $0x2fbc] ss:$48 sps:$4 sm:$0xff]   ;;  %v23195_v46 = vld [vmem:[%s25051_s14 + $0x29b8] ss:$48 sps:$4 sm:$0xff]  }
 0x5b1   : > { %16085 = vmatpush1.bf16.msra.mxu0 %v23159_v25  ;;  %v23198_v49 = vld [vmem:[%s25051_s14 + $0x2fb8] ss:$48 sps:$4 sm:$0xff]   ;;  %v23203_v14 = vld [vmem:[%s25051_s14 + $0x295c] ss:$48 sps:$4 sm:$0xff]  }
 0x5b2   : > { %16126 = vmatpush1.bf16.msra.mxu1 %v23162_v52  ;;  %16086 = vmatprep.subr.bf16.mxu0 %v23167_v62  ;;  %v23206_v25 = vld [vmem:[%s25051_s14 + $0x2f5c] ss:$48 sps:$4 sm:$0xff]   ;;  %v23201_v52 = vld [vmem:[%s25051_s14 + $0x2958] ss:$48 sps:$4 sm:$0xff]  }
 0x5b3   : > { %16127 = vmatprep.subr.bf16.mxu1 %v23170_v3  ;;  %v23204_v5 = vld [vmem:[%s25051_s14 + $0x2f58] ss:$48 sps:$4 sm:$0xff]   ;;  %v23209_v7 = vld [vmem:[%s25051_s14 + $0x28fc] ss:$48 sps:$4 sm:$0xff]  }
 0x5b4   : > { %v23212_v62 = vld [vmem:[%s25051_s14 + $0x2efc] ss:$48 sps:$4 sm:$0xff]   ;;  %v23207_v3 = vld [vmem:[%s25051_s14 + $0x28f8] ss:$48 sps:$4 sm:$0xff]  }
 0x5b5   : > { %16087 = vmatpush1.bf16.msra.mxu0 %v23165_v45  ;;  %v23210_v45 = vld [vmem:[%s25051_s14 + $0x2ef8] ss:$48 sps:$4 sm:$0xff]  }
 0x5b6   : > { %16128 = vmatpush1.bf16.msra.mxu1 %v23168_v47  ;;  %16088 = vmatprep.subr.bf16.mxu0 %v23173_v40  ;;  %v23215_v47 = vld [vmem:[%s25051_s14 + $0x289c] ss:$48 sps:$4 sm:$0xff]  }
 0x5b7   : > { %16129 = vmatprep.subr.bf16.mxu1 %v23176_v8  ;;  %v23218_v40 = vld [vmem:[%s25051_s14 + $0x2e9c] ss:$48 sps:$4 sm:$0xff]   ;;  %v23213_v8 = vld [vmem:[%s25051_s14 + $0x2898] ss:$48 sps:$4 sm:$0xff]  }
 0x5b9   : > { %16089 = vmatpush1.bf16.msra.mxu0 %v23171_v57  ;;  %v23216_v57 = vld [vmem:[%s25051_s14 + $0x2e98] ss:$48 sps:$4 sm:$0xff]  }
 0x5ba   : > { %16130 = vmatpush1.bf16.msra.mxu1 %v23174_v36  ;;  %16090 = vmatprep.subr.bf16.mxu0 %v23179_v29  ;;  %v23221_v36 = vld [vmem:[%s25051_s14 + $0x283c] ss:$48 sps:$4 sm:$0xff]  }
 0x5bb   : > { %16131 = vmatprep.subr.bf16.mxu1 %v23182_v53  ;;  %v23224_v29 = vld [vmem:[%s25051_s14 + $0x2e3c] ss:$48 sps:$4 sm:$0xff]   ;;  %v23219_v53 = vld [vmem:[%s25051_s14 + $0x2838] ss:$48 sps:$4 sm:$0xff]  }
 0x5bd   : > { %16091 = vmatpush1.bf16.msra.mxu0 %v23177_v33  ;;  %v23222_v33 = vld [vmem:[%s25051_s14 + $0x2e38] ss:$48 sps:$4 sm:$0xff]  }
 0x5be   : > { %16132 = vmatpush1.bf16.msra.mxu1 %v23180_v37  ;;  %16092 = vmatprep.subr.bf16.mxu0 %v23185_v58  ;;  %v23227_v37 = vld [vmem:[%s25051_s14 + $0x27dc] ss:$48 sps:$4 sm:$0xff]  }
 0x5bf   : > { %16133 = vmatprep.subr.bf16.mxu1 %v23188_v56  ;;  %v23230_v58 = vld [vmem:[%s25051_s14 + $0x2ddc] ss:$48 sps:$4 sm:$0xff]   ;;  %v23225_v56 = vld [vmem:[%s25051_s14 + $0x27d8] ss:$48 sps:$4 sm:$0xff]  }
 0x5c1   : > { %16093 = vmatpush1.bf16.msra.mxu0 %v23183_v39  ;;  %v23228_v39 = vld [vmem:[%s25051_s14 + $0x2dd8] ss:$48 sps:$4 sm:$0xff]  }
 0x5c2   : > { %16134 = vmatpush1.bf16.msra.mxu1 %v23186_v10  ;;  %16094 = vmatprep.subr.bf16.mxu0 %v23191_v32  ;;  %v23233_v10 = vld [vmem:[%s25051_s14 + $0x277c] ss:$48 sps:$4 sm:$0xff]  }
 0x5c3   : > { %16135 = vmatprep.subr.bf16.mxu1 %v23194_v48  ;;  %v23236_v32 = vld [vmem:[%s25051_s14 + $0x2d7c] ss:$48 sps:$4 sm:$0xff]   ;;  %v23231_v48 = vld [vmem:[%s25051_s14 + $0x2778] ss:$48 sps:$4 sm:$0xff]  }
 0x5c5   : > { %16095 = vmatpush1.bf16.msra.mxu0 %v23189_v20  ;;  %v23234_v20 = vld [vmem:[%s25051_s14 + $0x2d78] ss:$48 sps:$4 sm:$0xff]  }
 0x5c6   : > { %16136 = vmatpush1.bf16.msra.mxu1 %v23192_v51  ;;  %16096 = vmatprep.subr.bf16.mxu0 %v23197_v11  ;;  %v23239_v51 = vld [vmem:[%s25051_s14 + $0x271c] ss:$48 sps:$4 sm:$0xff]  }
 0x5c7   : > { %16137 = vmatprep.subr.bf16.mxu1 %v23200_v1  ;;  %v23242_v11 = vld [vmem:[%s25051_s14 + $0x2d1c] ss:$48 sps:$4 sm:$0xff]   ;;  %v23237_v1 = vld [vmem:[%s25051_s14 + $0x2718] ss:$48 sps:$4 sm:$0xff]  }
 0x5c9   : > { %16097 = vmatpush2.bf16.msra.mxu0 %v23195_v46  ;;  %v23240_v46 = vld [vmem:[%s25051_s14 + $0x2d18] ss:$48 sps:$4 sm:$0xff]  }
 0x5ca   : > { %16138 = vmatpush2.bf16.msra.mxu1 %v23198_v49  ;;  %16098 = vmatprep.subr.bf16.mxu0 %v23203_v14  ;;  %v2630_v49 = vsub.s32 6, %v25104_v42  ;;  %v23245_v14 = vld [vmem:[%s25051_s14 + $0x32bc] ss:$48 sps:$4 sm:$0xff]  }
 0x5cb   : > { %16139 = vmatprep.subr.bf16.mxu1 %v23206_v25  ;;  %v23248_v25 = vld [vmem:[%s25051_s14 + $0x38bc] ss:$48 sps:$4 sm:$0xff]  }
 0x5cd   : > { %16099 = vmatpush2.bf16.msra.mxu0 %v23201_v52  ;;  %v2634_v52 = vsub.s32 7, %v25104_v42 }
 0x5ce   : > { %16140 = vmatpush2.bf16.msra.mxu1 %v23204_v5  ;;  %16100 = vmatprep.subr.bf16.mxu0 %v23209_v7  ;;  %v24733_v5 = vld [vmem:[%s25059_s5] sm:$0xff] }
 0x5cf   : > { %16141 = vmatprep.subr.bf16.mxu1 %v23212_v62  ;;  %v2631_v7 = vrot.slane %v24733_v5, %v2630_v49  ;;  %v23243_v62 = vld [vmem:[%s25051_s14 + $0x32b8] ss:$48 sps:$4 sm:$0xff]   ;;  %v23263_v49 = vld [vmem:[%s25051_s14 + $0x319c] ss:$48 sps:$4 sm:$0xff]  }
 0x5d1   : > { %16101 = vmatpush2.bf16.msra.mxu0 %v23207_v3  ;;  %v23246_v3 = vld [vmem:[%s25051_s14 + $0x38b8] ss:$48 sps:$4 sm:$0xff]  }
 0x5d2   : > { %16142 = vmatpush2.bf16.msra.mxu1 %v23210_v45  ;;  %16102 = vmatprep.subr.bf16.mxu0 %v23215_v47  ;;  %v23251_v45 = vld [vmem:[%s25051_s14 + $0x325c] ss:$48 sps:$4 sm:$0xff]  }
 0x5d3   : > { %16143 = vmatprep.subr.bf16.mxu1 %v23218_v40  ;;  %v23254_v47 = vld [vmem:[%s25051_s14 + $0x385c] ss:$48 sps:$4 sm:$0xff]   ;;  %v2635_v40 = vrot.slane %v24733_v5, %v2634_v52  ;;  %v23264_v52 = vld [vmem:[%s25051_s14 + $0x3798] ss:$48 sps:$4 sm:$0xff]  }
 0x5d4   : > { %v23269_v5 = vld [vmem:[%s25051_s14 + $0x313c] ss:$48 sps:$4 sm:$0xff]  }
 0x5d5   : > { %16103 = vmatpush2.bf16.msra.mxu0 %v23213_v8 }
 0x5d6   : > { %16144 = vmatpush2.bf16.msra.mxu1 %v23216_v57  ;;  %16104 = vmatprep.subr.bf16.mxu0 %v23221_v36 }
 0x5d7   : > { %16145 = vmatprep.subr.bf16.mxu1 %v23224_v29  ;;  %v23249_v29 = vld [vmem:[%s25051_s14 + $0x3258] ss:$48 sps:$4 sm:$0xff]  }
 0x5d9   : > { %16105 = vmatpush2.bf16.msra.mxu0 %v23219_v53  ;;  %v23252_v53 = vld [vmem:[%s25051_s14 + $0x3858] ss:$48 sps:$4 sm:$0xff]  }
 0x5da   : > { %16146 = vmatpush2.bf16.msra.mxu1 %v23222_v33  ;;  %16106 = vmatprep.subr.bf16.mxu0 %v23227_v37 }
 0x5db   : > { %16147 = vmatprep.subr.bf16.mxu1 %v23230_v58  ;;  %v23257_v58 = vld [vmem:[%s25051_s14 + $0x31fc] ss:$48 sps:$4 sm:$0xff]  }
 0x5dd   : > { %16107 = vmatpush2.bf16.msra.mxu0 %v23225_v56  ;;  %v23260_v56 = vld [vmem:[%s25051_s14 + $0x37fc] ss:$48 sps:$4 sm:$0xff]  }
 0x5de   : > { %16148 = vmatpush2.bf16.msra.mxu1 %v23228_v39  ;;  %16108 = vmatprep.subr.bf16.mxu0 %v23233_v10 }
 0x5df   : > { %16149 = vmatprep.subr.bf16.mxu1 %v23236_v32 }
 0x5e1   : > { %16109 = vmatpush2.bf16.msra.mxu0 %v23231_v48 }
 0x5e2   : > { %16150 = vmatpush2.bf16.msra.mxu1 %v23234_v20  ;;  %16110 = vmatprep.subr.bf16.mxu0 %v23239_v51  ;;  %v23255_v51 = vld [vmem:[%s25051_s14 + $0x31f8] ss:$48 sps:$4 sm:$0xff]  }
 0x5e3   : > { %16151 = vmatprep.subr.bf16.mxu1 %v23242_v11  ;;  %v23258_v11 = vld [vmem:[%s25051_s14 + $0x37f8] ss:$48 sps:$4 sm:$0xff]  }
 0x5e5   : > { %16111 = vmatpush2.bf16.msra.mxu0 %v23237_v1 }
 0x5e6   : > { %16152 = vmatpush2.bf16.msra.mxu1 %v23240_v46  ;;  %16162 = vmatprep.subr.bf16.mxu0 %v23245_v14  ;;  %v23266_v14 = vld [vmem:[%s25051_s14 + $0x379c] ss:$48 sps:$4 sm:$0xff]  }
 0x5e7   : > { %16203 = vmatprep.subr.bf16.mxu1 %v23248_v25  ;;  %v23261_v25 = vld [vmem:[%s25051_s14 + $0x3198] ss:$48 sps:$4 sm:$0xff]  }
 0x5e8   : > { %v15868_v8 = vpop.f32.mrf.mxu0  ;;  %16113 = vmatmul.mubr.bf16.vlgmr.msra.gmra.mxu0 %v25432_v15 }
 0x5e9   : > { %v15909_v57 = vpop.f32.mrf.mxu1  ;;  %16154 = vmatmul.mubr.bf16.vlgmr.msra.gmra.mxu1 %v25443_v24  ;;  %v15869_v36 = vadd.f32 %v15868_v8, %v2631_v7  ;;  %16163 = vmatpush1.bf16.msra.mxu0 %v23243_v62  ;;  %v23272_v7 = vld [vmem:[%s25051_s14 + $0x373c] ss:$48 sps:$4 sm:$0xff]   ;;  %v23267_v62 = vld [vmem:[%s25051_s14 + $0x3138] ss:$48 sps:$4 sm:$0xff]  }
 0x5ea   : > { %16204 = vmatpush1.bf16.msra.mxu1 %v23246_v3  ;;  %v15870_v33 = vpop.f32.mrf.mxu0  ;;  %16164 = vmatprep.subr.bf16.mxu0 %v23251_v45  ;;  %v23270_v3 = vld [vmem:[%s25051_s14 + $0x3738] ss:$48 sps:$4 sm:$0xff]   ;;  %v23275_v45 = vld [vmem:[%s25051_s14 + $0x30dc] ss:$48 sps:$4 sm:$0xff]  }
 0x5eb   : > { %v15911_v37 = vpop.f32.mrf.mxu1  ;;  %16205 = vmatprep.subr.bf16.mxu1 %v23254_v47  ;;  %v26832_v39 = vadd.f32 %v15909_v57, %v15869_v36  ;;  %v15871_v10 = vadd.f32 %v15870_v33, %v2635_v40  ;;  %16194 = vmatprep.mubr.bf16.mxu0 %v25439_v22  ;;  %v23278_v47 = vld [vmem:[%s25051_s14 + $0x36dc] ss:$48 sps:$4 sm:$0xff]   ;;  %v23273_v40 = vld [vmem:[%s25051_s14 + $0x30d8] ss:$48 sps:$4 sm:$0xff]  }
 0x5ec   : > { %16235 = vmatprep.mubr.bf16.mxu1 %v25455_v6  ;;  %v15872_v32 = vpop.f32.mrf.mxu0  ;;  %v23276_v8 = vld [vmem:[%s25051_s14 + $0x36d8] ss:$48 sps:$4 sm:$0xff]   ;;  %v23281_v57 = vld [vmem:[%s25051_s14 + $0x307c] ss:$48 sps:$4 sm:$0xff]  }
 0x5ed   : > { %v15913_v48 = vpop.f32.mrf.mxu1  ;;  %v26836_v20 = vadd.f32 %v15911_v37, %v15871_v10  ;;  %16165 = vmatpush1.bf16.msra.mxu0 %v23249_v29  ;;  %v23284_v36 = vld [vmem:[%s25051_s14 + $0x367c] ss:$48 sps:$4 sm:$0xff]   ;;  %v23279_v29 = vld [vmem:[%s25051_s14 + $0x3078] ss:$48 sps:$4 sm:$0xff]  }
 0x5ee   : > { %16206 = vmatpush1.bf16.msra.mxu1 %v23252_v53  ;;  %v15873_v1 = vpop.f32.mrf.mxu0  ;;  %16166 = vmatprep.subr.bf16.mxu0 %v23257_v58  ;;  %v23282_v53 = vld [vmem:[%s25051_s14 + $0x3678] ss:$48 sps:$4 sm:$0xff]   ;;  %v23287_v33 = vld [vmem:[%s25051_s14 + $0x301c] ss:$48 sps:$4 sm:$0xff]  }
 0x5ef   : > { %v15914_v46 = vpop.f32.mrf.mxu1  ;;  %16207 = vmatprep.subr.bf16.mxu1 %v23260_v56  ;;  %v23290_v37 = vld [vmem:[%s25051_s14 + $0x361c] ss:$48 sps:$4 sm:$0xff]   ;;  %v23285_v58 = vld [vmem:[%s25051_s14 + $0x3018] ss:$48 sps:$4 sm:$0xff]  }
 0x5f0   : > { %v23288_v56 = vld [vmem:[%s25051_s14 + $0x3618] ss:$48 sps:$4 sm:$0xff]   ;;  %v23293_v10 = vld [vmem:[%s25051_s14 + $0x35bc] ss:$48 sps:$4 sm:$0xff]  }
 0x5f1   : > { %16167 = vmatpush1.bf16.msra.mxu0 %v23255_v51  ;;  %v23296_v32 = vld [vmem:[%s25051_s14 + $0x3bbc] ss:$48 sps:$4 sm:$0xff]   ;;  %v23291_v48 = vld [vmem:[%s25051_s14 + $0x35b8] ss:$48 sps:$4 sm:$0xff]  }
 0x5f2   : > { %16208 = vmatpush1.bf16.msra.mxu1 %v23258_v11  ;;  %16168 = vmatprep.subr.bf16.mxu0 %v23263_v49  ;;  %v23294_v51 = vld [vmem:[%s25051_s14 + $0x3bb8] ss:$48 sps:$4 sm:$0xff]   ;;  %v23299_v11 = vld [vmem:[%s25051_s14 + $0x355c] ss:$48 sps:$4 sm:$0xff]  }
 0x5f3   : > { %16209 = vmatprep.subr.bf16.mxu1 %v23266_v14  ;;  %v23302_v1 = vld [vmem:[%s25051_s14 + $0x3b5c] ss:$48 sps:$4 sm:$0xff]   ;;  %v23297_v46 = vld [vmem:[%s25051_s14 + $0x3558] ss:$48 sps:$4 sm:$0xff]  }
 0x5f4   : > { %v23300_v49 = vld [vmem:[%s25051_s14 + $0x3b58] ss:$48 sps:$4 sm:$0xff]   ;;  %v23305_v14 = vld [vmem:[%s25051_s14 + $0x34fc] ss:$48 sps:$4 sm:$0xff]  }
 0x5f5   : > { %16169 = vmatpush1.bf16.msra.mxu0 %v23261_v25  ;;  %v23308_v25 = vld [vmem:[%s25051_s14 + $0x3afc] ss:$48 sps:$4 sm:$0xff]  }
 0x5f6   : > { %16210 = vmatpush1.bf16.msra.mxu1 %v23264_v52  ;;  %16170 = vmatprep.subr.bf16.mxu0 %v23269_v5  ;;  %v23303_v52 = vld [vmem:[%s25051_s14 + $0x34f8] ss:$48 sps:$4 sm:$0xff]  }
 0x5f7   : > { %16211 = vmatprep.subr.bf16.mxu1 %v23272_v7  ;;  %v23306_v5 = vld [vmem:[%s25051_s14 + $0x3af8] ss:$48 sps:$4 sm:$0xff]   ;;  %v23311_v7 = vld [vmem:[%s25051_s14 + $0x349c] ss:$48 sps:$4 sm:$0xff]  }
 0x5f9   : > { %16171 = vmatpush1.bf16.msra.mxu0 %v23267_v62  ;;  %v23314_v62 = vld [vmem:[%s25051_s14 + $0x3a9c] ss:$48 sps:$4 sm:$0xff]  }
 0x5fa   : > { %16212 = vmatpush1.bf16.msra.mxu1 %v23270_v3  ;;  %16172 = vmatprep.subr.bf16.mxu0 %v23275_v45  ;;  %v23309_v3 = vld [vmem:[%s25051_s14 + $0x3498] ss:$48 sps:$4 sm:$0xff]  }
 0x5fb   : > { %16213 = vmatprep.subr.bf16.mxu1 %v23278_v47  ;;  %v23312_v45 = vld [vmem:[%s25051_s14 + $0x3a98] ss:$48 sps:$4 sm:$0xff]   ;;  %v23317_v47 = vld [vmem:[%s25051_s14 + $0x343c] ss:$48 sps:$4 sm:$0xff]  }
 0x5fd   : > { %16173 = vmatpush1.bf16.msra.mxu0 %v23273_v40  ;;  %v23320_v40 = vld [vmem:[%s25051_s14 + $0x3a3c] ss:$48 sps:$4 sm:$0xff]  }
 0x5fe   : > { %16214 = vmatpush1.bf16.msra.mxu1 %v23276_v8  ;;  %16174 = vmatprep.subr.bf16.mxu0 %v23281_v57  ;;  %v23315_v8 = vld [vmem:[%s25051_s14 + $0x3438] ss:$48 sps:$4 sm:$0xff]  }
 0x5ff   : > { %16215 = vmatprep.subr.bf16.mxu1 %v23284_v36  ;;  %v23318_v57 = vld [vmem:[%s25051_s14 + $0x3a38] ss:$48 sps:$4 sm:$0xff]   ;;  %v23323_v36 = vld [vmem:[%s25051_s14 + $0x33dc] ss:$48 sps:$4 sm:$0xff]  }
 0x601   : > { %16175 = vmatpush1.bf16.msra.mxu0 %v23279_v29  ;;  %v23326_v29 = vld [vmem:[%s25051_s14 + $0x39dc] ss:$48 sps:$4 sm:$0xff]  }
 0x602   : > { %16216 = vmatpush1.bf16.msra.mxu1 %v23282_v53  ;;  %16176 = vmatprep.subr.bf16.mxu0 %v23287_v33  ;;  %v23321_v53 = vld [vmem:[%s25051_s14 + $0x33d8] ss:$48 sps:$4 sm:$0xff]  }
 0x603   : > { %16217 = vmatprep.subr.bf16.mxu1 %v23290_v37  ;;  %v23324_v33 = vld [vmem:[%s25051_s14 + $0x39d8] ss:$48 sps:$4 sm:$0xff]   ;;  %v23329_v37 = vld [vmem:[%s25051_s14 + $0x337c] ss:$48 sps:$4 sm:$0xff]  }
 0x605   : > { %16177 = vmatpush1.bf16.msra.mxu0 %v23285_v58  ;;  %v23332_v58 = vld [vmem:[%s25051_s14 + $0x397c] ss:$48 sps:$4 sm:$0xff]  }
 0x606   : > { %16218 = vmatpush1.bf16.msra.mxu1 %v23288_v56  ;;  %16178 = vmatprep.subr.bf16.mxu0 %v23293_v10  ;;  %v23327_v56 = vld [vmem:[%s25051_s14 + $0x3378] ss:$48 sps:$4 sm:$0xff]  }
 0x607   : > { %16219 = vmatprep.subr.bf16.mxu1 %v23296_v32  ;;  %v23330_v10 = vld [vmem:[%s25051_s14 + $0x3978] ss:$48 sps:$4 sm:$0xff]   ;;  %v23335_v32 = vld [vmem:[%s25051_s14 + $0x331c] ss:$48 sps:$4 sm:$0xff]  }
 0x609   : > { %16179 = vmatpush2.bf16.msra.mxu0 %v23291_v48  ;;  %v23338_v48 = vld [vmem:[%s25051_s14 + $0x391c] ss:$48 sps:$4 sm:$0xff]  }
 0x60a   : > { %16220 = vmatpush2.bf16.msra.mxu1 %v23294_v51  ;;  %16180 = vmatprep.subr.bf16.mxu0 %v23299_v11  ;;  %v23333_v51 = vld [vmem:[%s25051_s14 + $0x3318] ss:$48 sps:$4 sm:$0xff]  }
 0x60b   : > { %16221 = vmatprep.subr.bf16.mxu1 %v23302_v1  ;;  %v23336_v11 = vld [vmem:[%s25051_s14 + $0x3918] ss:$48 sps:$4 sm:$0xff]   ;;  %v23341_v1 = vld [vmem:[%s25051_s14 + $0x3ebc] ss:$48 sps:$4 sm:$0xff]  }
 0x60d   : > { %16181 = vmatpush2.bf16.msra.mxu0 %v23297_v46  ;;  %v23344_v46 = vld [vmem:[%s25051_s14 + $0x44bc] ss:$48 sps:$4 sm:$0xff]  }
 0x60e   : > { %16222 = vmatpush2.bf16.msra.mxu1 %v23300_v49  ;;  %16182 = vmatprep.subr.bf16.mxu0 %v23305_v14  ;;  %v23339_v49 = vld [vmem:[%s25051_s14 + $0x3eb8] ss:$48 sps:$4 sm:$0xff]  }
 0x60f   : > { %16223 = vmatprep.subr.bf16.mxu1 %v23308_v25  ;;  %v23342_v14 = vld [vmem:[%s25051_s14 + $0x44b8] ss:$48 sps:$4 sm:$0xff]   ;;  %v23347_v25 = vld [vmem:[%s25051_s14 + $0x3e5c] ss:$48 sps:$4 sm:$0xff]  }
 0x611   : > { %16183 = vmatpush2.bf16.msra.mxu0 %v23303_v52  ;;  %v23350_v52 = vld [vmem:[%s25051_s14 + $0x445c] ss:$48 sps:$4 sm:$0xff]  }
 0x612   : > { %16224 = vmatpush2.bf16.msra.mxu1 %v23306_v5  ;;  %16184 = vmatprep.subr.bf16.mxu0 %v23311_v7 }
 0x613   : > { %16225 = vmatprep.subr.bf16.mxu1 %v23314_v62 }
 0x615   : > { %16185 = vmatpush2.bf16.msra.mxu0 %v23309_v3  ;;  %v23345_v3 = vld [vmem:[%s25051_s14 + $0x3e58] ss:$48 sps:$4 sm:$0xff]  }
 0x616   : > { %16226 = vmatpush2.bf16.msra.mxu1 %v23312_v45  ;;  %16186 = vmatprep.subr.bf16.mxu0 %v23317_v47  ;;  %v23348_v45 = vld [vmem:[%s25051_s14 + $0x4458] ss:$48 sps:$4 sm:$0xff]  }
 0x617   : > { %16227 = vmatprep.subr.bf16.mxu1 %v23320_v40 }
 0x619   : > { %16187 = vmatpush2.bf16.msra.mxu0 %v23315_v8  ;;  %v23353_v8 = vld [vmem:[%s25051_s14 + $0x3dfc] ss:$48 sps:$4 sm:$0xff]  }
 0x61a   : > { %16228 = vmatpush2.bf16.msra.mxu1 %v23318_v57  ;;  %16188 = vmatprep.subr.bf16.mxu0 %v23323_v36  ;;  %v23356_v57 = vld [vmem:[%s25051_s14 + $0x43fc] ss:$48 sps:$4 sm:$0xff]  }
 0x61b   : > { %16229 = vmatprep.subr.bf16.mxu1 %v23326_v29 }
 0x61d   : > { %16189 = vmatpush2.bf16.msra.mxu0 %v23321_v53 }
 0x61e   : > { %16230 = vmatpush2.bf16.msra.mxu1 %v23324_v33  ;;  %16190 = vmatprep.subr.bf16.mxu0 %v23329_v37  ;;  %v23351_v37 = vld [vmem:[%s25051_s14 + $0x3df8] ss:$48 sps:$4 sm:$0xff]  }
 0x61f   : > { %16231 = vmatprep.subr.bf16.mxu1 %v23332_v58  ;;  %v23354_v58 = vld [vmem:[%s25051_s14 + $0x43f8] ss:$48 sps:$4 sm:$0xff]  }
 0x621   : > { %16191 = vmatpush2.bf16.msra.mxu0 %v23327_v56 }
 0x622   : > { %16232 = vmatpush2.bf16.msra.mxu1 %v23330_v10  ;;  %16192 = vmatprep.subr.bf16.mxu0 %v23335_v32  ;;  %v23362_v32 = vld [vmem:[%s25051_s14 + $0x439c] ss:$48 sps:$4 sm:$0xff]  }
 0x623   : > { %16233 = vmatprep.subr.bf16.mxu1 %v23338_v48  ;;  %v23357_v48 = vld [vmem:[%s25051_s14 + $0x3d98] ss:$48 sps:$4 sm:$0xff]  }
 0x625   : > { %16193 = vmatpush2.bf16.msra.mxu0 %v23333_v51  ;;  %v23360_v51 = vld [vmem:[%s25051_s14 + $0x4398] ss:$48 sps:$4 sm:$0xff]  }
 0x626   : > { %16234 = vmatpush2.bf16.msra.mxu1 %v23336_v11  ;;  %16244 = vmatprep.subr.bf16.mxu0 %v23341_v1  ;;  %v23365_v11 = vld [vmem:[%s25051_s14 + $0x3d3c] ss:$48 sps:$4 sm:$0xff]  }
 0x627   : > { %16285 = vmatprep.subr.bf16.mxu1 %v23344_v46  ;;  %v23368_v1 = vld [vmem:[%s25051_s14 + $0x433c] ss:$48 sps:$4 sm:$0xff]   ;;  %v23363_v46 = vld [vmem:[%s25051_s14 + $0x3d38] ss:$48 sps:$4 sm:$0xff]  }
 0x628   : > { %v15950_v5 = vpop.f32.mrf.mxu0  ;;  %16195 = vmatmul.mubr.bf16.vlgmr.msra.gmra.mxu0 %v25530_v19 }
 0x629   : > { %v15991_v7 = vpop.f32.mrf.mxu1  ;;  %16236 = vmatmul.mubr.bf16.vlgmr.msra.gmra.mxu1 %v25543_v4  ;;  %v15951_v62 = vadd.f32 %v15950_v5, %v26832_v39  ;;  %16245 = vmatpush1.bf16.msra.mxu0 %v23339_v49  ;;  %v23366_v49 = vld [vmem:[%s25051_s14 + $0x4338] ss:$48 sps:$4 sm:$0xff]  }
 0x62a   : > { %16286 = vmatpush1.bf16.msra.mxu1 %v23342_v14  ;;  %v15952_v47 = vpop.f32.mrf.mxu0  ;;  %16246 = vmatprep.subr.bf16.mxu0 %v23347_v25  ;;  %v23371_v14 = vld [vmem:[%s25051_s14 + $0x3cdc] ss:$48 sps:$4 sm:$0xff]   ;;  %v23372_v5 = vld [vmem:[%s25051_s14 + $0x42d8] ss:$48 sps:$4 sm:$0xff]  }
 0x62b   : > { %v15993_v40 = vpop.f32.mrf.mxu1  ;;  %16287 = vmatprep.subr.bf16.mxu1 %v23350_v52  ;;  %v26905_v36 = vadd.f32 %v15991_v7, %v15951_v62  ;;  %v15953_v29 = vadd.f32 %v15952_v47, %v26836_v20  ;;  %16276 = vmatprep.mubr.bf16.mxu0 %v25539_v31  ;;  %v23359_v20 = vld [vmem:[%s25051_s14 + $0x3d9c] ss:$48 sps:$4 sm:$0xff]   ;;  %v23369_v52 = vld [vmem:[%s25051_s14 + $0x3cd8] ss:$48 sps:$4 sm:$0xff]  }
 0x62c   : > { %16317 = vmatprep.mubr.bf16.mxu1 %v25551_v38  ;;  %v15954_v39 = vpop.f32.mrf.mxu0  ;;  %v23374_v25 = vld [vmem:[%s25051_s14 + $0x42dc] ss:$48 sps:$4 sm:$0xff]  }
 0x62d   : > { %v15995_v53 = vpop.f32.mrf.mxu1  ;;  %v26910_v33 = vadd.f32 %v15993_v40, %v15953_v29  ;;  %16247 = vmatpush1.bf16.msra.mxu0 %v23345_v3  ;;  %v23377_v7 = vld [vmem:[%s25051_s14 + $0x3c7c] ss:$48 sps:$4 sm:$0xff]   ;;  %v23375_v3 = vld [vmem:[%s25051_s14 + $0x3c78] ss:$48 sps:$4 sm:$0xff]  }
 0x62e   : > { %16288 = vmatpush1.bf16.msra.mxu1 %v23348_v45  ;;  %v15955_v56 = vpop.f32.mrf.mxu0  ;;  %16248 = vmatprep.subr.bf16.mxu0 %v23353_v8  ;;  %v23380_v62 = vld [vmem:[%s25051_s14 + $0x427c] ss:$48 sps:$4 sm:$0xff]   ;;  %v23378_v45 = vld [vmem:[%s25051_s14 + $0x4278] ss:$48 sps:$4 sm:$0xff]  }
 0x62f   : > { %v15996_v10 = vpop.f32.mrf.mxu1  ;;  %16289 = vmatprep.subr.bf16.mxu1 %v23356_v57  ;;  %v23383_v47 = vld [vmem:[%s25051_s14 + $0x3c1c] ss:$48 sps:$4 sm:$0xff]   ;;  %v23381_v8 = vld [vmem:[%s25051_s14 + $0x3c18] ss:$48 sps:$4 sm:$0xff]  }
 0x630   : > { %v23386_v40 = vld [vmem:[%s25051_s14 + $0x421c] ss:$48 sps:$4 sm:$0xff]   ;;  %v23384_v57 = vld [vmem:[%s25051_s14 + $0x4218] ss:$48 sps:$4 sm:$0xff]  }
 0x631   : > { %16249 = vmatpush1.bf16.msra.mxu0 %v23351_v37  ;;  %v23389_v29 = vld [vmem:[%s25051_s14 + $0x41bc] ss:$48 sps:$4 sm:$0xff]   ;;  %v23387_v53 = vld [vmem:[%s25051_s14 + $0x41b8] ss:$48 sps:$4 sm:$0xff]  }
 0x632   : > { %16290 = vmatpush1.bf16.msra.mxu1 %v23354_v58  ;;  %16250 = vmatprep.subr.bf16.mxu0 %v23359_v20  ;;  %v23392_v39 = vld [vmem:[%s25051_s14 + $0x47bc] ss:$48 sps:$4 sm:$0xff]   ;;  %v23390_v37 = vld [vmem:[%s25051_s14 + $0x47b8] ss:$48 sps:$4 sm:$0xff]  }
 0x633   : > { %16291 = vmatprep.subr.bf16.mxu1 %v23362_v32  ;;  %v23395_v58 = vld [vmem:[%s25051_s14 + $0x415c] ss:$48 sps:$4 sm:$0xff]   ;;  %v23393_v10 = vld [vmem:[%s25051_s14 + $0x4158] ss:$48 sps:$4 sm:$0xff]  }
 0x634   : > { %v23398_v56 = vld [vmem:[%s25051_s14 + $0x475c] ss:$48 sps:$4 sm:$0xff]   ;;  %v23396_v20 = vld [vmem:[%s25051_s14 + $0x4758] ss:$48 sps:$4 sm:$0xff]  }
 0x635   : > { %16251 = vmatpush1.bf16.msra.mxu0 %v23357_v48  ;;  %v23401_v32 = vld [vmem:[%s25051_s14 + $0x40fc] ss:$48 sps:$4 sm:$0xff]  }
 0x636   : > { %16292 = vmatpush1.bf16.msra.mxu1 %v23360_v51  ;;  %16252 = vmatprep.subr.bf16.mxu0 %v23365_v11  ;;  %v23404_v48 = vld [vmem:[%s25051_s14 + $0x46fc] ss:$48 sps:$4 sm:$0xff]   ;;  %v23399_v51 = vld [vmem:[%s25051_s14 + $0x40f8] ss:$48 sps:$4 sm:$0xff]  }
 0x637   : > { %16293 = vmatprep.subr.bf16.mxu1 %v23368_v1  ;;  %v23402_v11 = vld [vmem:[%s25051_s14 + $0x46f8] ss:$48 sps:$4 sm:$0xff]   ;;  %v23407_v1 = vld [vmem:[%s25051_s14 + $0x409c] ss:$48 sps:$4 sm:$0xff]  }
 0x639   : > { %16253 = vmatpush1.bf16.msra.mxu0 %v23363_v46  ;;  %v23410_v46 = vld [vmem:[%s25051_s14 + $0x469c] ss:$48 sps:$4 sm:$0xff]  }
 0x63a   : > { %16294 = vmatpush1.bf16.msra.mxu1 %v23366_v49  ;;  %16254 = vmatprep.subr.bf16.mxu0 %v23371_v14  ;;  %v23405_v49 = vld [vmem:[%s25051_s14 + $0x4098] ss:$48 sps:$4 sm:$0xff]  }
 0x63b   : > { %16295 = vmatprep.subr.bf16.mxu1 %v23374_v25  ;;  %v23408_v14 = vld [vmem:[%s25051_s14 + $0x4698] ss:$48 sps:$4 sm:$0xff]   ;;  %v23413_v25 = vld [vmem:[%s25051_s14 + $0x403c] ss:$48 sps:$4 sm:$0xff]  }
 0x63d   : > { %16255 = vmatpush1.bf16.msra.mxu0 %v23369_v52  ;;  %v23416_v52 = vld [vmem:[%s25051_s14 + $0x463c] ss:$48 sps:$4 sm:$0xff]  }
 0x63e   : > { %16296 = vmatpush1.bf16.msra.mxu1 %v23372_v5  ;;  %16256 = vmatprep.subr.bf16.mxu0 %v23377_v7  ;;  %v23411_v5 = vld [vmem:[%s25051_s14 + $0x4038] ss:$48 sps:$4 sm:$0xff]  }
 0x63f   : > { %16297 = vmatprep.subr.bf16.mxu1 %v23380_v62  ;;  %v23414_v7 = vld [vmem:[%s25051_s14 + $0x4638] ss:$48 sps:$4 sm:$0xff]   ;;  %v23419_v62 = vld [vmem:[%s25051_s14 + $0x3fdc] ss:$48 sps:$4 sm:$0xff]  }
 0x641   : > { %16257 = vmatpush1.bf16.msra.mxu0 %v23375_v3  ;;  %v23422_v3 = vld [vmem:[%s25051_s14 + $0x45dc] ss:$48 sps:$4 sm:$0xff]  }
 0x642   : > { %16298 = vmatpush1.bf16.msra.mxu1 %v23378_v45  ;;  %16258 = vmatprep.subr.bf16.mxu0 %v23383_v47  ;;  %v23417_v45 = vld [vmem:[%s25051_s14 + $0x3fd8] ss:$48 sps:$4 sm:$0xff]  }
 0x643   : > { %16299 = vmatprep.subr.bf16.mxu1 %v23386_v40  ;;  %v23420_v47 = vld [vmem:[%s25051_s14 + $0x45d8] ss:$48 sps:$4 sm:$0xff]   ;;  %v23425_v40 = vld [vmem:[%s25051_s14 + $0x3f7c] ss:$48 sps:$4 sm:$0xff]  }
 0x645   : > { %16259 = vmatpush1.bf16.msra.mxu0 %v23381_v8  ;;  %v23428_v8 = vld [vmem:[%s25051_s14 + $0x457c] ss:$48 sps:$4 sm:$0xff]  }
 0x646   : > { %16300 = vmatpush1.bf16.msra.mxu1 %v23384_v57  ;;  %16260 = vmatprep.subr.bf16.mxu0 %v23389_v29  ;;  %v23423_v57 = vld [vmem:[%s25051_s14 + $0x3f78] ss:$48 sps:$4 sm:$0xff]  }
 0x647   : > { %16301 = vmatprep.subr.bf16.mxu1 %v23392_v39  ;;  %v23426_v29 = vld [vmem:[%s25051_s14 + $0x4578] ss:$48 sps:$4 sm:$0xff]   ;;  %v23431_v39 = vld [vmem:[%s25051_s14 + $0x3f1c] ss:$48 sps:$4 sm:$0xff]  }
 0x649   : > { %16261 = vmatpush2.bf16.msra.mxu0 %v23387_v53  ;;  %v23434_v53 = vld [vmem:[%s25051_s14 + $0x451c] ss:$48 sps:$4 sm:$0xff]  }
 0x64a   : > { %16302 = vmatpush2.bf16.msra.mxu1 %v23390_v37  ;;  %16262 = vmatprep.subr.bf16.mxu0 %v23395_v58  ;;  %v23429_v37 = vld [vmem:[%s25051_s14 + $0x3f18] ss:$48 sps:$4 sm:$0xff]  }
 0x64b   : > { %16303 = vmatprep.subr.bf16.mxu1 %v23398_v56  ;;  %v23432_v58 = vld [vmem:[%s25051_s14 + $0x4518] ss:$48 sps:$4 sm:$0xff]   ;;  %v23437_v56 = vld [vmem:[%s25051_s14 + $0x2c4] ss:$48 sps:$4 sm:$0xff]  }
 0x64d   : > { %16263 = vmatpush2.bf16.msra.mxu0 %v23393_v10  ;;  %v23440_v10 = vld [vmem:[%s25051_s14 + $0x8c4] ss:$48 sps:$4 sm:$0xff]  }
 0x64e   : > { %16304 = vmatpush2.bf16.msra.mxu1 %v23396_v20  ;;  %16264 = vmatprep.subr.bf16.mxu0 %v23401_v32  ;;  %v23435_v20 = vld [vmem:[%s25051_s14 + $0x2c0] ss:$48 sps:$4 sm:$0xff]  }
 0x64f   : > { %16305 = vmatprep.subr.bf16.mxu1 %v23404_v48  ;;  %v23438_v32 = vld [vmem:[%s25051_s14 + $0x8c0] ss:$48 sps:$4 sm:$0xff]   ;;  %v23443_v48 = vld [vmem:[%s25051_s14 + $0x264] ss:$48 sps:$4 sm:$0xff]  }
 0x651   : > { %16265 = vmatpush2.bf16.msra.mxu0 %v23399_v51  ;;  %v23446_v51 = vld [vmem:[%s25051_s14 + $0x864] ss:$48 sps:$4 sm:$0xff]  }
 0x652   : > { %16306 = vmatpush2.bf16.msra.mxu1 %v23402_v11  ;;  %16266 = vmatprep.subr.bf16.mxu0 %v23407_v1 }
 0x653   : > { %16307 = vmatprep.subr.bf16.mxu1 %v23410_v46 }
 0x655   : > { %16267 = vmatpush2.bf16.msra.mxu0 %v23405_v49  ;;  %v23441_v49 = vld [vmem:[%s25051_s14 + $0x260] ss:$48 sps:$4 sm:$0xff]  }
 0x656   : > { %16308 = vmatpush2.bf16.msra.mxu1 %v23408_v14  ;;  %16268 = vmatprep.subr.bf16.mxu0 %v23413_v25  ;;  %v23444_v14 = vld [vmem:[%s25051_s14 + $0x860] ss:$48 sps:$4 sm:$0xff]  }
 0x657   : > { %16309 = vmatprep.subr.bf16.mxu1 %v23416_v52 }
 0x659   : > { %16269 = vmatpush2.bf16.msra.mxu0 %v23411_v5  ;;  %v23449_v5 = vld [vmem:[%s25051_s14 + $0x204] ss:$48 sps:$4 sm:$0xff]  }
 0x65a   : > { %16310 = vmatpush2.bf16.msra.mxu1 %v23414_v7  ;;  %16270 = vmatprep.subr.bf16.mxu0 %v23419_v62  ;;  %v23452_v7 = vld [vmem:[%s25051_s14 + $0x804] ss:$48 sps:$4 sm:$0xff]  }
 0x65b   : > { %16311 = vmatprep.subr.bf16.mxu1 %v23422_v3 }
 0x65d   : > { %16271 = vmatpush2.bf16.msra.mxu0 %v23417_v45 }
 0x65e   : > { %16312 = vmatpush2.bf16.msra.mxu1 %v23420_v47  ;;  %16272 = vmatprep.subr.bf16.mxu0 %v23425_v40  ;;  %v23447_v40 = vld [vmem:[%s25051_s14 + $0x200] ss:$48 sps:$4 sm:$0xff]  }
 0x65f   : > { %16313 = vmatprep.subr.bf16.mxu1 %v23428_v8  ;;  %v23450_v8 = vld [vmem:[%s25051_s14 + $0x800] ss:$48 sps:$4 sm:$0xff]  }
 0x661   : > { %16273 = vmatpush2.bf16.msra.mxu0 %v23423_v57 }
 0x662   : > { %16314 = vmatpush2.bf16.msra.mxu1 %v23426_v29  ;;  %16274 = vmatprep.subr.bf16.mxu0 %v23431_v39  ;;  %v23458_v39 = vld [vmem:[%s25051_s14 + $0x7a4] ss:$48 sps:$4 sm:$0xff]  }
 0x663   : > { %16315 = vmatprep.subr.bf16.mxu1 %v23434_v53  ;;  %v23453_v53 = vld [vmem:[%s25051_s14 + $0x1a0] ss:$48 sps:$4 sm:$0xff]  }
 0x665   : > { %16275 = vmatpush2.bf16.msra.mxu0 %v23429_v37  ;;  %v23456_v37 = vld [vmem:[%s25051_s14 + $0x7a0] ss:$48 sps:$4 sm:$0xff]  }
 0x666   : > { %16316 = vmatpush2.bf16.msra.mxu1 %v23432_v58  ;;  %16326 = vmatprep.subr.bf16.mxu0 %v23437_v56  ;;  %v23461_v58 = vld [vmem:[%s25051_s14 + $0x144] ss:$48 sps:$4 sm:$0xff]  }
 0x667   : > { %16367 = vmatprep.subr.bf16.mxu1 %v23440_v10  ;;  %v23464_v56 = vld [vmem:[%s25051_s14 + $0x744] ss:$48 sps:$4 sm:$0xff]   ;;  %v23459_v10 = vld [vmem:[%s25051_s14 + $0x140] ss:$48 sps:$4 sm:$0xff]  }
 0x668   : > { %v16032_v11 = vpop.f32.mrf.mxu0  ;;  %16277 = vmatmul.mubr.bf16.vlgmr.msra.gmra.mxu0 %v25619_v28 }
 0x669   : > { %v16073_v1 = vpop.f32.mrf.mxu1  ;;  %16318 = vmatmul.mubr.bf16.vlgmr.msra.gmra.mxu1 %v25629_v44  ;;  %v16033_v46 = vadd.f32 %v16032_v11, %v26905_v36  ;;  %16327 = vmatpush1.bf16.msra.mxu0 %v23435_v20  ;;  %v23462_v20 = vld [vmem:[%s25051_s14 + $0x740] ss:$48 sps:$4 sm:$0xff]  }
 0x66a   : > { %16368 = vmatpush1.bf16.msra.mxu1 %v23438_v32  ;;  %v16034_v25 = vpop.f32.mrf.mxu0  ;;  %16328 = vmatprep.subr.bf16.mxu0 %v23443_v48  ;;  %v23467_v32 = vld [vmem:[%s25051_s14 + $0xe4] ss:$48 sps:$4 sm:$0xff]   ;;  %v23468_v11 = vld [vmem:[%s25051_s14 + $0x6e0] ss:$48 sps:$4 sm:$0xff]  }
 0x66b   : > { %v16075_v52 = vpop.f32.mrf.mxu1  ;;  %16369 = vmatprep.subr.bf16.mxu1 %v23446_v51  ;;  %v26979_v62 = vadd.f32 %v16073_v1, %v16033_v46  ;;  %v16035_v3 = vadd.f32 %v16034_v25, %v26910_v33  ;;  %16358 = vmatprep.mubr.bf16.mxu0 %v25126_v60  ;;  %v23455_v33 = vld [vmem:[%s25051_s14 + $0x1a4] ss:$48 sps:$4 sm:$0xff]   ;;  %v23465_v51 = vld [vmem:[%s25051_s14 + $0xe0] ss:$48 sps:$4 sm:$0xff]  }
 0x66c   : > { %16399 = vmatprep.mubr.bf16.mxu1 %v25133_v0  ;;  %v16036_v36 = vpop.f32.mrf.mxu0  ;;  %v23470_v48 = vld [vmem:[%s25051_s14 + $0x6e4] ss:$48 sps:$4 sm:$0xff]  }
 0x66d   : > { %v16077_v45 = vpop.f32.mrf.mxu1  ;;  %v26984_v47 = vadd.f32 %v16075_v52, %v16035_v3  ;;  %16329 = vmatpush1.bf16.msra.mxu0 %v23441_v49  ;;  %v23473_v1 = vld [vmem:[%s25051_s14 + $0x84] ss:$48 sps:$4 sm:$0xff]   ;;  %v23471_v49 = vld [vmem:[%s25051_s14 + $0x80] ss:$48 sps:$4 sm:$0xff]  }
 0x66e   : > { %16370 = vmatpush1.bf16.msra.mxu1 %v23444_v14  ;;  %v16037_v57 = vpop.f32.mrf.mxu0  ;;  %16330 = vmatprep.subr.bf16.mxu0 %v23449_v5  ;;  %v23476_v46 = vld [vmem:[%s25051_s14 + $0x684] ss:$48 sps:$4 sm:$0xff]   ;;  %v23474_v14 = vld [vmem:[%s25051_s14 + $0x680] ss:$48 sps:$4 sm:$0xff]  }
 0x66f   : > { %v16078_v29 = vpop.f32.mrf.mxu1  ;;  %16371 = vmatprep.subr.bf16.mxu1 %v23452_v7  ;;  %v23479_v25 = vld [vmem:[%s25051_s14 + $0x24] ss:$48 sps:$4 sm:$0xff]   ;;  %v23477_v5 = vld [vmem:[%s25051_s14 + $0x20] ss:$48 sps:$4 sm:$0xff]  }
 0x670   : > { %v23482_v52 = vld [vmem:[%s25051_s14 + $0x624] ss:$48 sps:$4 sm:$0xff]   ;;  %v23480_v7 = vld [vmem:[%s25051_s14 + $0x620] ss:$48 sps:$4 sm:$0xff]  }
 0x671   : > { %16331 = vmatpush1.bf16.msra.mxu0 %v23447_v40  ;;  %v23485_v3 = vld [vmem:[%s25051_s14 + $0x5c4] ss:$48 sps:$4 sm:$0xff]   ;;  %v23483_v45 = vld [vmem:[%s25051_s14 + $0x5c0] ss:$48 sps:$4 sm:$0xff]  }
 0x672   : > { %16372 = vmatpush1.bf16.msra.mxu1 %v23450_v8  ;;  %16332 = vmatprep.subr.bf16.mxu0 %v23455_v33  ;;  %v23488_v36 = vld [vmem:[%s25051_s14 + $0xbc4] ss:$48 sps:$4 sm:$0xff]   ;;  %v23486_v40 = vld [vmem:[%s25051_s14 + $0xbc0] ss:$48 sps:$4 sm:$0xff]  }
 0x673   : > { %16373 = vmatprep.subr.bf16.mxu1 %v23458_v39  ;;  %v23491_v8 = vld [vmem:[%s25051_s14 + $0x564] ss:$48 sps:$4 sm:$0xff]   ;;  %v23489_v29 = vld [vmem:[%s25051_s14 + $0x560] ss:$48 sps:$4 sm:$0xff]  }
 0x674   : > { %v23494_v57 = vld [vmem:[%s25051_s14 + $0xb64] ss:$48 sps:$4 sm:$0xff]   ;;  %v23492_v33 = vld [vmem:[%s25051_s14 + $0xb60] ss:$48 sps:$4 sm:$0xff]  }
 0x675   : > { %16333 = vmatpush1.bf16.msra.mxu0 %v23453_v53  ;;  %v23497_v39 = vld [vmem:[%s25051_s14 + $0x504] ss:$48 sps:$4 sm:$0xff]  }
 0x676   : > { %16374 = vmatpush1.bf16.msra.mxu1 %v23456_v37  ;;  %16334 = vmatprep.subr.bf16.mxu0 %v23461_v58  ;;  %v23500_v53 = vld [vmem:[%s25051_s14 + $0xb04] ss:$48 sps:$4 sm:$0xff]   ;;  %v23495_v37 = vld [vmem:[%s25051_s14 + $0x500] ss:$48 sps:$4 sm:$0xff]  }
 0x677   : > { %16375 = vmatprep.subr.bf16.mxu1 %v23464_v56  ;;  %v23498_v58 = vld [vmem:[%s25051_s14 + $0xb00] ss:$48 sps:$4 sm:$0xff]   ;;  %v23503_v56 = vld [vmem:[%s25051_s14 + $0x4a4] ss:$48 sps:$4 sm:$0xff]  }
 0x679   : > { %16335 = vmatpush1.bf16.msra.mxu0 %v23459_v10  ;;  %v23506_v10 = vld [vmem:[%s25051_s14 + $0xaa4] ss:$48 sps:$4 sm:$0xff]  }
 0x67a   : > { %16376 = vmatpush1.bf16.msra.mxu1 %v23462_v20  ;;  %16336 = vmatprep.subr.bf16.mxu0 %v23467_v32  ;;  %v23501_v20 = vld [vmem:[%s25051_s14 + $0x4a0] ss:$48 sps:$4 sm:$0xff]  }
 0x67b   : > { %16377 = vmatprep.subr.bf16.mxu1 %v23470_v48  ;;  %v23504_v32 = vld [vmem:[%s25051_s14 + $0xaa0] ss:$48 sps:$4 sm:$0xff]   ;;  %v23509_v48 = vld [vmem:[%s25051_s14 + $0x444] ss:$48 sps:$4 sm:$0xff]  }
 0x67d   : > { %16337 = vmatpush1.bf16.msra.mxu0 %v23465_v51  ;;  %v23512_v51 = vld [vmem:[%s25051_s14 + $0xa44] ss:$48 sps:$4 sm:$0xff]  }
 0x67e   : > { %16378 = vmatpush1.bf16.msra.mxu1 %v23468_v11  ;;  %16338 = vmatprep.subr.bf16.mxu0 %v23473_v1  ;;  %v23507_v11 = vld [vmem:[%s25051_s14 + $0x440] ss:$48 sps:$4 sm:$0xff]  }
 0x67f   : > { %16379 = vmatprep.subr.bf16.mxu1 %v23476_v46  ;;  %v23510_v1 = vld [vmem:[%s25051_s14 + $0xa40] ss:$48 sps:$4 sm:$0xff]   ;;  %v23515_v46 = vld [vmem:[%s25051_s14 + $0x3e4] ss:$48 sps:$4 sm:$0xff]  }
 0x681   : > { %16339 = vmatpush1.bf16.msra.mxu0 %v23471_v49  ;;  %v23518_v49 = vld [vmem:[%s25051_s14 + $0x9e4] ss:$48 sps:$4 sm:$0xff]  }
 0x682   : > { %16380 = vmatpush1.bf16.msra.mxu1 %v23474_v14  ;;  %16340 = vmatprep.subr.bf16.mxu0 %v23479_v25  ;;  %v23513_v14 = vld [vmem:[%s25051_s14 + $0x3e0] ss:$48 sps:$4 sm:$0xff]  }
 0x683   : > { %16381 = vmatprep.subr.bf16.mxu1 %v23482_v52  ;;  %v23516_v25 = vld [vmem:[%s25051_s14 + $0x9e0] ss:$48 sps:$4 sm:$0xff]   ;;  %v23521_v52 = vld [vmem:[%s25051_s14 + $0x384] ss:$48 sps:$4 sm:$0xff]  }
 0x685   : > { %16341 = vmatpush1.bf16.msra.mxu0 %v23477_v5  ;;  %v23524_v5 = vld [vmem:[%s25051_s14 + $0x984] ss:$48 sps:$4 sm:$0xff]  }
 0x686   : > { %16382 = vmatpush1.bf16.msra.mxu1 %v23480_v7  ;;  %16342 = vmatprep.subr.bf16.mxu0 %v23485_v3  ;;  %v23519_v7 = vld [vmem:[%s25051_s14 + $0x380] ss:$48 sps:$4 sm:$0xff]  }
 0x687   : > { %16383 = vmatprep.subr.bf16.mxu1 %v23488_v36  ;;  %v23522_v3 = vld [vmem:[%s25051_s14 + $0x980] ss:$48 sps:$4 sm:$0xff]   ;;  %v23527_v36 = vld [vmem:[%s25051_s14 + $0x324] ss:$48 sps:$4 sm:$0xff]  }
 0x689   : > { %16343 = vmatpush2.bf16.msra.mxu0 %v23483_v45  ;;  %v23530_v45 = vld [vmem:[%s25051_s14 + $0x924] ss:$48 sps:$4 sm:$0xff]  }
 0x68a   : > { %16384 = vmatpush2.bf16.msra.mxu1 %v23486_v40  ;;  %16344 = vmatprep.subr.bf16.mxu0 %v23491_v8  ;;  %v23525_v40 = vld [vmem:[%s25051_s14 + $0x320] ss:$48 sps:$4 sm:$0xff]  }
 0x68b   : > { %16385 = vmatprep.subr.bf16.mxu1 %v23494_v57  ;;  %v23528_v8 = vld [vmem:[%s25051_s14 + $0x920] ss:$48 sps:$4 sm:$0xff]   ;;  %v23533_v57 = vld [vmem:[%s25051_s14 + $0xec4] ss:$48 sps:$4 sm:$0xff]  }
 0x68d   : > { %16345 = vmatpush2.bf16.msra.mxu0 %v23489_v29  ;;  %v23536_v29 = vld [vmem:[%s25051_s14 + $0x14c4] ss:$48 sps:$4 sm:$0xff]  }
 0x68e   : > { %16386 = vmatpush2.bf16.msra.mxu1 %v23492_v33  ;;  %16346 = vmatprep.subr.bf16.mxu0 %v23497_v39  ;;  %v23531_v33 = vld [vmem:[%s25051_s14 + $0xec0] ss:$48 sps:$4 sm:$0xff]  }
 0x68f   : > { %16387 = vmatprep.subr.bf16.mxu1 %v23500_v53  ;;  %v23534_v39 = vld [vmem:[%s25051_s14 + $0x14c0] ss:$48 sps:$4 sm:$0xff]   ;;  %v23539_v53 = vld [vmem:[%s25051_s14 + $0xe64] ss:$48 sps:$4 sm:$0xff]  }
 0x691   : > { %16347 = vmatpush2.bf16.msra.mxu0 %v23495_v37  ;;  %v23542_v37 = vld [vmem:[%s25051_s14 + $0x1464] ss:$48 sps:$4 sm:$0xff]  }
 0x692   : > { %16388 = vmatpush2.bf16.msra.mxu1 %v23498_v58  ;;  %16348 = vmatprep.subr.bf16.mxu0 %v23503_v56 }
 0x693   : > { %16389 = vmatprep.subr.bf16.mxu1 %v23506_v10 }
 0x695   : > { %16349 = vmatpush2.bf16.msra.mxu0 %v23501_v20  ;;  %v23537_v20 = vld [vmem:[%s25051_s14 + $0xe60] ss:$48 sps:$4 sm:$0xff]  }
 0x696   : > { %16390 = vmatpush2.bf16.msra.mxu1 %v23504_v32  ;;  %16350 = vmatprep.subr.bf16.mxu0 %v23509_v48  ;;  %v23540_v32 = vld [vmem:[%s25051_s14 + $0x1460] ss:$48 sps:$4 sm:$0xff]  }
 0x697   : > { %16391 = vmatprep.subr.bf16.mxu1 %v23512_v51 }
 0x699   : > { %16351 = vmatpush2.bf16.msra.mxu0 %v23507_v11  ;;  %v23545_v11 = vld [vmem:[%s25051_s14 + $0xe04] ss:$48 sps:$4 sm:$0xff]  }
 0x69a   : > { %16392 = vmatpush2.bf16.msra.mxu1 %v23510_v1  ;;  %16352 = vmatprep.subr.bf16.mxu0 %v23515_v46  ;;  %v23548_v1 = vld [vmem:[%s25051_s14 + $0x1404] ss:$48 sps:$4 sm:$0xff]  }
 0x69b   : > { %16393 = vmatprep.subr.bf16.mxu1 %v23518_v49 }
 0x69d   : > { %16353 = vmatpush2.bf16.msra.mxu0 %v23513_v14 }
 0x69e   : > { %16394 = vmatpush2.bf16.msra.mxu1 %v23516_v25  ;;  %16354 = vmatprep.subr.bf16.mxu0 %v23521_v52  ;;  %v23543_v52 = vld [vmem:[%s25051_s14 + $0xe00] ss:$48 sps:$4 sm:$0xff]  }
 0x69f   : > { %16395 = vmatprep.subr.bf16.mxu1 %v23524_v5  ;;  %v23546_v5 = vld [vmem:[%s25051_s14 + $0x1400] ss:$48 sps:$4 sm:$0xff]  }
 0x6a1   : > { %16355 = vmatpush2.bf16.msra.mxu0 %v23519_v7 }
 0x6a2   : > { %16396 = vmatpush2.bf16.msra.mxu1 %v23522_v3  ;;  %16356 = vmatprep.subr.bf16.mxu0 %v23527_v36  ;;  %v23554_v36 = vld [vmem:[%s25051_s14 + $0x13a4] ss:$48 sps:$4 sm:$0xff]  }
 0x6a3   : > { %16397 = vmatprep.subr.bf16.mxu1 %v23530_v45  ;;  %v23549_v45 = vld [vmem:[%s25051_s14 + $0xda0] ss:$48 sps:$4 sm:$0xff]  }
 0x6a5   : > { %16357 = vmatpush2.bf16.msra.mxu0 %v23525_v40  ;;  %v23552_v40 = vld [vmem:[%s25051_s14 + $0x13a0] ss:$48 sps:$4 sm:$0xff]  }
 0x6a6   : > { %16398 = vmatpush2.bf16.msra.mxu1 %v23528_v8  ;;  %16408 = vmatprep.subr.bf16.mxu0 %v23533_v57  ;;  %v23557_v8 = vld [vmem:[%s25051_s14 + $0xd44] ss:$48 sps:$4 sm:$0xff]  }
 0x6a7   : > { %16449 = vmatprep.subr.bf16.mxu1 %v23536_v29  ;;  %v23560_v57 = vld [vmem:[%s25051_s14 + $0x1344] ss:$48 sps:$4 sm:$0xff]   ;;  %v23555_v29 = vld [vmem:[%s25051_s14 + $0xd40] ss:$48 sps:$4 sm:$0xff]  }
 0x6a8   : > { %v16114_v58 = vpop.f32.mrf.mxu0  ;;  %16359 = vmatmul.mubr.bf16.vlgmr.msra.gmra.mxu0 %v25152_v13 }
 0x6a9   : > { %v16155_v56 = vpop.f32.mrf.mxu1  ;;  %16400 = vmatmul.mubr.bf16.vlgmr.msra.gmra.mxu1 %v25162_v18  ;;  %v16115_v10 = vadd.f32 %v16114_v58, %v26979_v62  ;;  %16409 = vmatpush1.bf16.msra.mxu0 %v23531_v33  ;;  %v23558_v33 = vld [vmem:[%s25051_s14 + $0x1340] ss:$48 sps:$4 sm:$0xff]  }
 0x6aa   : > { %16450 = vmatpush1.bf16.msra.mxu1 %v23534_v39  ;;  %v16116_v48 = vpop.f32.mrf.mxu0  ;;  %16410 = vmatprep.subr.bf16.mxu0 %v23539_v53  ;;  %v23563_v39 = vld [vmem:[%s25051_s14 + $0xce4] ss:$48 sps:$4 sm:$0xff]   ;;  %v23564_v58 = vld [vmem:[%s25051_s14 + $0x12e0] ss:$48 sps:$4 sm:$0xff]  }
 0x6ab   : > { %v16157_v51 = vpop.f32.mrf.mxu1  ;;  %16451 = vmatprep.subr.bf16.mxu1 %v23542_v37  ;;  %v27053_v46 = vadd.f32 %v16155_v56, %v16115_v10  ;;  %v16117_v49 = vadd.f32 %v16116_v48, %v26984_v47  ;;  %16440 = vmatprep.mubr.bf16.mxu0 %v25158_v17  ;;  %v23551_v47 = vld [vmem:[%s25051_s14 + $0xda4] ss:$48 sps:$4 sm:$0xff]   ;;  %v23561_v37 = vld [vmem:[%s25051_s14 + $0xce0] ss:$48 sps:$4 sm:$0xff]  }
 0x6ac   : > { %16481 = vmatprep.mubr.bf16.mxu1 %v25170_v23  ;;  %v16118_v62 = vpop.f32.mrf.mxu0  ;;  %v23566_v53 = vld [vmem:[%s25051_s14 + $0x12e4] ss:$48 sps:$4 sm:$0xff]  }
 0x6ad   : > { %v16159_v14 = vpop.f32.mrf.mxu1  ;;  %v27058_v25 = vadd.f32 %v16157_v51, %v16117_v49  ;;  %16411 = vmatpush1.bf16.msra.mxu0 %v23537_v20  ;;  %v23569_v56 = vld [vmem:[%s25051_s14 + $0xc84] ss:$48 sps:$4 sm:$0xff]   ;;  %v23567_v20 = vld [vmem:[%s25051_s14 + $0xc80] ss:$48 sps:$4 sm:$0xff]  }
 0x6ae   : > { %16452 = vmatpush1.bf16.msra.mxu1 %v23540_v32  ;;  %v16119_v7 = vpop.f32.mrf.mxu0  ;;  %16412 = vmatprep.subr.bf16.mxu0 %v23545_v11  ;;  %v23572_v10 = vld [vmem:[%s25051_s14 + $0x1284] ss:$48 sps:$4 sm:$0xff]   ;;  %v23570_v32 = vld [vmem:[%s25051_s14 + $0x1280] ss:$48 sps:$4 sm:$0xff]  }
 0x6af   : > { %v16160_v3 = vpop.f32.mrf.mxu1  ;;  %16453 = vmatprep.subr.bf16.mxu1 %v23548_v1  ;;  %v23575_v48 = vld [vmem:[%s25051_s14 + $0xc24] ss:$48 sps:$4 sm:$0xff]   ;;  %v23573_v11 = vld [vmem:[%s25051_s14 + $0xc20] ss:$48 sps:$4 sm:$0xff]  }
 0x6b0   : > { %v23578_v51 = vld [vmem:[%s25051_s14 + $0x1224] ss:$48 sps:$4 sm:$0xff]   ;;  %v23576_v1 = vld [vmem:[%s25051_s14 + $0x1220] ss:$48 sps:$4 sm:$0xff]  }
 0x6b1   : > { %16413 = vmatpush1.bf16.msra.mxu0 %v23543_v52  ;;  %v23581_v49 = vld [vmem:[%s25051_s14 + $0x11c4] ss:$48 sps:$4 sm:$0xff]   ;;  %v23579_v14 = vld [vmem:[%s25051_s14 + $0x11c0] ss:$48 sps:$4 sm:$0xff]  }
 0x6b2   : > { %16454 = vmatpush1.bf16.msra.mxu1 %v23546_v5  ;;  %16414 = vmatprep.subr.bf16.mxu0 %v23551_v47  ;;  %v23584_v62 = vld [vmem:[%s25051_s14 + $0x17c4] ss:$48 sps:$4 sm:$0xff]   ;;  %v23582_v52 = vld [vmem:[%s25051_s14 + $0x17c0] ss:$48 sps:$4 sm:$0xff]  }
 0x6b3   : > { %16455 = vmatprep.subr.bf16.mxu1 %v23554_v36  ;;  %v23587_v5 = vld [vmem:[%s25051_s14 + $0x1164] ss:$48 sps:$4 sm:$0xff]   ;;  %v23585_v3 = vld [vmem:[%s25051_s14 + $0x1160] ss:$48 sps:$4 sm:$0xff]  }
 0x6b4   : > { %v23590_v7 = vld [vmem:[%s25051_s14 + $0x1764] ss:$48 sps:$4 sm:$0xff]   ;;  %v23588_v47 = vld [vmem:[%s25051_s14 + $0x1760] ss:$48 sps:$4 sm:$0xff]  }
 0x6b5   : > { %16415 = vmatpush1.bf16.msra.mxu0 %v23549_v45  ;;  %v23593_v36 = vld [vmem:[%s25051_s14 + $0x1104] ss:$48 sps:$4 sm:$0xff]  }
 0x6b6   : > { %16456 = vmatpush1.bf16.msra.mxu1 %v23552_v40  ;;  %16416 = vmatprep.subr.bf16.mxu0 %v23557_v8  ;;  %v23596_v45 = vld [vmem:[%s25051_s14 + $0x1704] ss:$48 sps:$4 sm:$0xff]   ;;  %v23591_v40 = vld [vmem:[%s25051_s14 + $0x1100] ss:$48 sps:$4 sm:$0xff]  }
 0x6b7   : > { %16457 = vmatprep.subr.bf16.mxu1 %v23560_v57  ;;  %v23594_v8 = vld [vmem:[%s25051_s14 + $0x1700] ss:$48 sps:$4 sm:$0xff]   ;;  %v23599_v57 = vld [vmem:[%s25051_s14 + $0x10a4] ss:$48 sps:$4 sm:$0xff]  }
 0x6b9   : > { %16417 = vmatpush1.bf16.msra.mxu0 %v23555_v29  ;;  %v23602_v29 = vld [vmem:[%s25051_s14 + $0x16a4] ss:$48 sps:$4 sm:$0xff]  }
 0x6ba   : > { %16458 = vmatpush1.bf16.msra.mxu1 %v23558_v33  ;;  %16418 = vmatprep.subr.bf16.mxu0 %v23563_v39  ;;  %v23597_v33 = vld [vmem:[%s25051_s14 + $0x10a0] ss:$48 sps:$4 sm:$0xff]  }
 0x6bb   : > { %16459 = vmatprep.subr.bf16.mxu1 %v23566_v53  ;;  %v23600_v39 = vld [vmem:[%s25051_s14 + $0x16a0] ss:$48 sps:$4 sm:$0xff]   ;;  %v23605_v53 = vld [vmem:[%s25051_s14 + $0x1044] ss:$48 sps:$4 sm:$0xff]  }
 0x6bd   : > { %16419 = vmatpush1.bf16.msra.mxu0 %v23561_v37  ;;  %v23608_v37 = vld [vmem:[%s25051_s14 + $0x1644] ss:$48 sps:$4 sm:$0xff]  }
 0x6be   : > { %16460 = vmatpush1.bf16.msra.mxu1 %v23564_v58  ;;  %16420 = vmatprep.subr.bf16.mxu0 %v23569_v56  ;;  %v23603_v58 = vld [vmem:[%s25051_s14 + $0x1040] ss:$48 sps:$4 sm:$0xff]  }
 0x6bf   : > { %16461 = vmatprep.subr.bf16.mxu1 %v23572_v10  ;;  %v23606_v56 = vld [vmem:[%s25051_s14 + $0x1640] ss:$48 sps:$4 sm:$0xff]   ;;  %v23611_v10 = vld [vmem:[%s25051_s14 + $0xfe4] ss:$48 sps:$4 sm:$0xff]  }
 0x6c1   : > { %16421 = vmatpush1.bf16.msra.mxu0 %v23567_v20  ;;  %v23614_v20 = vld [vmem:[%s25051_s14 + $0x15e4] ss:$48 sps:$4 sm:$0xff]  }
 0x6c2   : > { %16462 = vmatpush1.bf16.msra.mxu1 %v23570_v32  ;;  %16422 = vmatprep.subr.bf16.mxu0 %v23575_v48  ;;  %v23609_v32 = vld [vmem:[%s25051_s14 + $0xfe0] ss:$48 sps:$4 sm:$0xff]  }
 0x6c3   : > { %16463 = vmatprep.subr.bf16.mxu1 %v23578_v51  ;;  %v23612_v48 = vld [vmem:[%s25051_s14 + $0x15e0] ss:$48 sps:$4 sm:$0xff]   ;;  %v23617_v51 = vld [vmem:[%s25051_s14 + $0xf84] ss:$48 sps:$4 sm:$0xff]  }
 0x6c5   : > { %16423 = vmatpush1.bf16.msra.mxu0 %v23573_v11  ;;  %v23620_v11 = vld [vmem:[%s25051_s14 + $0x1584] ss:$48 sps:$4 sm:$0xff]  }
 0x6c6   : > { %16464 = vmatpush1.bf16.msra.mxu1 %v23576_v1  ;;  %16424 = vmatprep.subr.bf16.mxu0 %v23581_v49  ;;  %v23615_v1 = vld [vmem:[%s25051_s14 + $0xf80] ss:$48 sps:$4 sm:$0xff]  }
 0x6c7   : > { %16465 = vmatprep.subr.bf16.mxu1 %v23584_v62  ;;  %v23618_v49 = vld [vmem:[%s25051_s14 + $0x1580] ss:$48 sps:$4 sm:$0xff]   ;;  %v23623_v62 = vld [vmem:[%s25051_s14 + $0xf24] ss:$48 sps:$4 sm:$0xff]  }
 0x6c9   : > { %16425 = vmatpush2.bf16.msra.mxu0 %v23579_v14  ;;  %v23626_v14 = vld [vmem:[%s25051_s14 + $0x1524] ss:$48 sps:$4 sm:$0xff]  }
 0x6ca   : > { %16466 = vmatpush2.bf16.msra.mxu1 %v23582_v52  ;;  %16426 = vmatprep.subr.bf16.mxu0 %v23587_v5  ;;  %v23621_v52 = vld [vmem:[%s25051_s14 + $0xf20] ss:$48 sps:$4 sm:$0xff]  }
 0x6cb   : > { %16467 = vmatprep.subr.bf16.mxu1 %v23590_v7  ;;  %v23624_v5 = vld [vmem:[%s25051_s14 + $0x1520] ss:$48 sps:$4 sm:$0xff]   ;;  %v23629_v7 = vld [vmem:[%s25051_s14 + $0x1ac4] ss:$48 sps:$4 sm:$0xff]  }
 0x6cd   : > { %16427 = vmatpush2.bf16.msra.mxu0 %v23585_v3  ;;  %v23632_v3 = vld [vmem:[%s25051_s14 + $0x20c4] ss:$48 sps:$4 sm:$0xff]  }
 0x6ce   : > { %16468 = vmatpush2.bf16.msra.mxu1 %v23588_v47  ;;  %16428 = vmatprep.subr.bf16.mxu0 %v23593_v36  ;;  %v23627_v47 = vld [vmem:[%s25051_s14 + $0x1ac0] ss:$48 sps:$4 sm:$0xff]  }
 0x6cf   : > { %16469 = vmatprep.subr.bf16.mxu1 %v23596_v45  ;;  %v23630_v36 = vld [vmem:[%s25051_s14 + $0x20c0] ss:$48 sps:$4 sm:$0xff]   ;;  %v23635_v45 = vld [vmem:[%s25051_s14 + $0x1a64] ss:$48 sps:$4 sm:$0xff]  }
 0x6d1   : > { %16429 = vmatpush2.bf16.msra.mxu0 %v23591_v40  ;;  %v23638_v40 = vld [vmem:[%s25051_s14 + $0x2064] ss:$48 sps:$4 sm:$0xff]  }
 0x6d2   : > { %16470 = vmatpush2.bf16.msra.mxu1 %v23594_v8  ;;  %16430 = vmatprep.subr.bf16.mxu0 %v23599_v57 }
 0x6d3   : > { %16471 = vmatprep.subr.bf16.mxu1 %v23602_v29 }
 0x6d5   : > { %16431 = vmatpush2.bf16.msra.mxu0 %v23597_v33  ;;  %v23633_v33 = vld [vmem:[%s25051_s14 + $0x1a60] ss:$48 sps:$4 sm:$0xff]  }
 0x6d6   : > { %16472 = vmatpush2.bf16.msra.mxu1 %v23600_v39  ;;  %16432 = vmatprep.subr.bf16.mxu0 %v23605_v53  ;;  %v23636_v39 = vld [vmem:[%s25051_s14 + $0x2060] ss:$48 sps:$4 sm:$0xff]  }
 0x6d7   : > { %16473 = vmatprep.subr.bf16.mxu1 %v23608_v37 }
 0x6d9   : > { %16433 = vmatpush2.bf16.msra.mxu0 %v23603_v58  ;;  %v23641_v58 = vld [vmem:[%s25051_s14 + $0x1a04] ss:$48 sps:$4 sm:$0xff]  }
 0x6da   : > { %16474 = vmatpush2.bf16.msra.mxu1 %v23606_v56  ;;  %16434 = vmatprep.subr.bf16.mxu0 %v23611_v10  ;;  %v23644_v56 = vld [vmem:[%s25051_s14 + $0x2004] ss:$48 sps:$4 sm:$0xff]  }
 0x6db   : > { %16475 = vmatprep.subr.bf16.mxu1 %v23614_v20 }
 0x6dd   : > { %16435 = vmatpush2.bf16.msra.mxu0 %v23609_v32 }
 0x6de   : > { %16476 = vmatpush2.bf16.msra.mxu1 %v23612_v48  ;;  %16436 = vmatprep.subr.bf16.mxu0 %v23617_v51  ;;  %v23639_v51 = vld [vmem:[%s25051_s14 + $0x1a00] ss:$48 sps:$4 sm:$0xff]  }
 0x6df   : > { %16477 = vmatprep.subr.bf16.mxu1 %v23620_v11  ;;  %v23642_v11 = vld [vmem:[%s25051_s14 + $0x2000] ss:$48 sps:$4 sm:$0xff]  }
 0x6e1   : > { %16437 = vmatpush2.bf16.msra.mxu0 %v23615_v1 }
 0x6e2   : > { %16478 = vmatpush2.bf16.msra.mxu1 %v23618_v49  ;;  %16438 = vmatprep.subr.bf16.mxu0 %v23623_v62  ;;  %v23650_v62 = vld [vmem:[%s25051_s14 + $0x1fa4] ss:$48 sps:$4 sm:$0xff]  }
 0x6e3   : > { %16479 = vmatprep.subr.bf16.mxu1 %v23626_v14  ;;  %v23645_v14 = vld [vmem:[%s25051_s14 + $0x19a0] ss:$48 sps:$4 sm:$0xff]  }
 0x6e5   : > { %16439 = vmatpush2.bf16.msra.mxu0 %v23621_v52  ;;  %v23648_v52 = vld [vmem:[%s25051_s14 + $0x1fa0] ss:$48 sps:$4 sm:$0xff]  }
 0x6e6   : > { %16480 = vmatpush2.bf16.msra.mxu1 %v23624_v5  ;;  %16490 = vmatprep.subr.bf16.mxu0 %v23629_v7  ;;  %v23653_v5 = vld [vmem:[%s25051_s14 + $0x1944] ss:$48 sps:$4 sm:$0xff]  }
 0x6e7   : > { %16531 = vmatprep.subr.bf16.mxu1 %v23632_v3  ;;  %v23656_v7 = vld [vmem:[%s25051_s14 + $0x1f44] ss:$48 sps:$4 sm:$0xff]   ;;  %v23651_v3 = vld [vmem:[%s25051_s14 + $0x1940] ss:$48 sps:$4 sm:$0xff]  }
 0x6e8   : > { %v16196_v8 = vpop.f32.mrf.mxu0  ;;  %16441 = vmatmul.mubr.bf16.vlgmr.msra.gmra.mxu0 %v25235_v26 }
 0x6e9   : > { %v16237_v57 = vpop.f32.mrf.mxu1  ;;  %16482 = vmatmul.mubr.bf16.vlgmr.msra.gmra.mxu1 %v25242_v30  ;;  %v16197_v29 = vadd.f32 %v16196_v8, %v27053_v46  ;;  %16491 = vmatpush1.bf16.msra.mxu0 %v23627_v47  ;;  %v23654_v47 = vld [vmem:[%s25051_s14 + $0x1f40] ss:$48 sps:$4 sm:$0xff]  }
 0x6ea   : > { %16532 = vmatpush1.bf16.msra.mxu1 %v23630_v36  ;;  %v16198_v53 = vpop.f32.mrf.mxu0  ;;  %16492 = vmatprep.subr.bf16.mxu0 %v23635_v45  ;;  %v23659_v36 = vld [vmem:[%s25051_s14 + $0x18e4] ss:$48 sps:$4 sm:$0xff]   ;;  %v23660_v8 = vld [vmem:[%s25051_s14 + $0x1ee0] ss:$48 sps:$4 sm:$0xff]  }
 0x6eb   : > { %v16239_v37 = vpop.f32.mrf.mxu1  ;;  %16533 = vmatprep.subr.bf16.mxu1 %v23638_v40  ;;  %v27127_v10 = vadd.f32 %v16237_v57, %v16197_v29  ;;  %v16199_v20 = vadd.f32 %v16198_v53, %v27058_v25  ;;  %16522 = vmatprep.mubr.bf16.mxu0 %v25266_v41  ;;  %v23647_v25 = vld [vmem:[%s25051_s14 + $0x19a4] ss:$48 sps:$4 sm:$0xff]   ;;  %v23657_v40 = vld [vmem:[%s25051_s14 + $0x18e0] ss:$48 sps:$4 sm:$0xff]  }
 0x6ec   : > { %16563 = vmatprep.mubr.bf16.mxu1 %v25271_v43  ;;  %v16200_v46 = vpop.f32.mrf.mxu0  ;;  %v23662_v45 = vld [vmem:[%s25051_s14 + $0x1ee4] ss:$48 sps:$4 sm:$0xff]  }
 0x6ed   : > { %v16241_v32 = vpop.f32.mrf.mxu1  ;;  %v27132_v48 = vadd.f32 %v16239_v37, %v16199_v20  ;;  %16493 = vmatpush1.bf16.msra.mxu0 %v23633_v33  ;;  %v23665_v57 = vld [vmem:[%s25051_s14 + $0x1884] ss:$48 sps:$4 sm:$0xff]   ;;  %v23663_v33 = vld [vmem:[%s25051_s14 + $0x1880] ss:$48 sps:$4 sm:$0xff]  }
 0x6ee   : > { %16534 = vmatpush1.bf16.msra.mxu1 %v23636_v39  ;;  %v16201_v1 = vpop.f32.mrf.mxu0  ;;  %16494 = vmatprep.subr.bf16.mxu0 %v23641_v58  ;;  %v23668_v29 = vld [vmem:[%s25051_s14 + $0x1e84] ss:$48 sps:$4 sm:$0xff]   ;;  %v23666_v39 = vld [vmem:[%s25051_s14 + $0x1e80] ss:$48 sps:$4 sm:$0xff]  }
 0x6ef   : > { %v16242_v49 = vpop.f32.mrf.mxu1  ;;  %16535 = vmatprep.subr.bf16.mxu1 %v23644_v56  ;;  %v23671_v53 = vld [vmem:[%s25051_s14 + $0x1824] ss:$48 sps:$4 sm:$0xff]   ;;  %v23669_v58 = vld [vmem:[%s25051_s14 + $0x1820] ss:$48 sps:$4 sm:$0xff]  }
 0x6f0   : > { %v23674_v37 = vld [vmem:[%s25051_s14 + $0x1e24] ss:$48 sps:$4 sm:$0xff]   ;;  %v23672_v56 = vld [vmem:[%s25051_s14 + $0x1e20] ss:$48 sps:$4 sm:$0xff]  }
 0x6f1   : > { %16495 = vmatpush1.bf16.msra.mxu0 %v23639_v51  ;;  %v23677_v20 = vld [vmem:[%s25051_s14 + $0x1dc4] ss:$48 sps:$4 sm:$0xff]   ;;  %v23675_v32 = vld [vmem:[%s25051_s14 + $0x1dc0] ss:$48 sps:$4 sm:$0xff]  }
 0x6f2   : > { %16536 = vmatpush1.bf16.msra.mxu1 %v23642_v11  ;;  %16496 = vmatprep.subr.bf16.mxu0 %v23647_v25  ;;  %v23680_v46 = vld [vmem:[%s25051_s14 + $0x23c4] ss:$48 sps:$4 sm:$0xff]   ;;  %v23678_v51 = vld [vmem:[%s25051_s14 + $0x23c0] ss:$48 sps:$4 sm:$0xff]  }
 0x6f3   : > { %16537 = vmatprep.subr.bf16.mxu1 %v23650_v62  ;;  %v23683_v11 = vld [vmem:[%s25051_s14 + $0x1d64] ss:$48 sps:$4 sm:$0xff]   ;;  %v23681_v49 = vld [vmem:[%s25051_s14 + $0x1d60] ss:$48 sps:$4 sm:$0xff]  }
 0x6f4   : > { %v23686_v1 = vld [vmem:[%s25051_s14 + $0x2364] ss:$48 sps:$4 sm:$0xff]   ;;  %v23684_v25 = vld [vmem:[%s25051_s14 + $0x2360] ss:$48 sps:$4 sm:$0xff]  }
 0x6f5   : > { %16497 = vmatpush1.bf16.msra.mxu0 %v23645_v14  ;;  %v23689_v62 = vld [vmem:[%s25051_s14 + $0x1d04] ss:$48 sps:$4 sm:$0xff]  }
 0x6f6   : > { %16538 = vmatpush1.bf16.msra.mxu1 %v23648_v52  ;;  %16498 = vmatprep.subr.bf16.mxu0 %v23653_v5  ;;  %v23692_v14 = vld [vmem:[%s25051_s14 + $0x2304] ss:$48 sps:$4 sm:$0xff]   ;;  %v23687_v52 = vld [vmem:[%s25051_s14 + $0x1d00] ss:$48 sps:$4 sm:$0xff]  }
 0x6f7   : > { %16539 = vmatprep.subr.bf16.mxu1 %v23656_v7  ;;  %v23690_v5 = vld [vmem:[%s25051_s14 + $0x2300] ss:$48 sps:$4 sm:$0xff]   ;;  %v23695_v7 = vld [vmem:[%s25051_s14 + $0x1ca4] ss:$48 sps:$4 sm:$0xff]  }
 0x6f9   : > { %16499 = vmatpush1.bf16.msra.mxu0 %v23651_v3  ;;  %v23698_v3 = vld [vmem:[%s25051_s14 + $0x22a4] ss:$48 sps:$4 sm:$0xff]  }
 0x6fa   : > { %16540 = vmatpush1.bf16.msra.mxu1 %v23654_v47  ;;  %16500 = vmatprep.subr.bf16.mxu0 %v23659_v36  ;;  %v23693_v47 = vld [vmem:[%s25051_s14 + $0x1ca0] ss:$48 sps:$4 sm:$0xff]  }
 0x6fb   : > { %16541 = vmatprep.subr.bf16.mxu1 %v23662_v45  ;;  %v23696_v36 = vld [vmem:[%s25051_s14 + $0x22a0] ss:$48 sps:$4 sm:$0xff]   ;;  %v23701_v45 = vld [vmem:[%s25051_s14 + $0x1c44] ss:$48 sps:$4 sm:$0xff]  }
 0x6fd   : > { %16501 = vmatpush1.bf16.msra.mxu0 %v23657_v40  ;;  %v23704_v40 = vld [vmem:[%s25051_s14 + $0x2244] ss:$48 sps:$4 sm:$0xff]  }
 0x6fe   : > { %16542 = vmatpush1.bf16.msra.mxu1 %v23660_v8  ;;  %16502 = vmatprep.subr.bf16.mxu0 %v23665_v57  ;;  %v23699_v8 = vld [vmem:[%s25051_s14 + $0x1c40] ss:$48 sps:$4 sm:$0xff]  }
 0x6ff   : > { %16543 = vmatprep.subr.bf16.mxu1 %v23668_v29  ;;  %v23702_v57 = vld [vmem:[%s25051_s14 + $0x2240] ss:$48 sps:$4 sm:$0xff]   ;;  %v23707_v29 = vld [vmem:[%s25051_s14 + $0x1be4] ss:$48 sps:$4 sm:$0xff]  }
 0x701   : > { %16503 = vmatpush1.bf16.msra.mxu0 %v23663_v33  ;;  %v23710_v33 = vld [vmem:[%s25051_s14 + $0x21e4] ss:$48 sps:$4 sm:$0xff]  }
 0x702   : > { %16544 = vmatpush1.bf16.msra.mxu1 %v23666_v39  ;;  %16504 = vmatprep.subr.bf16.mxu0 %v23671_v53  ;;  %v23705_v39 = vld [vmem:[%s25051_s14 + $0x1be0] ss:$48 sps:$4 sm:$0xff]  }
 0x703   : > { %16545 = vmatprep.subr.bf16.mxu1 %v23674_v37  ;;  %v23708_v53 = vld [vmem:[%s25051_s14 + $0x21e0] ss:$48 sps:$4 sm:$0xff]   ;;  %v23713_v37 = vld [vmem:[%s25051_s14 + $0x1b84] ss:$48 sps:$4 sm:$0xff]  }
 0x705   : > { %16505 = vmatpush1.bf16.msra.mxu0 %v23669_v58  ;;  %v23716_v58 = vld [vmem:[%s25051_s14 + $0x2184] ss:$48 sps:$4 sm:$0xff]  }
 0x706   : > { %16546 = vmatpush1.bf16.msra.mxu1 %v23672_v56  ;;  %16506 = vmatprep.subr.bf16.mxu0 %v23677_v20  ;;  %v23711_v56 = vld [vmem:[%s25051_s14 + $0x1b80] ss:$48 sps:$4 sm:$0xff]  }
 0x707   : > { %16547 = vmatprep.subr.bf16.mxu1 %v23680_v46  ;;  %v23714_v20 = vld [vmem:[%s25051_s14 + $0x2180] ss:$48 sps:$4 sm:$0xff]   ;;  %v23719_v46 = vld [vmem:[%s25051_s14 + $0x1b24] ss:$48 sps:$4 sm:$0xff]  }
 0x709   : > { %16507 = vmatpush2.bf16.msra.mxu0 %v23675_v32  ;;  %v23722_v32 = vld [vmem:[%s25051_s14 + $0x2124] ss:$48 sps:$4 sm:$0xff]  }
 0x70a   : > { %16548 = vmatpush2.bf16.msra.mxu1 %v23678_v51  ;;  %16508 = vmatprep.subr.bf16.mxu0 %v23683_v11  ;;  %v23717_v51 = vld [vmem:[%s25051_s14 + $0x1b20] ss:$48 sps:$4 sm:$0xff]  }
 0x70b   : > { %16549 = vmatprep.subr.bf16.mxu1 %v23686_v1  ;;  %v23720_v11 = vld [vmem:[%s25051_s14 + $0x2120] ss:$48 sps:$4 sm:$0xff]   ;;  %v23725_v1 = vld [vmem:[%s25051_s14 + $0x26c4] ss:$48 sps:$4 sm:$0xff]  }
 0x70d   : > { %16509 = vmatpush2.bf16.msra.mxu0 %v23681_v49  ;;  %v23728_v49 = vld [vmem:[%s25051_s14 + $0x2cc4] ss:$48 sps:$4 sm:$0xff]  }
 0x70e   : > { %16550 = vmatpush2.bf16.msra.mxu1 %v23684_v25  ;;  %16510 = vmatprep.subr.bf16.mxu0 %v23689_v62  ;;  %v23723_v25 = vld [vmem:[%s25051_s14 + $0x26c0] ss:$48 sps:$4 sm:$0xff]  }
 0x70f   : > { %16551 = vmatprep.subr.bf16.mxu1 %v23692_v14  ;;  %v23726_v62 = vld [vmem:[%s25051_s14 + $0x2cc0] ss:$48 sps:$4 sm:$0xff]   ;;  %v23731_v14 = vld [vmem:[%s25051_s14 + $0x2664] ss:$48 sps:$4 sm:$0xff]  }
 0x711   : > { %16511 = vmatpush2.bf16.msra.mxu0 %v23687_v52  ;;  %v23734_v52 = vld [vmem:[%s25051_s14 + $0x2c64] ss:$48 sps:$4 sm:$0xff]  }
 0x712   : > { %16552 = vmatpush2.bf16.msra.mxu1 %v23690_v5  ;;  %16512 = vmatprep.subr.bf16.mxu0 %v23695_v7 }
 0x713   : > { %16553 = vmatprep.subr.bf16.mxu1 %v23698_v3 }
 0x715   : > { %16513 = vmatpush2.bf16.msra.mxu0 %v23693_v47  ;;  %v23729_v47 = vld [vmem:[%s25051_s14 + $0x2660] ss:$48 sps:$4 sm:$0xff]  }
 0x716   : > { %16554 = vmatpush2.bf16.msra.mxu1 %v23696_v36  ;;  %16514 = vmatprep.subr.bf16.mxu0 %v23701_v45  ;;  %v23732_v36 = vld [vmem:[%s25051_s14 + $0x2c60] ss:$48 sps:$4 sm:$0xff]  }
 0x717   : > { %16555 = vmatprep.subr.bf16.mxu1 %v23704_v40 }
 0x719   : > { %16515 = vmatpush2.bf16.msra.mxu0 %v23699_v8  ;;  %v23737_v8 = vld [vmem:[%s25051_s14 + $0x2604] ss:$48 sps:$4 sm:$0xff]  }
 0x71a   : > { %16556 = vmatpush2.bf16.msra.mxu1 %v23702_v57  ;;  %16516 = vmatprep.subr.bf16.mxu0 %v23707_v29  ;;  %v23740_v57 = vld [vmem:[%s25051_s14 + $0x2c04] ss:$48 sps:$4 sm:$0xff]  }
 0x71b   : > { %16557 = vmatprep.subr.bf16.mxu1 %v23710_v33 }
 0x71d   : > { %16517 = vmatpush2.bf16.msra.mxu0 %v23705_v39 }
 0x71e   : > { %16558 = vmatpush2.bf16.msra.mxu1 %v23708_v53  ;;  %16518 = vmatprep.subr.bf16.mxu0 %v23713_v37  ;;  %v23735_v37 = vld [vmem:[%s25051_s14 + $0x2600] ss:$48 sps:$4 sm:$0xff]  }
 0x71f   : > { %16559 = vmatprep.subr.bf16.mxu1 %v23716_v58  ;;  %v23738_v58 = vld [vmem:[%s25051_s14 + $0x2c00] ss:$48 sps:$4 sm:$0xff]  }
 0x721   : > { %16519 = vmatpush2.bf16.msra.mxu0 %v23711_v56 }
 0x722   : > { %16560 = vmatpush2.bf16.msra.mxu1 %v23714_v20  ;;  %16520 = vmatprep.subr.bf16.mxu0 %v23719_v46  ;;  %v23746_v46 = vld [vmem:[%s25051_s14 + $0x2ba4] ss:$48 sps:$4 sm:$0xff]  }
 0x723   : > { %16561 = vmatprep.subr.bf16.mxu1 %v23722_v32  ;;  %v23741_v32 = vld [vmem:[%s25051_s14 + $0x25a0] ss:$48 sps:$4 sm:$0xff]  }
 0x725   : > { %16521 = vmatpush2.bf16.msra.mxu0 %v23717_v51  ;;  %v23744_v51 = vld [vmem:[%s25051_s14 + $0x2ba0] ss:$48 sps:$4 sm:$0xff]  }
 0x726   : > { %16562 = vmatpush2.bf16.msra.mxu1 %v23720_v11  ;;  %16572 = vmatprep.subr.bf16.mxu0 %v23725_v1  ;;  %v23749_v11 = vld [vmem:[%s25051_s14 + $0x2544] ss:$48 sps:$4 sm:$0xff]  }
 0x727   : > { %16613 = vmatprep.subr.bf16.mxu1 %v23728_v49  ;;  %v23752_v1 = vld [vmem:[%s25051_s14 + $0x2b44] ss:$48 sps:$4 sm:$0xff]   ;;  %v23747_v49 = vld [vmem:[%s25051_s14 + $0x2540] ss:$48 sps:$4 sm:$0xff]  }
 0x728   : > { %v16278_v5 = vpop.f32.mrf.mxu0  ;;  %16523 = vmatmul.mubr.bf16.vlgmr.msra.gmra.mxu0 %v25336_v50 }
 0x729   : > { %v16319_v7 = vpop.f32.mrf.mxu1  ;;  %16564 = vmatmul.mubr.bf16.vlgmr.msra.gmra.mxu1 %v25346_v55  ;;  %v16279_v3 = vadd.f32 %v16278_v5, %v27127_v10  ;;  %16573 = vmatpush1.bf16.msra.mxu0 %v23723_v25  ;;  %v23750_v25 = vld [vmem:[%s25051_s14 + $0x2b40] ss:$48 sps:$4 sm:$0xff]  }
 0x72a   : > { %16614 = vmatpush1.bf16.msra.mxu1 %v23726_v62  ;;  %v16280_v45 = vpop.f32.mrf.mxu0  ;;  %16574 = vmatprep.subr.bf16.mxu0 %v23731_v14  ;;  %v23755_v62 = vld [vmem:[%s25051_s14 + $0x24e4] ss:$48 sps:$4 sm:$0xff]   ;;  %v23756_v5 = vld [vmem:[%s25051_s14 + $0x2ae0] ss:$48 sps:$4 sm:$0xff]  }
 0x72b   : > { %v16321_v40 = vpop.f32.mrf.mxu1  ;;  %16615 = vmatprep.subr.bf16.mxu1 %v23734_v52  ;;  %v27201_v29 = vadd.f32 %v16319_v7, %v16279_v3  ;;  %v16281_v33 = vadd.f32 %v16280_v45, %v27132_v48  ;;  %16604 = vmatprep.mubr.bf16.mxu0 %v25342_v54  ;;  %v23743_v48 = vld [vmem:[%s25051_s14 + $0x25a4] ss:$48 sps:$4 sm:$0xff]   ;;  %v23753_v52 = vld [vmem:[%s25051_s14 + $0x24e0] ss:$48 sps:$4 sm:$0xff]  }
 0x72c   : > { %16645 = vmatprep.mubr.bf16.mxu1 %v25354_v59  ;;  %v16282_v10 = vpop.f32.mrf.mxu0  ;;  %v23758_v14 = vld [vmem:[%s25051_s14 + $0x2ae4] ss:$48 sps:$4 sm:$0xff]  }
 0x72d   : > { %v16323_v39 = vpop.f32.mrf.mxu1  ;;  %v27206_v53 = vadd.f32 %v16321_v40, %v16281_v33  ;;  %16575 = vmatpush1.bf16.msra.mxu0 %v23729_v47  ;;  %v23761_v7 = vld [vmem:[%s25051_s14 + $0x2484] ss:$48 sps:$4 sm:$0xff]   ;;  %v23759_v47 = vld [vmem:[%s25051_s14 + $0x2480] ss:$48 sps:$4 sm:$0xff]  }
 0x72e   : > { %16616 = vmatpush1.bf16.msra.mxu1 %v23732_v36  ;;  %v16283_v56 = vpop.f32.mrf.mxu0  ;;  %16576 = vmatprep.subr.bf16.mxu0 %v23737_v8  ;;  %v23764_v3 = vld [vmem:[%s25051_s14 + $0x2a84] ss:$48 sps:$4 sm:$0xff]   ;;  %v23762_v36 = vld [vmem:[%s25051_s14 + $0x2a80] ss:$48 sps:$4 sm:$0xff]  }
 0x72f   : > { %v16324_v20 = vpop.f32.mrf.mxu1  ;;  %16617 = vmatprep.subr.bf16.mxu1 %v23740_v57  ;;  %v23767_v45 = vld [vmem:[%s25051_s14 + $0x2424] ss:$48 sps:$4 sm:$0xff]   ;;  %v23765_v8 = vld [vmem:[%s25051_s14 + $0x2420] ss:$48 sps:$4 sm:$0xff]  }
 0x730   : > { %v23770_v40 = vld [vmem:[%s25051_s14 + $0x2a24] ss:$48 sps:$4 sm:$0xff]   ;;  %v23768_v57 = vld [vmem:[%s25051_s14 + $0x2a20] ss:$48 sps:$4 sm:$0xff]  }
 0x731   : > { %16577 = vmatpush1.bf16.msra.mxu0 %v23735_v37  ;;  %v23773_v33 = vld [vmem:[%s25051_s14 + $0x29c4] ss:$48 sps:$4 sm:$0xff]   ;;  %v23771_v39 = vld [vmem:[%s25051_s14 + $0x29c0] ss:$48 sps:$4 sm:$0xff]  }
 0x732   : > { %16618 = vmatpush1.bf16.msra.mxu1 %v23738_v58  ;;  %16578 = vmatprep.subr.bf16.mxu0 %v23743_v48  ;;  %v23776_v10 = vld [vmem:[%s25051_s14 + $0x2fc4] ss:$48 sps:$4 sm:$0xff]   ;;  %v23774_v37 = vld [vmem:[%s25051_s14 + $0x2fc0] ss:$48 sps:$4 sm:$0xff]  }
 0x733   : > { %16619 = vmatprep.subr.bf16.mxu1 %v23746_v46  ;;  %v23779_v58 = vld [vmem:[%s25051_s14 + $0x2964] ss:$48 sps:$4 sm:$0xff]   ;;  %v23777_v20 = vld [vmem:[%s25051_s14 + $0x2960] ss:$48 sps:$4 sm:$0xff]  }
 0x734   : > { %v23782_v56 = vld [vmem:[%s25051_s14 + $0x2f64] ss:$48 sps:$4 sm:$0xff]   ;;  %v23780_v48 = vld [vmem:[%s25051_s14 + $0x2f60] ss:$48 sps:$4 sm:$0xff]  }
 0x735   : > { %16579 = vmatpush1.bf16.msra.mxu0 %v23741_v32  ;;  %v23785_v46 = vld [vmem:[%s25051_s14 + $0x2904] ss:$48 sps:$4 sm:$0xff]  }
 0x736   : > { %16620 = vmatpush1.bf16.msra.mxu1 %v23744_v51  ;;  %16580 = vmatprep.subr.bf16.mxu0 %v23749_v11  ;;  %v23788_v32 = vld [vmem:[%s25051_s14 + $0x2f04] ss:$48 sps:$4 sm:$0xff]   ;;  %v23783_v51 = vld [vmem:[%s25051_s14 + $0x2900] ss:$48 sps:$4 sm:$0xff]  }
 0x737   : > { %16621 = vmatprep.subr.bf16.mxu1 %v23752_v1  ;;  %v23786_v11 = vld [vmem:[%s25051_s14 + $0x2f00] ss:$48 sps:$4 sm:$0xff]   ;;  %v23791_v1 = vld [vmem:[%s25051_s14 + $0x28a4] ss:$48 sps:$4 sm:$0xff]  }
 0x739   : > { %16581 = vmatpush1.bf16.msra.mxu0 %v23747_v49  ;;  %v23794_v49 = vld [vmem:[%s25051_s14 + $0x2ea4] ss:$48 sps:$4 sm:$0xff]  }
 0x73a   : > { %16622 = vmatpush1.bf16.msra.mxu1 %v23750_v25  ;;  %16582 = vmatprep.subr.bf16.mxu0 %v23755_v62  ;;  %v23789_v25 = vld [vmem:[%s25051_s14 + $0x28a0] ss:$48 sps:$4 sm:$0xff]  }
 0x73b   : > { %16623 = vmatprep.subr.bf16.mxu1 %v23758_v14  ;;  %v23792_v62 = vld [vmem:[%s25051_s14 + $0x2ea0] ss:$48 sps:$4 sm:$0xff]   ;;  %v23797_v14 = vld [vmem:[%s25051_s14 + $0x2844] ss:$48 sps:$4 sm:$0xff]  }
 0x73d   : > { %16583 = vmatpush1.bf16.msra.mxu0 %v23753_v52  ;;  %v23800_v52 = vld [vmem:[%s25051_s14 + $0x2e44] ss:$48 sps:$4 sm:$0xff]  }
 0x73e   : > { %16624 = vmatpush1.bf16.msra.mxu1 %v23756_v5  ;;  %16584 = vmatprep.subr.bf16.mxu0 %v23761_v7  ;;  %v23795_v5 = vld [vmem:[%s25051_s14 + $0x2840] ss:$48 sps:$4 sm:$0xff]  }
 0x73f   : > { %16625 = vmatprep.subr.bf16.mxu1 %v23764_v3  ;;  %v23798_v7 = vld [vmem:[%s25051_s14 + $0x2e40] ss:$48 sps:$4 sm:$0xff]   ;;  %v23803_v3 = vld [vmem:[%s25051_s14 + $0x27e4] ss:$48 sps:$4 sm:$0xff]  }
 0x741   : > { %16585 = vmatpush1.bf16.msra.mxu0 %v23759_v47  ;;  %v23806_v47 = vld [vmem:[%s25051_s14 + $0x2de4] ss:$48 sps:$4 sm:$0xff]  }
 0x742   : > { %16626 = vmatpush1.bf16.msra.mxu1 %v23762_v36  ;;  %16586 = vmatprep.subr.bf16.mxu0 %v23767_v45  ;;  %v23801_v36 = vld [vmem:[%s25051_s14 + $0x27e0] ss:$48 sps:$4 sm:$0xff]  }
 0x743   : > { %16627 = vmatprep.subr.bf16.mxu1 %v23770_v40  ;;  %v23804_v45 = vld [vmem:[%s25051_s14 + $0x2de0] ss:$48 sps:$4 sm:$0xff]   ;;  %v23809_v40 = vld [vmem:[%s25051_s14 + $0x2784] ss:$48 sps:$4 sm:$0xff]  }
 0x745   : > { %16587 = vmatpush1.bf16.msra.mxu0 %v23765_v8  ;;  %v23812_v8 = vld [vmem:[%s25051_s14 + $0x2d84] ss:$48 sps:$4 sm:$0xff]  }
 0x746   : > { %16628 = vmatpush1.bf16.msra.mxu1 %v23768_v57  ;;  %16588 = vmatprep.subr.bf16.mxu0 %v23773_v33  ;;  %v23807_v57 = vld [vmem:[%s25051_s14 + $0x2780] ss:$48 sps:$4 sm:$0xff]  }
 0x747   : > { %16629 = vmatprep.subr.bf16.mxu1 %v23776_v10  ;;  %v23810_v33 = vld [vmem:[%s25051_s14 + $0x2d80] ss:$48 sps:$4 sm:$0xff]   ;;  %v23815_v10 = vld [vmem:[%s25051_s14 + $0x2724] ss:$48 sps:$4 sm:$0xff]  }
 0x749   : > { %16589 = vmatpush2.bf16.msra.mxu0 %v23771_v39  ;;  %v23818_v39 = vld [vmem:[%s25051_s14 + $0x2d24] ss:$48 sps:$4 sm:$0xff]  }
 0x74a   : > { %16630 = vmatpush2.bf16.msra.mxu1 %v23774_v37  ;;  %16590 = vmatprep.subr.bf16.mxu0 %v23779_v58  ;;  %v23813_v37 = vld [vmem:[%s25051_s14 + $0x2720] ss:$48 sps:$4 sm:$0xff]  }
 0x74b   : > { %16631 = vmatprep.subr.bf16.mxu1 %v23782_v56  ;;  %v23816_v58 = vld [vmem:[%s25051_s14 + $0x2d20] ss:$48 sps:$4 sm:$0xff]   ;;  %v2601_v56 = vld [vmem:[%s25059_s5 + $0x8] sm:$0xf] }
 0x74d   : > { %16591 = vmatpush2.bf16.msra.mxu0 %v23777_v20  ;;  %v23821_v20 = vld [vmem:[%s25051_s14 + $0x32c4] ss:$48 sps:$4 sm:$0xff]  }
 0x74e   : > { %16632 = vmatpush2.bf16.msra.mxu1 %v23780_v48  ;;  %16592 = vmatprep.subr.bf16.mxu0 %v23785_v46  ;;  %v23824_v48 = vld [vmem:[%s25051_s14 + $0x38c4] ss:$48 sps:$4 sm:$0xff]   ;;  %v2639_v46 = vrot.slane %v2601_v56, %v2606_v16  ;;  %v23825_v16 = vld [vmem:[%s25051_s14 + $0x3260] ss:$48 sps:$4 sm:$0xff]  }
 0x74f   : > { %16633 = vmatprep.subr.bf16.mxu1 %v23788_v32  ;;  %v23819_v32 = vld [vmem:[%s25051_s14 + $0x32c0] ss:$48 sps:$4 sm:$0xff]  }
 0x751   : > { %16593 = vmatpush2.bf16.msra.mxu0 %v23783_v51  ;;  %v23822_v51 = vld [vmem:[%s25051_s14 + $0x38c0] ss:$48 sps:$4 sm:$0xff]  }
 0x752   : > { %16634 = vmatpush2.bf16.msra.mxu1 %v23786_v11  ;;  %16594 = vmatprep.subr.bf16.mxu0 %v23791_v1  ;;  %v23827_v11 = vld [vmem:[%s25051_s14 + $0x3264] ss:$48 sps:$4 sm:$0xff]  }
 0x753   : > { %16635 = vmatprep.subr.bf16.mxu1 %v23794_v49  ;;  %v23830_v1 = vld [vmem:[%s25051_s14 + $0x3864] ss:$48 sps:$4 sm:$0xff]   ;;  %v2643_v49 = vrot.slane %v2601_v56, %v2610_v21  ;;  %v23837_v56 = vld [vmem:[%s25051_s14 + $0x31a0] ss:$48 sps:$4 sm:$0xff]  }
 0x755   : > { %16595 = vmatpush2.bf16.msra.mxu0 %v23789_v25 }
 0x756   : > { %16636 = vmatpush2.bf16.msra.mxu1 %v23792_v62  ;;  %16596 = vmatprep.subr.bf16.mxu0 %v23797_v14 }
 0x757   : > { %16637 = vmatprep.subr.bf16.mxu1 %v23800_v52  ;;  %v23828_v52 = vld [vmem:[%s25051_s14 + $0x3860] ss:$48 sps:$4 sm:$0xff]  }
 0x759   : > { %16597 = vmatpush2.bf16.msra.mxu0 %v23795_v5 }
 0x75a   : > { %16638 = vmatpush2.bf16.msra.mxu1 %v23798_v7  ;;  %16598 = vmatprep.subr.bf16.mxu0 %v23803_v3  ;;  %v23833_v3 = vld [vmem:[%s25051_s14 + $0x3204] ss:$48 sps:$4 sm:$0xff]  }
 0x75b   : > { %16639 = vmatprep.subr.bf16.mxu1 %v23806_v47  ;;  %v23836_v47 = vld [vmem:[%s25051_s14 + $0x3804] ss:$48 sps:$4 sm:$0xff]  }
 0x75d   : > { %16599 = vmatpush2.bf16.msra.mxu0 %v23801_v36 }
 0x75e   : > { %16640 = vmatpush2.bf16.msra.mxu1 %v23804_v45  ;;  %16600 = vmatprep.subr.bf16.mxu0 %v23809_v40 }
 0x75f   : > { %16641 = vmatprep.subr.bf16.mxu1 %v23812_v8 }
 0x761   : > { %16601 = vmatpush2.bf16.msra.mxu0 %v23807_v57  ;;  %v23831_v57 = vld [vmem:[%s25051_s14 + $0x3200] ss:$48 sps:$4 sm:$0xff]  }
 0x762   : > { %16642 = vmatpush2.bf16.msra.mxu1 %v23810_v33  ;;  %16602 = vmatprep.subr.bf16.mxu0 %v23815_v10  ;;  %v23834_v33 = vld [vmem:[%s25051_s14 + $0x3800] ss:$48 sps:$4 sm:$0xff]  }
 0x763   : > { %16643 = vmatprep.subr.bf16.mxu1 %v23818_v39 }
 0x765   : > { %16603 = vmatpush2.bf16.msra.mxu0 %v23813_v37  ;;  %v23839_v37 = vld [vmem:[%s25051_s14 + $0x31a4] ss:$48 sps:$4 sm:$0xff]  }
 0x766   : > { %16644 = vmatpush2.bf16.msra.mxu1 %v23816_v58  ;;  %16654 = vmatprep.subr.bf16.mxu0 %v23821_v20  ;;  %v23842_v58 = vld [vmem:[%s25051_s14 + $0x37a4] ss:$48 sps:$4 sm:$0xff]   ;;  %v23840_v20 = vld [vmem:[%s25051_s14 + $0x37a0] ss:$48 sps:$4 sm:$0xff]  }
 0x767   : > { %16695 = vmatprep.subr.bf16.mxu1 %v23824_v48  ;;  %v23845_v48 = vld [vmem:[%s25051_s14 + $0x3144] ss:$48 sps:$4 sm:$0xff]  }
 0x768   : > { %v16360_v25 = vpop.f32.mrf.mxu0  ;;  %16605 = vmatmul.mubr.bf16.vlgmr.msra.gmra.mxu0 %v25432_v15 }
 0x769   : > { %v16401_v62 = vpop.f32.mrf.mxu1  ;;  %16646 = vmatmul.mubr.bf16.vlgmr.msra.gmra.mxu1 %v25443_v24  ;;  %v16361_v14 = vadd.f32 %v16360_v25, %v2639_v46  ;;  %16655 = vmatpush1.bf16.msra.mxu0 %v23819_v32  ;;  %v23848_v46 = vld [vmem:[%s25051_s14 + $0x3744] ss:$48 sps:$4 sm:$0xff]   ;;  %v23843_v32 = vld [vmem:[%s25051_s14 + $0x3140] ss:$48 sps:$4 sm:$0xff]  }
 0x76a   : > { %16696 = vmatpush1.bf16.msra.mxu1 %v23822_v51  ;;  %v16362_v5 = vpop.f32.mrf.mxu0  ;;  %16656 = vmatprep.subr.bf16.mxu0 %v23827_v11  ;;  %v23846_v51 = vld [vmem:[%s25051_s14 + $0x3740] ss:$48 sps:$4 sm:$0xff]   ;;  %v23851_v11 = vld [vmem:[%s25051_s14 + $0x30e4] ss:$48 sps:$4 sm:$0xff]  }
 0x76b   : > { %v16403_v7 = vpop.f32.mrf.mxu1  ;;  %16697 = vmatprep.subr.bf16.mxu1 %v23830_v1  ;;  %v27279_v21 = vadd.f32 %v16401_v62, %v16361_v14  ;;  %v16363_v36 = vadd.f32 %v16362_v5, %v2643_v49  ;;  %16686 = vmatprep.mubr.bf16.mxu0 %v25439_v22  ;;  %v23854_v1 = vld [vmem:[%s25051_s14 + $0x36e4] ss:$48 sps:$4 sm:$0xff]   ;;  %v23849_v49 = vld [vmem:[%s25051_s14 + $0x30e0] ss:$48 sps:$4 sm:$0xff]  }
 0x76c   : > { %16727 = vmatprep.mubr.bf16.mxu1 %v25455_v6  ;;  %v16364_v45 = vpop.f32.mrf.mxu0  ;;  %v23852_v25 = vld [vmem:[%s25051_s14 + $0x36e0] ss:$48 sps:$4 sm:$0xff]   ;;  %v23857_v62 = vld [vmem:[%s25051_s14 + $0x3084] ss:$48 sps:$4 sm:$0xff]  }
 0x76d   : > { %v16405_v40 = vpop.f32.mrf.mxu1  ;;  %v27283_v8 = vadd.f32 %v16403_v7, %v16363_v36  ;;  %16657 = vmatpush1.bf16.msra.mxu0 %v23825_v16  ;;  %v23860_v14 = vld [vmem:[%s25051_s14 + $0x3684] ss:$48 sps:$4 sm:$0xff]   ;;  %v23855_v16 = vld [vmem:[%s25051_s14 + $0x3080] ss:$48 sps:$4 sm:$0xff]  }
 0x76e   : > { %16698 = vmatpush1.bf16.msra.mxu1 %v23828_v52  ;;  %v16365_v10 = vpop.f32.mrf.mxu0  ;;  %16658 = vmatprep.subr.bf16.mxu0 %v23833_v3  ;;  %v23858_v52 = vld [vmem:[%s25051_s14 + $0x3680] ss:$48 sps:$4 sm:$0xff]   ;;  %v23863_v5 = vld [vmem:[%s25051_s14 + $0x3024] ss:$48 sps:$4 sm:$0xff]  }
 0x76f   : > { %v16406_v39 = vpop.f32.mrf.mxu1  ;;  %16699 = vmatprep.subr.bf16.mxu1 %v23836_v47  ;;  %v23866_v7 = vld [vmem:[%s25051_s14 + $0x3624] ss:$48 sps:$4 sm:$0xff]   ;;  %v23861_v3 = vld [vmem:[%s25051_s14 + $0x3020] ss:$48 sps:$4 sm:$0xff]  }
 0x770   : > { %v23864_v47 = vld [vmem:[%s25051_s14 + $0x3620] ss:$48 sps:$4 sm:$0xff]   ;;  %v23869_v36 = vld [vmem:[%s25051_s14 + $0x35c4] ss:$48 sps:$4 sm:$0xff]  }
 0x771   : > { %16659 = vmatpush1.bf16.msra.mxu0 %v23831_v57  ;;  %v23872_v45 = vld [vmem:[%s25051_s14 + $0x3bc4] ss:$48 sps:$4 sm:$0xff]   ;;  %v23867_v40 = vld [vmem:[%s25051_s14 + $0x35c0] ss:$48 sps:$4 sm:$0xff]  }
 0x772   : > { %16700 = vmatpush1.bf16.msra.mxu1 %v23834_v33  ;;  %16660 = vmatprep.subr.bf16.mxu0 %v23839_v37  ;;  %v23870_v57 = vld [vmem:[%s25051_s14 + $0x3bc0] ss:$48 sps:$4 sm:$0xff]   ;;  %v23875_v33 = vld [vmem:[%s25051_s14 + $0x3564] ss:$48 sps:$4 sm:$0xff]  }
 0x773   : > { %16701 = vmatprep.subr.bf16.mxu1 %v23842_v58  ;;  %v23878_v10 = vld [vmem:[%s25051_s14 + $0x3b64] ss:$48 sps:$4 sm:$0xff]   ;;  %v23873_v39 = vld [vmem:[%s25051_s14 + $0x3560] ss:$48 sps:$4 sm:$0xff]  }
 0x774   : > { %v23876_v37 = vld [vmem:[%s25051_s14 + $0x3b60] ss:$48 sps:$4 sm:$0xff]   ;;  %v23881_v58 = vld [vmem:[%s25051_s14 + $0x3504] ss:$48 sps:$4 sm:$0xff]  }
 0x775   : > { %16661 = vmatpush1.bf16.msra.mxu0 %v23837_v56  ;;  %v23884_v56 = vld [vmem:[%s25051_s14 + $0x3b04] ss:$48 sps:$4 sm:$0xff]  }
 0x776   : > { %16702 = vmatpush1.bf16.msra.mxu1 %v23840_v20  ;;  %16662 = vmatprep.subr.bf16.mxu0 %v23845_v48  ;;  %v23879_v20 = vld [vmem:[%s25051_s14 + $0x3500] ss:$48 sps:$4 sm:$0xff]  }
 0x777   : > { %16703 = vmatprep.subr.bf16.mxu1 %v23848_v46  ;;  %v23882_v48 = vld [vmem:[%s25051_s14 + $0x3b00] ss:$48 sps:$4 sm:$0xff]   ;;  %v23887_v46 = vld [vmem:[%s25051_s14 + $0x34a4] ss:$48 sps:$4 sm:$0xff]  }
 0x779   : > { %16663 = vmatpush1.bf16.msra.mxu0 %v23843_v32  ;;  %v23890_v32 = vld [vmem:[%s25051_s14 + $0x3aa4] ss:$48 sps:$4 sm:$0xff]  }
 0x77a   : > { %16704 = vmatpush1.bf16.msra.mxu1 %v23846_v51  ;;  %16664 = vmatprep.subr.bf16.mxu0 %v23851_v11  ;;  %v23885_v51 = vld [vmem:[%s25051_s14 + $0x34a0] ss:$48 sps:$4 sm:$0xff]  }
 0x77b   : > { %16705 = vmatprep.subr.bf16.mxu1 %v23854_v1  ;;  %v23888_v11 = vld [vmem:[%s25051_s14 + $0x3aa0] ss:$48 sps:$4 sm:$0xff]   ;;  %v23893_v1 = vld [vmem:[%s25051_s14 + $0x3444] ss:$48 sps:$4 sm:$0xff]  }
 0x77d   : > { %16665 = vmatpush1.bf16.msra.mxu0 %v23849_v49  ;;  %v23896_v49 = vld [vmem:[%s25051_s14 + $0x3a44] ss:$48 sps:$4 sm:$0xff]  }
 0x77e   : > { %16706 = vmatpush1.bf16.msra.mxu1 %v23852_v25  ;;  %16666 = vmatprep.subr.bf16.mxu0 %v23857_v62  ;;  %v23891_v25 = vld [vmem:[%s25051_s14 + $0x3440] ss:$48 sps:$4 sm:$0xff]  }
 0x77f   : > { %16707 = vmatprep.subr.bf16.mxu1 %v23860_v14  ;;  %v23894_v62 = vld [vmem:[%s25051_s14 + $0x3a40] ss:$48 sps:$4 sm:$0xff]   ;;  %v23899_v14 = vld [vmem:[%s25051_s14 + $0x33e4] ss:$48 sps:$4 sm:$0xff]  }
 0x781   : > { %16667 = vmatpush1.bf16.msra.mxu0 %v23855_v16  ;;  %v23902_v16 = vld [vmem:[%s25051_s14 + $0x39e4] ss:$48 sps:$4 sm:$0xff]  }
 0x782   : > { %16708 = vmatpush1.bf16.msra.mxu1 %v23858_v52  ;;  %16668 = vmatprep.subr.bf16.mxu0 %v23863_v5  ;;  %v23897_v52 = vld [vmem:[%s25051_s14 + $0x33e0] ss:$48 sps:$4 sm:$0xff]  }
 0x783   : > { %16709 = vmatprep.subr.bf16.mxu1 %v23866_v7  ;;  %v23900_v5 = vld [vmem:[%s25051_s14 + $0x39e0] ss:$48 sps:$4 sm:$0xff]   ;;  %v23905_v7 = vld [vmem:[%s25051_s14 + $0x3384] ss:$48 sps:$4 sm:$0xff]  }
 0x785   : > { %16669 = vmatpush1.bf16.msra.mxu0 %v23861_v3  ;;  %v23908_v3 = vld [vmem:[%s25051_s14 + $0x3984] ss:$48 sps:$4 sm:$0xff]  }
 0x786   : > { %16710 = vmatpush1.bf16.msra.mxu1 %v23864_v47  ;;  %16670 = vmatprep.subr.bf16.mxu0 %v23869_v36  ;;  %v23903_v47 = vld [vmem:[%s25051_s14 + $0x3380] ss:$48 sps:$4 sm:$0xff]  }
 0x787   : > { %16711 = vmatprep.subr.bf16.mxu1 %v23872_v45  ;;  %v23906_v36 = vld [vmem:[%s25051_s14 + $0x3980] ss:$48 sps:$4 sm:$0xff]   ;;  %v23911_v45 = vld [vmem:[%s25051_s14 + $0x3324] ss:$48 sps:$4 sm:$0xff]  }
 0x789   : > { %16671 = vmatpush2.bf16.msra.mxu0 %v23867_v40  ;;  %v23914_v40 = vld [vmem:[%s25051_s14 + $0x3924] ss:$48 sps:$4 sm:$0xff]  }
 0x78a   : > { %16712 = vmatpush2.bf16.msra.mxu1 %v23870_v57  ;;  %16672 = vmatprep.subr.bf16.mxu0 %v23875_v33  ;;  %v23909_v57 = vld [vmem:[%s25051_s14 + $0x3320] ss:$48 sps:$4 sm:$0xff]  }
 0x78b   : > { %16713 = vmatprep.subr.bf16.mxu1 %v23878_v10  ;;  %v23912_v33 = vld [vmem:[%s25051_s14 + $0x3920] ss:$48 sps:$4 sm:$0xff]   ;;  %v23917_v10 = vld [vmem:[%s25051_s14 + $0x3ec4] ss:$48 sps:$4 sm:$0xff]  }
 0x78d   : > { %16673 = vmatpush2.bf16.msra.mxu0 %v23873_v39  ;;  %v23920_v39 = vld [vmem:[%s25051_s14 + $0x44c4] ss:$48 sps:$4 sm:$0xff]  }
 0x78e   : > { %16714 = vmatpush2.bf16.msra.mxu1 %v23876_v37  ;;  %16674 = vmatprep.subr.bf16.mxu0 %v23881_v58  ;;  %v23915_v37 = vld [vmem:[%s25051_s14 + $0x3ec0] ss:$48 sps:$4 sm:$0xff]  }
 0x78f   : > { %16715 = vmatprep.subr.bf16.mxu1 %v23884_v56  ;;  %v23918_v58 = vld [vmem:[%s25051_s14 + $0x44c0] ss:$48 sps:$4 sm:$0xff]   ;;  %v23923_v56 = vld [vmem:[%s25051_s14 + $0x3e64] ss:$48 sps:$4 sm:$0xff]  }
 0x791   : > { %16675 = vmatpush2.bf16.msra.mxu0 %v23879_v20  ;;  %v23926_v20 = vld [vmem:[%s25051_s14 + $0x4464] ss:$48 sps:$4 sm:$0xff]  }
 0x792   : > { %16716 = vmatpush2.bf16.msra.mxu1 %v23882_v48  ;;  %16676 = vmatprep.subr.bf16.mxu0 %v23887_v46 }
 0x793   : > { %16717 = vmatprep.subr.bf16.mxu1 %v23890_v32 }
 0x795   : > { %16677 = vmatpush2.bf16.msra.mxu0 %v23885_v51  ;;  %v23921_v51 = vld [vmem:[%s25051_s14 + $0x3e60] ss:$48 sps:$4 sm:$0xff]  }
 0x796   : > { %16718 = vmatpush2.bf16.msra.mxu1 %v23888_v11  ;;  %16678 = vmatprep.subr.bf16.mxu0 %v23893_v1  ;;  %v23924_v11 = vld [vmem:[%s25051_s14 + $0x4460] ss:$48 sps:$4 sm:$0xff]  }
 0x797   : > { %16719 = vmatprep.subr.bf16.mxu1 %v23896_v49 }
 0x799   : > { %16679 = vmatpush2.bf16.msra.mxu0 %v23891_v25  ;;  %v23929_v25 = vld [vmem:[%s25051_s14 + $0x3e04] ss:$48 sps:$4 sm:$0xff]  }
 0x79a   : > { %16720 = vmatpush2.bf16.msra.mxu1 %v23894_v62  ;;  %16680 = vmatprep.subr.bf16.mxu0 %v23899_v14  ;;  %v23932_v62 = vld [vmem:[%s25051_s14 + $0x4404] ss:$48 sps:$4 sm:$0xff]  }
 0x79b   : > { %16721 = vmatprep.subr.bf16.mxu1 %v23902_v16 }
 0x79d   : > { %16681 = vmatpush2.bf16.msra.mxu0 %v23897_v52 }
 0x79e   : > { %16722 = vmatpush2.bf16.msra.mxu1 %v23900_v5  ;;  %16682 = vmatprep.subr.bf16.mxu0 %v23905_v7  ;;  %v23927_v7 = vld [vmem:[%s25051_s14 + $0x3e00] ss:$48 sps:$4 sm:$0xff]  }
 0x79f   : > { %16723 = vmatprep.subr.bf16.mxu1 %v23908_v3  ;;  %v23930_v3 = vld [vmem:[%s25051_s14 + $0x4400] ss:$48 sps:$4 sm:$0xff]  }
 0x7a1   : > { %16683 = vmatpush2.bf16.msra.mxu0 %v23903_v47 }
 0x7a2   : > { %16724 = vmatpush2.bf16.msra.mxu1 %v23906_v36  ;;  %16684 = vmatprep.subr.bf16.mxu0 %v23911_v45  ;;  %v23938_v45 = vld [vmem:[%s25051_s14 + $0x43a4] ss:$48 sps:$4 sm:$0xff]  }
 0x7a3   : > { %16725 = vmatprep.subr.bf16.mxu1 %v23914_v40  ;;  %v23933_v40 = vld [vmem:[%s25051_s14 + $0x3da0] ss:$48 sps:$4 sm:$0xff]  }
 0x7a5   : > { %16685 = vmatpush2.bf16.msra.mxu0 %v23909_v57  ;;  %v23936_v57 = vld [vmem:[%s25051_s14 + $0x43a0] ss:$48 sps:$4 sm:$0xff]  }
 0x7a6   : > { %16726 = vmatpush2.bf16.msra.mxu1 %v23912_v33  ;;  %16736 = vmatprep.subr.bf16.mxu0 %v23917_v10  ;;  %v23941_v33 = vld [vmem:[%s25051_s14 + $0x3d44] ss:$48 sps:$4 sm:$0xff]  }
 0x7a7   : > { %16777 = vmatprep.subr.bf16.mxu1 %v23920_v39  ;;  %v23944_v10 = vld [vmem:[%s25051_s14 + $0x4344] ss:$48 sps:$4 sm:$0xff]   ;;  %v23939_v39 = vld [vmem:[%s25051_s14 + $0x3d40] ss:$48 sps:$4 sm:$0xff]  }
 0x7a8   : > { %v16442_v48 = vpop.f32.mrf.mxu0  ;;  %16687 = vmatmul.mubr.bf16.vlgmr.msra.gmra.mxu0 %v25530_v19 }
 0x7a9   : > { %v16483_v46 = vpop.f32.mrf.mxu1  ;;  %16728 = vmatmul.mubr.bf16.vlgmr.msra.gmra.mxu1 %v25543_v4  ;;  %v16443_v32 = vadd.f32 %v16442_v48, %v27279_v21  ;;  %16737 = vmatpush1.bf16.msra.mxu0 %v23915_v37  ;;  %v23942_v37 = vld [vmem:[%s25051_s14 + $0x4340] ss:$48 sps:$4 sm:$0xff]  }
 0x7aa   : > { %16778 = vmatpush1.bf16.msra.mxu1 %v23918_v58  ;;  %v16444_v1 = vpop.f32.mrf.mxu0  ;;  %16738 = vmatprep.subr.bf16.mxu0 %v23923_v56  ;;  %v23947_v58 = vld [vmem:[%s25051_s14 + $0x3ce4] ss:$48 sps:$4 sm:$0xff]   ;;  %v23948_v48 = vld [vmem:[%s25051_s14 + $0x42e0] ss:$48 sps:$4 sm:$0xff]  }
 0x7ab   : > { %v16485_v49 = vpop.f32.mrf.mxu1  ;;  %16779 = vmatprep.subr.bf16.mxu1 %v23926_v20  ;;  %v27352_v14 = vadd.f32 %v16483_v46, %v16443_v32  ;;  %v16445_v16 = vadd.f32 %v16444_v1, %v27283_v8  ;;  %16768 = vmatprep.mubr.bf16.mxu0 %v25539_v31  ;;  %v23935_v8 = vld [vmem:[%s25051_s14 + $0x3da4] ss:$48 sps:$4 sm:$0xff]   ;;  %v23945_v20 = vld [vmem:[%s25051_s14 + $0x3ce0] ss:$48 sps:$4 sm:$0xff]  }
 0x7ac   : > { %16809 = vmatprep.mubr.bf16.mxu1 %v25551_v38  ;;  %v16446_v21 = vpop.f32.mrf.mxu0  ;;  %v23950_v56 = vld [vmem:[%s25051_s14 + $0x42e4] ss:$48 sps:$4 sm:$0xff]  }
 0x7ad   : > { %v16487_v52 = vpop.f32.mrf.mxu1  ;;  %v27357_v5 = vadd.f32 %v16485_v49, %v16445_v16  ;;  %16739 = vmatpush1.bf16.msra.mxu0 %v23921_v51  ;;  %v23953_v46 = vld [vmem:[%s25051_s14 + $0x3c84] ss:$48 sps:$4 sm:$0xff]   ;;  %v23951_v51 = vld [vmem:[%s25051_s14 + $0x3c80] ss:$48 sps:$4 sm:$0xff]  }
 0x7ae   : > { %16780 = vmatpush1.bf16.msra.mxu1 %v23924_v11  ;;  %v16447_v47 = vpop.f32.mrf.mxu0  ;;  %16740 = vmatprep.subr.bf16.mxu0 %v23929_v25  ;;  %v23956_v32 = vld [vmem:[%s25051_s14 + $0x4284] ss:$48 sps:$4 sm:$0xff]   ;;  %v23954_v11 = vld [vmem:[%s25051_s14 + $0x4280] ss:$48 sps:$4 sm:$0xff]  }
 0x7af   : > { %v16488_v36 = vpop.f32.mrf.mxu1  ;;  %16781 = vmatprep.subr.bf16.mxu1 %v23932_v62  ;;  %v23959_v1 = vld [vmem:[%s25051_s14 + $0x3c24] ss:$48 sps:$4 sm:$0xff]   ;;  %v23957_v25 = vld [vmem:[%s25051_s14 + $0x3c20] ss:$48 sps:$4 sm:$0xff]  }
 0x7b0   : > { %v23962_v49 = vld [vmem:[%s25051_s14 + $0x4224] ss:$48 sps:$4 sm:$0xff]   ;;  %v23960_v62 = vld [vmem:[%s25051_s14 + $0x4220] ss:$48 sps:$4 sm:$0xff]  }
 0x7b1   : > { %16741 = vmatpush1.bf16.msra.mxu0 %v23927_v7  ;;  %v23965_v16 = vld [vmem:[%s25051_s14 + $0x41c4] ss:$48 sps:$4 sm:$0xff]   ;;  %v23963_v52 = vld [vmem:[%s25051_s14 + $0x41c0] ss:$48 sps:$4 sm:$0xff]  }
 0x7b2   : > { %16782 = vmatpush1.bf16.msra.mxu1 %v23930_v3  ;;  %16742 = vmatprep.subr.bf16.mxu0 %v23935_v8  ;;  %v23968_v21 = vld [vmem:[%s25051_s14 + $0x47c4] ss:$48 sps:$4 sm:$0xff]   ;;  %v23966_v7 = vld [vmem:[%s25051_s14 + $0x47c0] ss:$48 sps:$4 sm:$0xff]  }
 0x7b3   : > { %16783 = vmatprep.subr.bf16.mxu1 %v23938_v45  ;;  %v23971_v3 = vld [vmem:[%s25051_s14 + $0x4164] ss:$48 sps:$4 sm:$0xff]   ;;  %v23969_v36 = vld [vmem:[%s25051_s14 + $0x4160] ss:$48 sps:$4 sm:$0xff]  }
 0x7b4   : > { %v23974_v47 = vld [vmem:[%s25051_s14 + $0x4764] ss:$48 sps:$4 sm:$0xff]   ;;  %v23972_v8 = vld [vmem:[%s25051_s14 + $0x4760] ss:$48 sps:$4 sm:$0xff]  }
 0x7b5   : > { %16743 = vmatpush1.bf16.msra.mxu0 %v23933_v40  ;;  %v23977_v45 = vld [vmem:[%s25051_s14 + $0x4104] ss:$48 sps:$4 sm:$0xff]  }
 0x7b6   : > { %16784 = vmatpush1.bf16.msra.mxu1 %v23936_v57  ;;  %16744 = vmatprep.subr.bf16.mxu0 %v23941_v33  ;;  %v23980_v40 = vld [vmem:[%s25051_s14 + $0x4704] ss:$48 sps:$4 sm:$0xff]   ;;  %v23975_v57 = vld [vmem:[%s25051_s14 + $0x4100] ss:$48 sps:$4 sm:$0xff]  }
 0x7b7   : > { %16785 = vmatprep.subr.bf16.mxu1 %v23944_v10  ;;  %v23978_v33 = vld [vmem:[%s25051_s14 + $0x4700] ss:$48 sps:$4 sm:$0xff]   ;;  %v23983_v10 = vld [vmem:[%s25051_s14 + $0x40a4] ss:$48 sps:$4 sm:$0xff]  }
 0x7b9   : > { %16745 = vmatpush1.bf16.msra.mxu0 %v23939_v39  ;;  %v23986_v39 = vld [vmem:[%s25051_s14 + $0x46a4] ss:$48 sps:$4 sm:$0xff]  }
 0x7ba   : > { %16786 = vmatpush1.bf16.msra.mxu1 %v23942_v37  ;;  %16746 = vmatprep.subr.bf16.mxu0 %v23947_v58  ;;  %v23981_v37 = vld [vmem:[%s25051_s14 + $0x40a0] ss:$48 sps:$4 sm:$0xff]  }
 0x7bb   : > { %16787 = vmatprep.subr.bf16.mxu1 %v23950_v56  ;;  %v23984_v58 = vld [vmem:[%s25051_s14 + $0x46a0] ss:$48 sps:$4 sm:$0xff]   ;;  %v23989_v56 = vld [vmem:[%s25051_s14 + $0x4044] ss:$48 sps:$4 sm:$0xff]  }
 0x7bd   : > { %16747 = vmatpush1.bf16.msra.mxu0 %v23945_v20  ;;  %v23992_v20 = vld [vmem:[%s25051_s14 + $0x4644] ss:$48 sps:$4 sm:$0xff]  }
 0x7be   : > { %16788 = vmatpush1.bf16.msra.mxu1 %v23948_v48  ;;  %16748 = vmatprep.subr.bf16.mxu0 %v23953_v46  ;;  %v23987_v48 = vld [vmem:[%s25051_s14 + $0x4040] ss:$48 sps:$4 sm:$0xff]  }
 0x7bf   : > { %16789 = vmatprep.subr.bf16.mxu1 %v23956_v32  ;;  %v23990_v46 = vld [vmem:[%s25051_s14 + $0x4640] ss:$48 sps:$4 sm:$0xff]   ;;  %v23995_v32 = vld [vmem:[%s25051_s14 + $0x3fe4] ss:$48 sps:$4 sm:$0xff]  }
 0x7c1   : > { %16749 = vmatpush1.bf16.msra.mxu0 %v23951_v51  ;;  %v23998_v51 = vld [vmem:[%s25051_s14 + $0x45e4] ss:$48 sps:$4 sm:$0xff]  }
 0x7c2   : > { %16790 = vmatpush1.bf16.msra.mxu1 %v23954_v11  ;;  %16750 = vmatprep.subr.bf16.mxu0 %v23959_v1  ;;  %v23993_v11 = vld [vmem:[%s25051_s14 + $0x3fe0] ss:$48 sps:$4 sm:$0xff]  }
 0x7c3   : > { %16791 = vmatprep.subr.bf16.mxu1 %v23962_v49  ;;  %v23996_v1 = vld [vmem:[%s25051_s14 + $0x45e0] ss:$48 sps:$4 sm:$0xff]   ;;  %v24001_v49 = vld [vmem:[%s25051_s14 + $0x3f84] ss:$48 sps:$4 sm:$0xff]  }
 0x7c5   : > { %16751 = vmatpush1.bf16.msra.mxu0 %v23957_v25  ;;  %v24004_v25 = vld [vmem:[%s25051_s14 + $0x4584] ss:$48 sps:$4 sm:$0xff]  }
 0x7c6   : > { %16792 = vmatpush1.bf16.msra.mxu1 %v23960_v62  ;;  %16752 = vmatprep.subr.bf16.mxu0 %v23965_v16  ;;  %v23999_v62 = vld [vmem:[%s25051_s14 + $0x3f80] ss:$48 sps:$4 sm:$0xff]  }
 0x7c7   : > { %16793 = vmatprep.subr.bf16.mxu1 %v23968_v21  ;;  %v24002_v16 = vld [vmem:[%s25051_s14 + $0x4580] ss:$48 sps:$4 sm:$0xff]   ;;  %v24007_v21 = vld [vmem:[%s25051_s14 + $0x3f24] ss:$48 sps:$4 sm:$0xff]  }
 0x7c9   : > { %16753 = vmatpush2.bf16.msra.mxu0 %v23963_v52  ;;  %v24010_v52 = vld [vmem:[%s25051_s14 + $0x4524] ss:$48 sps:$4 sm:$0xff]  }
 0x7ca   : > { %16794 = vmatpush2.bf16.msra.mxu1 %v23966_v7  ;;  %16754 = vmatprep.subr.bf16.mxu0 %v23971_v3  ;;  %v24005_v7 = vld [vmem:[%s25051_s14 + $0x3f20] ss:$48 sps:$4 sm:$0xff]  }
 0x7cb   : > { %16795 = vmatprep.subr.bf16.mxu1 %v23974_v47  ;;  %v24008_v3 = vld [vmem:[%s25051_s14 + $0x4520] ss:$48 sps:$4 sm:$0xff]   ;;  %v24013_v47 = vld [vmem:[%s25051_s14 + $0x2cc] ss:$48 sps:$4 sm:$0xff]  }
 0x7cd   : > { %16755 = vmatpush2.bf16.msra.mxu0 %v23969_v36  ;;  %v24016_v36 = vld [vmem:[%s25051_s14 + $0x8cc] ss:$48 sps:$4 sm:$0xff]  }
 0x7ce   : > { %16796 = vmatpush2.bf16.msra.mxu1 %v23972_v8  ;;  %16756 = vmatprep.subr.bf16.mxu0 %v23977_v45  ;;  %v24011_v8 = vld [vmem:[%s25051_s14 + $0x2c8] ss:$48 sps:$4 sm:$0xff]  }
 0x7cf   : > { %16797 = vmatprep.subr.bf16.mxu1 %v23980_v40  ;;  %v24014_v45 = vld [vmem:[%s25051_s14 + $0x8c8] ss:$48 sps:$4 sm:$0xff]   ;;  %v24019_v40 = vld [vmem:[%s25051_s14 + $0x26c] ss:$48 sps:$4 sm:$0xff]  }
 0x7d1   : > { %16757 = vmatpush2.bf16.msra.mxu0 %v23975_v57  ;;  %v24022_v57 = vld [vmem:[%s25051_s14 + $0x86c] ss:$48 sps:$4 sm:$0xff]  }
 0x7d2   : > { %16798 = vmatpush2.bf16.msra.mxu1 %v23978_v33  ;;  %16758 = vmatprep.subr.bf16.mxu0 %v23983_v10 }
 0x7d3   : > { %16799 = vmatprep.subr.bf16.mxu1 %v23986_v39 }
 0x7d5   : > { %16759 = vmatpush2.bf16.msra.mxu0 %v23981_v37  ;;  %v24017_v37 = vld [vmem:[%s25051_s14 + $0x268] ss:$48 sps:$4 sm:$0xff]  }
 0x7d6   : > { %16800 = vmatpush2.bf16.msra.mxu1 %v23984_v58  ;;  %16760 = vmatprep.subr.bf16.mxu0 %v23989_v56  ;;  %v24020_v58 = vld [vmem:[%s25051_s14 + $0x868] ss:$48 sps:$4 sm:$0xff]  }
 0x7d7   : > { %16801 = vmatprep.subr.bf16.mxu1 %v23992_v20 }
 0x7d9   : > { %16761 = vmatpush2.bf16.msra.mxu0 %v23987_v48  ;;  %v24025_v48 = vld [vmem:[%s25051_s14 + $0x20c] ss:$48 sps:$4 sm:$0xff]  }
 0x7da   : > { %16802 = vmatpush2.bf16.msra.mxu1 %v23990_v46  ;;  %16762 = vmatprep.subr.bf16.mxu0 %v23995_v32  ;;  %v24028_v46 = vld [vmem:[%s25051_s14 + $0x80c] ss:$48 sps:$4 sm:$0xff]  }
 0x7db   : > { %16803 = vmatprep.subr.bf16.mxu1 %v23998_v51 }
 0x7dd   : > { %16763 = vmatpush2.bf16.msra.mxu0 %v23993_v11 }
 0x7de   : > { %16804 = vmatpush2.bf16.msra.mxu1 %v23996_v1  ;;  %16764 = vmatprep.subr.bf16.mxu0 %v24001_v49  ;;  %v24023_v49 = vld [vmem:[%s25051_s14 + $0x208] ss:$48 sps:$4 sm:$0xff]  }
 0x7df   : > { %16805 = vmatprep.subr.bf16.mxu1 %v24004_v25  ;;  %v24026_v25 = vld [vmem:[%s25051_s14 + $0x808] ss:$48 sps:$4 sm:$0xff]  }
 0x7e1   : > { %16765 = vmatpush2.bf16.msra.mxu0 %v23999_v62 }
 0x7e2   : > { %16806 = vmatpush2.bf16.msra.mxu1 %v24002_v16  ;;  %16766 = vmatprep.subr.bf16.mxu0 %v24007_v21  ;;  %v24032_v21 = vld [vmem:[%s25051_s14 + $0x7a8] ss:$48 sps:$4 sm:$0xff]  }
 0x7e3   : > { %16807 = vmatprep.subr.bf16.mxu1 %v24010_v52  ;;  %v24037_v52 = vld [vmem:[%s25051_s14 + $0x14c] ss:$48 sps:$4 sm:$0xff]  }
 0x7e5   : > { %16767 = vmatpush2.bf16.msra.mxu0 %v24005_v7  ;;  %v24040_v7 = vld [vmem:[%s25051_s14 + $0x74c] ss:$48 sps:$4 sm:$0xff]  }
 0x7e6   : > { %16808 = vmatpush2.bf16.msra.mxu1 %v24008_v3  ;;  %16818 = vmatprep.subr.bf16.mxu0 %v24013_v47  ;;  %v24035_v3 = vld [vmem:[%s25051_s14 + $0x148] ss:$48 sps:$4 sm:$0xff]  }
 0x7e7   : > { %16859 = vmatprep.subr.bf16.mxu1 %v24016_v36  ;;  %v24038_v47 = vld [vmem:[%s25051_s14 + $0x748] ss:$48 sps:$4 sm:$0xff]   ;;  %v24043_v36 = vld [vmem:[%s25051_s14 + $0xec] ss:$48 sps:$4 sm:$0xff]  }
 0x7e8   : > { %v16524_v33 = vpop.f32.mrf.mxu0  ;;  %16769 = vmatmul.mubr.bf16.vlgmr.msra.gmra.mxu0 %v25619_v28 }
 0x7e9   : > { %v16565_v10 = vpop.f32.mrf.mxu1  ;;  %16810 = vmatmul.mubr.bf16.vlgmr.msra.gmra.mxu1 %v25629_v44  ;;  %v16525_v39 = vadd.f32 %v16524_v33, %v27352_v14  ;;  %16819 = vmatpush1.bf16.msra.mxu0 %v24011_v8  ;;  %v24046_v8 = vld [vmem:[%s25051_s14 + $0x6ec] ss:$48 sps:$4 sm:$0xff]  }
 0x7ea   : > { %16860 = vmatpush1.bf16.msra.mxu1 %v24014_v45  ;;  %v16526_v56 = vpop.f32.mrf.mxu0  ;;  %16820 = vmatprep.subr.bf16.mxu0 %v24019_v40  ;;  %v24041_v45 = vld [vmem:[%s25051_s14 + $0xe8] ss:$48 sps:$4 sm:$0xff]   ;;  %v24052_v33 = vld [vmem:[%s25051_s14 + $0x68c] ss:$48 sps:$4 sm:$0xff]  }
 0x7eb   : > { %v16567_v20 = vpop.f32.mrf.mxu1  ;;  %16861 = vmatprep.subr.bf16.mxu1 %v24022_v57  ;;  %v27426_v32 = vadd.f32 %v16565_v10, %v16525_v39  ;;  %v16527_v51 = vadd.f32 %v16526_v56, %v27357_v5  ;;  %16850 = vmatprep.mubr.bf16.mxu0 %v25126_v60  ;;  %v24031_v60 = vld [vmem:[%s25051_s14 + $0x1ac] ss:$48 sps:$4 sm:$0xff]   ;;  %v24029_v5 = vld [vmem:[%s25051_s14 + $0x1a8] ss:$48 sps:$4 sm:$0xff]  }
 0x7ec   : > { %16891 = vmatprep.mubr.bf16.mxu1 %v25133_v0  ;;  %v16528_v14 = vpop.f32.mrf.mxu0  ;;  %v24034_v0 = vld [vmem:[%s25051_s14 + $0x7ac] ss:$48 sps:$4 sm:$0xff]   ;;  %v24044_v40 = vld [vmem:[%s25051_s14 + $0x6e8] ss:$48 sps:$4 sm:$0xff]  }
 0x7ed   : > { %v16569_v11 = vpop.f32.mrf.mxu1  ;;  %v27431_v1 = vadd.f32 %v16567_v20, %v16527_v51  ;;  %16821 = vmatpush1.bf16.msra.mxu0 %v24017_v37  ;;  %v24049_v57 = vld [vmem:[%s25051_s14 + $0x8c] ss:$48 sps:$4 sm:$0xff]   ;;  %v24047_v10 = vld [vmem:[%s25051_s14 + $0x88] ss:$48 sps:$4 sm:$0xff]  }
 0x7ee   : > { %16862 = vmatpush1.bf16.msra.mxu1 %v24020_v58  ;;  %v16529_v62 = vpop.f32.mrf.mxu0  ;;  %16822 = vmatprep.subr.bf16.mxu0 %v24025_v48  ;;  %v24050_v39 = vld [vmem:[%s25051_s14 + $0x688] ss:$48 sps:$4 sm:$0xff]   ;;  %v24055_v37 = vld [vmem:[%s25051_s14 + $0x2c] ss:$48 sps:$4 sm:$0xff]  }
 0x7ef   : > { %v16570_v16 = vpop.f32.mrf.mxu1  ;;  %16863 = vmatprep.subr.bf16.mxu1 %v24028_v46  ;;  %v24058_v58 = vld [vmem:[%s25051_s14 + $0x62c] ss:$48 sps:$4 sm:$0xff]   ;;  %v24053_v56 = vld [vmem:[%s25051_s14 + $0x28] ss:$48 sps:$4 sm:$0xff]  }
 0x7f0   : > { %v24056_v20 = vld [vmem:[%s25051_s14 + $0x628] ss:$48 sps:$4 sm:$0xff]   ;;  %v24061_v48 = vld [vmem:[%s25051_s14 + $0x5cc] ss:$48 sps:$4 sm:$0xff]  }
 0x7f1   : > { %16823 = vmatpush1.bf16.msra.mxu0 %v24023_v49  ;;  %v24064_v46 = vld [vmem:[%s25051_s14 + $0xbcc] ss:$48 sps:$4 sm:$0xff]   ;;  %v24059_v51 = vld [vmem:[%s25051_s14 + $0x5c8] ss:$48 sps:$4 sm:$0xff]  }
 0x7f2   : > { %16864 = vmatpush1.bf16.msra.mxu1 %v24026_v25  ;;  %16824 = vmatprep.subr.bf16.mxu0 %v24031_v60  ;;  %v24062_v14 = vld [vmem:[%s25051_s14 + $0xbc8] ss:$48 sps:$4 sm:$0xff]   ;;  %v24067_v11 = vld [vmem:[%s25051_s14 + $0x56c] ss:$48 sps:$4 sm:$0xff]  }
 0x7f3   : > { %16865 = vmatprep.subr.bf16.mxu1 %v24034_v0  ;;  %v24070_v49 = vld [vmem:[%s25051_s14 + $0xb6c] ss:$48 sps:$4 sm:$0xff]   ;;  %v24065_v25 = vld [vmem:[%s25051_s14 + $0x568] ss:$48 sps:$4 sm:$0xff]  }
 0x7f4   : > { %v24068_v62 = vld [vmem:[%s25051_s14 + $0xb68] ss:$48 sps:$4 sm:$0xff]   ;;  %v24073_v16 = vld [vmem:[%s25051_s14 + $0x50c] ss:$48 sps:$4 sm:$0xff]  }
 0x7f5   : > { %16825 = vmatpush1.bf16.msra.mxu0 %v24029_v5  ;;  %v24076_v60 = vld [vmem:[%s25051_s14 + $0xb0c] ss:$48 sps:$4 sm:$0xff]   ;;  %v24071_v0 = vld [vmem:[%s25051_s14 + $0x508] ss:$48 sps:$4 sm:$0xff]  }
 0x7f6   : > { %16866 = vmatpush1.bf16.msra.mxu1 %v24032_v21  ;;  %16826 = vmatprep.subr.bf16.mxu0 %v24037_v52  ;;  %v24074_v5 = vld [vmem:[%s25051_s14 + $0xb08] ss:$48 sps:$4 sm:$0xff]   ;;  %v24079_v21 = vld [vmem:[%s25051_s14 + $0x4ac] ss:$48 sps:$4 sm:$0xff]  }
 0x7f7   : > { %16867 = vmatprep.subr.bf16.mxu1 %v24040_v7  ;;  %v24082_v52 = vld [vmem:[%s25051_s14 + $0xaac] ss:$48 sps:$4 sm:$0xff]   ;;  %v24077_v7 = vld [vmem:[%s25051_s14 + $0x4a8] ss:$48 sps:$4 sm:$0xff]  }
 0x7f9   : > { %16827 = vmatpush1.bf16.msra.mxu0 %v24035_v3  ;;  %v24080_v3 = vld [vmem:[%s25051_s14 + $0xaa8] ss:$48 sps:$4 sm:$0xff]  }
 0x7fa   : > { %16868 = vmatpush1.bf16.msra.mxu1 %v24038_v47  ;;  %16828 = vmatprep.subr.bf16.mxu0 %v24043_v36  ;;  %v24085_v47 = vld [vmem:[%s25051_s14 + $0x44c] ss:$48 sps:$4 sm:$0xff]  }
 0x7fb   : > { %16869 = vmatprep.subr.bf16.mxu1 %v24046_v8  ;;  %v24088_v36 = vld [vmem:[%s25051_s14 + $0xa4c] ss:$48 sps:$4 sm:$0xff]   ;;  %v24083_v8 = vld [vmem:[%s25051_s14 + $0x448] ss:$48 sps:$4 sm:$0xff]  }
 0x7fd   : > { %16829 = vmatpush1.bf16.msra.mxu0 %v24041_v45  ;;  %v24086_v45 = vld [vmem:[%s25051_s14 + $0xa48] ss:$48 sps:$4 sm:$0xff]  }
 0x7fe   : > { %16870 = vmatpush1.bf16.msra.mxu1 %v24044_v40  ;;  %16830 = vmatprep.subr.bf16.mxu0 %v24049_v57  ;;  %v24091_v40 = vld [vmem:[%s25051_s14 + $0x3ec] ss:$48 sps:$4 sm:$0xff]  }
 0x7ff   : > { %16871 = vmatprep.subr.bf16.mxu1 %v24052_v33  ;;  %v24094_v57 = vld [vmem:[%s25051_s14 + $0x9ec] ss:$48 sps:$4 sm:$0xff]   ;;  %v24089_v33 = vld [vmem:[%s25051_s14 + $0x3e8] ss:$48 sps:$4 sm:$0xff]  }
 0x801   : > { %16831 = vmatpush1.bf16.msra.mxu0 %v24047_v10  ;;  %v24092_v10 = vld [vmem:[%s25051_s14 + $0x9e8] ss:$48 sps:$4 sm:$0xff]  }
 0x802   : > { %16872 = vmatpush1.bf16.msra.mxu1 %v24050_v39  ;;  %16832 = vmatprep.subr.bf16.mxu0 %v24055_v37  ;;  %v24097_v39 = vld [vmem:[%s25051_s14 + $0x38c] ss:$48 sps:$4 sm:$0xff]  }
 0x803   : > { %16873 = vmatprep.subr.bf16.mxu1 %v24058_v58  ;;  %v24100_v37 = vld [vmem:[%s25051_s14 + $0x98c] ss:$48 sps:$4 sm:$0xff]   ;;  %v24095_v58 = vld [vmem:[%s25051_s14 + $0x388] ss:$48 sps:$4 sm:$0xff]  }
 0x805   : > { %16833 = vmatpush1.bf16.msra.mxu0 %v24053_v56  ;;  %v24098_v56 = vld [vmem:[%s25051_s14 + $0x988] ss:$48 sps:$4 sm:$0xff]  }
 0x806   : > { %16874 = vmatpush1.bf16.msra.mxu1 %v24056_v20  ;;  %16834 = vmatprep.subr.bf16.mxu0 %v24061_v48  ;;  %v24103_v20 = vld [vmem:[%s25051_s14 + $0x32c] ss:$48 sps:$4 sm:$0xff]  }
 0x807   : > { %16875 = vmatprep.subr.bf16.mxu1 %v24064_v46  ;;  %v24106_v48 = vld [vmem:[%s25051_s14 + $0x92c] ss:$48 sps:$4 sm:$0xff]   ;;  %v24101_v46 = vld [vmem:[%s25051_s14 + $0x328] ss:$48 sps:$4 sm:$0xff]  }
 0x809   : > { %16835 = vmatpush2.bf16.msra.mxu0 %v24059_v51  ;;  %v24104_v51 = vld [vmem:[%s25051_s14 + $0x928] ss:$48 sps:$4 sm:$0xff]  }
 0x80a   : > { %16876 = vmatpush2.bf16.msra.mxu1 %v24062_v14  ;;  %16836 = vmatprep.subr.bf16.mxu0 %v24067_v11  ;;  %v24109_v14 = vld [vmem:[%s25051_s14 + $0xecc] ss:$48 sps:$4 sm:$0xff]  }
 0x80b   : > { %16877 = vmatprep.subr.bf16.mxu1 %v24070_v49  ;;  %v24112_v11 = vld [vmem:[%s25051_s14 + $0x14cc] ss:$48 sps:$4 sm:$0xff]   ;;  %v24107_v49 = vld [vmem:[%s25051_s14 + $0xec8] ss:$48 sps:$4 sm:$0xff]  }
 0x80d   : > { %16837 = vmatpush2.bf16.msra.mxu0 %v24065_v25  ;;  %v24110_v25 = vld [vmem:[%s25051_s14 + $0x14c8] ss:$48 sps:$4 sm:$0xff]  }
 0x80e   : > { %16878 = vmatpush2.bf16.msra.mxu1 %v24068_v62  ;;  %16838 = vmatprep.subr.bf16.mxu0 %v24073_v16  ;;  %v24115_v62 = vld [vmem:[%s25051_s14 + $0xe6c] ss:$48 sps:$4 sm:$0xff]  }
 0x80f   : > { %16879 = vmatprep.subr.bf16.mxu1 %v24076_v60  ;;  %v24118_v16 = vld [vmem:[%s25051_s14 + $0x146c] ss:$48 sps:$4 sm:$0xff]  }
 0x811   : > { %16839 = vmatpush2.bf16.msra.mxu0 %v24071_v0 }
 0x812   : > { %16880 = vmatpush2.bf16.msra.mxu1 %v24074_v5  ;;  %16840 = vmatprep.subr.bf16.mxu0 %v24079_v21  ;;  %v24113_v21 = vld [vmem:[%s25051_s14 + $0xe68] ss:$48 sps:$4 sm:$0xff]  }
 0x813   : > { %16881 = vmatprep.subr.bf16.mxu1 %v24082_v52  ;;  %v24116_v52 = vld [vmem:[%s25051_s14 + $0x1468] ss:$48 sps:$4 sm:$0xff]  }
 0x815   : > { %16841 = vmatpush2.bf16.msra.mxu0 %v24077_v7 }
 0x816   : > { %16882 = vmatpush2.bf16.msra.mxu1 %v24080_v3  ;;  %16842 = vmatprep.subr.bf16.mxu0 %v24085_v47  ;;  %v24121_v47 = vld [vmem:[%s25051_s14 + $0xe0c] ss:$48 sps:$4 sm:$0xff]  }
 0x817   : > { %16883 = vmatprep.subr.bf16.mxu1 %v24088_v36  ;;  %v24124_v36 = vld [vmem:[%s25051_s14 + $0x140c] ss:$48 sps:$4 sm:$0xff]  }
 0x819   : > { %16843 = vmatpush2.bf16.msra.mxu0 %v24083_v8 }
 0x81a   : > { %16884 = vmatpush2.bf16.msra.mxu1 %v24086_v45  ;;  %16844 = vmatprep.subr.bf16.mxu0 %v24091_v40  ;;  %v24119_v40 = vld [vmem:[%s25051_s14 + $0xe08] ss:$48 sps:$4 sm:$0xff]  }
 0x81b   : > { %16885 = vmatprep.subr.bf16.mxu1 %v24094_v57  ;;  %v24122_v57 = vld [vmem:[%s25051_s14 + $0x1408] ss:$48 sps:$4 sm:$0xff]  }
 0x81d   : > { %16845 = vmatpush2.bf16.msra.mxu0 %v24089_v33 }
 0x81e   : > { %16886 = vmatpush2.bf16.msra.mxu1 %v24092_v10  ;;  %16846 = vmatprep.subr.bf16.mxu0 %v24097_v39  ;;  %v24128_v39 = vld [vmem:[%s25051_s14 + $0x13a8] ss:$48 sps:$4 sm:$0xff]  }
 0x81f   : > { %16887 = vmatprep.subr.bf16.mxu1 %v24100_v37  ;;  %v24133_v37 = vld [vmem:[%s25051_s14 + $0xd4c] ss:$48 sps:$4 sm:$0xff]  }
 0x821   : > { %16847 = vmatpush2.bf16.msra.mxu0 %v24095_v58  ;;  %v24136_v58 = vld [vmem:[%s25051_s14 + $0x134c] ss:$48 sps:$4 sm:$0xff]  }
 0x822   : > { %16888 = vmatpush2.bf16.msra.mxu1 %v24098_v56  ;;  %16848 = vmatprep.subr.bf16.mxu0 %v24103_v20  ;;  %v24131_v56 = vld [vmem:[%s25051_s14 + $0xd48] ss:$48 sps:$4 sm:$0xff]  }
 0x823   : > { %16889 = vmatprep.subr.bf16.mxu1 %v24106_v48  ;;  %v24134_v20 = vld [vmem:[%s25051_s14 + $0x1348] ss:$48 sps:$4 sm:$0xff]   ;;  %v24139_v48 = vld [vmem:[%s25051_s14 + $0xcec] ss:$48 sps:$4 sm:$0xff]  }
 0x825   : > { %16849 = vmatpush2.bf16.msra.mxu0 %v24101_v46  ;;  %v24142_v46 = vld [vmem:[%s25051_s14 + $0x12ec] ss:$48 sps:$4 sm:$0xff]  }
 0x826   : > { %16890 = vmatpush2.bf16.msra.mxu1 %v24104_v51  ;;  %16900 = vmatprep.subr.bf16.mxu0 %v24109_v14  ;;  %v24137_v51 = vld [vmem:[%s25051_s14 + $0xce8] ss:$48 sps:$4 sm:$0xff]  }
 0x827   : > { %16941 = vmatprep.subr.bf16.mxu1 %v24112_v11  ;;  %v24140_v14 = vld [vmem:[%s25051_s14 + $0x12e8] ss:$48 sps:$4 sm:$0xff]   ;;  %v24145_v11 = vld [vmem:[%s25051_s14 + $0xc8c] ss:$48 sps:$4 sm:$0xff]  }
 0x828   : > { %v16606_v60 = vpop.f32.mrf.mxu0  ;;  %16851 = vmatmul.mubr.bf16.vlgmr.msra.gmra.mxu0 %v25152_v13 }
 0x829   : > { %v16647_v0 = vpop.f32.mrf.mxu1  ;;  %16892 = vmatmul.mubr.bf16.vlgmr.msra.gmra.mxu1 %v25162_v18  ;;  %v16607_v5 = vadd.f32 %v16606_v60, %v27426_v32  ;;  %16901 = vmatpush1.bf16.msra.mxu0 %v24107_v49  ;;  %v24148_v49 = vld [vmem:[%s25051_s14 + $0x128c] ss:$48 sps:$4 sm:$0xff]  }
 0x82a   : > { %16942 = vmatpush1.bf16.msra.mxu1 %v24110_v25  ;;  %v16608_v7 = vpop.f32.mrf.mxu0  ;;  %16902 = vmatprep.subr.bf16.mxu0 %v24115_v62  ;;  %v24143_v25 = vld [vmem:[%s25051_s14 + $0xc88] ss:$48 sps:$4 sm:$0xff]   ;;  %v24154_v60 = vld [vmem:[%s25051_s14 + $0x122c] ss:$48 sps:$4 sm:$0xff]  }
 0x82b   : > { %v16649_v3 = vpop.f32.mrf.mxu1  ;;  %16943 = vmatprep.subr.bf16.mxu1 %v24118_v16  ;;  %v27500_v8 = vadd.f32 %v16647_v0, %v16607_v5  ;;  %v16609_v13 = vadd.f32 %v16608_v7, %v27431_v1  ;;  %16932 = vmatprep.mubr.bf16.mxu0 %v25158_v17  ;;  %v24127_v17 = vld [vmem:[%s25051_s14 + $0xdac] ss:$48 sps:$4 sm:$0xff]   ;;  %v24125_v1 = vld [vmem:[%s25051_s14 + $0xda8] ss:$48 sps:$4 sm:$0xff]  }
 0x82c   : > { %16973 = vmatprep.mubr.bf16.mxu1 %v25170_v23  ;;  %v16610_v18 = vpop.f32.mrf.mxu0  ;;  %v24130_v23 = vld [vmem:[%s25051_s14 + $0x13ac] ss:$48 sps:$4 sm:$0xff]   ;;  %v24146_v62 = vld [vmem:[%s25051_s14 + $0x1288] ss:$48 sps:$4 sm:$0xff]  }
 0x82d   : > { %v16651_v32 = vpop.f32.mrf.mxu1  ;;  %v27505_v45 = vadd.f32 %v16649_v3, %v16609_v13  ;;  %16903 = vmatpush1.bf16.msra.mxu0 %v24113_v21  ;;  %v24151_v16 = vld [vmem:[%s25051_s14 + $0xc2c] ss:$48 sps:$4 sm:$0xff]   ;;  %v24149_v0 = vld [vmem:[%s25051_s14 + $0xc28] ss:$48 sps:$4 sm:$0xff]  }
 0x82e   : > { %16944 = vmatpush1.bf16.msra.mxu1 %v24116_v52  ;;  %v16611_v33 = vpop.f32.mrf.mxu0  ;;  %16904 = vmatprep.subr.bf16.mxu0 %v24121_v47  ;;  %v24152_v5 = vld [vmem:[%s25051_s14 + $0x1228] ss:$48 sps:$4 sm:$0xff]   ;;  %v24157_v21 = vld [vmem:[%s25051_s14 + $0x11cc] ss:$48 sps:$4 sm:$0xff]  }
 0x82f   : > { %v16652_v10 = vpop.f32.mrf.mxu1  ;;  %16945 = vmatprep.subr.bf16.mxu1 %v24124_v36  ;;  %v24160_v52 = vld [vmem:[%s25051_s14 + $0x17cc] ss:$48 sps:$4 sm:$0xff]   ;;  %v24155_v7 = vld [vmem:[%s25051_s14 + $0x11c8] ss:$48 sps:$4 sm:$0xff]  }
 0x830   : > { %v24158_v3 = vld [vmem:[%s25051_s14 + $0x17c8] ss:$48 sps:$4 sm:$0xff]   ;;  %v24163_v47 = vld [vmem:[%s25051_s14 + $0x116c] ss:$48 sps:$4 sm:$0xff]  }
 0x831   : > { %16905 = vmatpush1.bf16.msra.mxu0 %v24119_v40  ;;  %v24166_v36 = vld [vmem:[%s25051_s14 + $0x176c] ss:$48 sps:$4 sm:$0xff]   ;;  %v24161_v13 = vld [vmem:[%s25051_s14 + $0x1168] ss:$48 sps:$4 sm:$0xff]  }
 0x832   : > { %16946 = vmatpush1.bf16.msra.mxu1 %v24122_v57  ;;  %16906 = vmatprep.subr.bf16.mxu0 %v24127_v17  ;;  %v24164_v18 = vld [vmem:[%s25051_s14 + $0x1768] ss:$48 sps:$4 sm:$0xff]   ;;  %v24169_v32 = vld [vmem:[%s25051_s14 + $0x110c] ss:$48 sps:$4 sm:$0xff]  }
 0x833   : > { %16947 = vmatprep.subr.bf16.mxu1 %v24130_v23  ;;  %v24172_v40 = vld [vmem:[%s25051_s14 + $0x170c] ss:$48 sps:$4 sm:$0xff]   ;;  %v24167_v57 = vld [vmem:[%s25051_s14 + $0x1108] ss:$48 sps:$4 sm:$0xff]  }
 0x834   : > { %v24170_v33 = vld [vmem:[%s25051_s14 + $0x1708] ss:$48 sps:$4 sm:$0xff]   ;;  %v24175_v10 = vld [vmem:[%s25051_s14 + $0x10ac] ss:$48 sps:$4 sm:$0xff]  }
 0x835   : > { %16907 = vmatpush1.bf16.msra.mxu0 %v24125_v1  ;;  %v24178_v17 = vld [vmem:[%s25051_s14 + $0x16ac] ss:$48 sps:$4 sm:$0xff]   ;;  %v24173_v23 = vld [vmem:[%s25051_s14 + $0x10a8] ss:$48 sps:$4 sm:$0xff]  }
 0x836   : > { %16948 = vmatpush1.bf16.msra.mxu1 %v24128_v39  ;;  %16908 = vmatprep.subr.bf16.mxu0 %v24133_v37  ;;  %v24176_v1 = vld [vmem:[%s25051_s14 + $0x16a8] ss:$48 sps:$4 sm:$0xff]   ;;  %v24181_v39 = vld [vmem:[%s25051_s14 + $0x104c] ss:$48 sps:$4 sm:$0xff]  }
 0x837   : > { %16949 = vmatprep.subr.bf16.mxu1 %v24136_v58  ;;  %v24184_v37 = vld [vmem:[%s25051_s14 + $0x164c] ss:$48 sps:$4 sm:$0xff]   ;;  %v24179_v58 = vld [vmem:[%s25051_s14 + $0x1048] ss:$48 sps:$4 sm:$0xff]  }
 0x839   : > { %16909 = vmatpush1.bf16.msra.mxu0 %v24131_v56  ;;  %v24182_v56 = vld [vmem:[%s25051_s14 + $0x1648] ss:$48 sps:$4 sm:$0xff]  }
 0x83a   : > { %16950 = vmatpush1.bf16.msra.mxu1 %v24134_v20  ;;  %16910 = vmatprep.subr.bf16.mxu0 %v24139_v48  ;;  %v24187_v20 = vld [vmem:[%s25051_s14 + $0xfec] ss:$48 sps:$4 sm:$0xff]  }
 0x83b   : > { %16951 = vmatprep.subr.bf16.mxu1 %v24142_v46  ;;  %v24190_v48 = vld [vmem:[%s25051_s14 + $0x15ec] ss:$48 sps:$4 sm:$0xff]   ;;  %v24185_v46 = vld [vmem:[%s25051_s14 + $0xfe8] ss:$48 sps:$4 sm:$0xff]  }
 0x83d   : > { %16911 = vmatpush1.bf16.msra.mxu0 %v24137_v51  ;;  %v24188_v51 = vld [vmem:[%s25051_s14 + $0x15e8] ss:$48 sps:$4 sm:$0xff]  }
 0x83e   : > { %16952 = vmatpush1.bf16.msra.mxu1 %v24140_v14  ;;  %16912 = vmatprep.subr.bf16.mxu0 %v24145_v11  ;;  %v24193_v14 = vld [vmem:[%s25051_s14 + $0xf8c] ss:$48 sps:$4 sm:$0xff]  }
 0x83f   : > { %16953 = vmatprep.subr.bf16.mxu1 %v24148_v49  ;;  %v24196_v11 = vld [vmem:[%s25051_s14 + $0x158c] ss:$48 sps:$4 sm:$0xff]   ;;  %v24191_v49 = vld [vmem:[%s25051_s14 + $0xf88] ss:$48 sps:$4 sm:$0xff]  }
 0x841   : > { %16913 = vmatpush1.bf16.msra.mxu0 %v24143_v25  ;;  %v24194_v25 = vld [vmem:[%s25051_s14 + $0x1588] ss:$48 sps:$4 sm:$0xff]  }
 0x842   : > { %16954 = vmatpush1.bf16.msra.mxu1 %v24146_v62  ;;  %16914 = vmatprep.subr.bf16.mxu0 %v24151_v16  ;;  %v24199_v62 = vld [vmem:[%s25051_s14 + $0xf2c] ss:$48 sps:$4 sm:$0xff]  }
 0x843   : > { %16955 = vmatprep.subr.bf16.mxu1 %v24154_v60  ;;  %v24202_v16 = vld [vmem:[%s25051_s14 + $0x152c] ss:$48 sps:$4 sm:$0xff]   ;;  %v24197_v60 = vld [vmem:[%s25051_s14 + $0xf28] ss:$48 sps:$4 sm:$0xff]  }
 0x845   : > { %16915 = vmatpush1.bf16.msra.mxu0 %v24149_v0  ;;  %v24200_v0 = vld [vmem:[%s25051_s14 + $0x1528] ss:$48 sps:$4 sm:$0xff]  }
 0x846   : > { %16956 = vmatpush1.bf16.msra.mxu1 %v24152_v5  ;;  %16916 = vmatprep.subr.bf16.mxu0 %v24157_v21  ;;  %v24205_v5 = vld [vmem:[%s25051_s14 + $0x1acc] ss:$48 sps:$4 sm:$0xff]  }
 0x847   : > { %16957 = vmatprep.subr.bf16.mxu1 %v24160_v52  ;;  %v24208_v21 = vld [vmem:[%s25051_s14 + $0x20cc] ss:$48 sps:$4 sm:$0xff]   ;;  %v24203_v52 = vld [vmem:[%s25051_s14 + $0x1ac8] ss:$48 sps:$4 sm:$0xff]  }
 0x849   : > { %16917 = vmatpush2.bf16.msra.mxu0 %v24155_v7  ;;  %v24206_v7 = vld [vmem:[%s25051_s14 + $0x20c8] ss:$48 sps:$4 sm:$0xff]  }
 0x84a   : > { %16958 = vmatpush2.bf16.msra.mxu1 %v24158_v3  ;;  %16918 = vmatprep.subr.bf16.mxu0 %v24163_v47  ;;  %v24211_v3 = vld [vmem:[%s25051_s14 + $0x1a6c] ss:$48 sps:$4 sm:$0xff]  }
 0x84b   : > { %16959 = vmatprep.subr.bf16.mxu1 %v24166_v36  ;;  %v24214_v47 = vld [vmem:[%s25051_s14 + $0x206c] ss:$48 sps:$4 sm:$0xff]  }
 0x84d   : > { %16919 = vmatpush2.bf16.msra.mxu0 %v24161_v13 }
 0x84e   : > { %16960 = vmatpush2.bf16.msra.mxu1 %v24164_v18  ;;  %16920 = vmatprep.subr.bf16.mxu0 %v24169_v32  ;;  %v24209_v32 = vld [vmem:[%s25051_s14 + $0x1a68] ss:$48 sps:$4 sm:$0xff]  }
 0x84f   : > { %16961 = vmatprep.subr.bf16.mxu1 %v24172_v40  ;;  %v24212_v40 = vld [vmem:[%s25051_s14 + $0x2068] ss:$48 sps:$4 sm:$0xff]  }
 0x851   : > { %16921 = vmatpush2.bf16.msra.mxu0 %v24167_v57 }
 0x852   : > { %16962 = vmatpush2.bf16.msra.mxu1 %v24170_v33  ;;  %16922 = vmatprep.subr.bf16.mxu0 %v24175_v10  ;;  %v24217_v10 = vld [vmem:[%s25051_s14 + $0x1a0c] ss:$48 sps:$4 sm:$0xff]  }
 0x853   : > { %16963 = vmatprep.subr.bf16.mxu1 %v24178_v17  ;;  %v24220_v17 = vld [vmem:[%s25051_s14 + $0x200c] ss:$48 sps:$4 sm:$0xff]  }
 0x855   : > { %16923 = vmatpush2.bf16.msra.mxu0 %v24173_v23 }
 0x856   : > { %16964 = vmatpush2.bf16.msra.mxu1 %v24176_v1  ;;  %16924 = vmatprep.subr.bf16.mxu0 %v24181_v39  ;;  %v24215_v39 = vld [vmem:[%s25051_s14 + $0x1a08] ss:$48 sps:$4 sm:$0xff]  }
 0x857   : > { %16965 = vmatprep.subr.bf16.mxu1 %v24184_v37  ;;  %v24218_v37 = vld [vmem:[%s25051_s14 + $0x2008] ss:$48 sps:$4 sm:$0xff]  }
 0x859   : > { %16925 = vmatpush2.bf16.msra.mxu0 %v24179_v58 }
 0x85a   : > { %16966 = vmatpush2.bf16.msra.mxu1 %v24182_v56  ;;  %16926 = vmatprep.subr.bf16.mxu0 %v24187_v20  ;;  %v24224_v20 = vld [vmem:[%s25051_s14 + $0x1fa8] ss:$48 sps:$4 sm:$0xff]  }
 0x85b   : > { %16967 = vmatprep.subr.bf16.mxu1 %v24190_v48  ;;  %v24229_v48 = vld [vmem:[%s25051_s14 + $0x194c] ss:$48 sps:$4 sm:$0xff]  }
 0x85d   : > { %16927 = vmatpush2.bf16.msra.mxu0 %v24185_v46  ;;  %v24232_v46 = vld [vmem:[%s25051_s14 + $0x1f4c] ss:$48 sps:$4 sm:$0xff]  }
 0x85e   : > { %16968 = vmatpush2.bf16.msra.mxu1 %v24188_v51  ;;  %16928 = vmatprep.subr.bf16.mxu0 %v24193_v14  ;;  %v24227_v51 = vld [vmem:[%s25051_s14 + $0x1948] ss:$48 sps:$4 sm:$0xff]  }
 0x85f   : > { %16969 = vmatprep.subr.bf16.mxu1 %v24196_v11  ;;  %v24230_v14 = vld [vmem:[%s25051_s14 + $0x1f48] ss:$48 sps:$4 sm:$0xff]   ;;  %v24235_v11 = vld [vmem:[%s25051_s14 + $0x18ec] ss:$48 sps:$4 sm:$0xff]  }
 0x861   : > { %16929 = vmatpush2.bf16.msra.mxu0 %v24191_v49  ;;  %v24238_v49 = vld [vmem:[%s25051_s14 + $0x1eec] ss:$48 sps:$4 sm:$0xff]  }
 0x862   : > { %16970 = vmatpush2.bf16.msra.mxu1 %v24194_v25  ;;  %16930 = vmatprep.subr.bf16.mxu0 %v24199_v62  ;;  %v24233_v25 = vld [vmem:[%s25051_s14 + $0x18e8] ss:$48 sps:$4 sm:$0xff]  }
 0x863   : > { %16971 = vmatprep.subr.bf16.mxu1 %v24202_v16  ;;  %v24236_v62 = vld [vmem:[%s25051_s14 + $0x1ee8] ss:$48 sps:$4 sm:$0xff]   ;;  %v24241_v16 = vld [vmem:[%s25051_s14 + $0x188c] ss:$48 sps:$4 sm:$0xff]  }
 0x865   : > { %16931 = vmatpush2.bf16.msra.mxu0 %v24197_v60  ;;  %v24244_v60 = vld [vmem:[%s25051_s14 + $0x1e8c] ss:$48 sps:$4 sm:$0xff]  }
 0x866   : > { %16972 = vmatpush2.bf16.msra.mxu1 %v24200_v0  ;;  %16982 = vmatprep.subr.bf16.mxu0 %v24205_v5  ;;  %v24239_v0 = vld [vmem:[%s25051_s14 + $0x1888] ss:$48 sps:$4 sm:$0xff]  }
 0x867   : > { %17023 = vmatprep.subr.bf16.mxu1 %v24208_v21  ;;  %v24242_v5 = vld [vmem:[%s25051_s14 + $0x1e88] ss:$48 sps:$4 sm:$0xff]   ;;  %v24247_v21 = vld [vmem:[%s25051_s14 + $0x182c] ss:$48 sps:$4 sm:$0xff]  }
 0x868   : > { %v16688_v36 = vpop.f32.mrf.mxu0  ;;  %16933 = vmatmul.mubr.bf16.vlgmr.msra.gmra.mxu0 %v25235_v26 }
 0x869   : > { %v16729_v13 = vpop.f32.mrf.mxu1  ;;  %16974 = vmatmul.mubr.bf16.vlgmr.msra.gmra.mxu1 %v25242_v30  ;;  %v16689_v18 = vadd.f32 %v16688_v36, %v27500_v8  ;;  %16983 = vmatpush1.bf16.msra.mxu0 %v24203_v52  ;;  %v24250_v52 = vld [vmem:[%s25051_s14 + $0x1e2c] ss:$48 sps:$4 sm:$0xff]  }
 0x86a   : > { %17024 = vmatpush1.bf16.msra.mxu1 %v24206_v7  ;;  %v16690_v57 = vpop.f32.mrf.mxu0  ;;  %16984 = vmatprep.subr.bf16.mxu0 %v24211_v3  ;;  %v24245_v7 = vld [vmem:[%s25051_s14 + $0x1828] ss:$48 sps:$4 sm:$0xff]   ;;  %v24256_v36 = vld [vmem:[%s25051_s14 + $0x23cc] ss:$48 sps:$4 sm:$0xff]  }
 0x86b   : > { %v16731_v33 = vpop.f32.mrf.mxu1  ;;  %17025 = vmatprep.subr.bf16.mxu1 %v24214_v47  ;;  %v27574_v23 = vadd.f32 %v16729_v13, %v16689_v18  ;;  %v16691_v26 = vadd.f32 %v16690_v57, %v27505_v45  ;;  %17014 = vmatprep.mubr.bf16.mxu0 %v25266_v41  ;;  %v24223_v41 = vld [vmem:[%s25051_s14 + $0x19ac] ss:$48 sps:$4 sm:$0xff]   ;;  %v24221_v45 = vld [vmem:[%s25051_s14 + $0x19a8] ss:$48 sps:$4 sm:$0xff]  }
 0x86c   : > { %17055 = vmatprep.mubr.bf16.mxu1 %v25271_v43  ;;  %v16692_v30 = vpop.f32.mrf.mxu0  ;;  %v24226_v43 = vld [vmem:[%s25051_s14 + $0x1fac] ss:$48 sps:$4 sm:$0xff]   ;;  %v24248_v3 = vld [vmem:[%s25051_s14 + $0x1e28] ss:$48 sps:$4 sm:$0xff]  }
 0x86d   : > { %v16733_v8 = vpop.f32.mrf.mxu1  ;;  %v27579_v1 = vadd.f32 %v16731_v33, %v16691_v26  ;;  %16985 = vmatpush1.bf16.msra.mxu0 %v24209_v32  ;;  %v24253_v47 = vld [vmem:[%s25051_s14 + $0x1dcc] ss:$48 sps:$4 sm:$0xff]   ;;  %v24251_v13 = vld [vmem:[%s25051_s14 + $0x1dc8] ss:$48 sps:$4 sm:$0xff]  }
 0x86e   : > { %17026 = vmatpush1.bf16.msra.mxu1 %v24212_v40  ;;  %v16693_v58 = vpop.f32.mrf.mxu0  ;;  %16986 = vmatprep.subr.bf16.mxu0 %v24217_v10  ;;  %v24254_v18 = vld [vmem:[%s25051_s14 + $0x23c8] ss:$48 sps:$4 sm:$0xff]   ;;  %v24259_v32 = vld [vmem:[%s25051_s14 + $0x1d6c] ss:$48 sps:$4 sm:$0xff]  }
 0x86f   : > { %v16734_v56 = vpop.f32.mrf.mxu1  ;;  %17027 = vmatprep.subr.bf16.mxu1 %v24220_v17  ;;  %v24262_v40 = vld [vmem:[%s25051_s14 + $0x236c] ss:$48 sps:$4 sm:$0xff]   ;;  %v24257_v57 = vld [vmem:[%s25051_s14 + $0x1d68] ss:$48 sps:$4 sm:$0xff]  }
 0x870   : > { %v24260_v33 = vld [vmem:[%s25051_s14 + $0x2368] ss:$48 sps:$4 sm:$0xff]   ;;  %v24265_v10 = vld [vmem:[%s25051_s14 + $0x1d0c] ss:$48 sps:$4 sm:$0xff]  }
 0x871   : > { %16987 = vmatpush1.bf16.msra.mxu0 %v24215_v39  ;;  %v24268_v17 = vld [vmem:[%s25051_s14 + $0x230c] ss:$48 sps:$4 sm:$0xff]   ;;  %v24263_v26 = vld [vmem:[%s25051_s14 + $0x1d08] ss:$48 sps:$4 sm:$0xff]  }
 0x872   : > { %17028 = vmatpush1.bf16.msra.mxu1 %v24218_v37  ;;  %16988 = vmatprep.subr.bf16.mxu0 %v24223_v41  ;;  %v24266_v30 = vld [vmem:[%s25051_s14 + $0x2308] ss:$48 sps:$4 sm:$0xff]   ;;  %v24271_v8 = vld [vmem:[%s25051_s14 + $0x1cac] ss:$48 sps:$4 sm:$0xff]  }
 0x873   : > { %17029 = vmatprep.subr.bf16.mxu1 %v24226_v43  ;;  %v24274_v39 = vld [vmem:[%s25051_s14 + $0x22ac] ss:$48 sps:$4 sm:$0xff]   ;;  %v24269_v37 = vld [vmem:[%s25051_s14 + $0x1ca8] ss:$48 sps:$4 sm:$0xff]  }
 0x874   : > { %v24272_v58 = vld [vmem:[%s25051_s14 + $0x22a8] ss:$48 sps:$4 sm:$0xff]   ;;  %v24277_v56 = vld [vmem:[%s25051_s14 + $0x1c4c] ss:$48 sps:$4 sm:$0xff]  }
 0x875   : > { %16989 = vmatpush1.bf16.msra.mxu0 %v24221_v45  ;;  %v24280_v41 = vld [vmem:[%s25051_s14 + $0x224c] ss:$48 sps:$4 sm:$0xff]   ;;  %v24275_v43 = vld [vmem:[%s25051_s14 + $0x1c48] ss:$48 sps:$4 sm:$0xff]  }
 0x876   : > { %17030 = vmatpush1.bf16.msra.mxu1 %v24224_v20  ;;  %16990 = vmatprep.subr.bf16.mxu0 %v24229_v48  ;;  %v24278_v45 = vld [vmem:[%s25051_s14 + $0x2248] ss:$48 sps:$4 sm:$0xff]   ;;  %v24283_v20 = vld [vmem:[%s25051_s14 + $0x1bec] ss:$48 sps:$4 sm:$0xff]  }
 0x877   : > { %17031 = vmatprep.subr.bf16.mxu1 %v24232_v46  ;;  %v24286_v48 = vld [vmem:[%s25051_s14 + $0x21ec] ss:$48 sps:$4 sm:$0xff]   ;;  %v24281_v46 = vld [vmem:[%s25051_s14 + $0x1be8] ss:$48 sps:$4 sm:$0xff]  }
 0x879   : > { %16991 = vmatpush1.bf16.msra.mxu0 %v24227_v51  ;;  %v24284_v51 = vld [vmem:[%s25051_s14 + $0x21e8] ss:$48 sps:$4 sm:$0xff]  }
 0x87a   : > { %17032 = vmatpush1.bf16.msra.mxu1 %v24230_v14  ;;  %16992 = vmatprep.subr.bf16.mxu0 %v24235_v11  ;;  %v24289_v14 = vld [vmem:[%s25051_s14 + $0x1b8c] ss:$48 sps:$4 sm:$0xff]  }
 0x87b   : > { %17033 = vmatprep.subr.bf16.mxu1 %v24238_v49  ;;  %v24292_v11 = vld [vmem:[%s25051_s14 + $0x218c] ss:$48 sps:$4 sm:$0xff]   ;;  %v24287_v49 = vld [vmem:[%s25051_s14 + $0x1b88] ss:$48 sps:$4 sm:$0xff]  }
 0x87d   : > { %16993 = vmatpush1.bf16.msra.mxu0 %v24233_v25  ;;  %v24290_v25 = vld [vmem:[%s25051_s14 + $0x2188] ss:$48 sps:$4 sm:$0xff]  }
 0x87e   : > { %17034 = vmatpush1.bf16.msra.mxu1 %v24236_v62  ;;  %16994 = vmatprep.subr.bf16.mxu0 %v24241_v16  ;;  %v24295_v62 = vld [vmem:[%s25051_s14 + $0x1b2c] ss:$48 sps:$4 sm:$0xff]  }
 0x87f   : > { %17035 = vmatprep.subr.bf16.mxu1 %v24244_v60  ;;  %v24298_v16 = vld [vmem:[%s25051_s14 + $0x212c] ss:$48 sps:$4 sm:$0xff]   ;;  %v24293_v60 = vld [vmem:[%s25051_s14 + $0x1b28] ss:$48 sps:$4 sm:$0xff]  }
 0x881   : > { %16995 = vmatpush1.bf16.msra.mxu0 %v24239_v0  ;;  %v24296_v0 = vld [vmem:[%s25051_s14 + $0x2128] ss:$48 sps:$4 sm:$0xff]  }
 0x882   : > { %17036 = vmatpush1.bf16.msra.mxu1 %v24242_v5  ;;  %16996 = vmatprep.subr.bf16.mxu0 %v24247_v21  ;;  %v24301_v5 = vld [vmem:[%s25051_s14 + $0x26cc] ss:$48 sps:$4 sm:$0xff]  }
 0x883   : > { %17037 = vmatprep.subr.bf16.mxu1 %v24250_v52  ;;  %v24304_v21 = vld [vmem:[%s25051_s14 + $0x2ccc] ss:$48 sps:$4 sm:$0xff]   ;;  %v24299_v52 = vld [vmem:[%s25051_s14 + $0x26c8] ss:$48 sps:$4 sm:$0xff]  }
 0x885   : > { %16997 = vmatpush1.bf16.msra.mxu0 %v24245_v7  ;;  %v24302_v7 = vld [vmem:[%s25051_s14 + $0x2cc8] ss:$48 sps:$4 sm:$0xff]  }
 0x886   : > { %17038 = vmatpush1.bf16.msra.mxu1 %v24248_v3  ;;  %16998 = vmatprep.subr.bf16.mxu0 %v24253_v47  ;;  %v24307_v3 = vld [vmem:[%s25051_s14 + $0x266c] ss:$48 sps:$4 sm:$0xff]  }
 0x887   : > { %17039 = vmatprep.subr.bf16.mxu1 %v24256_v36  ;;  %v24310_v47 = vld [vmem:[%s25051_s14 + $0x2c6c] ss:$48 sps:$4 sm:$0xff]  }
 0x889   : > { %16999 = vmatpush2.bf16.msra.mxu0 %v24251_v13 }
 0x88a   : > { %17040 = vmatpush2.bf16.msra.mxu1 %v24254_v18  ;;  %17000 = vmatprep.subr.bf16.mxu0 %v24259_v32  ;;  %v24305_v32 = vld [vmem:[%s25051_s14 + $0x2668] ss:$48 sps:$4 sm:$0xff]  }
 0x88b   : > { %17041 = vmatprep.subr.bf16.mxu1 %v24262_v40  ;;  %v24308_v40 = vld [vmem:[%s25051_s14 + $0x2c68] ss:$48 sps:$4 sm:$0xff]  }
 0x88d   : > { %17001 = vmatpush2.bf16.msra.mxu0 %v24257_v57 }
 0x88e   : > { %17042 = vmatpush2.bf16.msra.mxu1 %v24260_v33  ;;  %17002 = vmatprep.subr.bf16.mxu0 %v24265_v10  ;;  %v24313_v10 = vld [vmem:[%s25051_s14 + $0x260c] ss:$48 sps:$4 sm:$0xff]  }
 0x88f   : > { %17043 = vmatprep.subr.bf16.mxu1 %v24268_v17  ;;  %v24316_v17 = vld [vmem:[%s25051_s14 + $0x2c0c] ss:$48 sps:$4 sm:$0xff]  }
 0x891   : > { %17003 = vmatpush2.bf16.msra.mxu0 %v24263_v26 }
 0x892   : > { %17044 = vmatpush2.bf16.msra.mxu1 %v24266_v30  ;;  %17004 = vmatprep.subr.bf16.mxu0 %v24271_v8  ;;  %v24311_v8 = vld [vmem:[%s25051_s14 + $0x2608] ss:$48 sps:$4 sm:$0xff]  }
 0x893   : > { %17045 = vmatprep.subr.bf16.mxu1 %v24274_v39  ;;  %v24314_v39 = vld [vmem:[%s25051_s14 + $0x2c08] ss:$48 sps:$4 sm:$0xff]  }
 0x895   : > { %17005 = vmatpush2.bf16.msra.mxu0 %v24269_v37 }
 0x896   : > { %17046 = vmatpush2.bf16.msra.mxu1 %v24272_v58  ;;  %17006 = vmatprep.subr.bf16.mxu0 %v24277_v56  ;;  %v24320_v56 = vld [vmem:[%s25051_s14 + $0x2ba8] ss:$48 sps:$4 sm:$0xff]  }
 0x897   : > { %17047 = vmatprep.subr.bf16.mxu1 %v24280_v41  ;;  %v24325_v41 = vld [vmem:[%s25051_s14 + $0x254c] ss:$48 sps:$4 sm:$0xff]  }
 0x899   : > { %17007 = vmatpush2.bf16.msra.mxu0 %v24275_v43  ;;  %v24328_v43 = vld [vmem:[%s25051_s14 + $0x2b4c] ss:$48 sps:$4 sm:$0xff]  }
 0x89a   : > { %17048 = vmatpush2.bf16.msra.mxu1 %v24278_v45  ;;  %17008 = vmatprep.subr.bf16.mxu0 %v24283_v20  ;;  %v24323_v45 = vld [vmem:[%s25051_s14 + $0x2548] ss:$48 sps:$4 sm:$0xff]  }
 0x89b   : > { %17049 = vmatprep.subr.bf16.mxu1 %v24286_v48  ;;  %v24326_v20 = vld [vmem:[%s25051_s14 + $0x2b48] ss:$48 sps:$4 sm:$0xff]   ;;  %v24331_v48 = vld [vmem:[%s25051_s14 + $0x24ec] ss:$48 sps:$4 sm:$0xff]  }
 0x89d   : > { %17009 = vmatpush2.bf16.msra.mxu0 %v24281_v46  ;;  %v24334_v46 = vld [vmem:[%s25051_s14 + $0x2aec] ss:$48 sps:$4 sm:$0xff]  }
 0x89e   : > { %17050 = vmatpush2.bf16.msra.mxu1 %v24284_v51  ;;  %17010 = vmatprep.subr.bf16.mxu0 %v24289_v14  ;;  %v24329_v51 = vld [vmem:[%s25051_s14 + $0x24e8] ss:$48 sps:$4 sm:$0xff]  }
 0x89f   : > { %17051 = vmatprep.subr.bf16.mxu1 %v24292_v11  ;;  %v24332_v14 = vld [vmem:[%s25051_s14 + $0x2ae8] ss:$48 sps:$4 sm:$0xff]   ;;  %v24337_v11 = vld [vmem:[%s25051_s14 + $0x248c] ss:$48 sps:$4 sm:$0xff]  }
 0x8a1   : > { %17011 = vmatpush2.bf16.msra.mxu0 %v24287_v49  ;;  %v24340_v49 = vld [vmem:[%s25051_s14 + $0x2a8c] ss:$48 sps:$4 sm:$0xff]  }
 0x8a2   : > { %17052 = vmatpush2.bf16.msra.mxu1 %v24290_v25  ;;  %17012 = vmatprep.subr.bf16.mxu0 %v24295_v62  ;;  %v24335_v25 = vld [vmem:[%s25051_s14 + $0x2488] ss:$48 sps:$4 sm:$0xff]  }
 0x8a3   : > { %17053 = vmatprep.subr.bf16.mxu1 %v24298_v16  ;;  %v24338_v62 = vld [vmem:[%s25051_s14 + $0x2a88] ss:$48 sps:$4 sm:$0xff]   ;;  %v24343_v16 = vld [vmem:[%s25051_s14 + $0x242c] ss:$48 sps:$4 sm:$0xff]  }
 0x8a5   : > { %17013 = vmatpush2.bf16.msra.mxu0 %v24293_v60  ;;  %v24346_v60 = vld [vmem:[%s25051_s14 + $0x2a2c] ss:$48 sps:$4 sm:$0xff]  }
 0x8a6   : > { %17054 = vmatpush2.bf16.msra.mxu1 %v24296_v0  ;;  %17064 = vmatprep.subr.bf16.mxu0 %v24301_v5  ;;  %v24341_v0 = vld [vmem:[%s25051_s14 + $0x2428] ss:$48 sps:$4 sm:$0xff]  }
 0x8a7   : > { %17105 = vmatprep.subr.bf16.mxu1 %v24304_v21  ;;  %v24344_v5 = vld [vmem:[%s25051_s14 + $0x2a28] ss:$48 sps:$4 sm:$0xff]   ;;  %v24349_v21 = vld [vmem:[%s25051_s14 + $0x29cc] ss:$48 sps:$4 sm:$0xff]  }
 0x8a8   : > { %v16770_v36 = vpop.f32.mrf.mxu0  ;;  %17015 = vmatmul.mubr.bf16.vlgmr.msra.gmra.mxu0 %v25336_v50 }
 0x8a9   : > { %v16811_v13 = vpop.f32.mrf.mxu1  ;;  %17056 = vmatmul.mubr.bf16.vlgmr.msra.gmra.mxu1 %v25346_v55  ;;  %v16771_v18 = vadd.f32 %v16770_v36, %v27574_v23  ;;  %17065 = vmatpush1.bf16.msra.mxu0 %v24299_v52  ;;  %v24352_v52 = vld [vmem:[%s25051_s14 + $0x2fcc] ss:$48 sps:$4 sm:$0xff]  }
 0x8aa   : > { %17106 = vmatpush1.bf16.msra.mxu1 %v24302_v7  ;;  %v16772_v57 = vpop.f32.mrf.mxu0  ;;  %17066 = vmatprep.subr.bf16.mxu0 %v24307_v3  ;;  %v24347_v7 = vld [vmem:[%s25051_s14 + $0x29c8] ss:$48 sps:$4 sm:$0xff]   ;;  %v24358_v36 = vld [vmem:[%s25051_s14 + $0x2f6c] ss:$48 sps:$4 sm:$0xff]  }
 0x8ab   : > { %v16813_v33 = vpop.f32.mrf.mxu1  ;;  %17107 = vmatprep.subr.bf16.mxu1 %v24310_v47  ;;  %v27648_v26 = vadd.f32 %v16811_v13, %v16771_v18  ;;  %v16773_v50 = vadd.f32 %v16772_v57, %v27579_v1  ;;  %17096 = vmatprep.mubr.bf16.mxu0 %v25342_v54  ;;  %v24319_v54 = vld [vmem:[%s25051_s14 + $0x25ac] ss:$48 sps:$4 sm:$0xff]   ;;  %v24317_v1 = vld [vmem:[%s25051_s14 + $0x25a8] ss:$48 sps:$4 sm:$0xff]  }
 0x8ac   : > { %17137 = vmatprep.mubr.bf16.mxu1 %v25354_v59  ;;  %v16774_v55 = vpop.f32.mrf.mxu0  ;;  %v24322_v59 = vld [vmem:[%s25051_s14 + $0x2bac] ss:$48 sps:$4 sm:$0xff]   ;;  %v24350_v3 = vld [vmem:[%s25051_s14 + $0x2fc8] ss:$48 sps:$4 sm:$0xff]  }
 0x8ad   : > { %v16815_v23 = vpop.f32.mrf.mxu1  ;;  %v27653_v30 = vadd.f32 %v16813_v33, %v16773_v50  ;;  %17067 = vmatpush1.bf16.msra.mxu0 %v24305_v32  ;;  %v24355_v47 = vld [vmem:[%s25051_s14 + $0x296c] ss:$48 sps:$4 sm:$0xff]   ;;  %v24353_v13 = vld [vmem:[%s25051_s14 + $0x2968] ss:$48 sps:$4 sm:$0xff]  }
 0x8ae   : > { %17108 = vmatpush1.bf16.msra.mxu1 %v24308_v40  ;;  %v16775_v37 = vpop.f32.mrf.mxu0  ;;  %17068 = vmatprep.subr.bf16.mxu0 %v24313_v10  ;;  %v24356_v18 = vld [vmem:[%s25051_s14 + $0x2f68] ss:$48 sps:$4 sm:$0xff]   ;;  %v24361_v32 = vld [vmem:[%s25051_s14 + $0x290c] ss:$48 sps:$4 sm:$0xff]  }
 0x8af   : > { %v16816_v58 = vpop.f32.mrf.mxu1  ;;  %17109 = vmatprep.subr.bf16.mxu1 %v24316_v17  ;;  %v24364_v40 = vld [vmem:[%s25051_s14 + $0x2f0c] ss:$48 sps:$4 sm:$0xff]   ;;  %v24359_v57 = vld [vmem:[%s25051_s14 + $0x2908] ss:$48 sps:$4 sm:$0xff]  }
 0x8b0   : > { %v24362_v33 = vld [vmem:[%s25051_s14 + $0x2f08] ss:$48 sps:$4 sm:$0xff]   ;;  %v24367_v10 = vld [vmem:[%s25051_s14 + $0x28ac] ss:$48 sps:$4 sm:$0xff]  }
 0x8b1   : > { %17069 = vmatpush1.bf16.msra.mxu0 %v24311_v8  ;;  %v24370_v17 = vld [vmem:[%s25051_s14 + $0x2eac] ss:$48 sps:$4 sm:$0xff]   ;;  %v24365_v50 = vld [vmem:[%s25051_s14 + $0x28a8] ss:$48 sps:$4 sm:$0xff]  }
 0x8b2   : > { %17110 = vmatpush1.bf16.msra.mxu1 %v24314_v39  ;;  %17070 = vmatprep.subr.bf16.mxu0 %v24319_v54  ;;  %v24368_v55 = vld [vmem:[%s25051_s14 + $0x2ea8] ss:$48 sps:$4 sm:$0xff]   ;;  %v24373_v23 = vld [vmem:[%s25051_s14 + $0x284c] ss:$48 sps:$4 sm:$0xff]  }
 0x8b3   : > { %17111 = vmatprep.subr.bf16.mxu1 %v24322_v59  ;;  %v24376_v8 = vld [vmem:[%s25051_s14 + $0x2e4c] ss:$48 sps:$4 sm:$0xff]   ;;  %v24371_v39 = vld [vmem:[%s25051_s14 + $0x2848] ss:$48 sps:$4 sm:$0xff]  }
 0x8b4   : > { %v24374_v37 = vld [vmem:[%s25051_s14 + $0x2e48] ss:$48 sps:$4 sm:$0xff]   ;;  %v24379_v58 = vld [vmem:[%s25051_s14 + $0x27ec] ss:$48 sps:$4 sm:$0xff]  }
 0x8b5   : > { %17071 = vmatpush1.bf16.msra.mxu0 %v24317_v1  ;;  %v24382_v54 = vld [vmem:[%s25051_s14 + $0x2dec] ss:$48 sps:$4 sm:$0xff]   ;;  %v24377_v59 = vld [vmem:[%s25051_s14 + $0x27e8] ss:$48 sps:$4 sm:$0xff]  }
 0x8b6   : > { %17112 = vmatpush1.bf16.msra.mxu1 %v24320_v56  ;;  %17072 = vmatprep.subr.bf16.mxu0 %v24325_v41  ;;  %v24380_v1 = vld [vmem:[%s25051_s14 + $0x2de8] ss:$48 sps:$4 sm:$0xff]   ;;  %v24385_v56 = vld [vmem:[%s25051_s14 + $0x278c] ss:$48 sps:$4 sm:$0xff]  }
 0x8b7   : > { %17113 = vmatprep.subr.bf16.mxu1 %v24328_v43  ;;  %v24388_v41 = vld [vmem:[%s25051_s14 + $0x2d8c] ss:$48 sps:$4 sm:$0xff]   ;;  %v24383_v43 = vld [vmem:[%s25051_s14 + $0x2788] ss:$48 sps:$4 sm:$0xff]  }
 0x8b9   : > { %17073 = vmatpush1.bf16.msra.mxu0 %v24323_v45  ;;  %v24386_v45 = vld [vmem:[%s25051_s14 + $0x2d88] ss:$48 sps:$4 sm:$0xff]  }
 0x8ba   : > { %17114 = vmatpush1.bf16.msra.mxu1 %v24326_v20  ;;  %17074 = vmatprep.subr.bf16.mxu0 %v24331_v48  ;;  %v24391_v20 = vld [vmem:[%s25051_s14 + $0x272c] ss:$48 sps:$4 sm:$0xff]  }
 0x8bb   : > { %17115 = vmatprep.subr.bf16.mxu1 %v24334_v46  ;;  %v24394_v48 = vld [vmem:[%s25051_s14 + $0x2d2c] ss:$48 sps:$4 sm:$0xff]   ;;  %v24389_v46 = vld [vmem:[%s25051_s14 + $0x2728] ss:$48 sps:$4 sm:$0xff]  }
 0x8bd   : > { %17075 = vmatpush1.bf16.msra.mxu0 %v24329_v51  ;;  %v24392_v51 = vld [vmem:[%s25051_s14 + $0x2d28] ss:$48 sps:$4 sm:$0xff]  }
 0x8be   : > { %17116 = vmatpush1.bf16.msra.mxu1 %v24332_v14  ;;  %17076 = vmatprep.subr.bf16.mxu0 %v24337_v11  ;;  %v24397_v14 = vld [vmem:[%s25051_s14 + $0x32cc] ss:$48 sps:$4 sm:$0xff]  }
 0x8bf   : > { %17117 = vmatprep.subr.bf16.mxu1 %v24340_v49  ;;  %v24400_v11 = vld [vmem:[%s25051_s14 + $0x38cc] ss:$48 sps:$4 sm:$0xff]   ;;  %v24395_v49 = vld [vmem:[%s25051_s14 + $0x32c8] ss:$48 sps:$4 sm:$0xff]  }
 0x8c1   : > { %17077 = vmatpush1.bf16.msra.mxu0 %v24335_v25  ;;  %v24734_v25 = vld [vmem:[%s25059_s5 + $0x8] sm:$0xf] }
 0x8c2   : > { %17118 = vmatpush1.bf16.msra.mxu1 %v24338_v62  ;;  %17078 = vmatprep.subr.bf16.mxu0 %v24343_v16  ;;  %v2647_v62 = vrot.slane %v24734_v25, %v2614_v63  ;;  %v24398_v16 = vld [vmem:[%s25051_s14 + $0x38c8] ss:$48 sps:$4 sm:$0xff]   ;;  %v24409_v63 = vld [vmem:[%s25051_s14 + $0x320c] ss:$48 sps:$4 sm:$0xff]  }
 0x8c3   : > { %17119 = vmatprep.subr.bf16.mxu1 %v24346_v60  ;;  %v24403_v60 = vld [vmem:[%s25051_s14 + $0x326c] ss:$48 sps:$4 sm:$0xff]  }
 0x8c5   : > { %17079 = vmatpush1.bf16.msra.mxu0 %v24341_v0  ;;  %v24406_v0 = vld [vmem:[%s25051_s14 + $0x386c] ss:$48 sps:$4 sm:$0xff]  }
 0x8c6   : > { %17120 = vmatpush1.bf16.msra.mxu1 %v24344_v5  ;;  %17080 = vmatprep.subr.bf16.mxu0 %v24349_v21  ;;  %v2651_v5 = vrot.slane %v24734_v25, %v2618_v61  ;;  %v24401_v21 = vld [vmem:[%s25051_s14 + $0x3268] ss:$48 sps:$4 sm:$0xff]   ;;  %v24451_v25 = vld [vmem:[%s25051_s14 + $0x356c] ss:$48 sps:$4 sm:$0xff]  }
 0x8c7   : > { %17121 = vmatprep.subr.bf16.mxu1 %v24352_v52  ;;  %v24404_v52 = vld [vmem:[%s25051_s14 + $0x3868] ss:$48 sps:$4 sm:$0xff]  }
 0x8c9   : > { %17081 = vmatpush2.bf16.msra.mxu0 %v24347_v7 }
 0x8ca   : > { %17122 = vmatpush2.bf16.msra.mxu1 %v24350_v3  ;;  %17082 = vmatprep.subr.bf16.mxu0 %v24355_v47 }
 0x8cb   : > { %17123 = vmatprep.subr.bf16.mxu1 %v24358_v36  ;;  %v24412_v36 = vld [vmem:[%s25051_s14 + $0x380c] ss:$48 sps:$4 sm:$0xff]  }
 0x8cd   : > { %17083 = vmatpush2.bf16.msra.mxu0 %v24353_v13 }
 0x8ce   : > { %17124 = vmatpush2.bf16.msra.mxu1 %v24356_v18  ;;  %17084 = vmatprep.subr.bf16.mxu0 %v24361_v32  ;;  %v24407_v32 = vld [vmem:[%s25051_s14 + $0x3208] ss:$48 sps:$4 sm:$0xff]  }
 0x8cf   : > { %17125 = vmatprep.subr.bf16.mxu1 %v24364_v40  ;;  %v24410_v40 = vld [vmem:[%s25051_s14 + $0x3808] ss:$48 sps:$4 sm:$0xff]  }
 0x8d1   : > { %17085 = vmatpush2.bf16.msra.mxu0 %v24359_v57 }
 0x8d2   : > { %17126 = vmatpush2.bf16.msra.mxu1 %v24362_v33  ;;  %17086 = vmatprep.subr.bf16.mxu0 %v24367_v10  ;;  %v24415_v33 = vld [vmem:[%s25051_s14 + $0x31ac] ss:$48 sps:$4 sm:$0xff]  }
 0x8d3   : > { %17127 = vmatprep.subr.bf16.mxu1 %v24370_v17 }
 0x8d5   : > { %17087 = vmatpush2.bf16.msra.mxu0 %v24365_v50  ;;  %v24416_v50 = vld [vmem:[%s25051_s14 + $0x37a8] ss:$48 sps:$4 sm:$0xff]  }
 0x8d6   : > { %17128 = vmatpush2.bf16.msra.mxu1 %v24368_v55  ;;  %17088 = vmatprep.subr.bf16.mxu0 %v24373_v23  ;;  %v24421_v55 = vld [vmem:[%s25051_s14 + $0x314c] ss:$48 sps:$4 sm:$0xff]  }
 0x8d7   : > { %17129 = vmatprep.subr.bf16.mxu1 %v24376_v8  ;;  %v24424_v23 = vld [vmem:[%s25051_s14 + $0x374c] ss:$48 sps:$4 sm:$0xff]   ;;  %v24419_v8 = vld [vmem:[%s25051_s14 + $0x3148] ss:$48 sps:$4 sm:$0xff]  }
 0x8d9   : > { %17089 = vmatpush2.bf16.msra.mxu0 %v24371_v39  ;;  %v24422_v39 = vld [vmem:[%s25051_s14 + $0x3748] ss:$48 sps:$4 sm:$0xff]  }
 0x8da   : > { %17130 = vmatpush2.bf16.msra.mxu1 %v24374_v37  ;;  %17090 = vmatprep.subr.bf16.mxu0 %v24379_v58  ;;  %v24427_v37 = vld [vmem:[%s25051_s14 + $0x30ec] ss:$48 sps:$4 sm:$0xff]  }
 0x8db   : > { %17131 = vmatprep.subr.bf16.mxu1 %v24382_v54  ;;  %v24430_v58 = vld [vmem:[%s25051_s14 + $0x36ec] ss:$48 sps:$4 sm:$0xff]   ;;  %v24425_v54 = vld [vmem:[%s25051_s14 + $0x30e8] ss:$48 sps:$4 sm:$0xff]  }
 0x8dd   : > { %17091 = vmatpush2.bf16.msra.mxu0 %v24377_v59  ;;  %v24428_v59 = vld [vmem:[%s25051_s14 + $0x36e8] ss:$48 sps:$4 sm:$0xff]  }
 0x8de   : > { %17132 = vmatpush2.bf16.msra.mxu1 %v24380_v1  ;;  %17092 = vmatprep.subr.bf16.mxu0 %v24385_v56  ;;  %v24433_v1 = vld [vmem:[%s25051_s14 + $0x308c] ss:$48 sps:$4 sm:$0xff]  }
 0x8df   : > { %17133 = vmatprep.subr.bf16.mxu1 %v24388_v41  ;;  %v24436_v56 = vld [vmem:[%s25051_s14 + $0x368c] ss:$48 sps:$4 sm:$0xff]   ;;  %v24431_v41 = vld [vmem:[%s25051_s14 + $0x3088] ss:$48 sps:$4 sm:$0xff]  }
 0x8e1   : > { %17093 = vmatpush2.bf16.msra.mxu0 %v24383_v43  ;;  %v24434_v43 = vld [vmem:[%s25051_s14 + $0x3688] ss:$48 sps:$4 sm:$0xff]  }
 0x8e2   : > { %17134 = vmatpush2.bf16.msra.mxu1 %v24386_v45  ;;  %17094 = vmatprep.subr.bf16.mxu0 %v24391_v20  ;;  %v24439_v45 = vld [vmem:[%s25051_s14 + $0x302c] ss:$48 sps:$4 sm:$0xff]  }
 0x8e3   : > { %17135 = vmatprep.subr.bf16.mxu1 %v24394_v48  ;;  %v24442_v20 = vld [vmem:[%s25051_s14 + $0x362c] ss:$48 sps:$4 sm:$0xff]   ;;  %v24437_v48 = vld [vmem:[%s25051_s14 + $0x3028] ss:$48 sps:$4 sm:$0xff]  }
 0x8e5   : > { %17095 = vmatpush2.bf16.msra.mxu0 %v24389_v46  ;;  %v24440_v46 = vld [vmem:[%s25051_s14 + $0x3628] ss:$48 sps:$4 sm:$0xff]  }
 0x8e6   : > { %17136 = vmatpush2.bf16.msra.mxu1 %v24392_v51  ;;  %17146 = vmatprep.subr.bf16.mxu0 %v24397_v14  ;;  %v24445_v51 = vld [vmem:[%s25051_s14 + $0x35cc] ss:$48 sps:$4 sm:$0xff]  }
 0x8e7   : > { %17187 = vmatprep.subr.bf16.mxu1 %v24400_v11  ;;  %v24448_v14 = vld [vmem:[%s25051_s14 + $0x3bcc] ss:$48 sps:$4 sm:$0xff]   ;;  %v24443_v11 = vld [vmem:[%s25051_s14 + $0x35c8] ss:$48 sps:$4 sm:$0xff]  }
 0x8e8   : > { %v16852_v7 = vpop.f32.mrf.mxu0  ;;  %17097 = vmatmul.mubr.bf16.vlgmr.msra.gmra.mxu0 %v25432_v15 }
 0x8e9   : > { %v16893_v3 = vpop.f32.mrf.mxu1  ;;  %17138 = vmatmul.mubr.bf16.vlgmr.msra.gmra.mxu1 %v25443_v24  ;;  %v16853_v47 = vadd.f32 %v16852_v7, %v2647_v62  ;;  %17147 = vmatpush1.bf16.msra.mxu0 %v24395_v49  ;;  %v24446_v49 = vld [vmem:[%s25051_s14 + $0x3bc8] ss:$48 sps:$4 sm:$0xff]   ;;  %v24454_v62 = vld [vmem:[%s25051_s14 + $0x3b6c] ss:$48 sps:$4 sm:$0xff]  }
 0x8ea   : > { %17188 = vmatpush1.bf16.msra.mxu1 %v24398_v16  ;;  %v16854_v13 = vpop.f32.mrf.mxu0  ;;  %17148 = vmatprep.subr.bf16.mxu0 %v24403_v60  ;;  %v24449_v16 = vld [vmem:[%s25051_s14 + $0x3568] ss:$48 sps:$4 sm:$0xff]  }
 0x8eb   : > { %v16895_v18 = vpop.f32.mrf.mxu1  ;;  %17189 = vmatprep.subr.bf16.mxu1 %v24406_v0  ;;  %v27729_v42 = vadd.f32 %v16893_v3, %v16853_v47  ;;  %v16855_v61 = vadd.f32 %v16854_v13, %v2651_v5  ;;  %17178 = vmatprep.mubr.bf16.mxu0 %v25439_v22  ;;  %v24418_v22 = vld [vmem:[%s25051_s14 + $0x37ac] ss:$48 sps:$4 sm:$0xff]   ;;  %v24452_v60 = vld [vmem:[%s25051_s14 + $0x3b68] ss:$48 sps:$4 sm:$0xff]  }
 0x8ec   : > { %17219 = vmatprep.mubr.bf16.mxu1 %v25455_v6  ;;  %v16856_v15 = vpop.f32.mrf.mxu0  ;;  %v24413_v6 = vld [vmem:[%s25051_s14 + $0x31a8] ss:$48 sps:$4 sm:$0xff]   ;;  %v24457_v0 = vld [vmem:[%s25051_s14 + $0x350c] ss:$48 sps:$4 sm:$0xff]  }
 0x8ed   : > { %v16897_v24 = vpop.f32.mrf.mxu1  ;;  %v27735_v57 = vadd.f32 %v16895_v18, %v16855_v61  ;;  %17149 = vmatpush1.bf16.msra.mxu0 %v24401_v21  ;;  %v24460_v5 = vld [vmem:[%s25051_s14 + $0x3b0c] ss:$48 sps:$4 sm:$0xff]   ;;  %v27768_v21 = vmul.f32 -1.442695, %v25869_v27  ;;  %v24458_v7 = vld [vmem:[%s25051_s14 + $0x3b08] ss:$48 sps:$4 sm:$0xff]  }
 0x8ee   : > { %17190 = vmatpush1.bf16.msra.mxu1 %v24404_v52  ;;  %v16857_v10 = vpop.f32.mrf.mxu0  ;;  %17150 = vmatprep.subr.bf16.mxu0 %v24409_v63  ;;  %v24455_v52 = vld [vmem:[%s25051_s14 + $0x3508] ss:$48 sps:$4 sm:$0xff]   ;;  %v24463_v3 = vld [vmem:[%s25051_s14 + $0x34ac] ss:$48 sps:$4 sm:$0xff]  }
 0x8ef   : > { %v16898_v17 = vpop.f32.mrf.mxu1  ;;  %17191 = vmatprep.subr.bf16.mxu1 %v24412_v36  ;;  %v24466_v63 = vld [vmem:[%s25051_s14 + $0x3aac] ss:$48 sps:$4 sm:$0xff]   ;;  %v24461_v47 = vld [vmem:[%s25051_s14 + $0x34a8] ss:$48 sps:$4 sm:$0xff]   ;;  %24683 = vpow2.f32 %v27768_v21 }
 0x8f0   : > { %v24464_v36 = vld [vmem:[%s25051_s14 + $0x3aa8] ss:$48 sps:$4 sm:$0xff]   ;;  %v24469_v27 = vld [vmem:[%s25051_s14 + $0x344c] ss:$48 sps:$4 sm:$0xff]  }
 0x8f1   : > { %17151 = vmatpush1.bf16.msra.mxu0 %v24407_v32  ;;  %v24472_v13 = vld [vmem:[%s25051_s14 + $0x3a4c] ss:$48 sps:$4 sm:$0xff]   ;;  %v24467_v18 = vld [vmem:[%s25051_s14 + $0x3448] ss:$48 sps:$4 sm:$0xff]  }
 0x8f2   : > { %17192 = vmatpush1.bf16.msra.mxu1 %v24410_v40  ;;  %17152 = vmatprep.subr.bf16.mxu0 %v24415_v33  ;;  %v24470_v61 = vld [vmem:[%s25051_s14 + $0x3a48] ss:$48 sps:$4 sm:$0xff]   ;;  %v24475_v32 = vld [vmem:[%s25051_s14 + $0x33ec] ss:$48 sps:$4 sm:$0xff]  }
 0x8f3   : > { %17193 = vmatprep.subr.bf16.mxu1 %v24418_v22  ;;  %v24478_v15 = vld [vmem:[%s25051_s14 + $0x39ec] ss:$48 sps:$4 sm:$0xff]   ;;  %v24473_v24 = vld [vmem:[%s25051_s14 + $0x33e8] ss:$48 sps:$4 sm:$0xff]  }
 0x8f4   : > { %v24476_v40 = vld [vmem:[%s25051_s14 + $0x39e8] ss:$48 sps:$4 sm:$0xff]   ;;  %v24481_v33 = vld [vmem:[%s25051_s14 + $0x338c] ss:$48 sps:$4 sm:$0xff]  }
 0x8f5   : > { %17153 = vmatpush1.bf16.msra.mxu0 %v24413_v6  ;;  %v24484_v10 = vld [vmem:[%s25051_s14 + $0x398c] ss:$48 sps:$4 sm:$0xff]   ;;  %v24479_v17 = vld [vmem:[%s25051_s14 + $0x3388] ss:$48 sps:$4 sm:$0xff]  }
 0x8f6   : > { %17194 = vmatpush1.bf16.msra.mxu1 %v24416_v50  ;;  %17154 = vmatprep.subr.bf16.mxu0 %v24421_v55  ;;  %v24482_v22 = vld [vmem:[%s25051_s14 + $0x3988] ss:$48 sps:$4 sm:$0xff]   ;;  %v24487_v6 = vld [vmem:[%s25051_s14 + $0x332c] ss:$48 sps:$4 sm:$0xff]  }
 0x8f7   : > { %17195 = vmatprep.subr.bf16.mxu1 %v24424_v23  ;;  %v24490_v50 = vld [vmem:[%s25051_s14 + $0x392c] ss:$48 sps:$4 sm:$0xff]   ;;  %v24485_v55 = vld [vmem:[%s25051_s14 + $0x3328] ss:$48 sps:$4 sm:$0xff]  }
 0x8f8   : > { %v24488_v23 = vld [vmem:[%s25051_s14 + $0x3928] ss:$48 sps:$4 sm:$0xff]   ;;  %v24553_v21 = vld [vmem:[%s25051_s14 + $0x410c] ss:$48 sps:$4 sm:$0xff]  }
 0x8f9   : > { %17155 = vmatpush1.bf16.msra.mxu0 %v24419_v8  ;;  %v24493_v8 = vld [vmem:[%s25051_s14 + $0x3ecc] ss:$48 sps:$4 sm:$0xff]  }
 0x8fa   : > { %17196 = vmatpush1.bf16.msra.mxu1 %v24422_v39  ;;  %17156 = vmatprep.subr.bf16.mxu0 %v24427_v37  ;;  %v24496_v39 = vld [vmem:[%s25051_s14 + $0x44cc] ss:$48 sps:$4 sm:$0xff]   ;;  %v24491_v37 = vld [vmem:[%s25051_s14 + $0x3ec8] ss:$48 sps:$4 sm:$0xff]  }
 0x8fb   : > { %17197 = vmatprep.subr.bf16.mxu1 %v24430_v58  ;;  %v24494_v58 = vld [vmem:[%s25051_s14 + $0x44c8] ss:$48 sps:$4 sm:$0xff]  }
 0x8fd   : > { %17157 = vmatpush1.bf16.msra.mxu0 %v24425_v54  ;;  %v24499_v54 = vld [vmem:[%s25051_s14 + $0x3e6c] ss:$48 sps:$4 sm:$0xff]  }
 0x8fe   : > { %17198 = vmatpush1.bf16.msra.mxu1 %v24428_v59  ;;  %17158 = vmatprep.subr.bf16.mxu0 %v24433_v1  ;;  %v24502_v59 = vld [vmem:[%s25051_s14 + $0x446c] ss:$48 sps:$4 sm:$0xff]   ;;  %v24497_v1 = vld [vmem:[%s25051_s14 + $0x3e68] ss:$48 sps:$4 sm:$0xff]  }
 0x8ff   : > { %17199 = vmatprep.subr.bf16.mxu1 %v24436_v56  ;;  %v24500_v56 = vld [vmem:[%s25051_s14 + $0x4468] ss:$48 sps:$4 sm:$0xff]  }
 0x901   : > { %17159 = vmatpush1.bf16.msra.mxu0 %v24431_v41 }
 0x902   : > { %17200 = vmatpush1.bf16.msra.mxu1 %v24434_v43  ;;  %17160 = vmatprep.subr.bf16.mxu0 %v24439_v45  ;;  %v24505_v45 = vld [vmem:[%s25051_s14 + $0x3e0c] ss:$48 sps:$4 sm:$0xff]  }
 0x903   : > { %17201 = vmatprep.subr.bf16.mxu1 %v24442_v20 }
 0x905   : > { %17161 = vmatpush1.bf16.msra.mxu0 %v24437_v48  ;;  %v24508_v48 = vld [vmem:[%s25051_s14 + $0x440c] ss:$48 sps:$4 sm:$0xff]  }
 0x906   : > { %17202 = vmatpush1.bf16.msra.mxu1 %v24440_v46  ;;  %17162 = vmatprep.subr.bf16.mxu0 %v24445_v51 }
 0x907   : > { %17203 = vmatprep.subr.bf16.mxu1 %v24448_v14 }
 0x909   : > { %17163 = vmatpush2.bf16.msra.mxu0 %v24443_v11  ;;  %v24503_v11 = vld [vmem:[%s25051_s14 + $0x3e08] ss:$48 sps:$4 sm:$0xff]  }
 0x90a   : > { %17204 = vmatpush2.bf16.msra.mxu1 %v24446_v49  ;;  %17164 = vmatprep.subr.bf16.mxu0 %v24451_v25  ;;  %v24506_v25 = vld [vmem:[%s25051_s14 + $0x4408] ss:$48 sps:$4 sm:$0xff]  }
 0x90b   : > { %17205 = vmatprep.subr.bf16.mxu1 %v24454_v62 }
 0x90d   : > { %17165 = vmatpush2.bf16.msra.mxu0 %v24449_v16  ;;  %v24514_v16 = vld [vmem:[%s25051_s14 + $0x43ac] ss:$48 sps:$4 sm:$0xff]  }
 0x90e   : > { %17206 = vmatpush2.bf16.msra.mxu1 %v24452_v60  ;;  %17166 = vmatprep.subr.bf16.mxu0 %v24457_v0  ;;  %v24512_v60 = vld [vmem:[%s25051_s14 + $0x43a8] ss:$48 sps:$4 sm:$0xff]   ;;  %v24517_v0 = vld [vmem:[%s25051_s14 + $0x3d4c] ss:$48 sps:$4 sm:$0xff]  }
 0x90f   : > { %17207 = vmatprep.subr.bf16.mxu1 %v24460_v5  ;;  %v24520_v5 = vld [vmem:[%s25051_s14 + $0x434c] ss:$48 sps:$4 sm:$0xff]  }
 0x911   : > { %17167 = vmatpush2.bf16.msra.mxu0 %v24455_v52  ;;  %v24515_v52 = vld [vmem:[%s25051_s14 + $0x3d48] ss:$48 sps:$4 sm:$0xff]  }
 0x912   : > { %17208 = vmatpush2.bf16.msra.mxu1 %v24458_v7  ;;  %17168 = vmatprep.subr.bf16.mxu0 %v24463_v3  ;;  %v24518_v7 = vld [vmem:[%s25051_s14 + $0x4348] ss:$48 sps:$4 sm:$0xff]   ;;  %v24523_v3 = vld [vmem:[%s25051_s14 + $0x3cec] ss:$48 sps:$4 sm:$0xff]  }
 0x913   : > { %17209 = vmatprep.subr.bf16.mxu1 %v24466_v63  ;;  %v24526_v63 = vld [vmem:[%s25051_s14 + $0x42ec] ss:$48 sps:$4 sm:$0xff]  }
 0x915   : > { %17169 = vmatpush2.bf16.msra.mxu0 %v24461_v47  ;;  %v24521_v47 = vld [vmem:[%s25051_s14 + $0x3ce8] ss:$48 sps:$4 sm:$0xff]  }
 0x916   : > { %17210 = vmatpush2.bf16.msra.mxu1 %v24464_v36  ;;  %17170 = vmatprep.subr.bf16.mxu0 %v24469_v27  ;;  %v24524_v36 = vld [vmem:[%s25051_s14 + $0x42e8] ss:$48 sps:$4 sm:$0xff]   ;;  %v24529_v27 = vld [vmem:[%s25051_s14 + $0x3c8c] ss:$48 sps:$4 sm:$0xff]  }
 0x917   : > { %17211 = vmatprep.subr.bf16.mxu1 %v24472_v13  ;;  %v24532_v13 = vld [vmem:[%s25051_s14 + $0x428c] ss:$48 sps:$4 sm:$0xff]  }
 0x919   : > { %17171 = vmatpush2.bf16.msra.mxu0 %v24467_v18  ;;  %v24527_v18 = vld [vmem:[%s25051_s14 + $0x3c88] ss:$48 sps:$4 sm:$0xff]  }
 0x91a   : > { %17212 = vmatpush2.bf16.msra.mxu1 %v24470_v61  ;;  %17172 = vmatprep.subr.bf16.mxu0 %v24475_v32  ;;  %v24530_v61 = vld [vmem:[%s25051_s14 + $0x4288] ss:$48 sps:$4 sm:$0xff]   ;;  %v24535_v32 = vld [vmem:[%s25051_s14 + $0x3c2c] ss:$48 sps:$4 sm:$0xff]  }
 0x91b   : > { %17213 = vmatprep.subr.bf16.mxu1 %v24478_v15  ;;  %v24538_v15 = vld [vmem:[%s25051_s14 + $0x422c] ss:$48 sps:$4 sm:$0xff]  }
 0x91d   : > { %17173 = vmatpush2.bf16.msra.mxu0 %v24473_v24  ;;  %v20826_v24 = vmul.f32 -1.442695, %v26318_v9  ;;  %v24539_v9 = vld [vmem:[%s25051_s14 + $0x41c8] ss:$48 sps:$4 sm:$0xff]  }
 0x91e   : > { %17214 = vmatpush2.bf16.msra.mxu1 %v24476_v40  ;;  %17174 = vmatprep.subr.bf16.mxu0 %v24481_v33  ;;  %v24533_v40 = vld [vmem:[%s25051_s14 + $0x3c28] ss:$48 sps:$4 sm:$0xff]  }
 0x91f   : > { %17215 = vmatprep.subr.bf16.mxu1 %v24484_v10  ;;  %v24536_v33 = vld [vmem:[%s25051_s14 + $0x4228] ss:$48 sps:$4 sm:$0xff]   ;;  %v24541_v10 = vld [vmem:[%s25051_s14 + $0x41cc] ss:$48 sps:$4 sm:$0xff]   ;;  %24685 = vpow2.f32 %v20826_v24 }
 0x920   : > { %v24593_v24 = vld [vmem:[%s27719_s7 + $0x30] sm:$0xff]  }
 0x921   : > { %17175 = vmatpush2.bf16.msra.mxu0 %v24479_v17  ;;  %v24544_v17 = vld [vmem:[%s25051_s14 + $0x47cc] ss:$48 sps:$4 sm:$0xff]  }
 0x922   : > { %17216 = vmatpush2.bf16.msra.mxu1 %v24482_v22  ;;  %17176 = vmatprep.subr.bf16.mxu0 %v24487_v6  ;;  %v24542_v22 = vld [vmem:[%s25051_s14 + $0x47c8] ss:$48 sps:$4 sm:$0xff]   ;;  %v24547_v6 = vld [vmem:[%s25051_s14 + $0x416c] ss:$48 sps:$4 sm:$0xff]  }
 0x923   : > { %17217 = vmatprep.subr.bf16.mxu1 %v24490_v50  ;;  %v24550_v50 = vld [vmem:[%s25051_s14 + $0x476c] ss:$48 sps:$4 sm:$0xff]  }
 0x925   : > { %17177 = vmatpush2.bf16.msra.mxu0 %v24485_v55  ;;  %v24545_v55 = vld [vmem:[%s25051_s14 + $0x4168] ss:$48 sps:$4 sm:$0xff]  }
 0x926   : > { %17218 = vmatpush2.bf16.msra.mxu1 %v24488_v23  ;;  %17228 = vmatprep.subr.bf16.mxu0 %v24493_v8  ;;  %v24548_v23 = vld [vmem:[%s25051_s14 + $0x4768] ss:$48 sps:$4 sm:$0xff]   ;;  %v24556_v8 = vld [vmem:[%s25051_s14 + $0x470c] ss:$48 sps:$4 sm:$0xff]  }
 0x927   : > { %17269 = vmatprep.subr.bf16.mxu1 %v24496_v39  ;;  %v24551_v39 = vld [vmem:[%s25051_s14 + $0x4108] ss:$48 sps:$4 sm:$0xff]  }
 0x928   : > { %v16934_v41 = vpop.f32.mrf.mxu0  ;;  %17179 = vmatmul.mubr.bf16.vlgmr.msra.gmra.mxu0 %v25530_v19 }
 0x929   : > { %v16975_v43 = vpop.f32.mrf.mxu1  ;;  %17220 = vmatmul.mubr.bf16.vlgmr.msra.gmra.mxu1 %v25543_v4  ;;  %v16935_v20 = vadd.f32 %v16934_v41, %v27729_v42  ;;  %17229 = vmatpush1.bf16.msra.mxu0 %v24491_v37  ;;  %v24554_v37 = vld [vmem:[%s25051_s14 + $0x4708] ss:$48 sps:$4 sm:$0xff]  }
 0x92a   : > { %17270 = vmatpush1.bf16.msra.mxu1 %v24494_v58  ;;  %v16936_v46 = vpop.f32.mrf.mxu0  ;;  %17230 = vmatprep.subr.bf16.mxu0 %v24499_v54  ;;  %v24559_v58 = vld [vmem:[%s25051_s14 + $0x40ac] ss:$48 sps:$4 sm:$0xff]   ;;  %v24560_v41 = vld [vmem:[%s25051_s14 + $0x46a8] ss:$48 sps:$4 sm:$0xff]  }
 0x92b   : > { %v16977_v51 = vpop.f32.mrf.mxu1  ;;  %17271 = vmatprep.subr.bf16.mxu1 %v24502_v59  ;;  %v27805_v14 = vadd.f32 %v16975_v43, %v16935_v20  ;;  %v16937_v19 = vadd.f32 %v16936_v46, %v27735_v57  ;;  %17260 = vmatprep.mubr.bf16.mxu0 %v25539_v31  ;;  %v24511_v31 = vld [vmem:[%s25051_s14 + $0x3dac] ss:$48 sps:$4 sm:$0xff]   ;;  %v24684_v59 = vpop.eup %24683  ;;  %v24563_v46 = vld [vmem:[%s25051_s14 + $0x4048] ss:$48 sps:$4 sm:$0xff]  }
 0x92c   : > { %17301 = vmatprep.mubr.bf16.mxu1 %v25551_v38  ;;  %v16938_v4 = vpop.f32.mrf.mxu0  ;;  %v24509_v38 = vld [vmem:[%s25051_s14 + $0x3da8] ss:$48 sps:$4 sm:$0xff]   ;;  %v24562_v54 = vld [vmem:[%s25051_s14 + $0x46ac] ss:$48 sps:$4 sm:$0xff]   ;;  %v17347_v20 = vadd.f32 1.0, %v24684_v59 }
 0x92d   : > { %v16979_v42 = vpop.f32.mrf.mxu1  ;;  %v27811_v49 = vadd.f32 %v16977_v51, %v16937_v19  ;;  %17231 = vmatpush1.bf16.msra.mxu0 %v24497_v1  ;;  %v24686_v1 = vpop.eup %24685  ;;  %v24565_v43 = vld [vmem:[%s25051_s14 + $0x404c] ss:$48 sps:$4 sm:$0xff]   ;;  %v24566_v51 = vld [vmem:[%s25051_s14 + $0x4648] ss:$48 sps:$4 sm:$0xff]  }
 0x92e   : > { %17272 = vmatpush1.bf16.msra.mxu1 %v24500_v56  ;;  %v16939_v62 = vpop.f32.mrf.mxu0  ;;  %17232 = vmatprep.subr.bf16.mxu0 %v24505_v45  ;;  %v24557_v56 = vld [vmem:[%s25051_s14 + $0x40a8] ss:$48 sps:$4 sm:$0xff]   ;;  %v24568_v45 = vld [vmem:[%s25051_s14 + $0x464c] ss:$48 sps:$4 sm:$0xff]   ;;  %24687 = vrcp.f32 %v17347_v20 }
 0x92f   : > { %v16980_v57 = vpop.f32.mrf.mxu1  ;;  %17273 = vmatprep.subr.bf16.mxu1 %v24508_v48  ;;  %v17349_v48 = vadd.f32 1.0, %v24686_v1  ;;  %v24571_v19 = vld [vmem:[%s25051_s14 + $0x3fec] ss:$48 sps:$4 sm:$0xff]   ;;  %v24569_v42 = vld [vmem:[%s25051_s14 + $0x3fe8] ss:$48 sps:$4 sm:$0xff]  }
 0x930   : > { %v24574_v4 = vld [vmem:[%s25051_s14 + $0x45ec] ss:$48 sps:$4 sm:$0xff]   ;;  %v24575_v57 = vld [vmem:[%s25051_s14 + $0x3f88] ss:$48 sps:$4 sm:$0xff]  }
 0x931   : > { %17233 = vmatpush1.bf16.msra.mxu0 %v24503_v11  ;;  %24689 = vrcp.f32 %v17349_v48  ;;  %v24572_v11 = vld [vmem:[%s25051_s14 + $0x45e8] ss:$48 sps:$4 sm:$0xff]   ;;  %v24580_v62 = vld [vmem:[%s25051_s14 + $0x458c] ss:$48 sps:$4 sm:$0xff]  }
 0x932   : > { %17274 = vmatpush1.bf16.msra.mxu1 %v24506_v25  ;;  %17234 = vmatprep.subr.bf16.mxu0 %v24511_v31  ;;  %v24577_v25 = vld [vmem:[%s25051_s14 + $0x3f8c] ss:$48 sps:$4 sm:$0xff]   ;;  %v24578_v31 = vld [vmem:[%s25051_s14 + $0x4588] ss:$48 sps:$4 sm:$0xff]  }
 0x933   : > { %17275 = vmatprep.subr.bf16.mxu1 %v24514_v16  ;;  %v20823_v16 = vmul.f32 -1.442695, %v25862_v12  ;;  %v24587_v12 = vld [vmem:[%s27719_s7 + $0x78] sm:$0xff]  }
 0x935   : > { %17235 = vmatpush1.bf16.msra.mxu0 %v24509_v38  ;;  %v24583_v38 = vld [vmem:[%s25051_s14 + $0x3f2c] ss:$48 sps:$4 sm:$0xff]   ;;  %24691 = vpow2.f32 %v20823_v16  ;;  %v24614_v16 = vld [vmem:[%s27719_s7 + $0x88] sm:$0xff]  }
 0x936   : > { %17276 = vmatpush1.bf16.msra.mxu1 %v24512_v60  ;;  %17236 = vmatprep.subr.bf16.mxu0 %v24517_v0  ;;  %v24586_v60 = vld [vmem:[%s25051_s14 + $0x452c] ss:$48 sps:$4 sm:$0xff]   ;;  %v20825_v0 = vmul.f32 -1.442695, %v26311_v34 }
 0x937   : > { %17277 = vmatprep.subr.bf16.mxu1 %v24520_v5  ;;  %v20828_v5 = vmul.f32 -1.442695, %v26761_v35  ;;  %v24589_v35 = vld [vmem:[%s27719_s7 + $0x38] sm:$0xff]  }
 0x938   : > { %24693 = vpow2.f32 %v20825_v0  ;;  %v24616_v0 = vld [vmem:[%s27719_s7 + $0xc0] sm:$0xff]  }
 0x939   : > { %17237 = vmatpush1.bf16.msra.mxu0 %v24515_v52  ;;  %v20830_v52 = vmul.f32 -1.442695, %v27206_v53  ;;  %24695 = vpow2.f32 %v20828_v5  ;;  %v24590_v53 = vld [vmem:[%s27719_s7 + $0xb8] sm:$0xff]   ;;  %v20832_v5 = vmul.f32 -1.442695, %v27653_v30 }
 0x93a   : > { %17278 = vmatpush1.bf16.msra.mxu1 %v24518_v7  ;;  %17238 = vmatprep.subr.bf16.mxu0 %v24523_v3  ;;  %v24581_v7 = vld [vmem:[%s25051_s14 + $0x3f28] ss:$48 sps:$4 sm:$0xff]   ;;  %v24621_v30 = vld [vmem:[%s27719_s7 + $0x138] sm:$0xff]  }
 0x93b   : > { %17279 = vmatprep.subr.bf16.mxu1 %v24526_v63  ;;  %v24584_v3 = vld [vmem:[%s25051_s14 + $0x4528] ss:$48 sps:$4 sm:$0xff]   ;;  %v24588_v63 = vld [vmem:[%s27719_s7 + $0xf8] sm:$0xff]   ;;  %24697 = vpow2.f32 %v20830_v52 }
 0x93c   : > { %v24617_v52 = vld [vmem:[%s27719_s7] sm:$0xff]  }
 0x93d   : > { %17239 = vmatpush1.bf16.msra.mxu0 %v24521_v47  ;;  %v24688_v47 = vpop.eup %24687 }
 0x93e   : > { %17280 = vmatpush1.bf16.msra.mxu1 %v24524_v36  ;;  %17240 = vmatprep.subr.bf16.mxu0 %v24529_v27  ;;  %v24690_v34 = vpop.eup %24689  ;;  %v17383_v36 = vpack.c.bf16 %v24688_v47, %v24688_v47  ;;  %v24591_v27 = vld [vmem:[%s27719_s7 + $0x70] sm:$0xff]  }
 0x93f   : > { %17281 = vmatprep.subr.bf16.mxu1 %v24532_v13  ;;  %v24592_v13 = vld [vmem:[%s27719_s7 + $0xf0] sm:$0xff]  }
 0x941   : > { %17241 = vmatpush1.bf16.msra.mxu0 %v24527_v18 }
 0x942   : > { %17282 = vmatpush1.bf16.msra.mxu1 %v24530_v61  ;;  %17242 = vmatprep.subr.bf16.mxu0 %v24535_v32  ;;  %v17385_v32 = vpack.c.bf16 %v24690_v34, %v24690_v34 }
 0x943   : > { %17283 = vmatprep.subr.bf16.mxu1 %v24538_v15 }
 0x945   : > { %17243 = vmatpush1.bf16.msra.mxu0 %v24533_v40 }
 0x946   : > { %17284 = vmatpush1.bf16.msra.mxu1 %v24536_v33  ;;  %17244 = vmatprep.subr.bf16.mxu0 %v24541_v10  ;;  %v24594_v10 = vld [vmem:[%s27719_s7 + $0xb0] sm:$0xff]  }
 0x947   : > { %17285 = vmatprep.subr.bf16.mxu1 %v24544_v17  ;;  %v24595_v17 = vld [vmem:[%s27719_s7 + $0x68] sm:$0xff]  }
 0x949   : > { %17245 = vmatpush2.bf16.msra.mxu0 %v24539_v9 }
 0x94a   : > { %17286 = vmatpush2.bf16.msra.mxu1 %v24542_v22  ;;  %17246 = vmatprep.subr.bf16.mxu0 %v24547_v6 }
 0x94b   : > { %17287 = vmatprep.subr.bf16.mxu1 %v24550_v50  ;;  %v24597_v50 = vld [vmem:[%s27719_s7 + $0x28] sm:$0xff]  }
 0x94d   : > { %17247 = vmatpush2.bf16.msra.mxu0 %v24545_v55 }
 0x94e   : > { %17288 = vmatpush2.bf16.msra.mxu1 %v24548_v23  ;;  %17248 = vmatprep.subr.bf16.mxu0 %v24553_v21  ;;  %v24598_v21 = vld [vmem:[%s27719_s7 + $0xa8] sm:$0xff]  }
 0x94f   : > { %17289 = vmatprep.subr.bf16.mxu1 %v24556_v8  ;;  %v24599_v8 = vld [vmem:[%s27719_s7 + $0x60] sm:$0xff]  }
 0x951   : > { %17249 = vmatpush2.bf16.msra.mxu0 %v24551_v39  ;;  %v24600_v39 = vld [vmem:[%s27719_s7 + $0xe0] sm:$0xff]  }
 0x952   : > { %17290 = vmatpush2.bf16.msra.mxu1 %v24554_v37  ;;  %17250 = vmatprep.subr.bf16.mxu0 %v24559_v58 }
 0x953   : > { %17291 = vmatprep.subr.bf16.mxu1 %v24562_v54  ;;  %v24601_v54 = vld [vmem:[%s27719_s7 + $0x20] sm:$0xff]  }
 0x955   : > { %17251 = vmatpush2.bf16.msra.mxu0 %v24557_v56  ;;  %v24602_v56 = vld [vmem:[%s27719_s7 + $0xa0] sm:$0xff]  }
 0x956   : > { %17292 = vmatpush2.bf16.msra.mxu1 %v24560_v41  ;;  %17252 = vmatprep.subr.bf16.mxu0 %v24565_v43  ;;  %v24603_v41 = vld [vmem:[%s27719_s7 + $0x58] sm:$0xff]  }
 0x957   : > { %17293 = vmatprep.subr.bf16.mxu1 %v24568_v45  ;;  %v24604_v45 = vld [vmem:[%s27719_s7 + $0xd8] sm:$0xff]  }
 0x959   : > { %17253 = vmatpush2.bf16.msra.mxu0 %v24563_v46  ;;  %v24605_v46 = vld [vmem:[%s27719_s7 + $0x18] sm:$0xff]  }
 0x95a   : > { %17294 = vmatpush2.bf16.msra.mxu1 %v24566_v51  ;;  %17254 = vmatprep.subr.bf16.mxu0 %v24571_v19  ;;  %v24606_v51 = vld [vmem:[%s27719_s7 + $0x98] sm:$0xff]   ;;  %v24607_v19 = vld [vmem:[%s27719_s7 + $0x50] sm:$0xff]  }
 0x95b   : > { %17295 = vmatprep.subr.bf16.mxu1 %v24574_v4  ;;  %v24608_v4 = vld [vmem:[%s27719_s7 + $0xd0] sm:$0xff]  }
 0x95d   : > { %17255 = vmatpush2.bf16.msra.mxu0 %v24569_v42  ;;  %v24609_v42 = vld [vmem:[%s27719_s7 + $0x10] sm:$0xff]  }
 0x95e   : > { %17296 = vmatpush2.bf16.msra.mxu1 %v24572_v11  ;;  %17256 = vmatprep.subr.bf16.mxu0 %v24577_v25  ;;  %v24610_v11 = vld [vmem:[%s27719_s7 + $0x90] sm:$0xff]   ;;  %v24611_v25 = vld [vmem:[%s27719_s7 + $0x48] sm:$0xff]  }
 0x95f   : > { %17297 = vmatprep.subr.bf16.mxu1 %v24580_v62  ;;  %v24612_v62 = vld [vmem:[%s27719_s7 + $0xc8] sm:$0xff]  }
 0x961   : > { %17257 = vmatpush2.bf16.msra.mxu0 %v24575_v57  ;;  %v24613_v57 = vld [vmem:[%s27719_s7 + $0x8] sm:$0xff]  }
 0x962   : > { %17298 = vmatpush2.bf16.msra.mxu1 %v24578_v31  ;;  %17258 = vmatprep.subr.bf16.mxu0 %v24583_v38  ;;  %v20827_v31 = vmul.f32 -1.442695, %v26756_v2  ;;  %v24615_v38 = vld [vmem:[%s27719_s7 + $0x40] sm:$0xff]   ;;  %v24619_v2 = vld [vmem:[%s27719_s7 + $0x178] sm:$0xff]  }
 0x963   : > { %17299 = vmatprep.subr.bf16.mxu1 %v24586_v60  ;;  %v20829_v60 = vmul.f32 -1.442695, %v27201_v29 }
 0x965   : > { %17259 = vmatpush2.bf16.msra.mxu0 %v24581_v7  ;;  %v24618_v7 = vld [vmem:[%s27719_s7 + $0x80] sm:$0xff]  }
 0x966   : > { %17300 = vmatpush2.bf16.msra.mxu1 %v24584_v3  ;;  %20934 = vmatprep.subr.bf16.mxu0 %v24587_v12  ;;  %v24620_v12 = vld [vmem:[%s27719_s7 + $0x1f8] sm:$0xff]  }
 0x967   : > { %20956 = vmatprep.subr.bf16.mxu1 %v24588_v63 }
 0x968   : > { %v17016_v18 = vpop.f32.mrf.mxu0  ;;  %17261 = vmatmul.mubr.bf16.vlgmr.msra.gmra.mxu0 %v25619_v28 }
 0x969   : > { %v17057_v61 = vpop.f32.mrf.mxu1  ;;  %17302 = vmatmul.mubr.bf16.vlgmr.msra.gmra.mxu1 %v25629_v44  ;;  %v17017_v15 = vadd.f32 %v17016_v18, %v27805_v14  ;;  %20935 = vmatpush3.bf16.msra.mxu0 %v24589_v35  ;;  %v24596_v44 = vld [vmem:[%s27719_s7 + $0xe8] sm:$0xff]   ;;  %v24622_v35 = vld [vmem:[%s27719_s7 + $0x1b8] sm:$0xff]  }
 0x96a   : > { %18194 = vmatprep.mubr.bf16.mxu0 %v17383_v36  ;;  %20957 = vmatpush3.bf16.msra.mxu1 %v24590_v53  ;;  %v17018_v40 = vpop.f32.mrf.mxu0  ;;  %v24623_v36 = vld [vmem:[%s27719_s7 + $0x170] sm:$0xff]  }
 0x96b   : > { %18234 = vmatprep.mubr.bf16.mxu1 %v17385_v32  ;;  %v17059_v33 = vpop.f32.mrf.mxu1  ;;  %v27884_v9 = vadd.f32 %v17057_v61, %v17017_v15  ;;  %v17019_v28 = vadd.f32 %v17018_v40, %v27811_v49  ;;  %20936 = vmatprep.subr.bf16.mxu0 %v24591_v27  ;;  %v24692_v49 = vpop.eup %24691  ;;  %v24625_v61 = vld [vmem:[%s27719_s7 + $0x130] sm:$0xff]   ;;  %v24627_v15 = vld [vmem:[%s27719_s7 + $0x168] sm:$0xff]  }
 0x96c   : > { %20958 = vmatprep.subr.bf16.mxu1 %v24592_v13  ;;  %v17020_v14 = vpop.f32.mrf.mxu0  ;;  %v24694_v37 = vpop.eup %24693  ;;  %v17346_v1 = vadd.f32 1.0, %v24692_v49  ;;  %v24624_v13 = vld [vmem:[%s27719_s7 + $0x1f0] sm:$0xff]   ;;  %v24629_v40 = vld [vmem:[%s27719_s7 + $0x128] sm:$0xff]  }
 0x96d   : > { %v17061_v22 = vpop.f32.mrf.mxu1  ;;  %v27888_v6 = vadd.f32 %v17059_v33, %v17019_v28  ;;  %20937 = vmatpush3.bf16.msra.mxu0 %v24593_v24  ;;  %v24696_v58 = vpop.eup %24695  ;;  %v17348_v43 = vadd.f32 1.0, %v24694_v37  ;;  %v24626_v32 = vld [vmem:[%s27719_s7 + $0x1b0] sm:$0xff]   ;;  %v24628_v24 = vld [vmem:[%s27719_s7 + $0x1e8] sm:$0xff]   ;;  %v24632_v28 = vld [vmem:[%s27719_s7 + $0x1e0] sm:$0xff]  }
 0x96e   : > { %20959 = vmatpush3.bf16.msra.mxu1 %v24594_v10  ;;  %v17021_v55 = vpop.f32.mrf.mxu0  ;;  %20938 = vmatprep.subr.bf16.mxu0 %v24595_v17  ;;  %v24698_v59 = vpop.eup %24697  ;;  %v17351_v20 = vadd.f32 1.0, %v24696_v58  ;;  %24699 = vrcp.f32 %v17346_v1  ;;  %v24630_v33 = vld [vmem:[%s27719_s7 + $0x1a8] sm:$0xff]   ;;  %v24631_v10 = vld [vmem:[%s27719_s7 + $0x160] sm:$0xff]   ;;  %v24638_v37 = vld [vmem:[%s27719_s7 + $0x198] sm:$0xff]  }
 0x96f   : > { %v17062_v23 = vpop.f32.mrf.mxu1  ;;  %20960 = vmatprep.subr.bf16.mxu1 %v24596_v44  ;;  %v17353_v48 = vadd.f32 1.0, %v24698_v59  ;;  %24701 = vrcp.f32 %v17348_v43  ;;  %v24633_v22 = vld [vmem:[%s27719_s7 + $0x120] sm:$0xff]   ;;  %v24639_v58 = vld [vmem:[%s27719_s7 + $0x150] sm:$0xff]   ;;  %v24645_v43 = vld [vmem:[%s27719_s7 + $0x108] sm:$0xff]  }
 0x970   : > { %24703 = vrcp.f32 %v17351_v20  ;;  %v24634_v55 = vld [vmem:[%s27719_s7 + $0x1a0] sm:$0xff]   ;;  %v24635_v23 = vld [vmem:[%s27719_s7 + $0x158] sm:$0xff]   ;;  %v24641_v59 = vld [vmem:[%s27719_s7 + $0x110] sm:$0xff]  }
 0x971   : > { %20939 = vmatpush3.bf16.msra.mxu0 %v24597_v50  ;;  %24705 = vrcp.f32 %v17353_v48  ;;  %v24642_v1 = vld [vmem:[%s27719_s7 + $0x190] sm:$0xff]   ;;  %v24646_v20 = vld [vmem:[%s27719_s7 + $0x188] sm:$0xff]   ;;  %v24647_v48 = vld [vmem:[%s27719_s7 + $0x140] sm:$0xff]  }
 0x972   : > { %20961 = vmatpush3.bf16.msra.mxu1 %v24598_v21  ;;  %20940 = vmatprep.subr.bf16.mxu0 %v24599_v8  ;;  %24707 = vpow2.f32 %v20827_v31  ;;  %v24636_v8 = vld [vmem:[%s27719_s7 + $0x1d8] sm:$0xff]  }
 0x973   : > { %20962 = vmatprep.subr.bf16.mxu1 %v24600_v39  ;;  %24709 = vpow2.f32 %v20829_v60  ;;  %v24637_v39 = vld [vmem:[%s27719_s7 + $0x118] sm:$0xff]  }
 0x974   : > { %24711 = vpow2.f32 %v20832_v5  ;;  %v24654_v5 = vld [vmem:[%s27719_s7 + $0x230] sm:$0xff]  }
 0x975   : > { %20941 = vmatpush3.bf16.msra.mxu0 %v24601_v54  ;;  %v24640_v54 = vld [vmem:[%s27719_s7 + $0x1d0] sm:$0xff]  }
 0x976   : > { %20963 = vmatpush3.bf16.msra.mxu1 %v24602_v56  ;;  %20942 = vmatprep.subr.bf16.mxu0 %v24603_v41  ;;  %v24643_v56 = vld [vmem:[%s27719_s7 + $0x148] sm:$0xff]  }
 0x977   : > { %20964 = vmatprep.subr.bf16.mxu1 %v24604_v45  ;;  %v24644_v41 = vld [vmem:[%s27719_s7 + $0x1c8] sm:$0xff]   ;;  %v20831_v45 = vmul.f32 -1.442695, %v27648_v26 }
 0x979   : > { %20943 = vmatpush3.bf16.msra.mxu0 %v24605_v46  ;;  %v24648_v46 = vld [vmem:[%s27719_s7 + $0x1c0] sm:$0xff]  }
 0x97a   : > { %20965 = vmatpush3.bf16.msra.mxu1 %v24606_v51  ;;  %20944 = vmatprep.subr.bf16.mxu0 %v24607_v19  ;;  %v24649_v51 = vld [vmem:[%s27719_s7 + $0x100] sm:$0xff]  }
 0x97b   : > { %20966 = vmatprep.subr.bf16.mxu1 %v24608_v4  ;;  %v24700_v3 = vpop.eup %24699  ;;  %v24650_v19 = vld [vmem:[%s27719_s7 + $0x180] sm:$0xff]   ;;  %v24651_v4 = vld [vmem:[%s27719_s7 + $0x278] sm:$0xff]  }
 0x97c   : > { %v24702_v29 = vpop.eup %24701  ;;  %v17382_v34 = vpack.c.bf16 %v24700_v3, %v24700_v3 }
 0x97d   : > { %20945 = vmatpush3.bf16.msra.mxu0 %v24609_v42  ;;  %v24704_v63 = vpop.eup %24703  ;;  %v17384_v53 = vpack.c.bf16 %v24702_v29, %v24702_v29 }
 0x97e   : > { %20967 = vmatpush3.bf16.msra.mxu1 %v24610_v11  ;;  %20946 = vmatprep.subr.bf16.mxu0 %v24611_v25  ;;  %v24706_v47 = vpop.eup %24705  ;;  %v17387_v27 = vpack.c.bf16 %v24704_v63, %v24704_v63  ;;  %v24652_v25 = vld [vmem:[%s27719_s7 + $0x238] sm:$0xff]  }
 0x97f   : > { %20968 = vmatprep.subr.bf16.mxu1 %v24612_v62  ;;  %v17389_v18 = vpack.c.bf16 %v24706_v47, %v24706_v47  ;;  %v24708_v17 = vpop.eup %24707 }
 0x980   : > { %v24710_v44 = vpop.eup %24709  ;;  %v17350_v50 = vadd.f32 1.0, %v24708_v17  ;;  %v24672_v17 = vld [vmem:[%s27719_s7 + $0x2a8] sm:$0xff]  }
 0x981   : > { %20947 = vmatpush3.bf16.msra.mxu0 %v24613_v57  ;;  %v24712_v14 = vpop.eup %24711  ;;  %v17352_v21 = vadd.f32 1.0, %v24710_v44  ;;  %v24653_v57 = vld [vmem:[%s27719_s7 + $0x270] sm:$0xff]   ;;  %v24665_v44 = vld [vmem:[%s27719_s7 + $0x240] sm:$0xff]  }
 0x982   : > { %20969 = vmatpush3.bf16.msra.mxu1 %v24614_v16  ;;  %20948 = vmatprep.subr.bf16.mxu0 %v24615_v38  ;;  %v17355_v49 = vadd.f32 1.0, %v24712_v14  ;;  %24713 = vrcp.f32 %v17350_v50  ;;  %v24673_v14 = vld [vmem:[%s27719_s7 + $0x2e0] sm:$0xff]  }
 0x983   : > { %20970 = vmatprep.subr.bf16.mxu1 %v24616_v0  ;;  %24715 = vrcp.f32 %v17352_v21  ;;  %v24666_v50 = vld [vmem:[%s27719_s7 + $0x200] sm:$0xff]   ;;  %v24676_v21 = vld [vmem:[%s27719_s7 + $0x298] sm:$0xff]  }
 0x984   : > { %24717 = vrcp.f32 %v17355_v49  ;;  %v24677_v49 = vld [vmem:[%s27719_s7 + $0x2d0] sm:$0xff]  }
 0x985   : > { %20949 = vmatpush3.bf16.msra.mxu0 %v24617_v52  ;;  %24719 = vpow2.f32 %v20831_v45 }
 0x986   : > { %20971 = vmatpush3.bf16.msra.mxu1 %v24618_v7  ;;  %20978 = vmatprep.subr.bf16.mxu0 %v24619_v2  ;;  %v24655_v2 = vld [vmem:[%s27719_s7 + $0x268] sm:$0xff]  }
 0x987   : > { %21000 = vmatprep.subr.bf16.mxu1 %v24620_v12 }
 0x988   : > { %18195 = vmatmul.mubr.bf16.vlgmr.msra.gmra.mxu0 %v17382_v34 }
 0x989   : > { %18235 = vmatmul.mubr.bf16.vlgmr.msra.gmra.mxu1 %v17384_v53  ;;  %20979 = vmatpush3.bf16.msra.mxu0 %v24621_v30  ;;  %v24656_v30 = vld [vmem:[%s27719_s7 + $0x228] sm:$0xff]  }
 0x98a   : > { %18274 = vmatprep.mubr.bf16.mxu0 %v17387_v27  ;;  %21001 = vmatpush3.bf16.msra.mxu1 %v24622_v35  ;;  %v24657_v35 = vld [vmem:[%s27719_s7 + $0x260] sm:$0xff]   ;;  %v24659_v27 = vld [vmem:[%s27719_s7 + $0x258] sm:$0xff]  }
 0x98b   : > { %18314 = vmatprep.mubr.bf16.mxu1 %v17389_v18  ;;  %20980 = vmatprep.subr.bf16.mxu0 %v24623_v36  ;;  %v24658_v36 = vld [vmem:[%s27719_s7 + $0x220] sm:$0xff]   ;;  %v24668_v18 = vld [vmem:[%s27719_s7 + $0x2b8] sm:$0xff]  }
 0x98c   : > { %21002 = vmatprep.subr.bf16.mxu1 %v24624_v13  ;;  %v24667_v13 = vld [vmem:[%s27719_s7 + $0x2f8] sm:$0xff]  }
 0x98d   : > { %20981 = vmatpush3.bf16.msra.mxu0 %v24625_v61  ;;  %v24660_v61 = vld [vmem:[%s27719_s7 + $0x218] sm:$0xff]  }
 0x98e   : > { %21003 = vmatpush3.bf16.msra.mxu1 %v24626_v32  ;;  %20982 = vmatprep.subr.bf16.mxu0 %v24627_v15  ;;  %v24661_v32 = vld [vmem:[%s27719_s7 + $0x250] sm:$0xff]  }
 0x98f   : > { %21004 = vmatprep.subr.bf16.mxu1 %v24628_v24  ;;  %v24714_v42 = vpop.eup %24713  ;;  %v24669_v15 = vld [vmem:[%s27719_s7 + $0x2f0] sm:$0xff]  }
 0x990   : > { %v24716_v11 = vpop.eup %24715  ;;  %v17386_v62 = vpack.c.bf16 %v24714_v42, %v24714_v42  ;;  %v24670_v24 = vld [vmem:[%s27719_s7 + $0x2b0] sm:$0xff]  }
 0x991   : > { %20983 = vmatpush3.bf16.msra.mxu0 %v24629_v40  ;;  %v24718_v26 = vpop.eup %24717  ;;  %v17388_v31 = vpack.c.bf16 %v24716_v11, %v24716_v11  ;;  %v24662_v40 = vld [vmem:[%s27719_s7 + $0x210] sm:$0xff]  }
 0x992   : > { %21005 = vmatpush3.bf16.msra.mxu1 %v24630_v33  ;;  %20984 = vmatprep.subr.bf16.mxu0 %v24631_v10  ;;  %v17391_v60 = vpack.c.bf16 %v24718_v26, %v24718_v26  ;;  %v24720_v53 = vpop.eup %24719  ;;  %v24663_v33 = vld [vmem:[%s27719_s7 + $0x248] sm:$0xff]  }
 0x993   : > { %21006 = vmatprep.subr.bf16.mxu1 %v24632_v28  ;;  %v24671_v10 = vld [vmem:[%s27719_s7 + $0x2e8] sm:$0xff]  }
 0x994   : > { %v24664_v28 = vld [vmem:[%s27719_s7 + $0x208] sm:$0xff]  }
 0x995   : > { %20985 = vmatpush3.bf16.msra.mxu0 %v24633_v22  ;;  %v24674_v22 = vld [vmem:[%s27719_s7 + $0x2a0] sm:$0xff]  }
 0x996   : > { %21007 = vmatpush3.bf16.msra.mxu1 %v24634_v55  ;;  %20986 = vmatprep.subr.bf16.mxu0 %v24635_v23  ;;  %v24675_v55 = vld [vmem:[%s27719_s7 + $0x2d8] sm:$0xff]  }
 0x997   : > { %21008 = vmatprep.subr.bf16.mxu1 %v24636_v8 }
 0x999   : > { %20987 = vmatpush3.bf16.msra.mxu0 %v24637_v39  ;;  %v24678_v39 = vld [vmem:[%s27719_s7 + $0x290] sm:$0xff]  }
 0x99a   : > { %21009 = vmatpush3.bf16.msra.mxu1 %v24638_v37  ;;  %20988 = vmatprep.subr.bf16.mxu0 %v24639_v58  ;;  %v24679_v37 = vld [vmem:[%s27719_s7 + $0x2c8] sm:$0xff]  }
 0x99b   : > { %21010 = vmatprep.subr.bf16.mxu1 %v24640_v54  ;;  %v24680_v58 = vld [vmem:[%s27719_s7 + $0x288] sm:$0xff]   ;;  %v24681_v54 = vld [vmem:[%s27719_s7 + $0x2c0] sm:$0xff]  }
 0x99d   : > { %20989 = vmatpush3.bf16.msra.mxu0 %v24641_v59  ;;  %v24682_v59 = vld [vmem:[%s27719_s7 + $0x280] sm:$0xff]  }
 0x99e   : > { %21011 = vmatpush3.bf16.msra.mxu1 %v24642_v1  ;;  %20990 = vmatprep.subr.bf16.mxu0 %v24643_v56 }
 0x99f   : > { %21012 = vmatprep.subr.bf16.mxu1 %v24644_v41 }
 0x9a1   : > { %20991 = vmatpush3.bf16.msra.mxu0 %v24645_v43 }
 0x9a2   : > { %21013 = vmatpush3.bf16.msra.mxu1 %v24646_v20  ;;  %20992 = vmatprep.subr.bf16.mxu0 %v24647_v48 }
 0x9a3   : > { %21014 = vmatprep.subr.bf16.mxu1 %v24648_v46 }
 0x9a5   : > { %20993 = vmatpush3.bf16.msra.mxu0 %v24649_v51 }
 0x9a6   : > { %21015 = vmatpush3.bf16.msra.mxu1 %v24650_v19  ;;  %21022 = vmatprep.subr.bf16.mxu0 %v24651_v4 }
 0x9a7   : > { %21044 = vmatprep.subr.bf16.mxu1 %v24667_v13 }
 0x9a8   : > { %v17098_v16 = vpop.f32.mrf.mxu0  ;;  %18275 = vmatmul.mubr.bf16.vlgmr.msra.gmra.mxu0 %v17386_v62 }
 0x9a9   : > { %v17139_v38 = vpop.f32.mrf.mxu1  ;;  %v17099_v0 = vadd.f32 %v17098_v16, %v27884_v9  ;;  %18315 = vmatmul.mubr.bf16.vlgmr.msra.gmra.mxu1 %v17388_v31  ;;  %21023 = vmatpush3.bf16.msra.mxu0 %v24652_v25 }
 0x9aa   : > { %18354 = vmatprep.mubr.bf16.mxu0 %v17391_v60  ;;  %v17100_v52 = vpop.f32.mrf.mxu0  ;;  %21024 = vmatprep.subr.bf16.mxu0 %v24653_v57 }
 0x9ab   : > { %v17141_v7 = vpop.f32.mrf.mxu1  ;;  %v27954_v3 = vadd.f32 %v17139_v38, %v17099_v0  ;;  %v17101_v12 = vadd.f32 %v17100_v52, %v27888_v6  ;;  %v17354_v6 = vadd.f32 1.0, %v24720_v53  ;;  %21045 = vmatpush3.bf16.msra.mxu1 %v24668_v18 }
 0x9ac   : > { %v17102_v29 = vpop.f32.mrf.mxu0  ;;  %21046 = vmatprep.subr.bf16.mxu1 %v24669_v15 }
 0x9ad   : > { %v17143_v63 = vpop.f32.mrf.mxu1  ;;  %v27957_v9 = vadd.f32 %v17141_v7, %v17101_v12  ;;  %21025 = vmatpush3.bf16.msra.mxu0 %v24654_v5  ;;  %24721 = vrcp.f32 %v17354_v6 }
 0x9ae   : > { %v17103_v47 = vpop.f32.mrf.mxu0  ;;  %21026 = vmatprep.subr.bf16.mxu0 %v24655_v2 }
 0x9af   : > { %v17144_v34 = vpop.f32.mrf.mxu1  ;;  %21047 = vmatpush3.bf16.msra.mxu1 %v24670_v24 }
 0x9b0   : > { %21048 = vmatprep.subr.bf16.mxu1 %v24671_v10 }
 0x9b1   : > { %21027 = vmatpush3.bf16.msra.mxu0 %v24656_v30 }
 0x9b2   : > { %21028 = vmatprep.subr.bf16.mxu0 %v24657_v35 }
 0x9b3   : > { %21049 = vmatpush3.bf16.msra.mxu1 %v24672_v17 }
 0x9b4   : > { %21050 = vmatprep.subr.bf16.mxu1 %v24673_v14 }
 0x9b5   : > { %21029 = vmatpush3.bf16.msra.mxu0 %v24658_v36 }
 0x9b6   : > { %21030 = vmatprep.subr.bf16.mxu0 %v24659_v27 }
 0x9b7   : > { %21051 = vmatpush3.bf16.msra.mxu1 %v24674_v22 }
 0x9b8   : > { %21052 = vmatprep.subr.bf16.mxu1 %v24675_v55 }
 0x9b9   : > { %21031 = vmatpush3.bf16.msra.mxu0 %v24660_v61 }
 0x9ba   : > { %21032 = vmatprep.subr.bf16.mxu0 %v24661_v32  ;;  %v24722_v23 = vpop.eup %24721 }
 0x9bb   : > { %21053 = vmatpush3.bf16.msra.mxu1 %v24676_v21  ;;  %v17390_v8 = vpack.c.bf16 %v24722_v23, %v24722_v23 }
 0x9bc   : > { %21054 = vmatprep.subr.bf16.mxu1 %v24677_v49 }
 0x9bd   : > { %21033 = vmatpush3.bf16.msra.mxu0 %v24662_v40 }
 0x9be   : > { %21034 = vmatprep.subr.bf16.mxu0 %v24663_v33 }
 0x9bf   : > { %21055 = vmatpush3.bf16.msra.mxu1 %v24678_v39 }
 0x9c0   : > { %21056 = vmatprep.subr.bf16.mxu1 %v24679_v37 }
 0x9c1   : > { %21035 = vmatpush3.bf16.msra.mxu0 %v24664_v28 }
 0x9c2   : > { %21036 = vmatprep.subr.bf16.mxu0 %v24665_v44 }
 0x9c3   : > { %21057 = vmatpush3.bf16.msra.mxu1 %v24680_v58 }
 0x9c4   : > { %21058 = vmatprep.subr.bf16.mxu1 %v24681_v54 }
 0x9c5   : > { %21037 = vmatpush3.bf16.msra.mxu0 %v24666_v50 }
 0x9c7   : > { %21059 = vmatpush3.bf16.msra.mxu1 %v24682_v59 }
 0x9c8   : > { %18355 = vmatmul.mubr.bf16.vlgmr.msra.gmra.mxu0 %v17390_v8 }
 0x9e8   : > { %v17180_v1 = vpop.f32.mrf.mxu0 }
 0x9e9   : > { %v17221_v56 = vpop.f32.mrf.mxu1  ;;  %v17181_v41 = vadd.f32 %v17180_v1, %v27954_v3 }
 0x9ea   : > { %v17182_v43 = vpop.f32.mrf.mxu0 }
 0x9eb   : > { %v17223_v45 = vpop.f32.mrf.mxu1  ;;  %v17222_v20 = vadd.f32 %v17221_v56, %v17181_v41  ;;  %v17183_v4 = vadd.f32 %v17182_v43, %v27957_v9 }
 0x9ec   : > { %v17184_v48 = vpop.f32.mrf.mxu0 }
 0x9ed   : > { %v17225_v46 = vpop.f32.mrf.mxu1  ;;  %v17224_v26 = vadd.f32 %v17223_v45, %v17183_v4 }
 0x9ee   : > { %v17185_v51 = vpop.f32.mrf.mxu0 }
 0x9ef   : > { %v17226_v19 = vpop.f32.mrf.mxu1 }
 0xa28   : > { %v17262_v42 = vpop.f32.mrf.mxu0 }
 0xa29   : > { %v17303_v11 = vpop.f32.mrf.mxu1  ;;  %v17263_v25 = vadd.f32 %v17262_v42, %v17222_v20 }
 0xa2a   : > { %v17264_v62 = vpop.f32.mrf.mxu0 }
 0xa2b   : > { %v17305_v57 = vpop.f32.mrf.mxu1  ;;  %v17304_v31 = vadd.f32 %v17303_v11, %v17263_v25  ;;  %v17265_v16 = vadd.f32 %v17264_v62, %v17224_v26 }
 0xa2c   : > { %v17266_v38 = vpop.f32.mrf.mxu0 }
 0xa2d   : > { %v17307_v60 = vpop.f32.mrf.mxu1  ;;  %v20833_v0 = vmul.f32 -1.442695, %v17304_v31  ;;  %v17306_v5 = vadd.f32 %v17305_v57, %v17265_v16 }
 0xa2e   : > { %v17267_v52 = vpop.f32.mrf.mxu0 }
 0xa2f   : > { %v17308_v7 = vpop.f32.mrf.mxu1  ;;  %24723 = vpow2.f32 %v20833_v0  ;;  %v20834_v2 = vmul.f32 -1.442695, %v17306_v5 }
 0xa31   : > { %24725 = vpow2.f32 %v20834_v2 }
 0xa3c   : > { %v24724_v3 = vpop.eup %24723 }
 0xa3d   : > { %v17356_v12 = vadd.f32 1.0, %v24724_v3 }
 0xa3e   : > { %v24726_v29 = vpop.eup %24725 }
 0xa3f   : > { %v17357_v63 = vadd.f32 1.0, %v24726_v29  ;;  %24727 = vrcp.f32 %v17356_v12 }
 0xa41   : > { %24729 = vrcp.f32 %v17357_v63 }
 0xa48   : > { %v20950_v9 = vpop.f32.mrf.mxu0 }
 0xa49   : > { %v20972_v30 = vpop.f32.mrf.mxu1 }
 0xa4a   : > { %v20951_v47 = vpop.f32.mrf.mxu0 }
 0xa4b   : > { %v20952_v34 = vadd.f32 %v20951_v47, %v20950_v9  ;;  %v20973_v35 = vpop.f32.mrf.mxu1 }
 0xa4c   : > { %v20974_v53 = vadd.f32 %v20973_v35, %v20972_v30  ;;  %v20953_v36 = vpop.f32.mrf.mxu0  ;;  %v24728_v6 = vpop.eup %24727 }
 0xa4d   : > { %v20975_v27 = vpop.f32.mrf.mxu1  ;;  %v17392_v24 = vpack.c.bf16 %v24728_v6, %v24728_v6 }
 0xa4e   : > { %v24730_v13 = vpop.eup %24729  ;;  %v18237_v18 = vadd.f32 %v20974_v53, %v20952_v34  ;;  %v20954_v61 = vpop.f32.mrf.mxu0 }
 0xa4f   : > { %v20976_v32 = vpop.f32.mrf.mxu1  ;;  %v17393_v15 = vpack.c.bf16 %v24730_v13, %v24730_v13 }
 0xa51   : > { %18394 = vmatprep.mubr.bf16.mxu1 %v17393_v15 }
 0xa52   : > { %18395 = vmatmul.mubr.bf16.vlgmr.msra.gmra.mxu1 %v17392_v24 }
 0xa68   : > { %v20994_v40 = vpop.f32.mrf.mxu0 }
 0xa69   : > { %v21016_v33 = vpop.f32.mrf.mxu1 }
 0xa6a   : > { %v20995_v10 = vpop.f32.mrf.mxu0 }
 0xa6b   : > { %v20996_v17 = vadd.f32 %v20995_v10, %v20994_v40  ;;  %v21017_v28 = vpop.f32.mrf.mxu1 }
 0xa6c   : > { %v21018_v44 = vadd.f32 %v21017_v28, %v21016_v33  ;;  %v20997_v14 = vpop.f32.mrf.mxu0 }
 0xa6d   : > { %v18277_v22 = vadd.f32 %v20996_v17, %v18237_v18  ;;  %v21019_v50 = vpop.f32.mrf.mxu1 }
 0xa6e   : > { %v20998_v55 = vpop.f32.mrf.mxu0 }
 0xa6f   : > { %v18317_v23 = vadd.f32 %v21018_v44, %v18277_v22  ;;  %v21020_v21 = vpop.f32.mrf.mxu1 }
 0xa88   : > { %v21038_v8 = vpop.f32.mrf.mxu0 }
 0xa8a   : > { %v21039_v49 = vpop.f32.mrf.mxu0 }
 0xa8b   : > { %v21040_v39 = vadd.f32 %v21039_v49, %v21038_v8 }
 0xa8c   : > { %v21041_v37 = vpop.f32.mrf.mxu0 }
 0xa8d   : > { %v18357_v58 = vadd.f32 %v21040_v39, %v18317_v23 }
 0xa8e   : > { %v21042_v54 = vpop.f32.mrf.mxu0 }
 0xb12   : > { %v21060_v59 = vpop.f32.mrf.mxu1 }
 0xb14   : > { %v21061_v1 = vpop.f32.mrf.mxu1 }
 0xb15   : > { %v21062_v56 = vadd.f32 %v21061_v1, %v21060_v59 }
 0xb16   : > { %v21063_v41 = vpop.f32.mrf.mxu1 }
 0xb17   : > { %v18397_v43 = vadd.f32 %v21062_v56, %v18357_v58 }
 0xb18   : > { %v21064_v45 = vpop.f32.mrf.mxu1 }
 0xb19   : > { %18402 = vst [vmem:[%s291_s28] sm:$0x3] %v18397_v43 }
 0xb1a PF: > { %p17_p4 = scmp.ge.s32.totalorder %s24914_s20, 4   ;;  %s28019_s15 = smov %s24849_s16 }
 0xb1b   : > { %s28020_s16 = smov %s24853_s17  ;;  %s28021_s17 = smov %s24924_s23 }
 0xb1c   : > { %s28022_s18 = smov %s24914_s20  ;;  %19 = sbr.rel (!%p17_p4) target bundleno = 5 (0x5), region = 100 }
 0xb21   :  { %18422 = vsyncpa [#allocation3], 1 }
 0xb22   :  { %18424 = vsyncpa [#allocation3 + $0x1], 1 }
 0xb23   :  { %18425 = vsyncpa [#allocation5], 1 }
 0xb24   :  { %18427 = vsyncpa [#allocation5 + $0x1], 1 }

</bundles_post_ra>
